<compile_context>
chip_gen: v5e
topology: v5e:2x2
jax: 0.10.0
libtpu: 0.0.40
codegen_flags: <defaults>
</compile_context>

<pallas_src>
import jax
import jax.numpy as jnp
from jax.experimental import pallas as pl
from jax.experimental.pallas import tpu as pltpu

IN_DIM = 3
HIDDEN = 100
OUT_DIM = 125557
LEAKY_SLOPE = 0.02
LN_EPS = 1e-5
K_PAD_INT8 = 128          # int8 tiles pack 32 sublanes -> 100 rows pad to 128 anyway


def _chip_kind():
    try:
        return jax.devices()[0].device_kind.lower()
    except Exception:
        return ""


def _is_v5e_or_v6e(kind):
    return ("v5 lite" in kind or "v5e" in kind or "v6e" in kind or "v6 lite" in kind)


_KIND = _chip_kind()
# "int8" (v5e/v6e int8 MXU), "bf16" (portable weight-only), or "f32" (exact).
MM_FORMAT = "int8" if _is_v5e_or_v6e(_KIND) else "bf16"
TILE_N = 32768 if _is_v5e_or_v6e(_KIND) else 16384
OUT_DTYPE = jnp.float32   # jnp.bfloat16 halves writeback if acceptable downstream


# ---------------------------------------------------------------------------
# Head math (Linear -> LeakyReLU -> LayerNorm, twice) -- shared by the Pallas
# kernel and the pure-JAX reference so the self-consistency check is tight.
# ---------------------------------------------------------------------------
def _leaky_ln(h, g, be):
    h = jnp.where(h > 0, h, LEAKY_SLOPE * h)
    mu = jnp.mean(h, axis=-1, keepdims=True)
    var = jnp.mean((h - mu) * (h - mu), axis=-1, keepdims=True)
    return (h - mu) * jax.lax.rsqrt(var + LN_EPS) * g + be


def _head_math(x, w1, b1, g1, be1, w2, b2, g2, be2):
    h = jnp.dot(x, w1, preferred_element_type=jnp.float32) + b1
    h = _leaky_ln(h, g1, be1)
    h = jnp.dot(h, w2, preferred_element_type=jnp.float32) + b2
    return _leaky_ln(h, g2, be2)


def _head_kernel(x_ref, w1_ref, b1_ref, g1_ref, be1_ref,
                 w2_ref, b2_ref, g2_ref, be2_ref, h_ref):
    h_ref[...] = _head_math(
        x_ref[...], w1_ref[...], b1_ref[...], g1_ref[...], be1_ref[...],
        w2_ref[...], b2_ref[...], g2_ref[...], be2_ref[...])


# ---------------------------------------------------------------------------
# Projection kernels: one output-column tile per grid step.
# ---------------------------------------------------------------------------
def _proj_kernel(h_ref, w_ref, b_ref, o_ref):
    o_ref[...] = (
        jnp.dot(h_ref[...], w_ref[...], preferred_element_type=jnp.float32)
        + b_ref[...]
    ).astype(o_ref.dtype)


def _proj_int8_kernel(h_ref, hs_ref, w_ref, ws_ref, b_ref, o_ref):
    acc = jnp.dot(h_ref[...], w_ref[...], preferred_element_type=jnp.int32)
    o_ref[...] = (
        acc.astype(jnp.float32) * (hs_ref[...] * ws_ref[...]) + b_ref[...]
    ).astype(o_ref.dtype)


# ---------------------------------------------------------------------------
# Symmetric int8 quantization helpers.
# ---------------------------------------------------------------------------
def _quantize_cols(w):          # per-output-column scales for W3
    ws = jnp.max(jnp.abs(w), axis=0, keepdims=True) / 127.0
    ws = jnp.maximum(ws, 1e-12)
    wq = jnp.clip(jnp.round(w / ws), -127.0, 127.0).astype(jnp.int8)
    return wq, ws


def _quantize_rows(h):          # dynamic per-row scales for the activations
    hs = jnp.max(jnp.abs(h), axis=-1, keepdims=True) / 127.0
    hs = jnp.maximum(hs, 1e-12)
    hq = jnp.clip(jnp.round(h / hs), -127.0, 127.0).astype(jnp.int8)
    return hq, hs


# ---------------------------------------------------------------------------
# Wrappers
# ---------------------------------------------------------------------------
def _head_forward(params, x):
    B = x.shape[0]
    # Tiny arrays: whole-array-in-VMEM pallas_call, single step.
    return pl.pallas_call(
        _head_kernel,
        out_shape=jax.ShapeDtypeStruct((B, HIDDEN), jnp.float32),
    )(x, params["w1"], params["b1"], params["g1"], params["be1"],
      params["w2"], params["b2"], params["g2"], params["be2"])


def _projection_forward(params, h):
    B = h.shape[0]
    n_tiles = pl.cdiv(OUT_DIM, TILE_N)
    const = lambda j: (0, 0)      # non-streaming operands: same block every step
    out_bytes = B * OUT_DIM * jnp.dtype(OUT_DTYPE).itemsize
    compiler_params = pltpu.CompilerParams(
        dimension_semantics=("parallel",),   # megacore splits the N tiles
        vmem_limit_bytes=(64 << 20) if TILE_N >= 32768 else None,
    )

    if MM_FORMAT == "int8":
        hq, hs = _quantize_rows(h)
        hq = jnp.pad(hq, ((0, 0), (0, K_PAD_INT8 - HIDDEN)))   # zero rows: no effect
        cost = pl.CostEstimate(
            flops=2 * B * HIDDEN * OUT_DIM,
            transcendentals=0,
            bytes_accessed=int(K_PAD_INT8 * OUT_DIM + 2 * OUT_DIM * 4 + out_bytes),
        )
        return pl.pallas_call(
            _proj_int8_kernel,
            out_shape=jax.ShapeDtypeStruct((B, OUT_DIM), OUT_DTYPE),
            grid_spec=pltpu.PrefetchScalarGridSpec(
                num_scalar_prefetch=0,
                grid=(n_tiles,),
                in_specs=[
                    pl.BlockSpec((B, K_PAD_INT8), const),              # h (int8)
                    pl.BlockSpec((B, 1), const),                       # h row scales
                    # Last N block is partially OOB: its garbage columns only
                    # feed output lanes that Pallas masks on the store (each
                    # output column depends only on its own w3/ws/b3 column).
                    pl.BlockSpec((K_PAD_INT8, TILE_N), lambda j: (0, j)),  # w3 tile
                    pl.BlockSpec((1, TILE_N), lambda j: (0, j)),       # w3 col scales
                    pl.BlockSpec((1, TILE_N), lambda j: (0, j)),       # b3 tile
                ],
                out_specs=pl.BlockSpec((B, TILE_N), lambda j: (0, j)),
            ),
            compiler_params=compiler_params,
            cost_estimate=cost,
        )(hq, hs, params["w3q"], params["w3s"], params["b3"])

    # bf16 / f32 weight path (portable; used on v7x / v4 / unknown chips).
    w3 = params["w3"]
    hc = h.astype(w3.dtype)
    cost = pl.CostEstimate(
        flops=2 * B * HIDDEN * OUT_DIM,
        transcendentals=0,
        bytes_accessed=int(HIDDEN * OUT_DIM * w3.dtype.itemsize
                           + OUT_DIM * 4 + out_bytes),
    )
    return pl.pallas_call(
        _proj_kernel,
        out_shape=jax.ShapeDtypeStruct((B, OUT_DIM), OUT_DTYPE),
        grid_spec=pltpu.PrefetchScalarGridSpec(
            num_scalar_prefetch=0,
            grid=(n_tiles,),
            in_specs=[
                pl.BlockSpec((B, HIDDEN), const),                      # h
                pl.BlockSpec((HIDDEN, TILE_N), lambda j: (0, j)),      # w3 tile
                pl.BlockSpec((1, TILE_N), lambda j: (0, j)),           # b3 tile
            ],
            out_specs=pl.BlockSpec((B, TILE_N), lambda j: (0, j)),
        ),
        compiler_params=compiler_params,
        cost_estimate=cost,
    )(hc, w3, params["b3"])


@jax.jit
def regression_forward(params, x):
    h = _head_forward(params, x)
    return _projection_forward(params, h)


# ---------------------------------------------------------------------------
# Parameter init (deterministic, PyTorch-style uniform(-1/sqrt(fan_in), ...))
# ---------------------------------------------------------------------------
def init_params(key):
    def linear(k, fan_in, fan_out):
        kw, kb = jax.random.split(k)
        bound = 1.0 / (fan_in ** 0.5)
        w = jax.random.uniform(kw, (fan_in, fan_out), jnp.float32, -bound, bound)
        b = jax.random.uniform(kb, (1, fan_out), jnp.float32, -bound, bound)
        return w, b

    k1, k2, k3 = jax.random.split(key, 3)
    w1, b1 = linear(k1, IN_DIM, HIDDEN)
    w2, b2 = linear(k2, HIDDEN, HIDDEN)
    w3_f32, b3 = linear(k3, HIDDEN, OUT_DIM)

    params = dict(
        w1=w1, b1=b1, w2=w2, b2=b2, b3=b3,
        g1=jnp.ones((1, HIDDEN), jnp.float32), be1=jnp.zeros((1, HIDDEN), jnp.float32),
        g2=jnp.ones((1, HIDDEN), jnp.float32), be2=jnp.zeros((1, HIDDEN), jnp.float32),
    )
    if MM_FORMAT == "int8":
        w3q, w3s = _quantize_cols(w3_f32)
        params["w3q"] = jnp.pad(w3q, ((0, K_PAD_INT8 - HIDDEN), (0, 0)))
        params["w3s"] = w3s
    elif MM_FORMAT == "bf16":
        params["w3"] = w3_f32.astype(jnp.bfloat16)
    else:
        params["w3"] = w3_f32
    return params, w3_f32   # keep the f32 master copy only for the sanity check


# ---------------------------------------------------------------------------
# Pure-JAX references
# ---------------------------------------------------------------------------
def regression_forward_ref(params, x):
    """Mirrors the kernel's W3 numeric format (tight self-consistency check)."""
    h = _head_math(x, params["w1"], params["b1"], params["g1"], params["be1"],
                   params["w2"], params["b2"], params["g2"], params["be2"])
    if MM_FORMAT == "int8":
        hq, hs = _quantize_rows(h)
        acc = jnp.dot(hq.astype(jnp.float32),
                      params["w3q"][:HIDDEN].astype(jnp.float32))
        return (acc * (hs * params["w3s"]) + params["b3"]).astype(OUT_DTYPE)
    w3 = params["w3"]
    out = jnp.dot(h.astype(w3.dtype), w3,
                  preferred_element_type=jnp.float32) + params["b3"]
    return out.astype(OUT_DTYPE)


def regression_forward_f32_ref(params, w3_f32, x):
    """Exact f32 module (loose sanity check of the quantization contract)."""
    h = _head_math(x, params["w1"], params["b1"], params["g1"], params["be1"],
                   params["w2"], params["b2"], params["g2"], params["be2"])
    return h @ w3_f32 + params["b3"]


_MIRROR_TOL = {"int8": 2e-2, "bf16": 5e-3, "f32": 2e-3}[MM_FORMAT]
_F32_TOL = {"int8": 0.6, "bf16": 0.15, "f32": 2e-3}[MM_FORMAT]


if __name__ == "__main__":
    key = jax.random.PRNGKey(0)
    pkey, xkey = jax.random.split(key)
    params, w3_f32 = init_params(pkey)

    B = 8  # small batch; the module's input feature dim is fixed at 3
    x = jax.random.normal(xkey, (B, IN_DIM), jnp.float32)

    out = jax.block_until_ready(regression_forward(params, x))
    assert out.shape == (B, OUT_DIM), out.shape
    assert out.dtype == jnp.dtype(OUT_DTYPE), out.dtype

    ref = regression_forward_ref(params, x)
    err = float(jnp.max(jnp.abs(out.astype(jnp.float32) - ref.astype(jnp.float32))))
    assert err < _MIRROR_TOL, f"max abs error vs format-mirrored reference = {err}"

    f32_ref = regression_forward_f32_ref(params, w3_f32, x)
    err_f32 = float(jnp.max(jnp.abs(out.astype(jnp.float32) - f32_ref)))
    assert err_f32 < _F32_TOL, f"max abs error vs exact f32 reference = {err_f32}"

    print("KERNEL_OK")
</pallas_src>

<mosaic_0001>
module attributes {stable_mosaic.version = 11 : i64} {
  func.func @_head_kernel(%arg0: memref<8x3xf32, #tpu.memory_space<vmem>>, %arg1: memref<3x100xf32, #tpu.memory_space<vmem>>, %arg2: memref<1x100xf32, #tpu.memory_space<vmem>>, %arg3: memref<1x100xf32, #tpu.memory_space<vmem>>, %arg4: memref<1x100xf32, #tpu.memory_space<vmem>>, %arg5: memref<100x100xf32, #tpu.memory_space<vmem>>, %arg6: memref<1x100xf32, #tpu.memory_space<vmem>>, %arg7: memref<1x100xf32, #tpu.memory_space<vmem>>, %arg8: memref<1x100xf32, #tpu.memory_space<vmem>>, %arg9: memref<8x100xf32, #tpu.memory_space<vmem>>) attributes {dimension_semantics = [], scalar_prefetch = 0 : i64, scratch_operands = 0 : i64, tpu.core_type = #tpu.core_type<tc>} {
    %c0 = arith.constant 0 : index
    %c0_0 = arith.constant 0 : index
    %0 = vector.load %arg0[%c0, %c0_0] : memref<8x3xf32, #tpu.memory_space<vmem>>, vector<8x3xf32>
    %c0_1 = arith.constant 0 : index
    %c0_2 = arith.constant 0 : index
    %1 = vector.load %arg1[%c0_1, %c0_2] : memref<3x100xf32, #tpu.memory_space<vmem>>, vector<3x100xf32>
    %c0_3 = arith.constant 0 : index
    %c0_4 = arith.constant 0 : index
    %2 = vector.load %arg2[%c0_3, %c0_4] : memref<1x100xf32, #tpu.memory_space<vmem>>, vector<1x100xf32>
    %c0_5 = arith.constant 0 : index
    %c0_6 = arith.constant 0 : index
    %3 = vector.load %arg3[%c0_5, %c0_6] : memref<1x100xf32, #tpu.memory_space<vmem>>, vector<1x100xf32>
    %c0_7 = arith.constant 0 : index
    %c0_8 = arith.constant 0 : index
    %4 = vector.load %arg4[%c0_7, %c0_8] : memref<1x100xf32, #tpu.memory_space<vmem>>, vector<1x100xf32>
    %c0_9 = arith.constant 0 : index
    %c0_10 = arith.constant 0 : index
    %5 = vector.load %arg5[%c0_9, %c0_10] : memref<100x100xf32, #tpu.memory_space<vmem>>, vector<100x100xf32>
    %c0_11 = arith.constant 0 : index
    %c0_12 = arith.constant 0 : index
    %6 = vector.load %arg6[%c0_11, %c0_12] : memref<1x100xf32, #tpu.memory_space<vmem>>, vector<1x100xf32>
    %c0_13 = arith.constant 0 : index
    %c0_14 = arith.constant 0 : index
    %7 = vector.load %arg7[%c0_13, %c0_14] : memref<1x100xf32, #tpu.memory_space<vmem>>, vector<1x100xf32>
    %c0_15 = arith.constant 0 : index
    %c0_16 = arith.constant 0 : index
    %8 = vector.load %arg8[%c0_15, %c0_16] : memref<1x100xf32, #tpu.memory_space<vmem>>, vector<1x100xf32>
    %cst = arith.constant dense<0.000000e+00> : vector<8x100xf32>
    %9 = tpu.matmul %0, %1, %cst {dimension_numbers = #tpu.dot_dimension_numbers<[1], [0], [0], [1], [0, 0, 1, 1], [], []>} : vector<8x3xf32>, vector<3x100xf32>, vector<8x100xf32> -> vector<8x100xf32>
    %10 = vector.broadcast %2 : vector<1x100xf32> to vector<8x100xf32>
    %11 = arith.addf %9, %10 : vector<8x100xf32>
    %cst_17 = arith.constant 0.000000e+00 : f32
    %12 = vector.broadcast %cst_17 : f32 to vector<8x100xf32>
    %13 = arith.cmpf ogt, %11, %12 : vector<8x100xf32>
    %cst_18 = arith.constant 2.000000e-02 : f32
    %14 = vector.broadcast %cst_18 : f32 to vector<8x100xf32>
    %15 = arith.mulf %14, %11 : vector<8x100xf32>
    %16 = arith.select %13, %11, %15 : vector<8x100xi1>, vector<8x100xf32>
    %cst_19 = arith.constant dense<0.000000e+00> : vector<8xf32>
    %17 = vector.multi_reduction <add>, %16, %cst_19 [1] : vector<8x100xf32> to vector<8xf32>
    %18 = vector.shape_cast %17 : vector<8xf32> to vector<8x1xf32>
    %cst_20 = arith.constant 1.000000e+02 : f32
    %19 = vector.broadcast %cst_20 : f32 to vector<8x1xf32>
    %20 = arith.divf %18, %19 : vector<8x1xf32>
    %21 = vector.broadcast %20 : vector<8x1xf32> to vector<8x100xf32>
    %22 = arith.subf %16, %21 : vector<8x100xf32>
    %23 = vector.broadcast %20 : vector<8x1xf32> to vector<8x100xf32>
    %24 = arith.subf %16, %23 : vector<8x100xf32>
    %25 = arith.mulf %22, %24 : vector<8x100xf32>
    %cst_21 = arith.constant dense<0.000000e+00> : vector<8xf32>
    %26 = vector.multi_reduction <add>, %25, %cst_21 [1] : vector<8x100xf32> to vector<8xf32>
    %27 = vector.shape_cast %26 : vector<8xf32> to vector<8x1xf32>
    %cst_22 = arith.constant 1.000000e+02 : f32
    %28 = vector.broadcast %cst_22 : f32 to vector<8x1xf32>
    %29 = arith.divf %27, %28 : vector<8x1xf32>
    %30 = vector.broadcast %20 : vector<8x1xf32> to vector<8x100xf32>
    %31 = arith.subf %16, %30 : vector<8x100xf32>
    %cst_23 = arith.constant 9.99999974E-6 : f32
    %32 = vector.broadcast %cst_23 : f32 to vector<8x1xf32>
    %33 = arith.addf %29, %32 : vector<8x1xf32>
    %34 = math.rsqrt %33 : vector<8x1xf32>
    %35 = vector.broadcast %34 : vector<8x1xf32> to vector<8x100xf32>
    %36 = arith.mulf %31, %35 : vector<8x100xf32>
    %37 = vector.broadcast %3 : vector<1x100xf32> to vector<8x100xf32>
    %38 = arith.mulf %36, %37 : vector<8x100xf32>
    %39 = vector.broadcast %4 : vector<1x100xf32> to vector<8x100xf32>
    %40 = arith.addf %38, %39 : vector<8x100xf32>
    %cst_24 = arith.constant dense<0.000000e+00> : vector<8x100xf32>
    %41 = tpu.matmul %40, %5, %cst_24 {dimension_numbers = #tpu.dot_dimension_numbers<[1], [0], [0], [1], [0, 0, 1, 1], [], []>} : vector<8x100xf32>, vector<100x100xf32>, vector<8x100xf32> -> vector<8x100xf32>
    %42 = vector.broadcast %6 : vector<1x100xf32> to vector<8x100xf32>
    %43 = arith.addf %41, %42 : vector<8x100xf32>
    %cst_25 = arith.constant 0.000000e+00 : f32
    %44 = vector.broadcast %cst_25 : f32 to vector<8x100xf32>
    %45 = arith.cmpf ogt, %43, %44 : vector<8x100xf32>
    %cst_26 = arith.constant 2.000000e-02 : f32
    %46 = vector.broadcast %cst_26 : f32 to vector<8x100xf32>
    %47 = arith.mulf %46, %43 : vector<8x100xf32>
    %48 = arith.select %45, %43, %47 : vector<8x100xi1>, vector<8x100xf32>
    %cst_27 = arith.constant dense<0.000000e+00> : vector<8xf32>
    %49 = vector.multi_reduction <add>, %48, %cst_27 [1] : vector<8x100xf32> to vector<8xf32>
    %50 = vector.shape_cast %49 : vector<8xf32> to vector<8x1xf32>
    %cst_28 = arith.constant 1.000000e+02 : f32
    %51 = vector.broadcast %cst_28 : f32 to vector<8x1xf32>
    %52 = arith.divf %50, %51 : vector<8x1xf32>
    %53 = vector.broadcast %52 : vector<8x1xf32> to vector<8x100xf32>
    %54 = arith.subf %48, %53 : vector<8x100xf32>
    %55 = vector.broadcast %52 : vector<8x1xf32> to vector<8x100xf32>
    %56 = arith.subf %48, %55 : vector<8x100xf32>
    %57 = arith.mulf %54, %56 : vector<8x100xf32>
    %cst_29 = arith.constant dense<0.000000e+00> : vector<8xf32>
    %58 = vector.multi_reduction <add>, %57, %cst_29 [1] : vector<8x100xf32> to vector<8xf32>
    %59 = vector.shape_cast %58 : vector<8xf32> to vector<8x1xf32>
    %cst_30 = arith.constant 1.000000e+02 : f32
    %60 = vector.broadcast %cst_30 : f32 to vector<8x1xf32>
    %61 = arith.divf %59, %60 : vector<8x1xf32>
    %62 = vector.broadcast %52 : vector<8x1xf32> to vector<8x100xf32>
    %63 = arith.subf %48, %62 : vector<8x100xf32>
    %cst_31 = arith.constant 9.99999974E-6 : f32
    %64 = vector.broadcast %cst_31 : f32 to vector<8x1xf32>
    %65 = arith.addf %61, %64 : vector<8x1xf32>
    %66 = math.rsqrt %65 : vector<8x1xf32>
    %67 = vector.broadcast %66 : vector<8x1xf32> to vector<8x100xf32>
    %68 = arith.mulf %63, %67 : vector<8x100xf32>
    %69 = vector.broadcast %7 : vector<1x100xf32> to vector<8x100xf32>
    %70 = arith.mulf %68, %69 : vector<8x100xf32>
    %71 = vector.broadcast %8 : vector<1x100xf32> to vector<8x100xf32>
    %72 = arith.addf %70, %71 : vector<8x100xf32>
    %c0_32 = arith.constant 0 : index
    %c0_33 = arith.constant 0 : index
    %73 = vector.load %arg9[%c0_32, %c0_33] : memref<8x100xf32, #tpu.memory_space<vmem>>, vector<8x100xf32>
    tpu.vector_store %arg9[%c0_32, %c0_33], %72 {strides = array<i32>} : memref<8x100xf32, #tpu.memory_space<vmem>>, vector<8x100xf32>,
    return
  }
}

module attributes {stable_mosaic.version = 11 : i64} {
  func.func @_proj_kernel(%arg0: i32, %arg1: memref<8x100xbf16, #tpu.memory_space<vmem>>, %arg2: memref<100x16384xbf16, #tpu.memory_space<vmem>>, %arg3: memref<1x16384xf32, #tpu.memory_space<vmem>>, %arg4: memref<8x16384xf32, #tpu.memory_space<vmem>>) attributes {dimension_semantics = [#tpu.dimension_semantics<parallel>], iteration_bounds = array<i64: 8>, scalar_prefetch = 0 : i64, scratch_operands = 0 : i64, tpu.core_type = #tpu.core_type<tc>, window_params = [{pipeline_mode = #tpu.pipeline_mode<synchronous>, transform_indices = @transform_0, window_bounds = array<i64: 8, 100>}, {transform_indices = @transform_1, window_bounds = array<i64: 100, 16384>}, {transform_indices = @transform_2, window_bounds = array<i64: 1, 16384>}, {transform_indices = @transform_3, window_bounds = array<i64: 8, 16384>}]} {
    %c0 = arith.constant 0 : index
    %c0_0 = arith.constant 0 : index
    %0 = vector.load %arg1[%c0, %c0_0] : memref<8x100xbf16, #tpu.memory_space<vmem>>, vector<8x100xbf16>
    %c0_1 = arith.constant 0 : index
    %c0_2 = arith.constant 0 : index
    %1 = vector.load %arg2[%c0_1, %c0_2] : memref<100x16384xbf16, #tpu.memory_space<vmem>>, vector<100x16384xbf16>
    %cst = arith.constant dense<0.000000e+00> : vector<8x16384xf32>
    %2 = tpu.matmul %0, %1, %cst {dimension_numbers = #tpu.dot_dimension_numbers<[1], [0], [0], [1], [0, 0, 1, 1], [], []>} : vector<8x100xbf16>, vector<100x16384xbf16>, vector<8x16384xf32> -> vector<8x16384xf32>
    %c0_3 = arith.constant 0 : index
    %c0_4 = arith.constant 0 : index
    %3 = vector.load %arg3[%c0_3, %c0_4] : memref<1x16384xf32, #tpu.memory_space<vmem>>, vector<1x16384xf32>
    %4 = vector.broadcast %3 : vector<1x16384xf32> to vector<8x16384xf32>
    %5 = arith.addf %2, %4 : vector<8x16384xf32>
    %c0_5 = arith.constant 0 : index
    %c0_6 = arith.constant 0 : index
    %6 = vector.load %arg4[%c0_5, %c0_6] : memref<8x16384xf32, #tpu.memory_space<vmem>>, vector<8x16384xf32>
    tpu.vector_store %arg4[%c0_5, %c0_6], %5 {strides = array<i32>} : memref<8x16384xf32, #tpu.memory_space<vmem>>, vector<8x16384xf32>,
    return
  }
  func.func @transform_0(%arg0: i32) -> (i32, i32) {
    %c0_i32 = arith.constant 0 : i32
    %c0_i32_0 = arith.constant 0 : i32
    %c0_i32_1 = arith.constant 0 : i32
    return %c0_i32, %c0_i32_0 : i32, i32
  }
  func.func @transform_1(%arg0: i32) -> (i32, i32) {
    %c0_i32 = arith.constant 0 : i32
    %c0_i32_0 = arith.constant 0 : i32
    return %c0_i32, %arg0 : i32, i32
  }
  func.func @transform_2(%arg0: i32) -> (i32, i32) {
    %c0_i32 = arith.constant 0 : i32
    %c0_i32_0 = arith.constant 0 : i32
    return %c0_i32, %arg0 : i32, i32
  }
  func.func @transform_3(%arg0: i32) -> (i32, i32) {
    %c0_i32 = arith.constant 0 : i32
    %c0_i32_0 = arith.constant 0 : i32
    return %c0_i32, %arg0 : i32, i32
  }
}

</mosaic_0001>

<bundles_post_ra>
// kernel: regression_forward.2
= control target key start
LH: loop header
LB: loop body
LE: loop exit
PB: predicated region body
PF: predicated region fallthrough
CT: control target
= control target key end

     0   :  { %14 = vsyncpa [#allocation3], 0  ;;  %s641_s0 = inlined_call_operand.vmem [shape: f32[8,3], index: 0, kind: input, shape index: {}]   ;;  %s642_s1 = inlined_call_operand.hbm [shape: f32[3,100], index: 1, kind: input, shape index: {}]   ;;  %s643_s2 = inlined_call_operand.hbm [shape: f32[1,100], index: 2, kind: input, shape index: {}]   ;;  %s644_s3 = inlined_call_operand.hbm [shape: f32[1,100], index: 3, kind: input, shape index: {}]   ;;  %s645_s4 = inlined_call_operand.hbm [shape: f32[1,100], index: 4, kind: input, shape index: {}]   ;;  %s646_s5 = inlined_call_operand.hbm [shape: f32[100,100], index: 5, kind: input, shape index: {}]   ;;  %s647_s6 = inlined_call_operand.hbm [shape: f32[1,100], index: 6, kind: input, shape index: {}]   ;;  %s648_s7 = inlined_call_operand.hbm [shape: f32[1,100], index: 7, kind: input, shape index: {}]   ;;  %s649_s8 = inlined_call_operand.hbm [shape: f32[1,100], index: 8, kind: input, shape index: {}]   ;;  %s650_s9 = inlined_call_operand.vmem [shape: f32[8,100], index: 9, kind: output, shape index: {}]  }
   0x1   :  { %15 = vsyncpa [#allocation5], 0 }
   0x2   :  { %16 = vsyncpa [#allocation8], 0 }
   0x3   :  { %17 = vsyncpa [#allocation11], 0  ;;  %s37_s11 = sshll.u32 %s643_s2, 4  ;;  %s38_s11 = int_to_ptr.hbm [resolvable:$true] %s37_s11 }
   0x4   :  { %18 = vsyncpa [#allocation14], 0  ;;  %s538_s12 = smov [#allocation4]   ;;  %s59_s16 = sshll.u32 %s645_s4, 4  ;;  %s60_s16 = int_to_ptr.hbm [resolvable:$true] %s59_s16 }
   0x5   :  { %s39_s13 = sshll.u32 %s538_s12, 4  ;;  %s539_s17 = smov [#allocation7]   ;;  %s40_s13 = int_to_ptr.vmem [resolvable:$true] %s39_s13 }
   0x6   :  { %42 = dma.hbm_to_vmem [thread:$0]  %s38_s11, 16, %s40_s13, [#allocation5]  }
   0x7   :  { %s61_s18 = sshll.u32 %s539_s17, 4  ;;  %s83_s21 = sshll.u32 %s647_s6, 4  ;;  %s62_s18 = int_to_ptr.vmem [resolvable:$true] %s61_s18  ;;  %s84_s21 = int_to_ptr.hbm [resolvable:$true] %s83_s21 }
   0x8   :  { %64 = dma.hbm_to_vmem [thread:$0]  %s60_s16, 16, %s62_s18, [#allocation8]  }
   0x9   :  { %s26_s23 = sshll.u32 %s642_s1, 4  ;;  %s540_s24 = smov [#allocation10]   ;;  %s27_s23 = int_to_ptr.hbm [resolvable:$true] %s26_s23 }
   0xa   :  { %s85_s25 = sshll.u32 %s540_s24, 4  ;;  %s541_s4 = smov [#allocation2]   ;;  %s86_s25 = int_to_ptr.vmem [resolvable:$true] %s85_s25 }
   0xb   :  { %88 = dma.hbm_to_vmem [thread:$0]  %s84_s21, 16, %s86_s25, [#allocation11]  }
   0xc   :  { %s28_s26 = sshll.u32 %s541_s4, 4  ;;  %s48_s29 = sshll.u32 %s644_s3, 4  ;;  %s29_s26 = int_to_ptr.vmem [resolvable:$true] %s28_s26  ;;  %s49_s29 = int_to_ptr.hbm [resolvable:$true] %s48_s29 }
   0xd   :  { %31 = dma.hbm_to_vmem [thread:$0]  %s27_s23, 64, %s29_s26, [#allocation3]  }
   0xe   :  { %s69_s10 = sshll.u32 %s646_s5, 4  ;;  %s542_s11 = smov [#allocation6]   ;;  %s70_s10 = int_to_ptr.hbm [resolvable:$true] %s69_s10 }
   0xf   :  { %s50_s1 = sshll.u32 %s542_s11, 4  ;;  %s543_s12 = smov [#allocation9]   ;;  %s51_s1 = int_to_ptr.vmem [resolvable:$true] %s50_s1 }
  0x10   :  { %53 = dma.hbm_to_vmem [thread:$0]  %s49_s29, 16, %s51_s1, [#allocation5]  }
  0x11   :  { %s71_s13 = sshll.u32 %s543_s12, 4  ;;  %s544_s14 = smov 128   ;;  %s72_s13 = int_to_ptr.vmem [resolvable:$true] %s71_s13 }
  0x12   :  { %s545_s15 = smov 8   ;;  %s94_s17 = sshll.u32 %s648_s7, 4  ;;  %s95_s17 = int_to_ptr.hbm [resolvable:$true] %s94_s17 }
  0x13   :  { %77 = dma.hbm_to_vmem [thread:$0]  %s70_s10, 1664, %s72_s13, [#allocation8], %s544_s14, %s544_s14, %s545_s15  }
  0x14   :  { %s546_s18 = smov [#allocation12]   ;;  %s105_s21 = sshll.u32 %s649_s8, 4  ;;  %s106_s21 = int_to_ptr.hbm [resolvable:$true] %s105_s21 }
  0x15   :  { %s96_s19 = sshll.u32 %s546_s18, 4  ;;  %s547_s2 = smov [#allocation13]   ;;  %s97_s19 = int_to_ptr.vmem [resolvable:$true] %s96_s19 }
  0x16   :  { %99 = dma.hbm_to_vmem [thread:$0]  %s95_s17, 16, %s97_s19, [#allocation11]  }
  0x17   :  { %s107_s22 = sshll.u32 %s547_s2, 4  ;;  %s108_s22 = int_to_ptr.vmem [resolvable:$true] %s107_s22 }
  0x18   :  { %110 = dma.hbm_to_vmem [thread:$0]  %s106_s21, 16, %s108_s22, [#allocation14]  }
  0x19   :  { %528 = dma.done.wait [#allocation3], 64  }
  0x1a   :  { %529 = vsyncadd [#allocation3], 4294967232 }
  0x1b   :  { %530 = dma.done.wait [#allocation5], 32  }
  0x1c   :  { %531 = vsyncadd [#allocation5], 4294967264 }
  0x1d   :  { %532 = dma.done.wait [#allocation8], 1680  }
  0x1e   :  { %533 = vsyncadd [#allocation8], 4294965616 }
  0x1f   :  { %534 = dma.done.wait [#allocation11], 32  }
  0x20   :  { %535 = vsyncadd [#allocation11], 4294967264 }
  0x21   :  { %536 = dma.done.wait [#allocation14], 16  }
  0x22   :  { %537 = vsyncadd [#allocation14], 4294967280  ;;  %vm171_vm0 = vcmask 1042432   ;;  %vm167_vm1 = vcmask 23552   ;;  %v144_v0 = vld [vmem:[#allocation2] sm:$0x7] }
  0x23   :  { %v143_v1 = vld [vmem:[%s641_s0] sm:$0xff]  ;;  %309 = vmatpush.msk.msra.mxu0 %vm171_vm0, %v144_v0  ;;  %vm198_vm3 = vcmask 818176   ;;  %v548_v8 = vmov 100.0   ;;  %v160_v20 = vld [vmem:[#allocation9 + $0x60] sm:$0xf]  ;;  %vm242_vm5 = vcmask 1043456  }
  0x24   :  { %310 = vmatmul.msk.f32.vlgmr.msra.gmra.mxu0 %vm167_vm1, %v143_v1  ;;  %v324_v2 = vld [vmem:[#allocation4] ss:$0 sm:$0xff]  ;;  %330 = vrcp.f32 %v548_v8  ;;  %311 = vmatpush.msk.msra.mxu1 %vm242_vm5, %v160_v20  ;;  %v158_v22 = vld [vmem:[#allocation9 + $0x50] sm:$0xff]  ;;  %v157_v23 = vld [vmem:[#allocation9 + $0x48] sm:$0xff] }
  0x25   :  { %v159_v21 = vld [vmem:[#allocation9 + $0x58] sm:$0xff]  ;;  %v156_v24 = vld [vmem:[#allocation9 + $0x40] sm:$0xff]  ;;  %v154_v26 = vld [vmem:[#allocation9 + $0x30] sm:$0xff] }
  0x26   :  { %250 = vmatpush.msra.mxu1 %v159_v21  ;;  %v155_v25 = vld [vmem:[#allocation9 + $0x38] sm:$0xff]  ;;  %v153_v27 = vld [vmem:[#allocation9 + $0x28] sm:$0xff]  ;;  %v152_v28 = vld [vmem:[#allocation9 + $0x20] sm:$0xff] }
  0x27   :  { %v151_v29 = vld [vmem:[#allocation9 + $0x18] sm:$0xff]  ;;  %v150_v30 = vld [vmem:[#allocation9 + $0x10] sm:$0xff]  ;;  %v149_v31 = vld [vmem:[#allocation9 + $0x8] sm:$0xff] }
  0x28   :  { %251 = vmatpush.msra.mxu1 %v158_v22  ;;  %v148_v32 = vld [vmem:[#allocation9] sm:$0xff]  ;;  %v325_v42 = vld [vmem:[#allocation6] ss:$0 sm:$0xff]  ;;  %v326_v45 = vld [vmem:[#allocation7] ss:$0 sm:$0xff] }
  0x29   :  { %v327_v48 = vld [vmem:[#allocation10] ss:$0 sm:$0xff] }
  0x2a   :  { %v331_v9 = vpop.eup %330  ;;  %252 = vmatpush.msra.mxu1 %v157_v23 }
  0x2b   :  { %v203_v10 = vmul.f32 100.0, %v331_v9  ;;  %vm207_vm4 = vweird.f32 %v331_v9 }
  0x2c   :  { %253 = vmatpush.msra.mxu1 %v156_v24 }
  0x2d   :  { %v204_v11 = vsub.f32 1.0, %v203_v10 }
  0x2e   :  { %254 = vmatpush.msra.mxu1 %v155_v25 }
  0x2f   :  { %v205_v12 = vmul.f32 %v331_v9, %v204_v11 }
  0x30   :  { %255 = vmatpush.msra.mxu1 %v154_v26 }
  0x31   :  { %v206_v13 = vadd.f32 %v331_v9, %v205_v12 }
  0x32   :  { %256 = vmatpush.msra.mxu1 %v153_v27 }
  0x33   :  { %v627_v14 = vsel %vm207_vm4, %v331_v9, %v206_v13 }
  0x34   :  { %257 = vmatpush.msra.mxu1 %v152_v28 }
  0x36   :  { %258 = vmatpush.msra.mxu1 %v151_v29 }
  0x38   :  { %259 = vmatpush.msra.mxu1 %v150_v30 }
  0x3a   :  { %260 = vmatpush.msra.mxu1 %v149_v31 }
  0x3c   :  { %261 = vmatpush.msra.mxu1 %v148_v32 }
  0xa1   :  { %v192_v3 = vpop.f32.mrf.mxu0 }
  0xa2   :  { %v193_v4 = vadd.f32 %v324_v2, %v192_v3 }
  0xa4   :  { %v196_v5 = vmul.f32 0.02, %v193_v4  ;;  %vm195_vm2 = vcmp.gt.f32.partialorder %v193_v4, 0.0 }
  0xa6   :  { %v197_v6 = vsel %vm195_vm2, %v193_v4, %v196_v5  ;;  %v328_v4 = vld [vmem:[#allocation12] ss:$0 sm:$0xff] }
  0xa7   :  { %v199_v7 = vsel %vm198_vm3, %v197_v6, 0.0 }
  0xa8   :  { %200 = vadd.xlane.f32.xlu0 %v199_v7 }
 0x11b   :  { %v201_v15 = vpop.xlane.xlu0 %200 }
 0x11c   :  { %v209_v16 = vmul.f32 %v627_v14, %v201_v15 }
 0x11e   :  { %v210_v17 = vsub.f32 %v197_v6, %v209_v16  ;;  %v329_v6 = vld [vmem:[#allocation13] ss:$0 sm:$0xff] }
 0x120   :  { %v211_v18 = vmul.f32 %v210_v17, %v210_v17 }
 0x122   :  { %v212_v19 = vsel %vm198_vm3, %v211_v18, 0.0 }
 0x123   :  { %213 = vadd.xlane.f32.xlu0 %v212_v19 }
 0x196   :  { %v214_v33 = vpop.xlane.xlu0 %213 }
 0x197   :  { %v215_v34 = vmul.f32 %v214_v33, %v627_v14 }
 0x199   :  { %v216_v35 = vadd.f32 1e-05, %v215_v34 }
 0x19b   :  { %332 = vrsqrt.f32 %v216_v35  ;;  %vm223_vm7 = vweird.f32 %v216_v35 }
 0x1a1   :  { %v333_v36 = vpop.eup %332 }
 0x1a2   :  { %v218_v37 = vmul.f32 %v333_v36, %v216_v35  ;;  %vm224_vm6 = vweird.f32 %v333_v36 }
 0x1a3   :  { %vm225_vm8 = vmor %vm223_vm7, %vm224_vm6 }
 0x1a4   :  { %v219_v38 = vmul.f32 %v333_v36, %v218_v37 }
 0x1a6   :  { %v220_v39 = vmul.f32 0.5, %v219_v38 }
 0x1a8   :  { %v221_v40 = vsub.f32 1.5, %v220_v39 }
 0x1aa   :  { %v222_v41 = vmul.f32 %v333_v36, %v221_v40 }
 0x1ac   :  { %v226_v43 = vsel %vm225_vm8, %v333_v36, %v222_v41 }
 0x1ad   :  { %v227_v44 = vmul.f32 %v226_v43, %v210_v17 }
 0x1af   :  { %v231_v46 = vmul.f32 %v325_v42, %v227_v44 }
 0x1b1   :  { %v235_v47 = vadd.f32 %v326_v45, %v231_v46 }
 0x1b3   :  { %312 = vmatmul.msk.f32.vlgmr.msra.gmra.mxu1 %vm198_vm3, %v235_v47 }
 0x230   :  { %v263_v49 = vpop.f32.mrf.mxu1 }
 0x231   :  { %v264_v50 = vadd.f32 %v327_v48, %v263_v49 }
 0x233   :  { %v267_v51 = vmul.f32 0.02, %v264_v50  ;;  %vm266_vm9 = vcmp.gt.f32.partialorder %v264_v50, 0.0 }
 0x235   :  { %v268_v52 = vsel %vm266_vm9, %v264_v50, %v267_v51 }
 0x236   :  { %v269_v53 = vsel %vm198_vm3, %v268_v52, 0.0 }
 0x237   :  { %270 = vadd.xlane.f32.xlu1 %v269_v53 }
 0x2aa   :  { %v271_v54 = vpop.xlane.xlu1 %270 }
 0x2ab   :  { %v272_v55 = vmul.f32 %v271_v54, %v627_v14 }
 0x2ad   :  { %v273_v56 = vsub.f32 %v268_v52, %v272_v55 }
 0x2af   :  { %v274_v57 = vmul.f32 %v273_v56, %v273_v56 }
 0x2b1   :  { %v275_v58 = vsel %vm198_vm3, %v274_v57, 0.0 }
 0x2b2   :  { %276 = vadd.xlane.f32.xlu1 %v275_v58 }
 0x325   :  { %v277_v59 = vpop.xlane.xlu1 %276 }
 0x326   :  { %v278_v60 = vmul.f32 %v277_v59, %v627_v14 }
 0x328   :  { %v279_v61 = vadd.f32 1e-05, %v278_v60 }
 0x32a   :  { %334 = vrsqrt.f32 %v279_v61  ;;  %vm286_vm11 = vweird.f32 %v279_v61 }
 0x330   :  { %v335_v62 = vpop.eup %334 }
 0x331   :  { %v281_v63 = vmul.f32 %v335_v62, %v279_v61  ;;  %vm287_vm10 = vweird.f32 %v335_v62 }
 0x332   :  { %vm288_vm12 = vmor %vm286_vm11, %vm287_vm10 }
 0x333   :  { %v282_v0 = vmul.f32 %v335_v62, %v281_v63 }
 0x335   :  { %v283_v1 = vmul.f32 0.5, %v282_v0 }
 0x337   :  { %v284_v2 = vsub.f32 1.5, %v283_v1 }
 0x339   :  { %v285_v3 = vmul.f32 %v335_v62, %v284_v2 }
 0x33b   :  { %v289_v5 = vsel %vm288_vm12, %v335_v62, %v285_v3 }
 0x33c   :  { %v290_v7 = vmul.f32 %v289_v5, %v273_v56 }
 0x33e   :  { %v294_v8 = vmul.f32 %v328_v4, %v290_v7 }
 0x340   :  { %v298_v9 = vadd.f32 %v329_v6, %v294_v8 }
 0x342   :  { %299 = vst.msk [vmem:[%s650_s9] sm:$0xff] %vm198_vm3, %v298_v9 }
 0x343   :  { %304 = vsyncpa [#allocation3], 1 }
 0x344   :  { %305 = vsyncpa [#allocation5], 1 }
 0x345   :  { %306 = vsyncpa [#allocation8], 1 }
 0x346   :  { %307 = vsyncpa [#allocation11], 1 }
 0x347   :  { %308 = vsyncpa [#allocation14], 1 }

// kernel: regression_forward.3
= control target key start
LH: loop header
LB: loop body
LE: loop exit
PB: predicated region body
PF: predicated region fallthrough
CT: control target
= control target key end

     0   :  { %8 = vsyncpa [#allocation3], 0  ;;  %s14593_s0 = inlined_call_operand.vmem [shape: bf16[8,100], index: 0, kind: input, shape index: {}]   ;;  %s14594_s1 = inlined_call_operand.hbm [shape: bf16[100,125557], index: 1, kind: input, shape index: {}]   ;;  %s14595_s2 = inlined_call_operand.hbm [shape: f32[1,125557], index: 2, kind: input, shape index: {}]   ;;  %s14596_s3 = inlined_call_operand.hbm [shape: f32[8,125557], index: 3, kind: output, shape index: {}]  }
   0x1   :  { %10 = vsyncpa [#allocation3 + $0x1], 0 }
   0x2   :  { %11 = vsyncpa [#allocation6], 0 }
   0x3   :  { %13 = vsyncpa [#allocation6 + $0x1], 0 }
   0x4   :  { %14 = vsyncpa [#allocation4], 0 }
   0x5   :  { %16 = vsyncpa [#allocation4 + $0x1], 0  ;;  %s12068_s12 = smov 0   ;;  %s12070_s13 = smov 0  }
   0x6   :  { %s12072_s14 = smov 0   ;;  %s12074_s15 = smov 0  }
   0x7 LB: > { %s12089_s16 = sadd.s32 4294967295, %s12041_s15   ;;  %s7837_s17 = sadd.s32 4294967294, %s12041_s15   ;;  %s12041_s15 = sphi %s12074_s15, %s14608_s15   ;;  %s12037_s14 = sphi %s12072_s14, %s14607_s14   ;;  %s12033_s13 = sphi %s12070_s13, %s14606_s13   ;;  %s12029_s12 = sphi %s12068_s12, %s14605_s12  }
   0x8   : > { %s12093_s18 = sadd.s32 1, %s12041_s15   ;;  %s50_s19 = sadd.s32 1, %s12037_s14 }
   0x9   : > { %s47_s20 = ssub.s32 %s12041_s15, %s12093_s18  ;;  %p57_p0 = scmp.ne.s32.totalorder %s12037_s14, %s12033_s13 }
   0xa   : > { %p48_p1 = scmp.eq.s32.totalorder %s47_s20, 0  ;;  %p58_p2 = scmp.eq.s32.totalorder %s12041_s15, 0 }
   0xb   : > { %p63_p3 = scmp.ne.s32.totalorder %s12033_s13, %s12029_s12  ;;  %p64_p4 = scmp.eq.s32.totalorder %s12089_s16, 0 }
   0xc   : > { %s12105_s21 = scalar_select %p48_p1, %s12037_s14, %s50_s19  }
   0xd   : > { %p12107_p5 = por %p58_p2, %p57_p0  ;;  %p12111_p6 = por %p64_p4, %p63_p3 }
   0xe   : > { %p113_p7 = scmp.eq.s32.totalorder %s12089_s16, 7  ;;  %p119_p8 = scmp.eq.s32.totalorder %s7837_s17, 7 }
   0xf   : > { %p7839_p11 = scmp.ge.s32.totalorder %s12041_s15, 8 }
  0x10   : > { %p12116_p9 = por %p113_p7, %p57_p0  ;;  %p12120_p10 = por %p119_p8, %p63_p3 }
  0x11   : > { %138 = sbr.rel (%p7839_p11) target bundleno = 99 (0x63), region = 20 }
  0x12   : > { %s14600_s25 = scalar_select %p12120_p10, 1, 0 }
  0x16   : > { %141 = sbr.rel (!%p12107_p5) target bundleno = 65 (0x41), region = 24  ;;  %s142_s26 = sand.u32 (%p12107_p5), 1, %s12037_s14  }
  0x17   : > { %s7840_s27 = sshll.u32 (%p12107_p5), %s12041_s15, 7  ;;  %s11831_s28 = smul.u32 (%p12107_p5), 6656, %s142_s26 }
  0x18   : > { %s148_s29 = ssub.s32 (%p12107_p5), 981, %s7840_s27  ;;  %s12132_s6 = scalar_lea.sflag (%p12107_p5), [#allocation3], %s142_s26 }
  0x19   : > { %p149_p12 = scmp.lt.s32.totalorder (%p12107_p5), %s148_s29, 128  ;;  %s146_s7 = scalar_lea.vmem (%p12107_p5), [#allocation2], %s11831_s28 }
  0x1b   : > { %s14610_s29 = smov (!%p149_p12, %s148_s29), 128 }
  0x1c   : > { %s151_s30 = smul.u32 52, %s14610_s29 }
  0x1e   : > { %s152_s4 = ssub.s32 6656, %s151_s30 }
  0x1f   : > { %s153_s5 = sshll.u32 %s152_s4, 4 }
  0x20   : > { %154 = vsyncadd %s12132_s6, %s153_s5  ;;  %p12135_p13 = scmp.ne.s32.totalorder %s151_s30, 0  ;;  %s11061_s9 = sshll.u32 %s12041_s15, 9 }
  0x21   : > { %s157_s17 = scalar_lea.hbm %s14594_s1, %s11061_s9  ;;  %s12144_s26 = sshll.u32 %s146_s7, 4  ;;  %s163_s26 = int_to_ptr.vmem [resolvable:$true] %s12144_s26 }
  0x22   : > { %s160_s20 = sshll.u32 %s157_s17, 4  ;;  %s12150_s27 = smul.u32 832, %s14610_s29  ;;  %s12146_s20 = int_to_ptr.hbm [resolvable:$true] %s160_s20 }
  0x23   : > { %s11882_s28 = sshra.s32 %s12146_s20, 4  ;;  %s11893_s11 = scalar_lea.hbm %s14594_s1, 51012  ;;  %s11883_s28 = int_to_ptr.hbm [resolvable:$true] %s11882_s28 }
  0x24   : > { %s11884_s30 = sshrl.u32 %s12150_s27, 4  ;;  %p11894_p4 = scmp.lt.s32.totalorder %s11883_s28, %s14594_s1 }
  0x25   : > { %s11920_s4 = sshll.u32 %s11884_s30, 4  ;;  %s11887_s5 = sadd.s32 1, %s11884_s30 }
  0x26   : > { %p11886_p0 = scmp.ne.s32.totalorder %s11920_s4, %s12150_s27 }
  0x28   : > { %s14612_s5 = smov (!%p11886_p0, %s11887_s5), %s11884_s30 }
  0x29   : > { %s11889_s9 = scalar_lea.hbm %s11883_s28, %s14612_s5 }
  0x2a   : > { %p11890_p1 = scmp.ne.s32.totalorder %s11883_s28, %s11889_s9  ;;  %p11895_p7 = scmp.lt.s32.totalorder %s11893_s11, %s11889_s9 }
  0x2c   : > { %p11891_p2 = pnand %p11890_p1, %p12135_p13  ;;  %p11896_p8 = por %p11895_p7, %p11894_p4 }
  0x2e   : > { %p11892_p3 = pneg %p11891_p2 }
  0x30   : > { %p11897_p11 = pnand %p11896_p8, %p11892_p3 }
  0x32   : > { %11900 = shalt.err (!%p11897_p11)
}
  0x33   : > { %s11901_s30 = sshra.s32 %s163_s26, 4  ;;  %s12043_s7 = smov [#allocation2]   ;;  %s11902_s30 = int_to_ptr.vmem [resolvable:$true] %s11901_s30 }
  0x34   : > { %s11908_s4 = scalar_lea.vmem %s11902_s30, %s14612_s5  ;;  %s11912_s10 = scalar_lea.vmem %s12043_s7, 13312 }
  0x35   : > { %p11909_p12 = scmp.ne.s32.totalorder %s11902_s30, %s11908_s4  ;;  %p11914_p2 = scmp.lt.s32.totalorder %s11912_s10, %s11908_s4 }
  0x37   : > { %p11910_p0 = pnand %p11909_p12, %p12135_p13 }
  0x39   : > { %p11911_p1 = pneg %p11910_p0 }
  0x3b   : > { %p11916_p10 = pnand %p11914_p2, %p11911_p1 }
  0x3d   : > { %11919 = shalt.err (!%p11916_p10)
}
  0x3e   : > { %s12044_s19 = smov 62784   ;;  %s12045_s28 = smov 8192  }
  0x3f   : > { %s14602_s9 = sshll.u32 %s14610_s29, 2 }
  0x40   : > { %168 = dma.hbm_to_vmem [thread:$0]  (%p12135_p13), %s12146_s20, %s12150_s27, %s163_s26, %s12132_s6, %s12044_s19, %s12045_s28, %s14602_s9  }
  0x41 PF: > { %171 = sbr.rel (!%p12107_p5) target bundleno = 99 (0x63), region = 28  ;;  %s172_s5 = sand.u32 (%p12107_p5), 1, %s12037_s14  }
  0x42   : > { %s7847_s11 = sshll.u32 (%p12107_p5), %s12041_s15, 7  ;;  %s7846_s17 = sshll.u32 (%p12107_p5), %s172_s5, 7 }
  0x43   : > { %s178_s30 = ssub.s32 (%p12107_p5), 981, %s7847_s11  ;;  %s12183_s8 = scalar_lea.sflag (%p12107_p5), [#allocation6], %s172_s5 }
  0x44   : > { %p179_p10 = scmp.lt.s32.totalorder (%p12107_p5), %s178_s30, 128  ;;  %s176_s29 = scalar_lea.vmem (%p12107_p5), [#allocation5], %s7846_s17 }
  0x46   : > { %s14614_s30 = smov (!%p179_p10, %s178_s30), 128 }
  0x47   : > { %s181_s4 = ssub.s32 128, %s14614_s30 }
  0x48   : > { %s182_s7 = sshll.u32 %s181_s4, 4 }
  0x49   : > { %183 = vsyncadd %s12183_s8, %s182_s7  ;;  %p7848_p5 = scmp.ne.s32.totalorder %s14614_s30, 0  ;;  %s185_s20 = scalar_lea.hbm %s14595_s2, %s7847_s11 }
  0x4a   : > { %s186_s26 = sshll.u32 %s14614_s30, 4  ;;  %s187_s27 = sshll.u32 %s185_s20, 4  ;;  %s12191_s27 = int_to_ptr.hbm [resolvable:$true] %s187_s27 }
  0x4b   : > { %s12193_s10 = sshll.u32 %s176_s29, 4  ;;  %s11921_s19 = sshra.s32 %s12191_s27, 4  ;;  %s190_s10 = int_to_ptr.vmem [resolvable:$true] %s12193_s10  ;;  %s11922_s19 = int_to_ptr.hbm [resolvable:$true] %s11921_s19 }
  0x4c   : > { %s11923_s28 = sshrl.u32 %s186_s26, 4  ;;  %s11932_s17 = scalar_lea.hbm %s14595_s2, 981 }
  0x4d   : > { %s11928_s9 = scalar_lea.hbm %s11922_s19, %s11923_s28  ;;  %p11933_p7 = scmp.lt.s32.totalorder %s11922_s19, %s14595_s2 }
  0x4e   : > { %p11929_p13 = scmp.ne.s32.totalorder %s11922_s19, %s11928_s9  ;;  %p11934_p8 = scmp.lt.s32.totalorder %s11932_s17, %s11928_s9 }
  0x50   : > { %p11930_p3 = pnand %p11929_p13, %p7848_p5  ;;  %p11935_p11 = por %p11934_p8, %p11933_p7 }
  0x52   : > { %p11931_p4 = pneg %p11930_p3 }
  0x54   : > { %p11936_p12 = pnand %p11935_p11, %p11931_p4 }
  0x56   : > { %11939 = shalt.err (!%p11936_p12)
}
  0x57   : > { %s11940_s29 = sshra.s32 %s190_s10, 4  ;;  %s12046_s6 = smov [#allocation5]   ;;  %s11941_s29 = int_to_ptr.vmem [resolvable:$true] %s11940_s29 }
  0x58   : > { %s11947_s22 = scalar_lea.vmem %s11941_s29, %s11923_s28  ;;  %s11951_s20 = scalar_lea.vmem %s12046_s6, 256 }
  0x59   : > { %p11948_p0 = scmp.ne.s32.totalorder %s11941_s29, %s11947_s22  ;;  %p11953_p10 = scmp.lt.s32.totalorder %s11951_s20, %s11947_s22 }
  0x5b   : > { %p11949_p1 = pnand %p11948_p0, %p7848_p5 }
  0x5d   : > { %p11950_p2 = pneg %p11949_p1 }
  0x5f   : > { %p11955_p13 = pnand %p11953_p10, %p11950_p2 }
  0x61   : > { %11958 = shalt.err (!%p11955_p13)
}
  0x62   : > { %192 = dma.hbm_to_vmem [thread:$0]  (%p7848_p5), %s12191_s27, %s186_s26, %s190_s10, %s12183_s8  }
  0x63 PF: > { %p7849_p3 = scmp.ge.s32.totalorder %s12041_s15, 1  ;;  %p194_p4 = scmp.lt.s32.totalorder %s12041_s15, 9 }
  0x65   : > { %p195_p7 = pnand %p7849_p3, %p194_p4 }
  0x66   : > { %s12218_s19 = sand.u32 (!%p195_p7), 1, %s12033_s13  }
  0x67   : > { %198 = sbr.rel (%p195_p7) target bundleno = 1184 (0x4a0), region = 32  ;;  %s201_s9 = scalar_lea.sflag (!%p195_p7), [#allocation3], %s12218_s19 }
  0x68   : > { %s11832_s28 = smul.u32 (!%p195_p7), 6656, %s12218_s19 }
  0x6a   : > { %s12222_s5 = scalar_lea.vmem (!%p195_p7), [#allocation2], %s11832_s28 }
  0x6c   : > { %12016 = dma.done.wait (%p12111_p6), %s201_s9, 106496  }
  0x6d   : > { %12018 = vsyncadd (%p12111_p6), %s201_s9, 4294860800  ;;  %s7850_s30 = sshll.u32 %s12218_s19, 7  ;;  %s211_s8 = scalar_lea.sflag [#allocation6], %s12218_s19 }
  0x6e   : > { %s12230_s26 = scalar_lea.vmem [#allocation5], %s7850_s30 }
  0x6f   : > { %12020 = dma.done.wait (%p12111_p6), %s211_s8, 2048  }
  0x70   : > { %12022 = vsyncadd (%p12111_p6), %s211_s8, 4294965248  ;;  %v1027_v0 = vld [vmem:[%s12222_s5 + $0x1800] sm:$0x33]  ;;  %v1028_v1 = vld [vmem:[%s12222_s5 + $0x1808] sm:$0x33]  ;;  %vm5543_vm0 = vcmask 1041408  }
  0x71   : > { %v3747_v2 = vunpack.c.l.b16 %v1027_v0  ;;  %v3748_v3 = vunpack.c.h.b16 %v1027_v0  ;;  %v3749_v4 = vunpack.c.l.b16 %v1028_v1  ;;  %v3750_v5 = vunpack.c.h.b16 %v1028_v1  ;;  %v10414_v6 = vld [vmem:[%s12222_s5 + $0x1400] sm:$0xf]  ;;  %v11702_v12 = vld [vmem:[%s12222_s5 + $0x1404] sm:$0xf]  ;;  %v10422_v14 = vld [vmem:[%s12222_s5 + $0x1408] sm:$0xf] }
  0x72   : > { %v11766_v7 = vld [vmem:[%s12222_s5 + $0x15fc] sm:$0xf0]  ;;  %v10416_v13 = vld [vmem:[%s12222_s5 + $0x1600] sm:$0xf0]  ;;  %v11767_v15 = vld [vmem:[%s12222_s5 + $0x1604] sm:$0xf0] }
  0x73   : > { %v4643_v8 = vpack.c.b16 %v3747_v2, %v3747_v2  ;;  %v4644_v9 = vpack.c.b16 %v3748_v3, %v3748_v3  ;;  %v4645_v10 = vpack.c.b16 %v3749_v4, %v3749_v4  ;;  %v4646_v11 = vpack.c.b16 %v3750_v5, %v3750_v5  ;;  %v11703_v16 = vld [vmem:[%s12222_s5 + $0x140c] sm:$0xf]  ;;  %v9902_v24 = vld [vmem:[%s12222_s5 + $0x1000] sm:$0xf]  ;;  %v11574_v28 = vld [vmem:[%s12222_s5 + $0x1004] sm:$0xf] }
  0x74   : > { %v10424_v17 = vld [vmem:[%s12222_s5 + $0x1608] sm:$0xf0]  ;;  %v10415_v22 = vor.u32 %v11766_v7, %v10414_v6  ;;  %v10419_v23 = vor.u32 %v11702_v12, %v10416_v13  ;;  %v11638_v25 = vld [vmem:[%s12222_s5 + $0x11fc] sm:$0xf0]  ;;  %v10423_v26 = vor.u32 %v11767_v15, %v10422_v14  ;;  %v9904_v29 = vld [vmem:[%s12222_s5 + $0x1200] sm:$0xf0] }
  0x75   : > { %v5545_v18 = vsel %vm5543_vm0, %v4643_v8, 0  ;;  %v5548_v19 = vsel %vm5543_vm0, %v4644_v9, 0  ;;  %v5551_v20 = vsel %vm5543_vm0, %v4645_v10, 0  ;;  %v5554_v21 = vsel %vm5543_vm0, %v4646_v11, 0  ;;  %v9910_v30 = vld [vmem:[%s12222_s5 + $0x1008] sm:$0xf] }
  0x76   : > { %5929 = vmatpush.bf16.msra.mxu0 %v5545_v18  ;;  %5942 = vmatpush.bf16.msra.mxu1 %v5548_v19  ;;  %v10427_v27 = vor.u32 %v11703_v16, %v10424_v17  ;;  %v11639_v31 = vld [vmem:[%s12222_s5 + $0x1204] sm:$0xf0]  ;;  %v11575_v32 = vld [vmem:[%s12222_s5 + $0x100c] sm:$0xf]  ;;  %v9903_v34 = vor.u32 %v11638_v25, %v9902_v24  ;;  %v9907_v35 = vor.u32 %v11574_v28, %v9904_v29  ;;  %v9390_v36 = vld [vmem:[%s12222_s5 + $0xc00] sm:$0xf] }
  0x77   : > { %5955 = vmatpush.bf16.msra.mxu2 %v5551_v20  ;;  %5968 = vmatpush.bf16.msra.mxu3 %v5554_v21  ;;  %v9912_v33 = vld [vmem:[%s12222_s5 + $0x1208] sm:$0xf0]  ;;  %v11510_v37 = vld [vmem:[%s12222_s5 + $0xdfc] sm:$0xf0]  ;;  %v9911_v38 = vor.u32 %v11639_v31, %v9910_v30  ;;  %v11446_v40 = vld [vmem:[%s12222_s5 + $0xc04] sm:$0xf] }
  0x78   : > { %v9915_v39 = vor.u32 %v11575_v32, %v9912_v33  ;;  %v9392_v41 = vld [vmem:[%s12222_s5 + $0xe00] sm:$0xf0]  ;;  %v9398_v42 = vld [vmem:[%s12222_s5 + $0xc08] sm:$0xf]  ;;  %v11447_v44 = vld [vmem:[%s12222_s5 + $0xc0c] sm:$0xf]  ;;  %v9391_v46 = vor.u32 %v11510_v37, %v9390_v36 }
  0x79   : > { %v11511_v43 = vld [vmem:[%s12222_s5 + $0xe04] sm:$0xf0]  ;;  %v9400_v45 = vld [vmem:[%s12222_s5 + $0xe08] sm:$0xf0]  ;;  %v9395_v47 = vor.u32 %v11446_v40, %v9392_v41  ;;  %v8878_v48 = vld [vmem:[%s12222_s5 + $0x800] sm:$0xf] }
  0x7a   : > { %5930 = vmatpush.bf16.msra.mxu0 %v10415_v22  ;;  %5943 = vmatpush.bf16.msra.mxu1 %v10419_v23  ;;  %v11382_v49 = vld [vmem:[%s12222_s5 + $0x9fc] sm:$0xf0]  ;;  %v9399_v50 = vor.u32 %v11511_v43, %v9398_v42  ;;  %v9403_v51 = vor.u32 %v11447_v44, %v9400_v45  ;;  %v11318_v52 = vld [vmem:[%s12222_s5 + $0x804] sm:$0xf]  ;;  %v8886_v54 = vld [vmem:[%s12222_s5 + $0x808] sm:$0xf] }
  0x7b   : > { %5956 = vmatpush.bf16.msra.mxu2 %v10423_v26  ;;  %5969 = vmatpush.bf16.msra.mxu3 %v10427_v27  ;;  %v8880_v53 = vld [vmem:[%s12222_s5 + $0xa00] sm:$0xf0]  ;;  %v11383_v55 = vld [vmem:[%s12222_s5 + $0xa04] sm:$0xf0]  ;;  %v11319_v56 = vld [vmem:[%s12222_s5 + $0x80c] sm:$0xf]  ;;  %v8879_v59 = vor.u32 %v11382_v49, %v8878_v48 }
  0x7c   : > { %v8888_v57 = vld [vmem:[%s12222_s5 + $0xa08] sm:$0xf0]  ;;  %v8366_v58 = vld [vmem:[%s12222_s5 + $0x400] sm:$0xf]  ;;  %v8883_v60 = vor.u32 %v11318_v52, %v8880_v53  ;;  %v11190_v62 = vld [vmem:[%s12222_s5 + $0x404] sm:$0xf]  ;;  %v8887_v0 = vor.u32 %v11383_v55, %v8886_v54 }
  0x7d   : > { %v11254_v61 = vld [vmem:[%s12222_s5 + $0x5fc] sm:$0xf0]  ;;  %v1029_v63 = vld [vmem:[%s12222_s5 + $0x1810] sm:$0x33]  ;;  %v8891_v1 = vor.u32 %v11319_v56, %v8888_v57  ;;  %v8368_v2 = vld [vmem:[%s12222_s5 + $0x600] sm:$0xf0] }
  0x7e   : > { %5931 = vmatpush.bf16.msra.mxu0 %v9903_v34  ;;  %5944 = vmatpush.bf16.msra.mxu1 %v9907_v35  ;;  %v8374_v3 = vld [vmem:[%s12222_s5 + $0x408] sm:$0xf]  ;;  %v1030_v4 = vld [vmem:[%s12222_s5 + $0x1818] sm:$0x33]  ;;  %v11191_v6 = vld [vmem:[%s12222_s5 + $0x40c] sm:$0xf]  ;;  %v3751_v8 = vunpack.c.l.b16 %v1029_v63  ;;  %v3752_v9 = vunpack.c.h.b16 %v1029_v63  ;;  %v8367_v10 = vor.u32 %v11254_v61, %v8366_v58  ;;  %v8371_v11 = vor.u32 %v11190_v62, %v8368_v2 }
  0x7f   : > { %5957 = vmatpush.bf16.msra.mxu2 %v9911_v38  ;;  %5970 = vmatpush.bf16.msra.mxu3 %v9915_v39  ;;  %v11255_v5 = vld [vmem:[%s12222_s5 + $0x604] sm:$0xf0]  ;;  %v8376_v7 = vld [vmem:[%s12222_s5 + $0x608] sm:$0xf0]  ;;  %v7854_v12 = vld [vmem:[%s12222_s5] sm:$0xf]  ;;  %v3753_v14 = vunpack.c.l.b16 %v1030_v4  ;;  %v3754_v15 = vunpack.c.h.b16 %v1030_v4 }
  0x80   : > { %v11126_v13 = vld [vmem:[%s12222_s5 + $0x1fc] sm:$0xf0]  ;;  %v8375_v16 = vor.u32 %v11255_v5, %v8374_v3  ;;  %v8379_v17 = vor.u32 %v11191_v6, %v8376_v7  ;;  %v11062_v18 = vld [vmem:[%s12222_s5 + $0x4] sm:$0xf]  ;;  %v7862_v20 = vld [vmem:[%s12222_s5 + $0x8] sm:$0xf]  ;;  %v4647_v25 = vpack.c.b16 %v3751_v8, %v3751_v8  ;;  %v4648_v26 = vpack.c.b16 %v3752_v9, %v3752_v9 }
  0x81   : > { %v7856_v19 = vld [vmem:[%s12222_s5 + $0x200] sm:$0xf0]  ;;  %v11127_v21 = vld [vmem:[%s12222_s5 + $0x204] sm:$0xf0]  ;;  %v11063_v22 = vld [vmem:[%s12222_s5 + $0xc] sm:$0xf]  ;;  %v7855_v24 = vor.u32 %v11126_v13, %v7854_v12  ;;  %v4649_v28 = vpack.c.b16 %v3753_v14, %v3753_v14  ;;  %v4650_v29 = vpack.c.b16 %v3754_v15, %v3754_v15 }
  0x82   : > { %5932 = vmatpush.bf16.msra.mxu0 %v9391_v46  ;;  %5945 = vmatpush.bf16.msra.mxu1 %v9395_v47  ;;  %v7864_v23 = vld [vmem:[%s12222_s5 + $0x208] sm:$0xf0]  ;;  %v7859_v27 = vor.u32 %v11062_v18, %v7856_v19  ;;  %v7863_v30 = vor.u32 %v11127_v21, %v7862_v20  ;;  %v10430_v32 = vld [vmem:[%s12222_s5 + $0x1410] sm:$0xf]  ;;  %v11704_v34 = vld [vmem:[%s12222_s5 + $0x1414] sm:$0xf] }
  0x83   : > { %5958 = vmatpush.bf16.msra.mxu2 %v9399_v50  ;;  %5971 = vmatpush.bf16.msra.mxu3 %v9403_v51  ;;  %v7867_v31 = vor.u32 %v11063_v22, %v7864_v23  ;;  %v11768_v33 = vld [vmem:[%s12222_s5 + $0x160c] sm:$0xf0]  ;;  %v10432_v35 = vld [vmem:[%s12222_s5 + $0x1610] sm:$0xf0]  ;;  %v5557_v36 = vsel %vm5543_vm0, %v4647_v25, 0  ;;  %v5560_v37 = vsel %vm5543_vm0, %v4648_v26, 0 }
  0x84   : > { %v10438_v38 = vld [vmem:[%s12222_s5 + $0x1418] sm:$0xf]  ;;  %v5563_v40 = vsel %vm5543_vm0, %v4649_v28, 0  ;;  %v5566_v41 = vsel %vm5543_vm0, %v4650_v29, 0  ;;  %v11705_v42 = vld [vmem:[%s12222_s5 + $0x141c] sm:$0xf]  ;;  %v10431_v45 = vor.u32 %v11768_v33, %v10430_v32  ;;  %v10435_v46 = vor.u32 %v11704_v34, %v10432_v35 }
  0x85   : > { %v11769_v39 = vld [vmem:[%s12222_s5 + $0x1614] sm:$0xf0]  ;;  %v10440_v43 = vld [vmem:[%s12222_s5 + $0x1618] sm:$0xf0]  ;;  %v12307_v44 = vld [vmem:[%s14593_s0] sm:$0xf] }
  0x86   : > { %5933 = vmatpush.bf16.msra.mxu0 %v8879_v59  ;;  %5946 = vmatpush.bf16.msra.mxu1 %v8883_v60  ;;  %vm5539_vm1 = vcmask 818176   ;;  %v9918_v47 = vld [vmem:[%s12222_s5 + $0x1010] sm:$0xf]  ;;  %v10439_v49 = vor.u32 %v11769_v39, %v10438_v38  ;;  %v10443_v50 = vor.u32 %v11705_v42, %v10440_v43  ;;  %v11576_v51 = vld [vmem:[%s12222_s5 + $0x1014] sm:$0xf]  ;;  %s7851_s10 = sshll.u32 %s12218_s19, 10 }
  0x87   : > { %5959 = vmatpush.bf16.msra.mxu2 %v8887_v0  ;;  %5972 = vmatpush.bf16.msra.mxu3 %v8891_v1  ;;  %v11640_v48 = vld [vmem:[%s12222_s5 + $0x120c] sm:$0xf0]  ;;  %v9920_v52 = vld [vmem:[%s12222_s5 + $0x1210] sm:$0xf0]  ;;  %v9926_v53 = vld [vmem:[%s12222_s5 + $0x1018] sm:$0xf] }
  0x88   : > { %v11641_v54 = vld [vmem:[%s12222_s5 + $0x1214] sm:$0xf0]  ;;  %v11577_v55 = vld [vmem:[%s12222_s5 + $0x101c] sm:$0xf]  ;;  %v9919_v57 = vor.u32 %v11640_v48, %v9918_v47  ;;  %v9923_v58 = vor.u32 %v11576_v51, %v9920_v52  ;;  %v9406_v59 = vld [vmem:[%s12222_s5 + $0xc10] sm:$0xf] }
  0x89   : > { %v9928_v56 = vld [vmem:[%s12222_s5 + $0x1218] sm:$0xf0]  ;;  %v11512_v60 = vld [vmem:[%s12222_s5 + $0xe0c] sm:$0xf0]  ;;  %v9927_v61 = vor.u32 %v11641_v54, %v9926_v53  ;;  %v11448_v63 = vld [vmem:[%s12222_s5 + $0xc14] sm:$0xf] }
  0x8a   : > { %5934 = vmatpush.bf16.msra.mxu0 %v8367_v10  ;;  %5947 = vmatpush.bf16.msra.mxu1 %v8371_v11  ;;  %v9931_v62 = vor.u32 %v11577_v55, %v9928_v56  ;;  %v9408_v0 = vld [vmem:[%s12222_s5 + $0xe10] sm:$0xf0]  ;;  %v9414_v1 = vld [vmem:[%s12222_s5 + $0xc18] sm:$0xf]  ;;  %v11449_v3 = vld [vmem:[%s12222_s5 + $0xc1c] sm:$0xf]  ;;  %v9407_v5 = vor.u32 %v11512_v60, %v9406_v59 }
  0x8b   : > { %5960 = vmatpush.bf16.msra.mxu2 %v8375_v16  ;;  %5973 = vmatpush.bf16.msra.mxu3 %v8379_v17  ;;  %v11513_v2 = vld [vmem:[%s12222_s5 + $0xe14] sm:$0xf0]  ;;  %v9416_v4 = vld [vmem:[%s12222_s5 + $0xe18] sm:$0xf0]  ;;  %v9411_v6 = vor.u32 %v11448_v63, %v9408_v0  ;;  %v8894_v7 = vld [vmem:[%s12222_s5 + $0x810] sm:$0xf] }
  0x8c   : > { %v11384_v8 = vld [vmem:[%s12222_s5 + $0xa0c] sm:$0xf0]  ;;  %v9415_v9 = vor.u32 %v11513_v2, %v9414_v1  ;;  %v9419_v10 = vor.u32 %v11449_v3, %v9416_v4  ;;  %v11320_v11 = vld [vmem:[%s12222_s5 + $0x814] sm:$0xf]  ;;  %v8902_v13 = vld [vmem:[%s12222_s5 + $0x818] sm:$0xf] }
  0x8d   : > { %v8896_v12 = vld [vmem:[%s12222_s5 + $0xa10] sm:$0xf0]  ;;  %v11385_v14 = vld [vmem:[%s12222_s5 + $0xa14] sm:$0xf0]  ;;  %v11321_v15 = vld [vmem:[%s12222_s5 + $0x81c] sm:$0xf]  ;;  %v8895_v18 = vor.u32 %v11384_v8, %v8894_v7 }
  0x8e   : > { %5935 = vmatpush.bf16.msra.mxu0 %v7855_v24  ;;  %5948 = vmatpush.bf16.msra.mxu1 %v7859_v27  ;;  %v8904_v16 = vld [vmem:[%s12222_s5 + $0xa18] sm:$0xf0]  ;;  %v8382_v17 = vld [vmem:[%s12222_s5 + $0x410] sm:$0xf]  ;;  %v8899_v19 = vor.u32 %v11320_v11, %v8896_v12  ;;  %v11192_v21 = vld [vmem:[%s12222_s5 + $0x414] sm:$0xf]  ;;  %v8903_v23 = vor.u32 %v11385_v14, %v8902_v13 }
  0x8f   : > { %5961 = vmatpush.bf16.msra.mxu2 %v7863_v30  ;;  %5974 = vmatpush.bf16.msra.mxu3 %v7867_v31  ;;  %v11256_v20 = vld [vmem:[%s12222_s5 + $0x60c] sm:$0xf0]  ;;  %v1031_v22 = vld [vmem:[%s12222_s5 + $0x1820] sm:$0x33]  ;;  %v8907_v24 = vor.u32 %v11321_v15, %v8904_v16  ;;  %v8384_v25 = vld [vmem:[%s12222_s5 + $0x610] sm:$0xf0] }
  0x90   : > { %v8390_v26 = vld [vmem:[%s12222_s5 + $0x418] sm:$0xf]  ;;  %v1032_v27 = vld [vmem:[%s12222_s5 + $0x1828] sm:$0x33]  ;;  %v11193_v29 = vld [vmem:[%s12222_s5 + $0x41c] sm:$0xf]  ;;  %v3755_v31 = vunpack.c.l.b16 %v1031_v22  ;;  %v3756_v32 = vunpack.c.h.b16 %v1031_v22  ;;  %v8383_v33 = vor.u32 %v11256_v20, %v8382_v17  ;;  %v8387_v34 = vor.u32 %v11192_v21, %v8384_v25 }
  0x91   : > { %10924 = vmatmul.msk.bf16.vlgmr.msra.gmra.mxu0 %vm5539_vm1, %v12307_v44  ;;  %10925 = vmatmul.msk.bf16.vlgmr.msra.gmra.mxu1 %vm5539_vm1, %v12307_v44  ;;  %v11257_v28 = vld [vmem:[%s12222_s5 + $0x614] sm:$0xf0]  ;;  %v8392_v30 = vld [vmem:[%s12222_s5 + $0x618] sm:$0xf0]  ;;  %v7870_v35 = vld [vmem:[%s12222_s5 + $0x10] sm:$0xf]  ;;  %v3758_v38 = vunpack.c.h.b16 %v1032_v27 }
  0x92   : > { %5981 = vmatpush.bf16.msrb.mxu0 %v5557_v36  ;;  %5994 = vmatpush.bf16.msrb.mxu1 %v5560_v37  ;;  %v11128_v36 = vld [vmem:[%s12222_s5 + $0x20c] sm:$0xf0]  ;;  %v3757_v37 = vunpack.c.l.b16 %v1032_v27  ;;  %v8391_v39 = vor.u32 %v11257_v28, %v8390_v26  ;;  %v7872_v42 = vld [vmem:[%s12222_s5 + $0x210] sm:$0xf0]  ;;  %v7878_v43 = vld [vmem:[%s12222_s5 + $0x18] sm:$0xf] }
  0x93   : > { %6007 = vmatpush.bf16.msrb.mxu2 %v5563_v40  ;;  %6020 = vmatpush.bf16.msrb.mxu3 %v5566_v41  ;;  %v8395_v40 = vor.u32 %v11193_v29, %v8392_v30  ;;  %v11064_v41 = vld [vmem:[%s12222_s5 + $0x14] sm:$0xf]  ;;  %v7880_v47 = vld [vmem:[%s12222_s5 + $0x218] sm:$0xf0]  ;;  %v7871_v48 = vor.u32 %v11128_v36, %v7870_v35  ;;  %v4654_v53 = vpack.c.b16 %v3758_v38, %v3758_v38  ;;  %v10446_v56 = vld [vmem:[%s12222_s5 + $0x1420] sm:$0xf] }
  0x94   : > { %10926 = vmatmul.msk.bf16.vlgmr.msra.gmra.mxu2 %vm5539_vm1, %v12307_v44  ;;  %10927 = vmatmul.msk.bf16.vlgmr.msra.gmra.mxu3 %vm5539_vm1, %v12307_v44  ;;  %v7875_v51 = vor.u32 %v11064_v41, %v7872_v42  ;;  %v4653_v52 = vpack.c.b16 %v3757_v37, %v3757_v37  ;;  %v10448_v59 = vld [vmem:[%s12222_s5 + $0x1620] sm:$0xf0]  ;;  %v11771_v63 = vld [vmem:[%s12222_s5 + $0x1624] sm:$0xf0]  ;;  %v11707_v2 = vld [vmem:[%s12222_s5 + $0x142c] sm:$0xf] }
  0x95   : > { %v5578_v1 = vsel %vm5543_vm0, %v4654_v53, 0  ;;  %v10456_v3 = vld [vmem:[%s12222_s5 + $0x1628] sm:$0xf0]  ;;  %v11642_v7 = vld [vmem:[%s12222_s5 + $0x121c] sm:$0xf0]  ;;  %s12635_s11 = scalar_lea.vmem [#allocation7], %s7851_s10 }
  0x96   : > { %5982 = vmatpush.bf16.msrb.mxu0 %v10431_v45  ;;  %5995 = vmatpush.bf16.msrb.mxu1 %v10435_v46  ;;  %v11129_v45 = vld [vmem:[%s12222_s5 + $0x214] sm:$0xf0]  ;;  %v11065_v46 = vld [vmem:[%s12222_s5 + $0x1c] sm:$0xf]  ;;  %v5575_v0 = vsel %vm5543_vm0, %v4653_v52, 0 }
  0x97   : > { %6008 = vmatpush.bf16.msrb.mxu2 %v10439_v49  ;;  %6021 = vmatpush.bf16.msrb.mxu3 %v10443_v50  ;;  %v4651_v49 = vpack.c.b16 %v3755_v31, %v3755_v31  ;;  %v4652_v50 = vpack.c.b16 %v3756_v32, %v3756_v32  ;;  %v7879_v54 = vor.u32 %v11129_v45, %v7878_v43  ;;  %v9936_v11 = vld [vmem:[%s12222_s5 + $0x1220] sm:$0xf0]  ;;  %v9942_v12 = vld [vmem:[%s12222_s5 + $0x1028] sm:$0xf]  ;;  %v11579_v14 = vld [vmem:[%s12222_s5 + $0x102c] sm:$0xf] }
  0x98   : > { %v7883_v55 = vor.u32 %v11065_v46, %v7880_v47  ;;  %v11643_v13 = vld [vmem:[%s12222_s5 + $0x1224] sm:$0xf0]  ;;  %v9944_v15 = vld [vmem:[%s12222_s5 + $0x1228] sm:$0xf0]  ;;  %v11450_v22 = vld [vmem:[%s12222_s5 + $0xc24] sm:$0xf] }
  0x99   : > { %v5569_v60 = vsel %vm5543_vm0, %v4651_v49, 0  ;;  %v9943_v20 = vor.u32 %v11643_v13, %v9942_v12  ;;  %v9947_v21 = vor.u32 %v11579_v14, %v9944_v15  ;;  %v11515_v25 = vld [vmem:[%s12222_s5 + $0xe24] sm:$0xf0]  ;;  %v11451_v26 = vld [vmem:[%s12222_s5 + $0xc2c] sm:$0xf] }
  0x9a   : > { %5983 = vmatpush.bf16.msrb.mxu0 %v9919_v57  ;;  %5996 = vmatpush.bf16.msrb.mxu1 %v9923_v58  ;;  %v11770_v57 = vld [vmem:[%s12222_s5 + $0x161c] sm:$0xf0]  ;;  %v11706_v58 = vld [vmem:[%s12222_s5 + $0x1424] sm:$0xf]  ;;  %v9432_v27 = vld [vmem:[%s12222_s5 + $0xe28] sm:$0xf0] }
  0x9b   : > { %6009 = vmatpush.bf16.msrb.mxu2 %v9927_v61  ;;  %6022 = vmatpush.bf16.msrb.mxu3 %v9931_v62  ;;  %v5572_v61 = vsel %vm5543_vm0, %v4652_v50, 0  ;;  %v10454_v62 = vld [vmem:[%s12222_s5 + $0x1428] sm:$0xf]  ;;  %v10447_v4 = vor.u32 %v11770_v57, %v10446_v56  ;;  %v8910_v30 = vld [vmem:[%s12222_s5 + $0x820] sm:$0xf] }
  0x9c   : > { %v10455_v8 = vor.u32 %v11771_v63, %v10454_v62  ;;  %v11386_v31 = vld [vmem:[%s12222_s5 + $0xa1c] sm:$0xf0]  ;;  %v8912_v35 = vld [vmem:[%s12222_s5 + $0xa20] sm:$0xf0]  ;;  %v8918_v36 = vld [vmem:[%s12222_s5 + $0x828] sm:$0xf] }
  0x9d   : > { %v11387_v37 = vld [vmem:[%s12222_s5 + $0xa24] sm:$0xf0]  ;;  %v11323_v38 = vld [vmem:[%s12222_s5 + $0x82c] sm:$0xf]  ;;  %v8911_v41 = vor.u32 %v11386_v31, %v8910_v30  ;;  %v11258_v43 = vld [vmem:[%s12222_s5 + $0x61c] sm:$0xf0] }
  0x9e   : > { %5984 = vmatpush.bf16.msrb.mxu0 %v9407_v5  ;;  %5997 = vmatpush.bf16.msrb.mxu1 %v9411_v6  ;;  %v10451_v5 = vor.u32 %v11706_v58, %v10448_v59  ;;  %v9934_v6 = vld [vmem:[%s12222_s5 + $0x1020] sm:$0xf]  ;;  %v11194_v45 = vld [vmem:[%s12222_s5 + $0x424] sm:$0xf]  ;;  %v1033_v46 = vld [vmem:[%s12222_s5 + $0x1830] sm:$0x33]  ;;  %v8919_v47 = vor.u32 %v11387_v37, %v8918_v36 }
  0x9f   : > { %6010 = vmatpush.bf16.msrb.mxu2 %v9415_v9  ;;  %6023 = vmatpush.bf16.msrb.mxu3 %v9419_v10  ;;  %v10459_v9 = vor.u32 %v11707_v2, %v10456_v3  ;;  %v11578_v10 = vld [vmem:[%s12222_s5 + $0x1024] sm:$0xf]  ;;  %v9935_v16 = vor.u32 %v11642_v7, %v9934_v6  ;;  %v8406_v50 = vld [vmem:[%s12222_s5 + $0x428] sm:$0xf]  ;;  %v11195_v53 = vld [vmem:[%s12222_s5 + $0x42c] sm:$0xf]  ;;  %v3760_v56 = vunpack.c.h.b16 %v1033_v46 }
  0xa0   : > { %v9939_v17 = vor.u32 %v11578_v10, %v9936_v11  ;;  %v8400_v49 = vld [vmem:[%s12222_s5 + $0x620] sm:$0xf0]  ;;  %v11259_v52 = vld [vmem:[%s12222_s5 + $0x624] sm:$0xf0]  ;;  %v7886_v59 = vld [vmem:[%s12222_s5 + $0x20] sm:$0xf] }
  0xa1   : > { %v8403_v58 = vor.u32 %v11194_v45, %v8400_v49  ;;  %v8407_v63 = vor.u32 %v11259_v52, %v8406_v50  ;;  %v7888_v2 = vld [vmem:[%s12222_s5 + $0x220] sm:$0xf0]  ;;  %v7894_v3 = vld [vmem:[%s12222_s5 + $0x28] sm:$0xf]  ;;  %v7896_v6 = vld [vmem:[%s12222_s5 + $0x228] sm:$0xf0] }
  0xa2   : > { %5985 = vmatpush.bf16.msrb.mxu0 %v8895_v18  ;;  %5998 = vmatpush.bf16.msrb.mxu1 %v8899_v19  ;;  %v9422_v18 = vld [vmem:[%s12222_s5 + $0xc20] sm:$0xf]  ;;  %v10462_v15 = vld [vmem:[%s12222_s5 + $0x1430] sm:$0xf]  ;;  %v11645_v36 = vld [vmem:[%s12222_s5 + $0x1234] sm:$0xf0] }
  0xa3   : > { %6011 = vmatpush.bf16.msrb.mxu2 %v8903_v23  ;;  %6024 = vmatpush.bf16.msrb.mxu3 %v8907_v24  ;;  %v11514_v19 = vld [vmem:[%s12222_s5 + $0xe1c] sm:$0xf0]  ;;  %v9424_v23 = vld [vmem:[%s12222_s5 + $0xe20] sm:$0xf0]  ;;  %v9430_v24 = vld [vmem:[%s12222_s5 + $0xc28] sm:$0xf] }
  0xa4   : > { %v9423_v28 = vor.u32 %v11514_v19, %v9422_v18  ;;  %v9427_v29 = vor.u32 %v11450_v22, %v9424_v23  ;;  %v9431_v32 = vor.u32 %v11515_v25, %v9430_v24  ;;  %v10464_v18 = vld [vmem:[%s12222_s5 + $0x1630] sm:$0xf0]  ;;  %v11773_v22 = vld [vmem:[%s12222_s5 + $0x1634] sm:$0xf0]  ;;  %v11709_v25 = vld [vmem:[%s12222_s5 + $0x143c] sm:$0xf] }
  0xa5   : > { %v11644_v30 = vld [vmem:[%s12222_s5 + $0x122c] sm:$0xf0]  ;;  %v11581_v37 = vld [vmem:[%s12222_s5 + $0x103c] sm:$0xf]  ;;  %v11517_v49 = vld [vmem:[%s12222_s5 + $0xe34] sm:$0xf0] }
  0xa6   : > { %5986 = vmatpush.bf16.msrb.mxu0 %v8383_v33  ;;  %5999 = vmatpush.bf16.msrb.mxu1 %v8387_v34  ;;  %v9435_v33 = vor.u32 %v11451_v26, %v9432_v27  ;;  %v11322_v34 = vld [vmem:[%s12222_s5 + $0x824] sm:$0xf]  ;;  %v10472_v26 = vld [vmem:[%s12222_s5 + $0x1638] sm:$0xf0] }
  0xa7   : > { %6012 = vmatpush.bf16.msrb.mxu2 %v8391_v39  ;;  %6025 = vmatpush.bf16.msrb.mxu3 %v8395_v40  ;;  %v8920_v39 = vld [vmem:[%s12222_s5 + $0xa28] sm:$0xf0]  ;;  %v8398_v40 = vld [vmem:[%s12222_s5 + $0x420] sm:$0xf]  ;;  %v8915_v42 = vor.u32 %v11322_v34, %v8912_v35  ;;  %v9952_v34 = vld [vmem:[%s12222_s5 + $0x1230] sm:$0xf0] }
  0xa8   : > { %v8399_v57 = vor.u32 %v11258_v43, %v8398_v40  ;;  %v9958_v35 = vld [vmem:[%s12222_s5 + $0x1038] sm:$0xf]  ;;  %v11453_v50 = vld [vmem:[%s12222_s5 + $0xc3c] sm:$0xf] }
  0xa9   : > { %v9959_v43 = vor.u32 %v11645_v36, %v9958_v35 }
  0xaa   : > { %5987 = vmatpush.bf16.msrb.mxu0 %v7871_v48  ;;  %6000 = vmatpush.bf16.msrb.mxu1 %v7875_v51  ;;  %v8923_v48 = vor.u32 %v11323_v38, %v8920_v39  ;;  %v1034_v51 = vld [vmem:[%s12222_s5 + $0x1838] sm:$0x33] }
  0xab   : > { %6013 = vmatpush.bf16.msrb.mxu2 %v7879_v54  ;;  %6026 = vmatpush.bf16.msrb.mxu3 %v7883_v55  ;;  %v8408_v54 = vld [vmem:[%s12222_s5 + $0x628] sm:$0xf0]  ;;  %v3759_v55 = vunpack.c.l.b16 %v1033_v46  ;;  %v3762_v62 = vunpack.c.h.b16 %v1034_v51  ;;  %v9960_v38 = vld [vmem:[%s12222_s5 + $0x1238] sm:$0xf0]  ;;  %v11452_v46 = vld [vmem:[%s12222_s5 + $0xc34] sm:$0xf] }
  0xac   : > { %v9963_v45 = vor.u32 %v11581_v37, %v9960_v38 }
  0xad   : > { %10928 = vmatmul.msk.bf16.vlgmr.msrb.gmra.mxu0 %vm5539_vm1, %v12307_v44  ;;  %10929 = vmatmul.msk.bf16.vlgmr.msrb.gmra.mxu1 %vm5539_vm1, %v12307_v44  ;;  %v4658_v12 = vpack.c.b16 %v3762_v62, %v3762_v62  ;;  %v11325_v62 = vld [vmem:[%s12222_s5 + $0x83c] sm:$0xf] }
  0xae   : > { %6033 = vmatpush.bf16.msra.mxu0 %v5569_v60  ;;  %6046 = vmatpush.bf16.msra.mxu1 %v5572_v61  ;;  %v11130_v60 = vld [vmem:[%s12222_s5 + $0x21c] sm:$0xf0]  ;;  %v3761_v61 = vunpack.c.l.b16 %v1034_v51  ;;  %v9448_v51 = vld [vmem:[%s12222_s5 + $0xe38] sm:$0xf0] }
  0xaf   : > { %6059 = vmatpush.bf16.msra.mxu2 %v5575_v0  ;;  %6072 = vmatpush.bf16.msra.mxu3 %v5578_v1  ;;  %v8411_v0 = vor.u32 %v11195_v53, %v8408_v54  ;;  %v11066_v1 = vld [vmem:[%s12222_s5 + $0x24] sm:$0xf]  ;;  %v7887_v7 = vor.u32 %v11130_v60, %v7886_v59  ;;  %v5590_v24 = vsel %vm5543_vm0, %v4658_v12, 0  ;;  %v8926_v54 = vld [vmem:[%s12222_s5 + $0x830] sm:$0xf] }
  0xb0   : > { %10930 = vmatmul.msk.bf16.vlgmr.msrb.gmra.mxu2 %vm5539_vm1, %v12307_v44  ;;  %10931 = vmatmul.msk.bf16.vlgmr.msrb.gmra.mxu3 %vm5539_vm1, %v12307_v44  ;;  %v7891_v10 = vor.u32 %v11066_v1, %v7888_v2  ;;  %v4657_v11 = vpack.c.b16 %v3761_v61, %v3761_v61  ;;  %v8928_v59 = vld [vmem:[%s12222_s5 + $0xa30] sm:$0xf0]  ;;  %v8934_v60 = vld [vmem:[%s12222_s5 + $0x838] sm:$0xf]  ;;  %v1036_v1 = vld [vmem:[%s12222_s5 + $0x1848] sm:$0x33] }
  0xb1   : > { %v11389_v61 = vld [vmem:[%s12222_s5 + $0xa34] sm:$0xf0] }
  0xb2   : > { %6034 = vmatpush.bf16.msra.mxu0 %v10447_v4  ;;  %6047 = vmatpush.bf16.msra.mxu1 %v10451_v5  ;;  %v11131_v4 = vld [vmem:[%s12222_s5 + $0x224] sm:$0xf0]  ;;  %v11067_v5 = vld [vmem:[%s12222_s5 + $0x2c] sm:$0xf]  ;;  %v5587_v23 = vsel %vm5543_vm0, %v4657_v11, 0 }
  0xb3   : > { %6060 = vmatpush.bf16.msra.mxu2 %v10455_v8  ;;  %6073 = vmatpush.bf16.msra.mxu3 %v10459_v9  ;;  %v4655_v8 = vpack.c.b16 %v3759_v55, %v3759_v55  ;;  %v4656_v9 = vpack.c.b16 %v3760_v56, %v3760_v56  ;;  %v7895_v13 = vor.u32 %v11131_v4, %v7894_v3  ;;  %v11388_v55 = vld [vmem:[%s12222_s5 + $0xa2c] sm:$0xf0]  ;;  %v11324_v56 = vld [vmem:[%s12222_s5 + $0x834] sm:$0xf]  ;;  %v11261_v11 = vld [vmem:[%s12222_s5 + $0x634] sm:$0xf0] }
  0xb4   : > { %v7899_v14 = vor.u32 %v11067_v5, %v7896_v6  ;;  %v8927_v2 = vor.u32 %v11388_v55, %v8926_v54  ;;  %v8931_v3 = vor.u32 %v11324_v56, %v8928_v59  ;;  %v8414_v4 = vld [vmem:[%s12222_s5 + $0x430] sm:$0xf]  ;;  %v11196_v6 = vld [vmem:[%s12222_s5 + $0x434] sm:$0xf]  ;;  %v11646_v54 = vld [vmem:[%s12222_s5 + $0x123c] sm:$0xf0] }
  0xb5   : > { %v5581_v19 = vsel %vm5543_vm0, %v4655_v8, 0  ;;  %v11260_v5 = vld [vmem:[%s12222_s5 + $0x62c] sm:$0xf0]  ;;  %v9974_v59 = vld [vmem:[%s12222_s5 + $0x1048] sm:$0xf] }
  0xb6   : > { %6035 = vmatpush.bf16.msra.mxu0 %v9935_v16  ;;  %6048 = vmatpush.bf16.msra.mxu1 %v9939_v17  ;;  %v11772_v16 = vld [vmem:[%s12222_s5 + $0x162c] sm:$0xf0]  ;;  %v11708_v17 = vld [vmem:[%s12222_s5 + $0x1434] sm:$0xf] }
  0xb7   : > { %6061 = vmatpush.bf16.msra.mxu2 %v9943_v20  ;;  %6074 = vmatpush.bf16.msra.mxu3 %v9947_v21  ;;  %v5584_v20 = vsel %vm5543_vm0, %v4656_v9, 0  ;;  %v10470_v21 = vld [vmem:[%s12222_s5 + $0x1438] sm:$0xf]  ;;  %v10463_v27 = vor.u32 %v11772_v16, %v10462_v15  ;;  %v8416_v9 = vld [vmem:[%s12222_s5 + $0x630] sm:$0xf0]  ;;  %v3765_v16 = vunpack.c.l.b16 %v1036_v1 }
  0xb8   : > { %v10471_v31 = vor.u32 %v11773_v22, %v10470_v21  ;;  %v8424_v15 = vld [vmem:[%s12222_s5 + $0x638] sm:$0xf0]  ;;  %v7902_v21 = vld [vmem:[%s12222_s5 + $0x30] sm:$0xf] }
  0xb9   : > { %v11132_v22 = vld [vmem:[%s12222_s5 + $0x22c] sm:$0xf0] }
  0xba   : > { %6036 = vmatpush.bf16.msra.mxu0 %v9423_v28  ;;  %6049 = vmatpush.bf16.msra.mxu1 %v9427_v29  ;;  %v10467_v28 = vor.u32 %v11708_v17, %v10464_v18  ;;  %v9950_v29 = vld [vmem:[%s12222_s5 + $0x1030] sm:$0xf]  ;;  %v3766_v17 = vunpack.c.h.b16 %v1036_v1  ;;  %v8415_v18 = vor.u32 %v11260_v5, %v8414_v4  ;;  %v9454_v1 = vld [vmem:[%s12222_s5 + $0xc40] sm:$0xf]  ;;  %v11454_v5 = vld [vmem:[%s12222_s5 + $0xc44] sm:$0xf] }
  0xbb   : > { %6062 = vmatpush.bf16.msra.mxu2 %v9431_v32  ;;  %6075 = vmatpush.bf16.msra.mxu3 %v9435_v33  ;;  %v10475_v32 = vor.u32 %v11709_v25, %v10472_v26  ;;  %v11580_v33 = vld [vmem:[%s12222_s5 + $0x1034] sm:$0xf]  ;;  %v9951_v39 = vor.u32 %v11644_v30, %v9950_v29  ;;  %v7910_v26 = vld [vmem:[%s12222_s5 + $0x38] sm:$0xf]  ;;  %v11069_v30 = vld [vmem:[%s12222_s5 + $0x3c] sm:$0xf] }
  0xbc   : > { %v9955_v40 = vor.u32 %v11580_v33, %v9952_v34  ;;  %v7904_v25 = vld [vmem:[%s12222_s5 + $0x230] sm:$0xf0]  ;;  %v11133_v29 = vld [vmem:[%s12222_s5 + $0x234] sm:$0xf0]  ;;  %v4662_v33 = vpack.c.b16 %v3766_v17, %v3766_v17  ;;  %v7903_v34 = vor.u32 %v11132_v22, %v7902_v21  ;;  %v11327_v21 = vld [vmem:[%s12222_s5 + $0x84c] sm:$0xf] }
  0xbd   : > { %v7911_v36 = vor.u32 %v11133_v29, %v7910_v26  ;;  %v8952_v22 = vld [vmem:[%s12222_s5 + $0xa48] sm:$0xf0]  ;;  %v11198_v29 = vld [vmem:[%s12222_s5 + $0x444] sm:$0xf] }
  0xbe   : > { %6037 = vmatpush.bf16.msra.mxu0 %v8911_v41  ;;  %6050 = vmatpush.bf16.msra.mxu1 %v8915_v42  ;;  %v9438_v41 = vld [vmem:[%s12222_s5 + $0xc30] sm:$0xf] }
  0xbf   : > { %6063 = vmatpush.bf16.msra.mxu2 %v8919_v47  ;;  %6076 = vmatpush.bf16.msra.mxu3 %v8923_v48  ;;  %v11516_v42 = vld [vmem:[%s12222_s5 + $0xe2c] sm:$0xf0]  ;;  %v9440_v47 = vld [vmem:[%s12222_s5 + $0xe30] sm:$0xf0]  ;;  %v9446_v48 = vld [vmem:[%s12222_s5 + $0xc38] sm:$0xf] }
  0xc0   : > { %v9439_v52 = vor.u32 %v11516_v42, %v9438_v41  ;;  %v9443_v53 = vor.u32 %v11452_v46, %v9440_v47  ;;  %v5602_v41 = vsel %vm5543_vm0, %v4662_v33, 0  ;;  %v10478_v42 = vld [vmem:[%s12222_s5 + $0x1440] sm:$0xf]  ;;  %v10480_v46 = vld [vmem:[%s12222_s5 + $0x1640] sm:$0xf0] }
  0xc1   : > { %v10486_v47 = vld [vmem:[%s12222_s5 + $0x1448] sm:$0xf] }
  0xc2   : > { %6038 = vmatpush.bf16.msra.mxu0 %v8399_v57  ;;  %6051 = vmatpush.bf16.msra.mxu1 %v8403_v58  ;;  %v9447_v57 = vor.u32 %v11517_v49, %v9446_v48  ;;  %v9451_v58 = vor.u32 %v11453_v50, %v9448_v51  ;;  %v11775_v48 = vld [vmem:[%s12222_s5 + $0x1644] sm:$0xf0]  ;;  %v11711_v49 = vld [vmem:[%s12222_s5 + $0x144c] sm:$0xf] }
  0xc3   : > { %6064 = vmatpush.bf16.msra.mxu2 %v8407_v63  ;;  %6077 = vmatpush.bf16.msra.mxu3 %v8411_v0  ;;  %v8936_v63 = vld [vmem:[%s12222_s5 + $0xa38] sm:$0xf0]  ;;  %v1035_v0 = vld [vmem:[%s12222_s5 + $0x1840] sm:$0x33]  ;;  %v10488_v50 = vld [vmem:[%s12222_s5 + $0x1648] sm:$0xf0]  ;;  %v10487_v55 = vor.u32 %v11775_v48, %v10486_v47 }
  0xc4   : > { %v8939_v8 = vor.u32 %v11325_v62, %v8936_v63  ;;  %v3763_v12 = vunpack.c.l.b16 %v1035_v0  ;;  %v10491_v56 = vor.u32 %v11711_v49, %v10488_v50  ;;  %v9976_v62 = vld [vmem:[%s12222_s5 + $0x1248] sm:$0xf0]  ;;  %v8438_v33 = vld [vmem:[%s12222_s5 + $0x448] sm:$0xf]  ;;  %v11070_v48 = vld [vmem:[%s12222_s5 + $0x44] sm:$0xf] }
  0xc5   : > { %v7920_v49 = vld [vmem:[%s12222_s5 + $0x240] sm:$0xf0]  ;;  %v7926_v50 = vld [vmem:[%s12222_s5 + $0x48] sm:$0xf] }
  0xc6   : > { %6039 = vmatpush.bf16.msra.mxu0 %v7887_v7  ;;  %6052 = vmatpush.bf16.msra.mxu1 %v7891_v10  ;;  %v8935_v7 = vor.u32 %v11389_v61, %v8934_v60  ;;  %v8422_v10 = vld [vmem:[%s12222_s5 + $0x438] sm:$0xf]  ;;  %v11647_v60 = vld [vmem:[%s12222_s5 + $0x1244] sm:$0xf0]  ;;  %v11583_v61 = vld [vmem:[%s12222_s5 + $0x104c] sm:$0xf] }
  0xc7   : > { %6065 = vmatpush.bf16.msra.mxu2 %v7895_v13  ;;  %6078 = vmatpush.bf16.msra.mxu3 %v7899_v14  ;;  %v3764_v13 = vunpack.c.h.b16 %v1035_v0  ;;  %v11197_v14 = vld [vmem:[%s12222_s5 + $0x43c] sm:$0xf]  ;;  %v9979_v4 = vor.u32 %v11583_v61, %v9976_v62 }
  0xc9   : > { %10932 = vmatmul.msk.bf16.vlgmr.msra.gmra.mxu0 %vm5539_vm1, %v12307_v44  ;;  %10933 = vmatmul.msk.bf16.vlgmr.msra.gmra.mxu1 %vm5539_vm1, %v12307_v44 }
  0xca   : > { %6085 = vmatpush.bf16.msrb.mxu0 %v5581_v19  ;;  %6098 = vmatpush.bf16.msrb.mxu1 %v5584_v20  ;;  %v8419_v19 = vor.u32 %v11196_v6, %v8416_v9  ;;  %v8423_v20 = vor.u32 %v11261_v11, %v8422_v10  ;;  %v9456_v6 = vld [vmem:[%s12222_s5 + $0xe40] sm:$0xf0]  ;;  %v11455_v9 = vld [vmem:[%s12222_s5 + $0xc4c] sm:$0xf] }
  0xcb   : > { %6111 = vmatpush.bf16.msrb.mxu2 %v5587_v23  ;;  %6124 = vmatpush.bf16.msrb.mxu3 %v5590_v24  ;;  %v8427_v23 = vor.u32 %v11197_v14, %v8424_v15  ;;  %v11068_v24 = vld [vmem:[%s12222_s5 + $0x34] sm:$0xf]  ;;  %v9464_v10 = vld [vmem:[%s12222_s5 + $0xe48] sm:$0xf0]  ;;  %v11390_v14 = vld [vmem:[%s12222_s5 + $0xa3c] sm:$0xf0] }
  0xcc   : > { %10934 = vmatmul.msk.bf16.vlgmr.msra.gmra.mxu2 %vm5539_vm1, %v12307_v44  ;;  %10935 = vmatmul.msk.bf16.vlgmr.msra.gmra.mxu3 %vm5539_vm1, %v12307_v44  ;;  %v7907_v35 = vor.u32 %v11068_v24, %v7904_v25  ;;  %v11326_v15 = vld [vmem:[%s12222_s5 + $0x844] sm:$0xf]  ;;  %v9467_v17 = vor.u32 %v11455_v9, %v9464_v10  ;;  %v1038_v24 = vld [vmem:[%s12222_s5 + $0x1858] sm:$0x33] }
  0xcd   : > { %v10504_v9 = vld [vmem:[%s12222_s5 + $0x1658] sm:$0xf0] }
  0xce   : > { %6086 = vmatpush.bf16.msrb.mxu0 %v10463_v27  ;;  %6099 = vmatpush.bf16.msrb.mxu1 %v10467_v28  ;;  %v4659_v27 = vpack.c.b16 %v3763_v12, %v3763_v12  ;;  %v4660_v28 = vpack.c.b16 %v3764_v13, %v3764_v13  ;;  %v9459_v12 = vor.u32 %v11454_v5, %v9456_v6  ;;  %v8942_v13 = vld [vmem:[%s12222_s5 + $0x840] sm:$0xf]  ;;  %v10496_v5 = vld [vmem:[%s12222_s5 + $0x1650] sm:$0xf0]  ;;  %v10502_v6 = vld [vmem:[%s12222_s5 + $0x1458] sm:$0xf] }
  0xcf   : > { %6112 = vmatpush.bf16.msrb.mxu2 %v10471_v31  ;;  %6125 = vmatpush.bf16.msrb.mxu3 %v10475_v32  ;;  %v7912_v31 = vld [vmem:[%s12222_s5 + $0x238] sm:$0xf0]  ;;  %v4661_v32 = vpack.c.b16 %v3765_v16, %v3765_v16  ;;  %v8943_v25 = vor.u32 %v11390_v14, %v8942_v13  ;;  %v11648_v13 = vld [vmem:[%s12222_s5 + $0x124c] sm:$0xf0] }
  0xd0   : > { %v7915_v37 = vor.u32 %v11069_v30, %v7912_v31  ;;  %v5593_v38 = vsel %vm5543_vm0, %v4659_v27, 0  ;;  %v8430_v27 = vld [vmem:[%s12222_s5 + $0x440] sm:$0xf]  ;;  %v8955_v31 = vor.u32 %v11327_v21, %v8952_v22  ;;  %v9992_v21 = vld [vmem:[%s12222_s5 + $0x1258] sm:$0xf0] }
  0xd2   : > { %6087 = vmatpush.bf16.msrb.mxu0 %v9951_v39  ;;  %6100 = vmatpush.bf16.msrb.mxu1 %v9955_v40  ;;  %v5596_v39 = vsel %vm5543_vm0, %v4660_v28, 0  ;;  %v5599_v40 = vsel %vm5543_vm0, %v4661_v32, 0  ;;  %v11262_v28 = vld [vmem:[%s12222_s5 + $0x63c] sm:$0xf0]  ;;  %v8432_v32 = vld [vmem:[%s12222_s5 + $0x640] sm:$0xf0] }
  0xd3   : > { %6113 = vmatpush.bf16.msrb.mxu2 %v9959_v43  ;;  %6126 = vmatpush.bf16.msrb.mxu3 %v9963_v45  ;;  %v11774_v43 = vld [vmem:[%s12222_s5 + $0x163c] sm:$0xf0]  ;;  %v11710_v45 = vld [vmem:[%s12222_s5 + $0x1444] sm:$0xf] }
  0xd4   : > { %v10479_v51 = vor.u32 %v11774_v43, %v10478_v42  ;;  %v8435_v42 = vor.u32 %v11198_v29, %v8432_v32  ;;  %v9472_v29 = vld [vmem:[%s12222_s5 + $0xe50] sm:$0xf0]  ;;  %v9480_v32 = vld [vmem:[%s12222_s5 + $0xe58] sm:$0xf0] }
  0xd6   : > { %6088 = vmatpush.bf16.msrb.mxu0 %v9439_v52  ;;  %6101 = vmatpush.bf16.msrb.mxu1 %v9443_v53  ;;  %v10483_v52 = vor.u32 %v11710_v45, %v10480_v46  ;;  %v9966_v53 = vld [vmem:[%s12222_s5 + $0x1040] sm:$0xf] }
  0xd7   : > { %6114 = vmatpush.bf16.msrb.mxu2 %v9447_v57  ;;  %6127 = vmatpush.bf16.msrb.mxu3 %v9451_v58  ;;  %v11582_v57 = vld [vmem:[%s12222_s5 + $0x1044] sm:$0xf]  ;;  %v9967_v63 = vor.u32 %v11646_v54, %v9966_v53  ;;  %v7918_v45 = vld [vmem:[%s12222_s5 + $0x40] sm:$0xf]  ;;  %v11135_v53 = vld [vmem:[%s12222_s5 + $0x244] sm:$0xf0] }
  0xd8   : > { %v9968_v58 = vld [vmem:[%s12222_s5 + $0x1240] sm:$0xf0]  ;;  %v11134_v46 = vld [vmem:[%s12222_s5 + $0x23c] sm:$0xf0]  ;;  %v11071_v54 = vld [vmem:[%s12222_s5 + $0x4c] sm:$0xf] }
  0xd9   : > { %v9971_v0 = vor.u32 %v11582_v57, %v9968_v58  ;;  %v7919_v58 = vor.u32 %v11134_v46, %v7918_v45  ;;  %v8968_v45 = vld [vmem:[%s12222_s5 + $0xa58] sm:$0xf0]  ;;  %v1039_v46 = vld [vmem:[%s12222_s5 + $0x1860] sm:$0x33] }
  0xda   : > { %6089 = vmatpush.bf16.msrb.mxu0 %v8927_v2  ;;  %6102 = vmatpush.bf16.msrb.mxu1 %v8931_v3  ;;  %v11518_v2 = vld [vmem:[%s12222_s5 + $0xe3c] sm:$0xf0]  ;;  %v9975_v3 = vor.u32 %v11647_v60, %v9974_v59  ;;  %v7923_v59 = vor.u32 %v11070_v48, %v7920_v49  ;;  %v7927_v60 = vor.u32 %v11135_v53, %v7926_v50  ;;  %v8446_v50 = vld [vmem:[%s12222_s5 + $0x450] sm:$0xf] }
  0xdb   : > { %6115 = vmatpush.bf16.msrb.mxu2 %v8935_v7  ;;  %6128 = vmatpush.bf16.msrb.mxu3 %v8939_v8  ;;  %v9462_v7 = vld [vmem:[%s12222_s5 + $0xc48] sm:$0xf]  ;;  %v9455_v11 = vor.u32 %v11518_v2, %v9454_v1  ;;  %v10494_v2 = vld [vmem:[%s12222_s5 + $0x1450] sm:$0xf] }
  0xdc   : > { %v11519_v8 = vld [vmem:[%s12222_s5 + $0xe44] sm:$0xf0] }
  0xdd   : > { %v9463_v16 = vor.u32 %v11519_v8, %v9462_v7  ;;  %v11777_v7 = vld [vmem:[%s12222_s5 + $0x1654] sm:$0xf0]  ;;  %v11713_v8 = vld [vmem:[%s12222_s5 + $0x145c] sm:$0xf] }
  0xde   : > { %6090 = vmatpush.bf16.msrb.mxu0 %v8415_v18  ;;  %6103 = vmatpush.bf16.msrb.mxu1 %v8419_v19  ;;  %v8944_v18 = vld [vmem:[%s12222_s5 + $0xa40] sm:$0xf0]  ;;  %v8950_v19 = vld [vmem:[%s12222_s5 + $0x848] sm:$0xf]  ;;  %v10503_v14 = vor.u32 %v11777_v7, %v10502_v6  ;;  %v7936_v6 = vld [vmem:[%s12222_s5 + $0x250] sm:$0xf0] }
  0xdf   : > { %6116 = vmatpush.bf16.msrb.mxu2 %v8423_v20  ;;  %6129 = vmatpush.bf16.msrb.mxu3 %v8427_v23  ;;  %v11391_v20 = vld [vmem:[%s12222_s5 + $0xa44] sm:$0xf0]  ;;  %v1037_v23 = vld [vmem:[%s12222_s5 + $0x1850] sm:$0x33]  ;;  %v8947_v26 = vor.u32 %v11326_v15, %v8944_v18  ;;  %v10507_v15 = vor.u32 %v11713_v8, %v10504_v9  ;;  %v9990_v18 = vld [vmem:[%s12222_s5 + $0x1058] sm:$0xf] }
  0xe0   : > { %v8951_v30 = vor.u32 %v11391_v20, %v8950_v19  ;;  %v11649_v19 = vld [vmem:[%s12222_s5 + $0x1254] sm:$0xf0]  ;;  %v11585_v20 = vld [vmem:[%s12222_s5 + $0x105c] sm:$0xf] }
  0xe1   : > { %v7942_v7 = vld [vmem:[%s12222_s5 + $0x58] sm:$0xf] }
  0xe2   : > { %6091 = vmatpush.bf16.msrb.mxu0 %v7903_v34  ;;  %6104 = vmatpush.bf16.msrb.mxu1 %v7907_v35  ;;  %v11263_v34 = vld [vmem:[%s12222_s5 + $0x644] sm:$0xf0]  ;;  %v3767_v35 = vunpack.c.l.b16 %v1037_v23  ;;  %v11137_v9 = vld [vmem:[%s12222_s5 + $0x254] sm:$0xf0] }
  0xe3   : > { %6117 = vmatpush.bf16.msrb.mxu2 %v7911_v36  ;;  %6130 = vmatpush.bf16.msrb.mxu3 %v7915_v37  ;;  %v3768_v36 = vunpack.c.h.b16 %v1037_v23  ;;  %v11199_v37 = vld [vmem:[%s12222_s5 + $0x44c] sm:$0xf]  ;;  %v8439_v43 = vor.u32 %v11263_v34, %v8438_v33 }
  0xe5   : > { %10936 = vmatmul.msk.bf16.vlgmr.msrb.gmra.mxu0 %vm5539_vm1, %v12307_v44  ;;  %10937 = vmatmul.msk.bf16.vlgmr.msrb.gmra.mxu1 %vm5539_vm1, %v12307_v44 }
  0xe6   : > { %6137 = vmatpush.bf16.msra.mxu0 %v5593_v38  ;;  %6150 = vmatpush.bf16.msra.mxu1 %v5596_v39  ;;  %v8440_v38 = vld [vmem:[%s12222_s5 + $0x648] sm:$0xf0]  ;;  %v3769_v39 = vunpack.c.l.b16 %v1038_v24 }
  0xe7   : > { %6163 = vmatpush.bf16.msra.mxu2 %v5599_v40  ;;  %6176 = vmatpush.bf16.msra.mxu3 %v5602_v41  ;;  %v3770_v40 = vunpack.c.h.b16 %v1038_v24  ;;  %v8431_v41 = vor.u32 %v11262_v28, %v8430_v27  ;;  %v8443_v47 = vor.u32 %v11199_v37, %v8440_v38  ;;  %v9470_v24 = vld [vmem:[%s12222_s5 + $0xc50] sm:$0xf]  ;;  %v9995_v27 = vor.u32 %v11585_v20, %v9992_v21  ;;  %v11456_v28 = vld [vmem:[%s12222_s5 + $0xc54] sm:$0xf] }
  0xe8   : > { %10938 = vmatmul.msk.bf16.vlgmr.msrb.gmra.mxu2 %vm5539_vm1, %v12307_v44  ;;  %10939 = vmatmul.msk.bf16.vlgmr.msrb.gmra.mxu3 %vm5539_vm1, %v12307_v44  ;;  %v9475_v34 = vor.u32 %v11456_v28, %v9472_v29  ;;  %v11328_v37 = vld [vmem:[%s12222_s5 + $0x854] sm:$0xf]  ;;  %v11778_v28 = vld [vmem:[%s12222_s5 + $0x165c] sm:$0xf0]  ;;  %v11714_v29 = vld [vmem:[%s12222_s5 + $0x1464] sm:$0xf] }
  0xe9   : > { %v4666_v57 = vpack.c.b16 %v3770_v40, %v3770_v40  ;;  %v8960_v40 = vld [vmem:[%s12222_s5 + $0xa50] sm:$0xf0] }
  0xea   : > { %6138 = vmatpush.bf16.msra.mxu0 %v10479_v51  ;;  %6151 = vmatpush.bf16.msra.mxu1 %v10483_v52  ;;  %v4663_v51 = vpack.c.b16 %v3767_v35, %v3767_v35  ;;  %v4664_v52 = vpack.c.b16 %v3768_v36, %v3768_v36  ;;  %v8958_v35 = vld [vmem:[%s12222_s5 + $0x850] sm:$0xf]  ;;  %v8963_v49 = vor.u32 %v11328_v37, %v8960_v40 }
  0xeb   : > { %6164 = vmatpush.bf16.msra.mxu2 %v10487_v55  ;;  %6177 = vmatpush.bf16.msra.mxu3 %v10491_v56  ;;  %v7928_v55 = vld [vmem:[%s12222_s5 + $0x248] sm:$0xf0]  ;;  %v4665_v56 = vpack.c.b16 %v3769_v39, %v3769_v39  ;;  %v5614_v1 = vsel %vm5543_vm0, %v4666_v57, 0  ;;  %v11392_v36 = vld [vmem:[%s12222_s5 + $0xa4c] sm:$0xf0] }
  0xec   : > { %v7931_v61 = vor.u32 %v11071_v54, %v7928_v55  ;;  %v5605_v62 = vsel %vm5543_vm0, %v4663_v51, 0  ;;  %v8959_v48 = vor.u32 %v11392_v36, %v8958_v35  ;;  %v11264_v51 = vld [vmem:[%s12222_s5 + $0x64c] sm:$0xf0]  ;;  %v8448_v55 = vld [vmem:[%s12222_s5 + $0x650] sm:$0xf0] }
  0xed   : > { %v11265_v57 = vld [vmem:[%s12222_s5 + $0x654] sm:$0xf0]  ;;  %v9998_v36 = vld [vmem:[%s12222_s5 + $0x1060] sm:$0xf] }
  0xee   : > { %6139 = vmatpush.bf16.msra.mxu0 %v9967_v63  ;;  %6152 = vmatpush.bf16.msra.mxu1 %v9971_v0  ;;  %v5608_v63 = vsel %vm5543_vm0, %v4664_v52, 0  ;;  %v5611_v0 = vsel %vm5543_vm0, %v4665_v56, 0  ;;  %v11200_v52 = vld [vmem:[%s12222_s5 + $0x454] sm:$0xf]  ;;  %v8454_v56 = vld [vmem:[%s12222_s5 + $0x458] sm:$0xf] }
  0xef   : > { %6165 = vmatpush.bf16.msra.mxu2 %v9975_v3  ;;  %6178 = vmatpush.bf16.msra.mxu3 %v9979_v4  ;;  %v11776_v3 = vld [vmem:[%s12222_s5 + $0x164c] sm:$0xf0]  ;;  %v11712_v4 = vld [vmem:[%s12222_s5 + $0x1454] sm:$0xf] }
  0xf0   : > { %v10495_v10 = vor.u32 %v11776_v3, %v10494_v2  ;;  %v8447_v2 = vor.u32 %v11264_v51, %v8446_v50  ;;  %v8451_v3 = vor.u32 %v11200_v52, %v8448_v55  ;;  %v11651_v50 = vld [vmem:[%s12222_s5 + $0x1264] sm:$0xf0]  ;;  %v11587_v51 = vld [vmem:[%s12222_s5 + $0x106c] sm:$0xf] }
  0xf1   : > { %v10008_v52 = vld [vmem:[%s12222_s5 + $0x1268] sm:$0xf0] }
  0xf2   : > { %6140 = vmatpush.bf16.msra.mxu0 %v9455_v11  ;;  %6153 = vmatpush.bf16.msra.mxu1 %v9459_v12  ;;  %v10499_v11 = vor.u32 %v11712_v4, %v10496_v5  ;;  %v9982_v12 = vld [vmem:[%s12222_s5 + $0x1050] sm:$0xf]  ;;  %v8455_v4 = vor.u32 %v11265_v57, %v8454_v56  ;;  %v11072_v5 = vld [vmem:[%s12222_s5 + $0x54] sm:$0xf] }
  0xf3   : > { %6166 = vmatpush.bf16.msra.mxu2 %v9463_v16  ;;  %6179 = vmatpush.bf16.msra.mxu3 %v9467_v17  ;;  %v11584_v16 = vld [vmem:[%s12222_s5 + $0x1054] sm:$0xf]  ;;  %v9983_v22 = vor.u32 %v11648_v13, %v9982_v12 }
  0xf4   : > { %v9984_v17 = vld [vmem:[%s12222_s5 + $0x1250] sm:$0xf0] }
  0xf5   : > { %v9987_v23 = vor.u32 %v11584_v16, %v9984_v17  ;;  %v12609_v16 = vld [vmem:[%s12230_s26] sm:$0xff] }
  0xf6   : > { %6141 = vmatpush.bf16.msra.mxu0 %v8943_v25  ;;  %6154 = vmatpush.bf16.msra.mxu1 %v8947_v26  ;;  %v11520_v25 = vld [vmem:[%s12222_s5 + $0xe4c] sm:$0xf0]  ;;  %v9991_v26 = vor.u32 %v11649_v19, %v9990_v18  ;;  %v7939_v18 = vor.u32 %v11072_v5, %v7936_v6  ;;  %v7943_v19 = vor.u32 %v11137_v9, %v7942_v7  ;;  %v9496_v5 = vld [vmem:[%s12222_s5 + $0xe68] sm:$0xf0] }
  0xf7   : > { %6167 = vmatpush.bf16.msra.mxu2 %v8951_v30  ;;  %6180 = vmatpush.bf16.msra.mxu3 %v8955_v31  ;;  %v9478_v30 = vld [vmem:[%s12222_s5 + $0xc58] sm:$0xf]  ;;  %v11457_v31 = vld [vmem:[%s12222_s5 + $0xc5c] sm:$0xf]  ;;  %v9471_v33 = vor.u32 %v11520_v25, %v9470_v24  ;;  %v1124_v24 = vperm.slane %v12609_v16, 1 }
  0xf8   : > { %v9483_v39 = vor.u32 %v11457_v31, %v9480_v32  ;;  %v11779_v31 = vld [vmem:[%s12222_s5 + $0x1664] sm:$0xf0]  ;;  %v11715_v32 = vld [vmem:[%s12222_s5 + $0x146c] sm:$0xf] }
  0xfa   : > { %6142 = vmatpush.bf16.msra.mxu0 %v8431_v41  ;;  %6155 = vmatpush.bf16.msra.mxu1 %v8435_v42  ;;  %v8966_v41 = vld [vmem:[%s12222_s5 + $0x858] sm:$0xf] }
  0xfb   : > { %6168 = vmatpush.bf16.msra.mxu2 %v8439_v43  ;;  %6181 = vmatpush.bf16.msra.mxu3 %v8443_v47  ;;  %v11393_v42 = vld [vmem:[%s12222_s5 + $0xa54] sm:$0xf0]  ;;  %v11329_v43 = vld [vmem:[%s12222_s5 + $0x85c] sm:$0xf]  ;;  %v1040_v47 = vld [vmem:[%s12222_s5 + $0x1868] sm:$0x33] }
  0xfc   : > { %v8967_v53 = vor.u32 %v11393_v42, %v8966_v41  ;;  %v8971_v54 = vor.u32 %v11329_v43, %v8968_v45  ;;  %v11650_v41 = vld [vmem:[%s12222_s5 + $0x125c] sm:$0xf0]  ;;  %v11586_v42 = vld [vmem:[%s12222_s5 + $0x1064] sm:$0xf]  ;;  %v1125_v43 = vperm.slane %v12609_v16, 2  ;;  %v1126_v45 = vperm.slane %v12609_v16, 3 }
  0xfe   : > { %6143 = vmatpush.bf16.msra.mxu0 %v7919_v58  ;;  %6156 = vmatpush.bf16.msra.mxu1 %v7923_v59  ;;  %v3771_v58 = vunpack.c.l.b16 %v1039_v46  ;;  %v3772_v59 = vunpack.c.h.b16 %v1039_v46 }
  0xff   : > { %6169 = vmatpush.bf16.msra.mxu2 %v7927_v60  ;;  %6182 = vmatpush.bf16.msra.mxu3 %v7931_v61  ;;  %v11201_v60 = vld [vmem:[%s12222_s5 + $0x45c] sm:$0xf] }
 0x100   : > { %v8456_v61 = vld [vmem:[%s12222_s5 + $0x658] sm:$0xf0]  ;;  %v4667_v12 = vpack.c.b16 %v3771_v58, %v3771_v58  ;;  %v4668_v13 = vpack.c.b16 %v3772_v59, %v3772_v59  ;;  %v9486_v58 = vld [vmem:[%s12222_s5 + $0xc60] sm:$0xf] }
 0x101   : > { %10940 = vmatmul.msk.bf16.vlgmr.msra.gmra.mxu0 %vm5539_vm1, %v12307_v44  ;;  %10941 = vmatmul.msk.bf16.vlgmr.msra.gmra.mxu1 %vm5539_vm1, %v12307_v44  ;;  %v8459_v8 = vor.u32 %v11201_v60, %v8456_v61  ;;  %v11522_v59 = vld [vmem:[%s12222_s5 + $0xe5c] sm:$0xf0]  ;;  %v11458_v60 = vld [vmem:[%s12222_s5 + $0xc64] sm:$0xf] }
 0x102   : > { %6189 = vmatpush.bf16.msrb.mxu0 %v5605_v62  ;;  %6202 = vmatpush.bf16.msrb.mxu1 %v5608_v63  ;;  %v3773_v62 = vunpack.c.l.b16 %v1040_v47  ;;  %v3774_v63 = vunpack.c.h.b16 %v1040_v47  ;;  %v5617_v21 = vsel %vm5543_vm0, %v4667_v12, 0  ;;  %v11330_v12 = vld [vmem:[%s12222_s5 + $0x864] sm:$0xf] }
 0x103   : > { %6215 = vmatpush.bf16.msrb.mxu2 %v5611_v0  ;;  %6228 = vmatpush.bf16.msrb.mxu3 %v5614_v1  ;;  %v7934_v0 = vld [vmem:[%s12222_s5 + $0x50] sm:$0xf] }
 0x104   : > { %10942 = vmatmul.msk.bf16.vlgmr.msra.gmra.mxu2 %vm5539_vm1, %v12307_v44  ;;  %10943 = vmatmul.msk.bf16.vlgmr.msra.gmra.mxu3 %vm5539_vm1, %v12307_v44  ;;  %v11521_v44 = vld [vmem:[%s12222_s5 + $0xe54] sm:$0xf0]  ;;  %v11136_v1 = vld [vmem:[%s12222_s5 + $0x24c] sm:$0xf0] }
 0x105   : > { %v9479_v38 = vor.u32 %v11521_v44, %v9478_v30  ;;  %v7935_v17 = vor.u32 %v11136_v1, %v7934_v0  ;;  %v10512_v30 = vld [vmem:[%s12222_s5 + $0x1660] sm:$0xf0]  ;;  %v10518_v44 = vld [vmem:[%s12222_s5 + $0x1468] sm:$0xf]  ;;  %v10011_v0 = vor.u32 %v11587_v51, %v10008_v52  ;;  %v11075_v51 = vld [vmem:[%s12222_s5 + $0x6c] sm:$0xf] }
 0x106   : > { %6190 = vmatpush.bf16.msrb.mxu0 %v10495_v10  ;;  %6203 = vmatpush.bf16.msrb.mxu1 %v10499_v11  ;;  %v11073_v10 = vld [vmem:[%s12222_s5 + $0x5c] sm:$0xf]  ;;  %v10515_v40 = vor.u32 %v11714_v29, %v10512_v30  ;;  %v10519_v46 = vor.u32 %v11779_v31, %v10518_v44  ;;  %v9488_v1 = vld [vmem:[%s12222_s5 + $0xe60] sm:$0xf0]  ;;  %v7960_v52 = vld [vmem:[%s12222_s5 + $0x268] sm:$0xf0] }
 0x107   : > { %6216 = vmatpush.bf16.msrb.mxu2 %v10503_v14  ;;  %6229 = vmatpush.bf16.msrb.mxu3 %v10507_v15  ;;  %v7944_v11 = vld [vmem:[%s12222_s5 + $0x258] sm:$0xf0]  ;;  %v4669_v14 = vpack.c.b16 %v3773_v62, %v3773_v62  ;;  %v4670_v15 = vpack.c.b16 %v3774_v63, %v3774_v63  ;;  %v9491_v9 = vor.u32 %v11458_v60, %v9488_v1  ;;  %v11202_v29 = vld [vmem:[%s12222_s5 + $0x464] sm:$0xf]  ;;  %v1128_v1 = vperm.slane %v12609_v16, 5 }
 0x108   : > { %v7947_v20 = vor.u32 %v11073_v10, %v7944_v11  ;;  %v8974_v10 = vld [vmem:[%s12222_s5 + $0x860] sm:$0xf]  ;;  %v8464_v31 = vld [vmem:[%s12222_s5 + $0x660] sm:$0xf0] }
 0x109   : > { %v5623_v25 = vsel %vm5543_vm0, %v4669_v14, 0  ;;  %v11394_v11 = vld [vmem:[%s12222_s5 + $0xa5c] sm:$0xf0] }
 0x10a   : > { %6191 = vmatpush.bf16.msrb.mxu0 %v9983_v22  ;;  %6204 = vmatpush.bf16.msrb.mxu1 %v9987_v23  ;;  %v5620_v22 = vsel %vm5543_vm0, %v4668_v13, 0  ;;  %v1123_v23 = vperm.slane %v12609_v16, 0 }
 0x10b   : > { %6217 = vmatpush.bf16.msrb.mxu2 %v9991_v26  ;;  %6230 = vmatpush.bf16.msrb.mxu3 %v9995_v27  ;;  %v5626_v26 = vsel %vm5543_vm0, %v4670_v15, 0  ;;  %v10510_v27 = vld [vmem:[%s12222_s5 + $0x1460] sm:$0xf]  ;;  %v8976_v15 = vld [vmem:[%s12222_s5 + $0xa60] sm:$0xf0] }
 0x10e   : > { %6192 = vmatpush.bf16.msrb.mxu0 %v9471_v33  ;;  %6205 = vmatpush.bf16.msrb.mxu1 %v9475_v34  ;;  %v10520_v33 = vld [vmem:[%s12222_s5 + $0x1668] sm:$0xf0]  ;;  %v5937_v34 = vpop.f32.mrf.mxu0  ;;  %v5950_v35 = vpop.f32.mrf.mxu1 }
 0x10f   : > { %6218 = vmatpush.bf16.msrb.mxu2 %v9479_v38  ;;  %6231 = vmatpush.bf16.msrb.mxu3 %v9483_v39  ;;  %v5938_v37 = vadd.f32 %v5937_v34, %v1123_v23  ;;  %v5951_v38 = vadd.f32 %v5950_v35, %v1124_v24  ;;  %v10511_v39 = vor.u32 %v11778_v28, %v10510_v27  ;;  %v8462_v27 = vld [vmem:[%s12222_s5 + $0x460] sm:$0xf] }
 0x110   : > { %v10523_v47 = vor.u32 %v11715_v32, %v10520_v33  ;;  %v11266_v28 = vld [vmem:[%s12222_s5 + $0x65c] sm:$0xf0]  ;;  %v8470_v32 = vld [vmem:[%s12222_s5 + $0x468] sm:$0xf] }
 0x111   : > { %7592 = vst [vmem:[%s12635_s11] sm:$0xff] %v5938_v37  ;;  %v11267_v33 = vld [vmem:[%s12222_s5 + $0x664] sm:$0xf0]  ;;  %v8472_v37 = vld [vmem:[%s12222_s5 + $0x668] sm:$0xf0] }
 0x112   : > { %6193 = vmatpush.bf16.msrb.mxu0 %v8959_v48  ;;  %6206 = vmatpush.bf16.msrb.mxu1 %v8963_v49  ;;  %v10000_v48 = vld [vmem:[%s12222_s5 + $0x1260] sm:$0xf0]  ;;  %v10006_v49 = vld [vmem:[%s12222_s5 + $0x1068] sm:$0xf]  ;;  %7593 = vst [vmem:[%s12635_s11 + $0x8] sm:$0xff] %v5951_v38 }
 0x113   : > { %6219 = vmatpush.bf16.msrb.mxu2 %v8967_v53  ;;  %6232 = vmatpush.bf16.msrb.mxu3 %v8971_v54  ;;  %v12643_v53 = vld [vmem:[%s14593_s0] sm:$0xf]  ;;  %v9999_v54 = vor.u32 %v11650_v41, %v9998_v36  ;;  %v10003_v57 = vor.u32 %v11586_v42, %v10000_v48  ;;  %v10007_v63 = vor.u32 %v11651_v50, %v10006_v49  ;;  %v11203_v36 = vld [vmem:[%s12222_s5 + $0x46c] sm:$0xf]  ;;  %v7958_v48 = vld [vmem:[%s12222_s5 + $0x68] sm:$0xf] }
 0x114   : > { %v11138_v41 = vld [vmem:[%s12222_s5 + $0x25c] sm:$0xf0]  ;;  %v8463_v42 = vor.u32 %v11266_v28, %v8462_v27  ;;  %v8475_v49 = vor.u32 %v11203_v36, %v8472_v37  ;;  %v11139_v50 = vld [vmem:[%s12222_s5 + $0x264] sm:$0xf0]  ;;  %v10022_v27 = vld [vmem:[%s12222_s5 + $0x1078] sm:$0xf] }
 0x115   : > { %v7959_v60 = vor.u32 %v11139_v50, %v7958_v48  ;;  %v11653_v28 = vld [vmem:[%s12222_s5 + $0x1274] sm:$0xf0]  ;;  %v8990_v50 = vld [vmem:[%s12222_s5 + $0x870] sm:$0xf] }
 0x116   : > { %6194 = vmatpush.bf16.msrb.mxu0 %v8447_v2  ;;  %6207 = vmatpush.bf16.msrb.mxu1 %v8451_v3  ;;  %v9494_v2 = vld [vmem:[%s12222_s5 + $0xc68] sm:$0xf]  ;;  %v5939_v6 = vpop.f32.mrf.mxu0  ;;  %v5952_v7 = vpop.f32.mrf.mxu1 }
 0x117   : > { %6220 = vmatpush.bf16.msrb.mxu2 %v8455_v4  ;;  %6233 = vmatpush.bf16.msrb.mxu3 %v8459_v8  ;;  %v5963_v55 = vpop.f32.mrf.mxu2  ;;  %v5976_v56 = vpop.f32.mrf.mxu3  ;;  %v11523_v3 = vld [vmem:[%s12222_s5 + $0xe64] sm:$0xf0]  ;;  %v11459_v4 = vld [vmem:[%s12222_s5 + $0xc6c] sm:$0xf]  ;;  %v9487_v8 = vor.u32 %v11522_v59, %v9486_v58  ;;  %v11716_v6 = vld [vmem:[%s12222_s5 + $0x1474] sm:$0xf] }
 0x118   : > { %v5964_v61 = vadd.f32 %v5963_v55, %v1125_v43  ;;  %v5977_v62 = vadd.f32 %v5976_v56, %v1126_v45  ;;  %v9495_v13 = vor.u32 %v11523_v3, %v9494_v2  ;;  %v9499_v14 = vor.u32 %v11459_v4, %v9496_v5  ;;  %v10526_v4 = vld [vmem:[%s12222_s5 + $0x1470] sm:$0xf]  ;;  %v10528_v7 = vld [vmem:[%s12222_s5 + $0x1670] sm:$0xf0] }
 0x119   : > { %v8467_v43 = vor.u32 %v11202_v29, %v8464_v31  ;;  %v8471_v45 = vor.u32 %v11267_v33, %v8470_v32  ;;  %v11780_v5 = vld [vmem:[%s12222_s5 + $0x166c] sm:$0xf0]  ;;  %v11589_v29 = vld [vmem:[%s12222_s5 + $0x107c] sm:$0xf] }
 0x11a   : > { %6195 = vmatpush.bf16.msrb.mxu0 %v7935_v17  ;;  %6208 = vmatpush.bf16.msrb.mxu1 %v7939_v18  ;;  %7594 = vst [vmem:[%s12635_s11 + $0x10] sm:$0xff] %v5964_v61  ;;  %v8982_v17 = vld [vmem:[%s12222_s5 + $0x868] sm:$0xf]  ;;  %v7963_v61 = vor.u32 %v11075_v51, %v7960_v52  ;;  %v9502_v33 = vld [vmem:[%s12222_s5 + $0xc70] sm:$0xf] }
 0x11b   : > { %6221 = vmatpush.bf16.msrb.mxu2 %v7943_v19  ;;  %6234 = vmatpush.bf16.msrb.mxu3 %v7947_v20  ;;  %7595 = vst [vmem:[%s12635_s11 + $0x18] sm:$0xff] %v5977_v62  ;;  %v11395_v18 = vld [vmem:[%s12222_s5 + $0xa64] sm:$0xf0]  ;;  %v11331_v19 = vld [vmem:[%s12222_s5 + $0x86c] sm:$0xf] }
 0x11c   : > { %v8984_v20 = vld [vmem:[%s12222_s5 + $0xa68] sm:$0xf0]  ;;  %v8983_v30 = vor.u32 %v11395_v18, %v8982_v17  ;;  %v11396_v51 = vld [vmem:[%s12222_s5 + $0xa6c] sm:$0xf0]  ;;  %v11332_v52 = vld [vmem:[%s12222_s5 + $0x874] sm:$0xf] }
 0x11d   : > { %10944 = vmatmul.msk.bf16.vlgmr.msrb.gmra.mxu0 %vm5539_vm1, %v12643_v53  ;;  %10945 = vmatmul.msk.bf16.vlgmr.msrb.gmra.mxu1 %vm5539_vm1, %v12643_v53  ;;  %v8987_v44 = vor.u32 %v11331_v19, %v8984_v20  ;;  %v10527_v19 = vor.u32 %v11780_v5, %v10526_v4  ;;  %v10531_v20 = vor.u32 %v11716_v6, %v10528_v7  ;;  %v11268_v4 = vld [vmem:[%s12222_s5 + $0x66c] sm:$0xf0]  ;;  %v11204_v5 = vld [vmem:[%s12222_s5 + $0x474] sm:$0xf] }
 0x11e   : > { %6241 = vmatpush.bf16.msra.mxu0 %v5617_v21  ;;  %6254 = vmatpush.bf16.msra.mxu1 %v5620_v22  ;;  %v1041_v21 = vld [vmem:[%s12222_s5 + $0x1870] sm:$0x33]  ;;  %v1042_v22 = vld [vmem:[%s12222_s5 + $0x1878] sm:$0x33] }
 0x11f   : > { %6267 = vmatpush.bf16.msra.mxu2 %v5623_v25  ;;  %6280 = vmatpush.bf16.msra.mxu3 %v5626_v26  ;;  %v5965_v23 = vpop.f32.mrf.mxu2  ;;  %v5978_v24 = vpop.f32.mrf.mxu3  ;;  %v8975_v25 = vor.u32 %v11394_v11, %v8974_v10  ;;  %v8979_v26 = vor.u32 %v11330_v12, %v8976_v15  ;;  %v3775_v34 = vunpack.c.l.b16 %v1041_v21  ;;  %v3776_v35 = vunpack.c.h.b16 %v1041_v21  ;;  %v11717_v10 = vld [vmem:[%s12222_s5 + $0x147c] sm:$0xf]  ;;  %v11652_v15 = vld [vmem:[%s12222_s5 + $0x126c] sm:$0xf0]  ;;  %v11588_v21 = vld [vmem:[%s12222_s5 + $0x1074] sm:$0xf] }
 0x120   : > { %10946 = vmatmul.msk.bf16.vlgmr.msrb.gmra.mxu2 %vm5539_vm1, %v12643_v53  ;;  %10947 = vmatmul.msk.bf16.vlgmr.msrb.gmra.mxu3 %vm5539_vm1, %v12643_v53  ;;  %v3777_v38 = vunpack.c.l.b16 %v1042_v22  ;;  %v10536_v11 = vld [vmem:[%s12222_s5 + $0x1678] sm:$0xf0]  ;;  %v1129_v23 = vperm.slane %v12609_v16, 6  ;;  %v1130_v24 = vperm.slane %v12609_v16, 7 }
 0x121   : > { %v4672_v55 = vpack.c.b16 %v3776_v35, %v3776_v35  ;;  %v11460_v35 = vld [vmem:[%s12222_s5 + $0xc74] sm:$0xf] }
 0x122   : > { %6242 = vmatpush.bf16.msra.mxu0 %v10511_v39  ;;  %6255 = vmatpush.bf16.msra.mxu1 %v10515_v40  ;;  %v3778_v39 = vunpack.c.h.b16 %v1042_v22  ;;  %v7950_v40 = vld [vmem:[%s12222_s5 + $0x60] sm:$0xf]  ;;  %v4673_v56 = vpack.c.b16 %v3777_v38, %v3777_v38  ;;  %v10016_v22 = vld [vmem:[%s12222_s5 + $0x1270] sm:$0xf0]  ;;  %v10023_v38 = vor.u32 %v11653_v28, %v10022_v27  ;;  %v11141_v27 = vld [vmem:[%s12222_s5 + $0x274] sm:$0xf0] }
 0x123   : > { %6268 = vmatpush.bf16.msra.mxu2 %v10519_v46  ;;  %6281 = vmatpush.bf16.msra.mxu3 %v10523_v47  ;;  %v11074_v46 = vld [vmem:[%s12222_s5 + $0x64] sm:$0xf]  ;;  %v7951_v58 = vor.u32 %v11138_v41, %v7950_v40  ;;  %v10019_v32 = vor.u32 %v11588_v21, %v10016_v22  ;;  %v9504_v40 = vld [vmem:[%s12222_s5 + $0xe70] sm:$0xf0]  ;;  %v9510_v41 = vld [vmem:[%s12222_s5 + $0xc78] sm:$0xf] }
 0x124   : > { %v7952_v47 = vld [vmem:[%s12222_s5 + $0x260] sm:$0xf0]  ;;  %v5635_v2 = vsel %vm5543_vm0, %v4673_v56, 0  ;;  %v8992_v56 = vld [vmem:[%s12222_s5 + $0xa70] sm:$0xf0] }
 0x125   : > { %v7955_v59 = vor.u32 %v11074_v46, %v7952_v47  ;;  %v11077_v28 = vld [vmem:[%s12222_s5 + $0x7c] sm:$0xf] }
 0x126   : > { %6243 = vmatpush.bf16.msra.mxu0 %v9999_v54  ;;  %6256 = vmatpush.bf16.msra.mxu1 %v10003_v57  ;;  %v4671_v54 = vpack.c.b16 %v3775_v34, %v3775_v34  ;;  %v4674_v57 = vpack.c.b16 %v3778_v39, %v3778_v39  ;;  %v11524_v34 = vld [vmem:[%s12222_s5 + $0xe6c] sm:$0xf0] }
 0x127   : > { %6269 = vmatpush.bf16.msra.mxu2 %v10007_v63  ;;  %6282 = vmatpush.bf16.msra.mxu3 %v10011_v0  ;;  %v5632_v63 = vsel %vm5543_vm0, %v4672_v55, 0  ;;  %v1127_v0 = vperm.slane %v12609_v16, 4  ;;  %v9503_v48 = vor.u32 %v11524_v34, %v9502_v33 }
 0x128   : > { %v5629_v62 = vsel %vm5543_vm0, %v4671_v54, 0  ;;  %v5638_v3 = vsel %vm5543_vm0, %v4674_v57, 0  ;;  %v8998_v57 = vld [vmem:[%s12222_s5 + $0x878] sm:$0xf] }
 0x12a   : > { %6244 = vmatpush.bf16.msra.mxu0 %v9487_v8  ;;  %6257 = vmatpush.bf16.msra.mxu1 %v9491_v9  ;;  %v10534_v8 = vld [vmem:[%s12222_s5 + $0x1478] sm:$0xf]  ;;  %v5989_v12 = vpop.f32.mrf.mxu0 }
 0x12b   : > { %6270 = vmatpush.bf16.msra.mxu2 %v9495_v13  ;;  %6283 = vmatpush.bf16.msra.mxu3 %v9499_v14  ;;  %v11781_v9 = vld [vmem:[%s12222_s5 + $0x1674] sm:$0xf0]  ;;  %v6002_v13 = vpop.f32.mrf.mxu1  ;;  %v10014_v14 = vld [vmem:[%s12222_s5 + $0x1070] sm:$0xf]  ;;  %v5990_v17 = vadd.f32 %v5989_v12, %v1127_v0 }
 0x12c   : > { %v6003_v18 = vadd.f32 %v6002_v13, %v1128_v1  ;;  %v10015_v16 = vor.u32 %v11652_v15, %v10014_v14  ;;  %v8991_v1 = vor.u32 %v11396_v51, %v8990_v50  ;;  %v11205_v13 = vld [vmem:[%s12222_s5 + $0x47c] sm:$0xf]  ;;  %v11719_v50 = vld [vmem:[%s12222_s5 + $0x148c] sm:$0xf] }
 0x12d   : > { %7596 = vst [vmem:[%s12635_s11 + $0x20] sm:$0xff] %v5990_v17  ;;  %v8488_v14 = vld [vmem:[%s12222_s5 + $0x678] sm:$0xf0]  ;;  %v10552_v51 = vld [vmem:[%s12222_s5 + $0x1688] sm:$0xf0] }
 0x12e   : > { %6245 = vmatpush.bf16.msra.mxu0 %v8975_v25  ;;  %6258 = vmatpush.bf16.msra.mxu1 %v8979_v26  ;;  %v10535_v25 = vor.u32 %v11781_v9, %v10534_v8  ;;  %v10539_v26 = vor.u32 %v11717_v10, %v10536_v11  ;;  %7597 = vst [vmem:[%s12635_s11 + $0x28] sm:$0xff] %v6003_v18  ;;  %v8480_v8 = vld [vmem:[%s12222_s5 + $0x670] sm:$0xf0]  ;;  %v8486_v9 = vld [vmem:[%s12222_s5 + $0x478] sm:$0xf] }
 0x12f   : > { %6271 = vmatpush.bf16.msra.mxu2 %v8983_v30  ;;  %6284 = vmatpush.bf16.msra.mxu3 %v8987_v44  ;;  %v10024_v30 = vld [vmem:[%s12222_s5 + $0x1278] sm:$0xf0]  ;;  %v11269_v10 = vld [vmem:[%s12222_s5 + $0x674] sm:$0xf0]  ;;  %v7966_v18 = vld [vmem:[%s12222_s5 + $0x70] sm:$0xf]  ;;  %v8483_v21 = vor.u32 %v11204_v5, %v8480_v8 }
 0x130   : > { %v10027_v39 = vor.u32 %v11589_v29, %v10024_v30  ;;  %v8487_v22 = vor.u32 %v11269_v10, %v8486_v9  ;;  %v7976_v29 = vld [vmem:[%s12222_s5 + $0x278] sm:$0xf0]  ;;  %v11591_v5 = vld [vmem:[%s12222_s5 + $0x108c] sm:$0xf] }
 0x132   : > { %6246 = vmatpush.bf16.msra.mxu0 %v8463_v42  ;;  %6259 = vmatpush.bf16.msra.mxu1 %v8467_v43  ;;  %v11525_v42 = vld [vmem:[%s12222_s5 + $0xe74] sm:$0xf0]  ;;  %v11461_v43 = vld [vmem:[%s12222_s5 + $0xc7c] sm:$0xf]  ;;  %v5991_v46 = vpop.f32.mrf.mxu0 }
 0x133   : > { %6272 = vmatpush.bf16.msra.mxu2 %v8471_v45  ;;  %6285 = vmatpush.bf16.msra.mxu3 %v8475_v49  ;;  %v6015_v44 = vpop.f32.mrf.mxu2  ;;  %v6028_v31 = vpop.f32.mrf.mxu3  ;;  %v9512_v45 = vld [vmem:[%s12222_s5 + $0xe78] sm:$0xf0]  ;;  %v9507_v49 = vor.u32 %v11460_v35, %v9504_v40  ;;  %v9511_v54 = vor.u32 %v11525_v42, %v9510_v41  ;;  %v11718_v46 = vld [vmem:[%s12222_s5 + $0x1484] sm:$0xf] }
 0x134   : > { %v6016_v36 = vadd.f32 %v6015_v44, %v1129_v23  ;;  %v6029_v37 = vadd.f32 %v6028_v31, %v1130_v24  ;;  %v6004_v47 = vpop.f32.mrf.mxu1  ;;  %v9515_v55 = vor.u32 %v11461_v43, %v9512_v45  ;;  %v11076_v23 = vld [vmem:[%s12222_s5 + $0x74] sm:$0xf]  ;;  %v10542_v43 = vld [vmem:[%s12222_s5 + $0x1480] sm:$0xf] }
 0x135   : > { %v7968_v24 = vld [vmem:[%s12222_s5 + $0x270] sm:$0xf0]  ;;  %v11782_v45 = vld [vmem:[%s12222_s5 + $0x167c] sm:$0xf0]  ;;  %v10544_v47 = vld [vmem:[%s12222_s5 + $0x1680] sm:$0xf0] }
 0x136   : > { %6247 = vmatpush.bf16.msra.mxu0 %v7951_v58  ;;  %6260 = vmatpush.bf16.msra.mxu1 %v7955_v59  ;;  %7598 = vst [vmem:[%s12635_s11 + $0x30] sm:$0xff] %v6016_v36  ;;  %v11397_v58 = vld [vmem:[%s12222_s5 + $0xa74] sm:$0xf0]  ;;  %v11333_v59 = vld [vmem:[%s12222_s5 + $0x87c] sm:$0xf]  ;;  %v7971_v34 = vor.u32 %v11076_v23, %v7968_v24  ;;  %v7979_v36 = vor.u32 %v11077_v28, %v7976_v29 }
 0x137   : > { %6273 = vmatpush.bf16.msra.mxu2 %v7959_v60  ;;  %6286 = vmatpush.bf16.msra.mxu3 %v7963_v61  ;;  %7599 = vst [vmem:[%s12635_s11 + $0x38] sm:$0xff] %v6029_v37  ;;  %v9000_v60 = vld [vmem:[%s12222_s5 + $0xa78] sm:$0xf0]  ;;  %v1043_v61 = vld [vmem:[%s12222_s5 + $0x1880] sm:$0x33]  ;;  %v8999_v6 = vor.u32 %v11397_v58, %v8998_v57 }
 0x138   : > { %v9003_v7 = vor.u32 %v11333_v59, %v9000_v60  ;;  %v3779_v11 = vunpack.c.l.b16 %v1043_v61  ;;  %v3780_v12 = vunpack.c.h.b16 %v1043_v61  ;;  %v10543_v59 = vor.u32 %v11782_v45, %v10542_v43  ;;  %v11590_v61 = vld [vmem:[%s12222_s5 + $0x1084] sm:$0xf]  ;;  %v9528_v23 = vld [vmem:[%s12222_s5 + $0xe88] sm:$0xf0]  ;;  %v9006_v28 = vld [vmem:[%s12222_s5 + $0x880] sm:$0xf] }
 0x139   : > { %10948 = vmatmul.msk.bf16.vlgmr.msra.gmra.mxu0 %vm5539_vm1, %v12643_v53  ;;  %10949 = vmatmul.msk.bf16.vlgmr.msra.gmra.mxu1 %vm5539_vm1, %v12643_v53  ;;  %v10547_v60 = vor.u32 %v11718_v46, %v10544_v47  ;;  %v11398_v29 = vld [vmem:[%s12222_s5 + $0xa7c] sm:$0xf0]  ;;  %v11206_v46 = vld [vmem:[%s12222_s5 + $0x484] sm:$0xf] }
 0x13a   : > { %6293 = vmatpush.bf16.msrb.mxu0 %v5629_v62  ;;  %6306 = vmatpush.bf16.msrb.mxu1 %v5632_v63  ;;  %v1044_v62 = vld [vmem:[%s12222_s5 + $0x1888] sm:$0x33]  ;;  %v4675_v30 = vpack.c.b16 %v3779_v11, %v3779_v11  ;;  %v9518_v11 = vld [vmem:[%s12222_s5 + $0xc80] sm:$0xf] }
 0x13b   : > { %6319 = vmatpush.bf16.msrb.mxu2 %v5635_v2  ;;  %6332 = vmatpush.bf16.msrb.mxu3 %v5638_v3  ;;  %v6017_v63 = vpop.f32.mrf.mxu2  ;;  %v6030_v0 = vpop.f32.mrf.mxu3  ;;  %v8995_v2 = vor.u32 %v11332_v52, %v8992_v56  ;;  %v8478_v3 = vld [vmem:[%s12222_s5 + $0x470] sm:$0xf]  ;;  %v3781_v15 = vunpack.c.l.b16 %v1044_v62  ;;  %v3782_v17 = vunpack.c.h.b16 %v1044_v62  ;;  %v11654_v56 = vld [vmem:[%s12222_s5 + $0x127c] sm:$0xf0]  ;;  %v10032_v62 = vld [vmem:[%s12222_s5 + $0x1280] sm:$0xf0] }
 0x13c   : > { %10950 = vmatmul.msk.bf16.vlgmr.msra.gmra.mxu2 %vm5539_vm1, %v12643_v53  ;;  %10951 = vmatmul.msk.bf16.vlgmr.msra.gmra.mxu3 %vm5539_vm1, %v12643_v53  ;;  %v5641_v37 = vsel %vm5543_vm0, %v4675_v30, 0  ;;  %v10035_v10 = vor.u32 %v11590_v61, %v10032_v62  ;;  %v11334_v30 = vld [vmem:[%s12222_s5 + $0x884] sm:$0xf]  ;;  %v8494_v43 = vld [vmem:[%s12222_s5 + $0x480] sm:$0xf] }
 0x13d   : > { %v4677_v44 = vpack.c.b16 %v3781_v15, %v3781_v15  ;;  %v4678_v31 = vpack.c.b16 %v3782_v17, %v3782_v17  ;;  %v11270_v45 = vld [vmem:[%s12222_s5 + $0x67c] sm:$0xf0] }
 0x13e   : > { %6294 = vmatpush.bf16.msrb.mxu0 %v10527_v19  ;;  %6307 = vmatpush.bf16.msrb.mxu1 %v10531_v20  ;;  %v11140_v19 = vld [vmem:[%s12222_s5 + $0x26c] sm:$0xf0]  ;;  %v8479_v20 = vor.u32 %v11268_v4, %v8478_v3  ;;  %v10038_v3 = vld [vmem:[%s12222_s5 + $0x1088] sm:$0xf]  ;;  %v8495_v61 = vor.u32 %v11270_v45, %v8494_v43  ;;  %v10054_v43 = vld [vmem:[%s12222_s5 + $0x1098] sm:$0xf] }
 0x13f   : > { %6320 = vmatpush.bf16.msrb.mxu2 %v10535_v25  ;;  %6333 = vmatpush.bf16.msrb.mxu3 %v10539_v26  ;;  %v7974_v25 = vld [vmem:[%s12222_s5 + $0x78] sm:$0xf]  ;;  %v8491_v26 = vor.u32 %v11205_v13, %v8488_v14  ;;  %v7967_v33 = vor.u32 %v11140_v19, %v7966_v18  ;;  %v5647_v41 = vsel %vm5543_vm0, %v4677_v44, 0  ;;  %v5650_v42 = vsel %vm5543_vm0, %v4678_v31, 0  ;;  %v11655_v4 = vld [vmem:[%s12222_s5 + $0x1284] sm:$0xf0] }
 0x140   : > { %v7975_v35 = vor.u32 %v11141_v27, %v7974_v25  ;;  %v11462_v13 = vld [vmem:[%s12222_s5 + $0xc84] sm:$0xf]  ;;  %v10039_v17 = vor.u32 %v11655_v4, %v10038_v3  ;;  %v11143_v4 = vld [vmem:[%s12222_s5 + $0x284] sm:$0xf0]  ;;  %v11657_v45 = vld [vmem:[%s12222_s5 + $0x1294] sm:$0xf0] }
 0x141   : > { %v9520_v19 = vld [vmem:[%s12222_s5 + $0xe80] sm:$0xf0] }
 0x142   : > { %6295 = vmatpush.bf16.msrb.mxu0 %v10015_v16  ;;  %6308 = vmatpush.bf16.msrb.mxu1 %v10019_v32  ;;  %v4676_v16 = vpack.c.b16 %v3780_v12, %v3780_v12  ;;  %v12761_v32 = vld [vmem:[%s12230_s26 + $0x8] sm:$0xff]  ;;  %v11526_v12 = vld [vmem:[%s12222_s5 + $0xe7c] sm:$0xf0]  ;;  %v9523_v27 = vor.u32 %v11462_v13, %v9520_v19  ;;  %v9008_v31 = vld [vmem:[%s12222_s5 + $0xa80] sm:$0xf0] }
 0x143   : > { %6321 = vmatpush.bf16.msrb.mxu2 %v10023_v38  ;;  %6334 = vmatpush.bf16.msrb.mxu3 %v10027_v39  ;;  %v1131_v39 = vperm.slane %v12761_v32, 0  ;;  %v1132_v40 = vperm.slane %v12761_v32, 1  ;;  %v1133_v63 = vperm.slane %v12761_v32, 2  ;;  %v1134_v0 = vperm.slane %v12761_v32, 3 }
 0x144   : > { %v5644_v38 = vsel %vm5543_vm0, %v4676_v16, 0  ;;  %v1136_v19 = vperm.slane %v12761_v32, 5 }
 0x146   : > { %6296 = vmatpush.bf16.msrb.mxu0 %v9503_v48  ;;  %6309 = vmatpush.bf16.msrb.mxu1 %v9507_v49  ;;  %v10550_v48 = vld [vmem:[%s12222_s5 + $0x1488] sm:$0xf]  ;;  %v6041_v52 = vpop.f32.mrf.mxu0 }
 0x147   : > { %6322 = vmatpush.bf16.msrb.mxu2 %v9511_v54  ;;  %6335 = vmatpush.bf16.msrb.mxu3 %v9515_v55  ;;  %v11783_v49 = vld [vmem:[%s12222_s5 + $0x1684] sm:$0xf0]  ;;  %v6054_v54 = vpop.f32.mrf.mxu1  ;;  %v10030_v55 = vld [vmem:[%s12222_s5 + $0x1080] sm:$0xf]  ;;  %v6042_v57 = vadd.f32 %v6041_v52, %v1131_v39 }
 0x148   : > { %v6055_v58 = vadd.f32 %v6054_v54, %v1132_v40 }
 0x149   : > { %7600 = vst [vmem:[%s12635_s11 + $0x40] sm:$0xff] %v6042_v57 }
 0x14a   : > { %6297 = vmatpush.bf16.msrb.mxu0 %v8991_v1  ;;  %6310 = vmatpush.bf16.msrb.mxu1 %v8995_v2  ;;  %v10551_v1 = vor.u32 %v11783_v49, %v10550_v48  ;;  %v10555_v2 = vor.u32 %v11719_v50, %v10552_v51  ;;  %7601 = vst [vmem:[%s12635_s11 + $0x48] sm:$0xff] %v6055_v58  ;;  %v8496_v49 = vld [vmem:[%s12222_s5 + $0x680] sm:$0xf0]  ;;  %v8502_v50 = vld [vmem:[%s12222_s5 + $0x488] sm:$0xf] }
 0x14b   : > { %6323 = vmatpush.bf16.msrb.mxu2 %v8999_v6  ;;  %6336 = vmatpush.bf16.msrb.mxu3 %v9003_v7  ;;  %v10040_v6 = vld [vmem:[%s12222_s5 + $0x1288] sm:$0xf0]  ;;  %v10031_v7 = vor.u32 %v11654_v56, %v10030_v55  ;;  %v11271_v51 = vld [vmem:[%s12222_s5 + $0x684] sm:$0xf0]  ;;  %v8499_v62 = vor.u32 %v11206_v46, %v8496_v49  ;;  %v11593_v46 = vld [vmem:[%s12222_s5 + $0x109c] sm:$0xf] }
 0x14c   : > { %v10043_v18 = vor.u32 %v11591_v5, %v10040_v6  ;;  %v11207_v55 = vld [vmem:[%s12222_s5 + $0x48c] sm:$0xf] }
 0x14d   : > { %v8504_v56 = vld [vmem:[%s12222_s5 + $0x688] sm:$0xf0] }
 0x14e   : > { %6298 = vmatpush.bf16.msrb.mxu0 %v8479_v20  ;;  %6311 = vmatpush.bf16.msrb.mxu1 %v8483_v21  ;;  %v9526_v20 = vld [vmem:[%s12222_s5 + $0xc88] sm:$0xf]  ;;  %v6043_v24 = vpop.f32.mrf.mxu0  ;;  %v8507_v3 = vor.u32 %v11207_v55, %v8504_v56  ;;  %v11079_v5 = vld [vmem:[%s12222_s5 + $0x8c] sm:$0xf] }
 0x14f   : > { %6324 = vmatpush.bf16.msrb.mxu2 %v8487_v22  ;;  %6337 = vmatpush.bf16.msrb.mxu3 %v8491_v26  ;;  %v6067_v8 = vpop.f32.mrf.mxu2  ;;  %v6080_v9 = vpop.f32.mrf.mxu3  ;;  %v11527_v21 = vld [vmem:[%s12222_s5 + $0xe84] sm:$0xf0]  ;;  %v11463_v22 = vld [vmem:[%s12222_s5 + $0xc8c] sm:$0xf]  ;;  %v9519_v26 = vor.u32 %v11526_v12, %v9518_v11  ;;  %v11720_v24 = vld [vmem:[%s12222_s5 + $0x1494] sm:$0xf] }
 0x150   : > { %v6068_v14 = vadd.f32 %v6067_v8, %v1133_v63  ;;  %v6081_v15 = vadd.f32 %v6080_v9, %v1134_v0  ;;  %v6056_v25 = vpop.f32.mrf.mxu1  ;;  %v9527_v16 = vor.u32 %v11527_v21, %v9526_v20  ;;  %v9531_v44 = vor.u32 %v11463_v22, %v9528_v23  ;;  %v11078_v0 = vld [vmem:[%s12222_s5 + $0x84] sm:$0xf]  ;;  %v7992_v6 = vld [vmem:[%s12222_s5 + $0x288] sm:$0xf0]  ;;  %v10558_v22 = vld [vmem:[%s12222_s5 + $0x1490] sm:$0xf] }
 0x151   : > { %v8503_v63 = vor.u32 %v11271_v51, %v8502_v50  ;;  %v11784_v23 = vld [vmem:[%s12222_s5 + $0x168c] sm:$0xf0]  ;;  %v10560_v25 = vld [vmem:[%s12222_s5 + $0x1690] sm:$0xf0] }
 0x152   : > { %6299 = vmatpush.bf16.msrb.mxu0 %v7967_v33  ;;  %6312 = vmatpush.bf16.msrb.mxu1 %v7971_v34  ;;  %7602 = vst [vmem:[%s12635_s11 + $0x50] sm:$0xff] %v6068_v14  ;;  %v9014_v33 = vld [vmem:[%s12222_s5 + $0x888] sm:$0xf]  ;;  %v7995_v14 = vor.u32 %v11079_v5, %v7992_v6  ;;  %v9534_v51 = vld [vmem:[%s12222_s5 + $0xc90] sm:$0xf] }
 0x153   : > { %6325 = vmatpush.bf16.msrb.mxu2 %v7975_v35  ;;  %6338 = vmatpush.bf16.msrb.mxu3 %v7979_v36  ;;  %7603 = vst [vmem:[%s12635_s11 + $0x58] sm:$0xff] %v6081_v15  ;;  %v11399_v34 = vld [vmem:[%s12222_s5 + $0xa84] sm:$0xf0]  ;;  %v11335_v35 = vld [vmem:[%s12222_s5 + $0x88c] sm:$0xf] }
 0x154   : > { %v9016_v36 = vld [vmem:[%s12222_s5 + $0xa88] sm:$0xf0]  ;;  %v9015_v47 = vor.u32 %v11399_v34, %v9014_v33  ;;  %v11336_v5 = vld [vmem:[%s12222_s5 + $0x894] sm:$0xf] }
 0x155   : > { %10952 = vmatmul.msk.bf16.vlgmr.msrb.gmra.mxu0 %vm5539_vm1, %v12643_v53  ;;  %10953 = vmatmul.msk.bf16.vlgmr.msrb.gmra.mxu1 %vm5539_vm1, %v12643_v53  ;;  %v9019_v48 = vor.u32 %v11335_v35, %v9016_v36  ;;  %v10559_v35 = vor.u32 %v11784_v23, %v10558_v22  ;;  %v10563_v36 = vor.u32 %v11720_v24, %v10560_v25  ;;  %v11208_v22 = vld [vmem:[%s12222_s5 + $0x494] sm:$0xf] }
 0x156   : > { %6345 = vmatpush.bf16.msra.mxu0 %v5641_v37  ;;  %6358 = vmatpush.bf16.msra.mxu1 %v5644_v38  ;;  %v1045_v37 = vld [vmem:[%s12222_s5 + $0x1890] sm:$0x33]  ;;  %v1046_v38 = vld [vmem:[%s12222_s5 + $0x1898] sm:$0x33] }
 0x157   : > { %6371 = vmatpush.bf16.msra.mxu2 %v5647_v41  ;;  %6384 = vmatpush.bf16.msra.mxu3 %v5650_v42  ;;  %v6069_v39 = vpop.f32.mrf.mxu2  ;;  %v6082_v40 = vpop.f32.mrf.mxu3  ;;  %v9007_v41 = vor.u32 %v11398_v29, %v9006_v28  ;;  %v9011_v42 = vor.u32 %v11334_v30, %v9008_v31  ;;  %v3783_v52 = vunpack.c.l.b16 %v1045_v37  ;;  %v3784_v54 = vunpack.c.h.b16 %v1045_v37  ;;  %v11721_v28 = vld [vmem:[%s12222_s5 + $0x149c] sm:$0xf]  ;;  %v11656_v31 = vld [vmem:[%s12222_s5 + $0x128c] sm:$0xf0]  ;;  %v11592_v37 = vld [vmem:[%s12222_s5 + $0x1094] sm:$0xf] }
 0x158   : > { %10954 = vmatmul.msk.bf16.vlgmr.msrb.gmra.mxu2 %vm5539_vm1, %v12643_v53  ;;  %10955 = vmatmul.msk.bf16.vlgmr.msrb.gmra.mxu3 %vm5539_vm1, %v12643_v53  ;;  %v3785_v57 = vunpack.c.l.b16 %v1046_v38  ;;  %v3786_v58 = vunpack.c.h.b16 %v1046_v38  ;;  %v10568_v29 = vld [vmem:[%s12222_s5 + $0x1698] sm:$0xf0]  ;;  %v10048_v38 = vld [vmem:[%s12222_s5 + $0x1290] sm:$0xf0]  ;;  %v1137_v39 = vperm.slane %v12761_v32, 6  ;;  %v1138_v40 = vperm.slane %v12761_v32, 7 }
 0x159   : > { %v4680_v8 = vpack.c.b16 %v3784_v54, %v3784_v54  ;;  %v10051_v50 = vor.u32 %v11592_v37, %v10048_v38  ;;  %v11464_v54 = vld [vmem:[%s12222_s5 + $0xc94] sm:$0xf] }
 0x15a   : > { %6346 = vmatpush.bf16.msra.mxu0 %v10543_v59  ;;  %6359 = vmatpush.bf16.msra.mxu1 %v10547_v60  ;;  %v7982_v59 = vld [vmem:[%s12222_s5 + $0x80] sm:$0xf]  ;;  %v4681_v9 = vpack.c.b16 %v3785_v57, %v3785_v57  ;;  %v10055_v57 = vor.u32 %v11657_v45, %v10054_v43  ;;  %v8512_v25 = vld [vmem:[%s12222_s5 + $0x690] sm:$0xf0]  ;;  %v11081_v43 = vld [vmem:[%s12222_s5 + $0x9c] sm:$0xf] }
 0x15b   : > { %6372 = vmatpush.bf16.msra.mxu2 %v10551_v1  ;;  %6385 = vmatpush.bf16.msra.mxu3 %v10555_v2  ;;  %v11142_v60 = vld [vmem:[%s12222_s5 + $0x27c] sm:$0xf0]  ;;  %v7984_v1 = vld [vmem:[%s12222_s5 + $0x280] sm:$0xf0]  ;;  %v7990_v2 = vld [vmem:[%s12222_s5 + $0x88] sm:$0xf] }
 0x15c   : > { %v7983_v11 = vor.u32 %v11142_v60, %v7982_v59  ;;  %v7987_v12 = vor.u32 %v11078_v0, %v7984_v1  ;;  %v7991_v13 = vor.u32 %v11143_v4, %v7990_v2  ;;  %v5659_v20 = vsel %vm5543_vm0, %v4681_v9, 0  ;;  %v9542_v59 = vld [vmem:[%s12222_s5 + $0xc98] sm:$0xf]  ;;  %v11400_v4 = vld [vmem:[%s12222_s5 + $0xa8c] sm:$0xf0] }
 0x15d   : > { %v11529_v60 = vld [vmem:[%s12222_s5 + $0xe94] sm:$0xf0]  ;;  %v11080_v38 = vld [vmem:[%s12222_s5 + $0x94] sm:$0xf]  ;;  %v8008_v45 = vld [vmem:[%s12222_s5 + $0x298] sm:$0xf0] }
 0x15e   : > { %6347 = vmatpush.bf16.msra.mxu0 %v10031_v7  ;;  %6360 = vmatpush.bf16.msra.mxu1 %v10035_v10  ;;  %v4679_v7 = vpack.c.b16 %v3783_v52, %v3783_v52  ;;  %v4682_v10 = vpack.c.b16 %v3786_v58, %v3786_v58  ;;  %v11528_v52 = vld [vmem:[%s12222_s5 + $0xe8c] sm:$0xf0]  ;;  %v9543_v6 = vor.u32 %v11529_v60, %v9542_v59  ;;  %v9030_v9 = vld [vmem:[%s12222_s5 + $0x898] sm:$0xf]  ;;  %v10574_v60 = vld [vmem:[%s12222_s5 + $0x14a0] sm:$0xf] }
 0x15f   : > { %6373 = vmatpush.bf16.msra.mxu2 %v10039_v17  ;;  %6386 = vmatpush.bf16.msra.mxu3 %v10043_v18  ;;  %v5656_v17 = vsel %vm5543_vm0, %v4680_v8, 0  ;;  %v1135_v18 = vperm.slane %v12761_v32, 4  ;;  %v9535_v1 = vor.u32 %v11528_v52, %v9534_v51  ;;  %v9024_v8 = vld [vmem:[%s12222_s5 + $0xa90] sm:$0xf0] }
 0x160   : > { %v5653_v15 = vsel %vm5543_vm0, %v4679_v7, 0  ;;  %v5662_v21 = vsel %vm5543_vm0, %v4682_v10, 0  ;;  %v11401_v10 = vld [vmem:[%s12222_s5 + $0xa94] sm:$0xf0] }
 0x161   : > { %v9031_v23 = vor.u32 %v11401_v10, %v9030_v9 }
 0x162   : > { %6348 = vmatpush.bf16.msra.mxu0 %v9519_v26  ;;  %6361 = vmatpush.bf16.msra.mxu1 %v9523_v27  ;;  %v10566_v26 = vld [vmem:[%s12222_s5 + $0x1498] sm:$0xf]  ;;  %v6093_v30 = vpop.f32.mrf.mxu0 }
 0x163   : > { %6374 = vmatpush.bf16.msra.mxu2 %v9527_v16  ;;  %6387 = vmatpush.bf16.msra.mxu3 %v9531_v44  ;;  %v11785_v27 = vld [vmem:[%s12222_s5 + $0x1694] sm:$0xf0]  ;;  %v6106_v16 = vpop.f32.mrf.mxu1  ;;  %v10046_v44 = vld [vmem:[%s12222_s5 + $0x1090] sm:$0xf]  ;;  %v6094_v33 = vadd.f32 %v6093_v30, %v1135_v18  ;;  %v11209_v30 = vld [vmem:[%s12222_s5 + $0x49c] sm:$0xf] }
 0x164   : > { %v6107_v34 = vadd.f32 %v6106_v16, %v1136_v19  ;;  %v10047_v32 = vor.u32 %v11656_v31, %v10046_v44  ;;  %v9027_v19 = vor.u32 %v11336_v5, %v9024_v8  ;;  %v8520_v16 = vld [vmem:[%s12222_s5 + $0x698] sm:$0xf0] }
 0x165   : > { %7604 = vst [vmem:[%s12635_s11 + $0x60] sm:$0xff] %v6094_v33  ;;  %v7998_v33 = vld [vmem:[%s12222_s5 + $0x90] sm:$0xf] }
 0x166   : > { %6349 = vmatpush.bf16.msra.mxu0 %v9007_v41  ;;  %6362 = vmatpush.bf16.msra.mxu1 %v9011_v42  ;;  %v10567_v41 = vor.u32 %v11785_v27, %v10566_v26  ;;  %v10571_v42 = vor.u32 %v11721_v28, %v10568_v29  ;;  %7605 = vst [vmem:[%s12635_s11 + $0x68] sm:$0xff] %v6107_v34  ;;  %v8518_v26 = vld [vmem:[%s12222_s5 + $0x498] sm:$0xf]  ;;  %v11144_v34 = vld [vmem:[%s12222_s5 + $0x28c] sm:$0xf0] }
 0x167   : > { %6375 = vmatpush.bf16.msra.mxu2 %v9015_v47  ;;  %6388 = vmatpush.bf16.msra.mxu3 %v9019_v48  ;;  %v10056_v47 = vld [vmem:[%s12222_s5 + $0x1298] sm:$0xf0]  ;;  %v11273_v27 = vld [vmem:[%s12222_s5 + $0x694] sm:$0xf0] }
 0x168   : > { %v10059_v58 = vor.u32 %v11593_v46, %v10056_v47  ;;  %v8519_v37 = vor.u32 %v11273_v27, %v8518_v26 }
 0x16a   : > { %6350 = vmatpush.bf16.msra.mxu0 %v8495_v61  ;;  %6363 = vmatpush.bf16.msra.mxu1 %v8499_v62  ;;  %v11465_v61 = vld [vmem:[%s12222_s5 + $0xc9c] sm:$0xf] }
 0x16b   : > { %6376 = vmatpush.bf16.msra.mxu2 %v8503_v63  ;;  %6389 = vmatpush.bf16.msra.mxu3 %v8507_v3  ;;  %v6119_v48 = vpop.f32.mrf.mxu2  ;;  %v6132_v49 = vpop.f32.mrf.mxu3  ;;  %v9544_v62 = vld [vmem:[%s12222_s5 + $0xe98] sm:$0xf0]  ;;  %v9022_v3 = vld [vmem:[%s12222_s5 + $0x890] sm:$0xf] }
 0x16c   : > { %v6120_v55 = vadd.f32 %v6119_v48, %v1137_v39  ;;  %v6133_v56 = vadd.f32 %v6132_v49, %v1138_v40  ;;  %v6095_v63 = vpop.f32.mrf.mxu0  ;;  %v6108_v0 = vpop.f32.mrf.mxu1  ;;  %v9547_v7 = vor.u32 %v11465_v61, %v9544_v62  ;;  %v9023_v18 = vor.u32 %v11400_v4, %v9022_v3  ;;  %v8000_v39 = vld [vmem:[%s12222_s5 + $0x290] sm:$0xf0]  ;;  %v8006_v40 = vld [vmem:[%s12222_s5 + $0x98] sm:$0xf]  ;;  %v11786_v61 = vld [vmem:[%s12222_s5 + $0x169c] sm:$0xf0] }
 0x16d   : > { %v12904_v49 = vld [vmem:[%s12230_s26 + $0x10] sm:$0xff]  ;;  %v8003_v51 = vor.u32 %v11080_v38, %v8000_v39  ;;  %v11722_v62 = vld [vmem:[%s12222_s5 + $0x14a4] sm:$0xf]  ;;  %v10582_v0 = vld [vmem:[%s12222_s5 + $0x14a8] sm:$0xf]  ;;  %v10575_v10 = vor.u32 %v11786_v61, %v10574_v60 }
 0x16e   : > { %6351 = vmatpush.bf16.msra.mxu0 %v7983_v11  ;;  %6364 = vmatpush.bf16.msra.mxu1 %v7987_v12  ;;  %7606 = vst [vmem:[%s12635_s11 + $0x70] sm:$0xff] %v6120_v55  ;;  %v11337_v11 = vld [vmem:[%s12222_s5 + $0x89c] sm:$0xf]  ;;  %v10576_v63 = vld [vmem:[%s12222_s5 + $0x16a0] sm:$0xf0] }
 0x16f   : > { %6377 = vmatpush.bf16.msra.mxu2 %v7991_v13  ;;  %6390 = vmatpush.bf16.msra.mxu3 %v7995_v14  ;;  %7607 = vst [vmem:[%s12635_s11 + $0x78] sm:$0xff] %v6133_v56  ;;  %v9032_v12 = vld [vmem:[%s12222_s5 + $0xa98] sm:$0xf0]  ;;  %v1047_v13 = vld [vmem:[%s12222_s5 + $0x18a0] sm:$0x33] }
 0x170   : > { %v1048_v14 = vld [vmem:[%s12222_s5 + $0x18a8] sm:$0x33]  ;;  %v9035_v24 = vor.u32 %v11337_v11, %v9032_v12  ;;  %v3787_v28 = vunpack.c.l.b16 %v1047_v13  ;;  %v3788_v29 = vunpack.c.h.b16 %v1047_v13  ;;  %v10579_v11 = vor.u32 %v11722_v62, %v10576_v63  ;;  %v11594_v12 = vld [vmem:[%s12222_s5 + $0x10a4] sm:$0xf]  ;;  %v8526_v60 = vld [vmem:[%s12222_s5 + $0x4a0] sm:$0xf] }
 0x171   : > { %10956 = vmatmul.msk.bf16.vlgmr.msra.gmra.mxu0 %vm5539_vm1, %v12643_v53  ;;  %10957 = vmatmul.msk.bf16.vlgmr.msra.gmra.mxu1 %vm5539_vm1, %v12643_v53  ;;  %v3789_v44 = vunpack.c.l.b16 %v1048_v14  ;;  %v3790_v31 = vunpack.c.h.b16 %v1048_v14  ;;  %v10584_v3 = vld [vmem:[%s12222_s5 + $0x16a8] sm:$0xf0]  ;;  %v10064_v13 = vld [vmem:[%s12222_s5 + $0x12a0] sm:$0xf0]  ;;  %v1141_v14 = vperm.slane %v12904_v49, 2 }
 0x172   : > { %6397 = vmatpush.bf16.msrb.mxu0 %v5653_v15  ;;  %6410 = vmatpush.bf16.msrb.mxu1 %v5656_v17  ;;  %v4683_v46 = vpack.c.b16 %v3787_v28, %v3787_v28  ;;  %v4684_v47 = vpack.c.b16 %v3788_v29, %v3788_v29  ;;  %v10067_v27 = vor.u32 %v11594_v12, %v10064_v13  ;;  %v9550_v28 = vld [vmem:[%s12222_s5 + $0xca0] sm:$0xf]  ;;  %v9560_v38 = vld [vmem:[%s12222_s5 + $0xea8] sm:$0xf0]  ;;  %v11210_v62 = vld [vmem:[%s12222_s5 + $0x4a4] sm:$0xf] }
 0x173   : > { %6423 = vmatpush.bf16.msrb.mxu2 %v5659_v20  ;;  %6436 = vmatpush.bf16.msrb.mxu3 %v5662_v21  ;;  %v6121_v15 = vpop.f32.mrf.mxu2  ;;  %v6134_v17 = vpop.f32.mrf.mxu3  ;;  %v8510_v20 = vld [vmem:[%s12222_s5 + $0x490] sm:$0xf]  ;;  %v4686_v48 = vpack.c.b16 %v3790_v31, %v3790_v31  ;;  %v11530_v29 = vld [vmem:[%s12222_s5 + $0xe9c] sm:$0xf0] }
 0x174   : > { %10958 = vmatmul.msk.bf16.vlgmr.msra.gmra.mxu2 %vm5539_vm1, %v12643_v53  ;;  %10959 = vmatmul.msk.bf16.vlgmr.msra.gmra.mxu3 %vm5539_vm1, %v12643_v53  ;;  %v9536_v53 = vld [vmem:[%s12222_s5 + $0xe90] sm:$0xf0]  ;;  %v11272_v21 = vld [vmem:[%s12222_s5 + $0x68c] sm:$0xf0]  ;;  %v5665_v55 = vsel %vm5543_vm0, %v4683_v46, 0  ;;  %v5668_v56 = vsel %vm5543_vm0, %v4684_v47, 0 }
 0x175   : > { %v9539_v2 = vor.u32 %v11464_v54, %v9536_v53  ;;  %v8011_v54 = vor.u32 %v11081_v43, %v8008_v45  ;;  %v5674_v59 = vsel %vm5543_vm0, %v4686_v48, 0  ;;  %v1142_v15 = vperm.slane %v12904_v49, 3  ;;  %v9038_v43 = vld [vmem:[%s12222_s5 + $0x8a0] sm:$0xf]  ;;  %v11338_v46 = vld [vmem:[%s12222_s5 + $0x8a4] sm:$0xf] }
 0x176   : > { %6398 = vmatpush.bf16.msrb.mxu0 %v10559_v35  ;;  %6411 = vmatpush.bf16.msrb.mxu1 %v10563_v36  ;;  %v8511_v35 = vor.u32 %v11272_v21, %v8510_v20  ;;  %v8515_v36 = vor.u32 %v11208_v22, %v8512_v25  ;;  %v11659_v20 = vld [vmem:[%s12222_s5 + $0x12a4] sm:$0xf0]  ;;  %v11595_v21 = vld [vmem:[%s12222_s5 + $0x10ac] sm:$0xf]  ;;  %v11402_v45 = vld [vmem:[%s12222_s5 + $0xa9c] sm:$0xf0] }
 0x177   : > { %6424 = vmatpush.bf16.msrb.mxu2 %v10567_v41  ;;  %6437 = vmatpush.bf16.msrb.mxu3 %v10571_v42  ;;  %v8523_v41 = vor.u32 %v11209_v30, %v8520_v16  ;;  %v11145_v42 = vld [vmem:[%s12222_s5 + $0x294] sm:$0xf0]  ;;  %v10072_v22 = vld [vmem:[%s12222_s5 + $0x12a8] sm:$0xf0]  ;;  %v11466_v30 = vld [vmem:[%s12222_s5 + $0xca4] sm:$0xf] }
 0x178   : > { %v8007_v52 = vor.u32 %v11145_v42, %v8006_v40  ;;  %v9040_v48 = vld [vmem:[%s12222_s5 + $0xaa0] sm:$0xf0]  ;;  %v11274_v61 = vld [vmem:[%s12222_s5 + $0x69c] sm:$0xf0] }
 0x179   : > { %v8527_v12 = vor.u32 %v11274_v61, %v8526_v60  ;;  %v10086_v60 = vld [vmem:[%s12222_s5 + $0x10b8] sm:$0xf] }
 0x17a   : > { %6399 = vmatpush.bf16.msrb.mxu0 %v10047_v32  ;;  %6412 = vmatpush.bf16.msrb.mxu1 %v10051_v50  ;;  %v4685_v32 = vpack.c.b16 %v3789_v44, %v3789_v44  ;;  %v7999_v50 = vor.u32 %v11144_v34, %v7998_v33  ;;  %v10075_v33 = vor.u32 %v11595_v21, %v10072_v22  ;;  %v9552_v34 = vld [vmem:[%s12222_s5 + $0xea0] sm:$0xf0]  ;;  %v11083_v21 = vld [vmem:[%s12222_s5 + $0xac] sm:$0xf]  ;;  %v11661_v61 = vld [vmem:[%s12222_s5 + $0x12b4] sm:$0xf0] }
 0x17b   : > { %6425 = vmatpush.bf16.msrb.mxu2 %v10055_v57  ;;  %6438 = vmatpush.bf16.msrb.mxu3 %v10059_v58  ;;  %v1139_v57 = vperm.slane %v12904_v49, 0  ;;  %v1140_v58 = vperm.slane %v12904_v49, 1  ;;  %v9555_v42 = vor.u32 %v11466_v30, %v9552_v34  ;;  %v8024_v22 = vld [vmem:[%s12222_s5 + $0x2a8] sm:$0xf0]  ;;  %v1144_v34 = vperm.slane %v12904_v49, 5 }
 0x17c   : > { %v5671_v53 = vsel %vm5543_vm0, %v4685_v32, 0 }
 0x17e   : > { %6400 = vmatpush.bf16.msrb.mxu0 %v9535_v1  ;;  %6413 = vmatpush.bf16.msrb.mxu1 %v9539_v2  ;;  %v11787_v1 = vld [vmem:[%s12222_s5 + $0x16a4] sm:$0xf0]  ;;  %v11723_v2 = vld [vmem:[%s12222_s5 + $0x14ac] sm:$0xf]  ;;  %v6145_v4 = vpop.f32.mrf.mxu0  ;;  %v6158_v5 = vpop.f32.mrf.mxu1 }
 0x17f   : > { %6426 = vmatpush.bf16.msrb.mxu2 %v9543_v6  ;;  %6439 = vmatpush.bf16.msrb.mxu3 %v9547_v7  ;;  %v10062_v6 = vld [vmem:[%s12222_s5 + $0x10a0] sm:$0xf]  ;;  %v6146_v8 = vadd.f32 %v6145_v4, %v1139_v57  ;;  %v6159_v9 = vadd.f32 %v6158_v5, %v1140_v58  ;;  %v10583_v17 = vor.u32 %v11787_v1, %v10582_v0  ;;  %v8528_v1 = vld [vmem:[%s12222_s5 + $0x6a0] sm:$0xf0] }
 0x180   : > { %v11658_v7 = vld [vmem:[%s12222_s5 + $0x129c] sm:$0xf0]  ;;  %v8531_v13 = vor.u32 %v11210_v62, %v8528_v1  ;;  %v11597_v62 = vld [vmem:[%s12222_s5 + $0x10bc] sm:$0xf] }
 0x181   : > { %7608 = vst [vmem:[%s12635_s11 + $0x80] sm:$0xff] %v6146_v8 }
 0x182   : > { %6401 = vmatpush.bf16.msrb.mxu0 %v9023_v18  ;;  %6414 = vmatpush.bf16.msrb.mxu1 %v9027_v19  ;;  %v10587_v18 = vor.u32 %v11723_v2, %v10584_v3  ;;  %v10070_v19 = vld [vmem:[%s12222_s5 + $0x10a8] sm:$0xf]  ;;  %7609 = vst [vmem:[%s12635_s11 + $0x88] sm:$0xff] %v6159_v9 }
 0x183   : > { %6427 = vmatpush.bf16.msrb.mxu2 %v9031_v23  ;;  %6440 = vmatpush.bf16.msrb.mxu3 %v9035_v24  ;;  %v12934_v23 = vld [vmem:[%s14593_s0] sm:$0xf]  ;;  %v10063_v24 = vor.u32 %v11658_v7, %v10062_v6  ;;  %v10071_v31 = vor.u32 %v11659_v20, %v10070_v19  ;;  %v8534_v2 = vld [vmem:[%s12222_s5 + $0x4a8] sm:$0xf]  ;;  %v11211_v6 = vld [vmem:[%s12222_s5 + $0x4ac] sm:$0xf] }
 0x184   : > { %v11275_v3 = vld [vmem:[%s12222_s5 + $0x6a4] sm:$0xf0]  ;;  %v8536_v7 = vld [vmem:[%s12222_s5 + $0x6a8] sm:$0xf0] }
 0x185   : > { %v8539_v19 = vor.u32 %v11211_v6, %v8536_v7  ;;  %v11147_v20 = vld [vmem:[%s12222_s5 + $0x2a4] sm:$0xf0] }
 0x186   : > { %6402 = vmatpush.bf16.msrb.mxu0 %v8511_v35  ;;  %6415 = vmatpush.bf16.msrb.mxu1 %v8515_v36  ;;  %v9558_v35 = vld [vmem:[%s12222_s5 + $0xca8] sm:$0xf]  ;;  %v6147_v39 = vpop.f32.mrf.mxu0  ;;  %v6160_v40 = vpop.f32.mrf.mxu1 }
 0x187   : > { %6428 = vmatpush.bf16.msrb.mxu2 %v8519_v37  ;;  %6441 = vmatpush.bf16.msrb.mxu3 %v8523_v41  ;;  %v6171_v25 = vpop.f32.mrf.mxu2  ;;  %v6184_v26 = vpop.f32.mrf.mxu3  ;;  %v11531_v36 = vld [vmem:[%s12222_s5 + $0xea4] sm:$0xf0]  ;;  %v11467_v37 = vld [vmem:[%s12222_s5 + $0xcac] sm:$0xf]  ;;  %v9551_v41 = vor.u32 %v11530_v29, %v9550_v28  ;;  %v11724_v39 = vld [vmem:[%s12222_s5 + $0x14b4] sm:$0xf] }
 0x188   : > { %v6172_v16 = vadd.f32 %v6171_v25, %v1141_v14  ;;  %v6185_v44 = vadd.f32 %v6184_v26, %v1142_v15  ;;  %v9559_v47 = vor.u32 %v11531_v36, %v9558_v35  ;;  %v9563_v32 = vor.u32 %v11467_v37, %v9560_v38  ;;  %v11082_v15 = vld [vmem:[%s12222_s5 + $0xa4] sm:$0xf]  ;;  %v10590_v37 = vld [vmem:[%s12222_s5 + $0x14b0] sm:$0xf]  ;;  %v10592_v40 = vld [vmem:[%s12222_s5 + $0x16b0] sm:$0xf0] }
 0x189   : > { %v8535_v14 = vor.u32 %v11275_v3, %v8534_v2  ;;  %v11788_v38 = vld [vmem:[%s12222_s5 + $0x16ac] sm:$0xf0] }
 0x18a   : > { %6403 = vmatpush.bf16.msrb.mxu0 %v7999_v50  ;;  %6416 = vmatpush.bf16.msrb.mxu1 %v8003_v51  ;;  %7610 = vst [vmem:[%s12635_s11 + $0x90] sm:$0xff] %v6172_v16  ;;  %v9046_v50 = vld [vmem:[%s12222_s5 + $0x8a8] sm:$0xf]  ;;  %v8027_v16 = vor.u32 %v11083_v21, %v8024_v22  ;;  %v9566_v3 = vld [vmem:[%s12222_s5 + $0xcb0] sm:$0xf] }
 0x18b   : > { %6429 = vmatpush.bf16.msrb.mxu2 %v8007_v52  ;;  %6442 = vmatpush.bf16.msrb.mxu3 %v8011_v54  ;;  %7611 = vst [vmem:[%s12635_s11 + $0x98] sm:$0xff] %v6185_v44  ;;  %v11403_v51 = vld [vmem:[%s12222_s5 + $0xaa4] sm:$0xf0]  ;;  %v11339_v52 = vld [vmem:[%s12222_s5 + $0x8ac] sm:$0xf] }
 0x18c   : > { %v9048_v54 = vld [vmem:[%s12222_s5 + $0xaa8] sm:$0xf0]  ;;  %v9047_v63 = vor.u32 %v11403_v51, %v9046_v50  ;;  %v11404_v21 = vld [vmem:[%s12222_s5 + $0xaac] sm:$0xf0]  ;;  %v11340_v22 = vld [vmem:[%s12222_s5 + $0x8b4] sm:$0xf] }
 0x18d   : > { %10960 = vmatmul.msk.bf16.vlgmr.msrb.gmra.mxu0 %vm5539_vm1, %v12934_v23  ;;  %10961 = vmatmul.msk.bf16.vlgmr.msrb.gmra.mxu1 %vm5539_vm1, %v12934_v23  ;;  %v9051_v0 = vor.u32 %v11339_v52, %v9048_v54  ;;  %v10591_v52 = vor.u32 %v11788_v38, %v10590_v37  ;;  %v10595_v54 = vor.u32 %v11724_v39, %v10592_v40  ;;  %v11276_v37 = vld [vmem:[%s12222_s5 + $0x6ac] sm:$0xf0]  ;;  %v11212_v38 = vld [vmem:[%s12222_s5 + $0x4b4] sm:$0xf] }
 0x18e   : > { %6449 = vmatpush.bf16.msra.mxu0 %v5665_v55  ;;  %6462 = vmatpush.bf16.msra.mxu1 %v5668_v56  ;;  %v1049_v55 = vld [vmem:[%s12222_s5 + $0x18b0] sm:$0x33]  ;;  %v1050_v56 = vld [vmem:[%s12222_s5 + $0x18b8] sm:$0x33] }
 0x18f   : > { %6475 = vmatpush.bf16.msra.mxu2 %v5671_v53  ;;  %6488 = vmatpush.bf16.msra.mxu3 %v5674_v59  ;;  %v6173_v57 = vpop.f32.mrf.mxu2  ;;  %v6186_v58 = vpop.f32.mrf.mxu3  ;;  %v9039_v53 = vor.u32 %v11402_v45, %v9038_v43  ;;  %v9043_v59 = vor.u32 %v11338_v46, %v9040_v48  ;;  %v3791_v4 = vunpack.c.l.b16 %v1049_v55  ;;  %v3792_v5 = vunpack.c.h.b16 %v1049_v55  ;;  %v11725_v43 = vld [vmem:[%s12222_s5 + $0x14bc] sm:$0xf]  ;;  %v11660_v48 = vld [vmem:[%s12222_s5 + $0x12ac] sm:$0xf0]  ;;  %v11596_v55 = vld [vmem:[%s12222_s5 + $0x10b4] sm:$0xf] }
 0x190   : > { %10962 = vmatmul.msk.bf16.vlgmr.msrb.gmra.mxu2 %vm5539_vm1, %v12934_v23  ;;  %10963 = vmatmul.msk.bf16.vlgmr.msrb.gmra.mxu3 %vm5539_vm1, %v12934_v23  ;;  %v3793_v8 = vunpack.c.l.b16 %v1050_v56  ;;  %v3794_v9 = vunpack.c.h.b16 %v1050_v56  ;;  %v10600_v45 = vld [vmem:[%s12222_s5 + $0x16b8] sm:$0xf0]  ;;  %v10080_v56 = vld [vmem:[%s12222_s5 + $0x12b0] sm:$0xf0]  ;;  %v1145_v57 = vperm.slane %v12904_v49, 6  ;;  %v1146_v58 = vperm.slane %v12904_v49, 7 }
 0x191   : > { %v4688_v25 = vpack.c.b16 %v3792_v5, %v3792_v5  ;;  %v10083_v2 = vor.u32 %v11596_v55, %v10080_v56  ;;  %v11468_v5 = vld [vmem:[%s12222_s5 + $0xcb4] sm:$0xf] }
 0x192   : > { %6450 = vmatpush.bf16.msra.mxu0 %v10575_v10  ;;  %6463 = vmatpush.bf16.msra.mxu1 %v10579_v11  ;;  %v8014_v10 = vld [vmem:[%s12222_s5 + $0xa0] sm:$0xf]  ;;  %v4689_v26 = vpack.c.b16 %v3793_v8, %v3793_v8  ;;  %v10087_v8 = vor.u32 %v11661_v61, %v10086_v60  ;;  %v11149_v60 = vld [vmem:[%s12222_s5 + $0x2b4] sm:$0xf0]  ;;  %v11085_v61 = vld [vmem:[%s12222_s5 + $0xbc] sm:$0xf] }
 0x193   : > { %6476 = vmatpush.bf16.msra.mxu2 %v10583_v17  ;;  %6489 = vmatpush.bf16.msra.mxu3 %v10587_v18  ;;  %v11146_v11 = vld [vmem:[%s12222_s5 + $0x29c] sm:$0xf0]  ;;  %v8016_v17 = vld [vmem:[%s12222_s5 + $0x2a0] sm:$0xf0]  ;;  %v8022_v18 = vld [vmem:[%s12222_s5 + $0xa8] sm:$0xf] }
 0x194   : > { %v8015_v28 = vor.u32 %v11146_v11, %v8014_v10  ;;  %v8019_v29 = vor.u32 %v11082_v15, %v8016_v17  ;;  %v8023_v30 = vor.u32 %v11147_v20, %v8022_v18  ;;  %v5683_v35 = vsel %vm5543_vm0, %v4689_v26, 0  ;;  %v9568_v10 = vld [vmem:[%s12222_s5 + $0xeb0] sm:$0xf0]  ;;  %v9574_v11 = vld [vmem:[%s12222_s5 + $0xcb8] sm:$0xf] }
 0x195   : > { %v9054_v20 = vld [vmem:[%s12222_s5 + $0x8b0] sm:$0xf]  ;;  %v9056_v26 = vld [vmem:[%s12222_s5 + $0xab0] sm:$0xf0] }
 0x196   : > { %6451 = vmatpush.bf16.msra.mxu0 %v10063_v24  ;;  %6464 = vmatpush.bf16.msra.mxu1 %v10067_v27  ;;  %v4687_v24 = vpack.c.b16 %v3791_v4, %v3791_v4  ;;  %v4690_v27 = vpack.c.b16 %v3794_v9, %v3794_v9  ;;  %v11532_v4 = vld [vmem:[%s12222_s5 + $0xeac] sm:$0xf0] }
 0x197   : > { %6477 = vmatpush.bf16.msra.mxu2 %v10071_v31  ;;  %6490 = vmatpush.bf16.msra.mxu3 %v10075_v33  ;;  %v5680_v31 = vsel %vm5543_vm0, %v4688_v25, 0  ;;  %v1143_v33 = vperm.slane %v12904_v49, 4  ;;  %v9567_v18 = vor.u32 %v11532_v4, %v9566_v3 }
 0x198   : > { %v5677_v44 = vsel %vm5543_vm0, %v4687_v24, 0  ;;  %v5686_v36 = vsel %vm5543_vm0, %v4690_v27, 0  ;;  %v9062_v27 = vld [vmem:[%s12222_s5 + $0x8b8] sm:$0xf] }
 0x19a   : > { %6452 = vmatpush.bf16.msra.mxu0 %v9551_v41  ;;  %6465 = vmatpush.bf16.msra.mxu1 %v9555_v42  ;;  %v10598_v41 = vld [vmem:[%s12222_s5 + $0x14b8] sm:$0xf]  ;;  %v6197_v46 = vpop.f32.mrf.mxu0 }
 0x19b   : > { %6478 = vmatpush.bf16.msra.mxu2 %v9559_v47  ;;  %6491 = vmatpush.bf16.msra.mxu3 %v9563_v32  ;;  %v11789_v42 = vld [vmem:[%s12222_s5 + $0x16b4] sm:$0xf0]  ;;  %v6210_v47 = vpop.f32.mrf.mxu1  ;;  %v10078_v32 = vld [vmem:[%s12222_s5 + $0x10b0] sm:$0xf]  ;;  %v6198_v50 = vadd.f32 %v6197_v46, %v1143_v33 }
 0x19c   : > { %v6211_v51 = vadd.f32 %v6210_v47, %v1144_v34  ;;  %v10079_v49 = vor.u32 %v11660_v48, %v10078_v32  ;;  %v9055_v34 = vor.u32 %v11404_v21, %v9054_v20  ;;  %v11213_v47 = vld [vmem:[%s12222_s5 + $0x4bc] sm:$0xf]  ;;  %v11727_v20 = vld [vmem:[%s12222_s5 + $0x14cc] sm:$0xf] }
 0x19d   : > { %7612 = vst [vmem:[%s12635_s11 + $0xa0] sm:$0xff] %v6198_v50  ;;  %v8552_v32 = vld [vmem:[%s12222_s5 + $0x6b8] sm:$0xf0]  ;;  %v10616_v21 = vld [vmem:[%s12222_s5 + $0x16c8] sm:$0xf0] }
 0x19e   : > { %6453 = vmatpush.bf16.msra.mxu0 %v9039_v53  ;;  %6466 = vmatpush.bf16.msra.mxu1 %v9043_v59  ;;  %v10599_v53 = vor.u32 %v11789_v42, %v10598_v41  ;;  %v10603_v59 = vor.u32 %v11725_v43, %v10600_v45  ;;  %7613 = vst [vmem:[%s12635_s11 + $0xa8] sm:$0xff] %v6211_v51  ;;  %v8544_v41 = vld [vmem:[%s12222_s5 + $0x6b0] sm:$0xf0]  ;;  %v8550_v42 = vld [vmem:[%s12222_s5 + $0x4b8] sm:$0xf] }
 0x19f   : > { %6479 = vmatpush.bf16.msra.mxu2 %v9047_v63  ;;  %6492 = vmatpush.bf16.msra.mxu3 %v9051_v0  ;;  %v10088_v63 = vld [vmem:[%s12222_s5 + $0x12b8] sm:$0xf0]  ;;  %v11277_v43 = vld [vmem:[%s12222_s5 + $0x6b4] sm:$0xf0]  ;;  %v8030_v51 = vld [vmem:[%s12222_s5 + $0xb0] sm:$0xf]  ;;  %v8547_v55 = vor.u32 %v11212_v38, %v8544_v41 }
 0x1a0   : > { %v10091_v9 = vor.u32 %v11597_v62, %v10088_v63  ;;  %v8551_v56 = vor.u32 %v11277_v43, %v8550_v42  ;;  %v8040_v62 = vld [vmem:[%s12222_s5 + $0x2b8] sm:$0xf0]  ;;  %v11599_v38 = vld [vmem:[%s12222_s5 + $0x10cc] sm:$0xf] }
 0x1a2   : > { %6454 = vmatpush.bf16.msra.mxu0 %v8527_v12  ;;  %6467 = vmatpush.bf16.msra.mxu1 %v8531_v13  ;;  %v11533_v12 = vld [vmem:[%s12222_s5 + $0xeb4] sm:$0xf0]  ;;  %v11469_v13 = vld [vmem:[%s12222_s5 + $0xcbc] sm:$0xf]  ;;  %v6199_v15 = vpop.f32.mrf.mxu0 }
 0x1a3   : > { %6480 = vmatpush.bf16.msra.mxu2 %v8535_v14  ;;  %6493 = vmatpush.bf16.msra.mxu3 %v8539_v19  ;;  %v6223_v0 = vpop.f32.mrf.mxu2  ;;  %v6236_v1 = vpop.f32.mrf.mxu3  ;;  %v9576_v14 = vld [vmem:[%s12222_s5 + $0xeb8] sm:$0xf0]  ;;  %v9571_v19 = vor.u32 %v11468_v5, %v9568_v10  ;;  %v9575_v24 = vor.u32 %v11533_v12, %v9574_v11  ;;  %v11726_v15 = vld [vmem:[%s12222_s5 + $0x14c4] sm:$0xf] }
 0x1a4   : > { %v6224_v6 = vadd.f32 %v6223_v0, %v1145_v57  ;;  %v6237_v7 = vadd.f32 %v6236_v1, %v1146_v58  ;;  %v6212_v17 = vpop.f32.mrf.mxu1  ;;  %v9579_v25 = vor.u32 %v11469_v13, %v9576_v14  ;;  %v11084_v57 = vld [vmem:[%s12222_s5 + $0xb4] sm:$0xf]  ;;  %v10606_v13 = vld [vmem:[%s12222_s5 + $0x14c0] sm:$0xf] }
 0x1a5   : > { %v8032_v58 = vld [vmem:[%s12222_s5 + $0x2b0] sm:$0xf0]  ;;  %v11790_v14 = vld [vmem:[%s12222_s5 + $0x16bc] sm:$0xf0]  ;;  %v10608_v17 = vld [vmem:[%s12222_s5 + $0x16c0] sm:$0xf0] }
 0x1a6   : > { %6455 = vmatpush.bf16.msra.mxu0 %v8015_v28  ;;  %6468 = vmatpush.bf16.msra.mxu1 %v8019_v29  ;;  %7614 = vst [vmem:[%s12635_s11 + $0xb0] sm:$0xff] %v6224_v6  ;;  %v11405_v28 = vld [vmem:[%s12222_s5 + $0xab4] sm:$0xf0]  ;;  %v11341_v29 = vld [vmem:[%s12222_s5 + $0x8bc] sm:$0xf]  ;;  %v8035_v4 = vor.u32 %v11084_v57, %v8032_v58  ;;  %v8043_v6 = vor.u32 %v11085_v61, %v8040_v62 }
 0x1a7   : > { %6481 = vmatpush.bf16.msra.mxu2 %v8023_v30  ;;  %6494 = vmatpush.bf16.msra.mxu3 %v8027_v16  ;;  %7615 = vst [vmem:[%s12635_s11 + $0xb8] sm:$0xff] %v6237_v7  ;;  %v9064_v30 = vld [vmem:[%s12222_s5 + $0xab8] sm:$0xf0]  ;;  %v1051_v16 = vld [vmem:[%s12222_s5 + $0x18c0] sm:$0x33]  ;;  %v9063_v39 = vor.u32 %v11405_v28, %v9062_v27 }
 0x1a8   : > { %v9067_v40 = vor.u32 %v11341_v29, %v9064_v30  ;;  %v3795_v45 = vunpack.c.l.b16 %v1051_v16  ;;  %v3796_v46 = vunpack.c.h.b16 %v1051_v16  ;;  %v10607_v29 = vor.u32 %v11790_v14, %v10606_v13  ;;  %v11598_v16 = vld [vmem:[%s12222_s5 + $0x10c4] sm:$0xf]  ;;  %v9592_v57 = vld [vmem:[%s12222_s5 + $0xec8] sm:$0xf0]  ;;  %v9070_v61 = vld [vmem:[%s12222_s5 + $0x8c0] sm:$0xf] }
 0x1a9   : > { %10964 = vmatmul.msk.bf16.vlgmr.msra.gmra.mxu0 %vm5539_vm1, %v12934_v23  ;;  %10965 = vmatmul.msk.bf16.vlgmr.msra.gmra.mxu1 %vm5539_vm1, %v12934_v23  ;;  %v10611_v30 = vor.u32 %v11726_v15, %v10608_v17  ;;  %v11406_v62 = vld [vmem:[%s12222_s5 + $0xabc] sm:$0xf0]  ;;  %v11214_v15 = vld [vmem:[%s12222_s5 + $0x4c4] sm:$0xf] }
 0x1aa   : > { %6501 = vmatpush.bf16.msrb.mxu0 %v5677_v44  ;;  %6514 = vmatpush.bf16.msrb.mxu1 %v5680_v31  ;;  %v1052_v44 = vld [vmem:[%s12222_s5 + $0x18c8] sm:$0x33]  ;;  %v4691_v63 = vpack.c.b16 %v3795_v45, %v3795_v45  ;;  %v9582_v45 = vld [vmem:[%s12222_s5 + $0xcc0] sm:$0xf] }
 0x1ab   : > { %6527 = vmatpush.bf16.msrb.mxu2 %v5683_v35  ;;  %6540 = vmatpush.bf16.msrb.mxu3 %v5686_v36  ;;  %v6225_v31 = vpop.f32.mrf.mxu2  ;;  %v6238_v33 = vpop.f32.mrf.mxu3  ;;  %v9059_v35 = vor.u32 %v11340_v22, %v9056_v26  ;;  %v8542_v36 = vld [vmem:[%s12222_s5 + $0x4b0] sm:$0xf]  ;;  %v3797_v48 = vunpack.c.l.b16 %v1052_v44  ;;  %v3798_v50 = vunpack.c.h.b16 %v1052_v44  ;;  %v11662_v26 = vld [vmem:[%s12222_s5 + $0x12bc] sm:$0xf0]  ;;  %v10096_v44 = vld [vmem:[%s12222_s5 + $0x12c0] sm:$0xf0] }
 0x1ac   : > { %10966 = vmatmul.msk.bf16.vlgmr.msra.gmra.mxu2 %vm5539_vm1, %v12934_v23  ;;  %10967 = vmatmul.msk.bf16.vlgmr.msra.gmra.mxu3 %vm5539_vm1, %v12934_v23  ;;  %v5689_v7 = vsel %vm5543_vm0, %v4691_v63, 0  ;;  %v10099_v43 = vor.u32 %v11598_v16, %v10096_v44  ;;  %v11342_v63 = vld [vmem:[%s12222_s5 + $0x8c4] sm:$0xf]  ;;  %v8558_v13 = vld [vmem:[%s12222_s5 + $0x4c0] sm:$0xf] }
 0x1ad   : > { %v4693_v0 = vpack.c.b16 %v3797_v48, %v3797_v48  ;;  %v4694_v1 = vpack.c.b16 %v3798_v50, %v3798_v50  ;;  %v11278_v14 = vld [vmem:[%s12222_s5 + $0x6bc] sm:$0xf0] }
 0x1ae   : > { %6502 = vmatpush.bf16.msrb.mxu0 %v10591_v52  ;;  %6515 = vmatpush.bf16.msrb.mxu1 %v10595_v54  ;;  %v11148_v52 = vld [vmem:[%s12222_s5 + $0x2ac] sm:$0xf0]  ;;  %v8543_v54 = vor.u32 %v11276_v37, %v8542_v36  ;;  %v10102_v36 = vld [vmem:[%s12222_s5 + $0x10c8] sm:$0xf]  ;;  %v8559_v16 = vor.u32 %v11278_v14, %v8558_v13  ;;  %v10118_v13 = vld [vmem:[%s12222_s5 + $0x10d8] sm:$0xf] }
 0x1af   : > { %6528 = vmatpush.bf16.msrb.mxu2 %v10599_v53  ;;  %6541 = vmatpush.bf16.msrb.mxu3 %v10603_v59  ;;  %v8038_v53 = vld [vmem:[%s12222_s5 + $0xb8] sm:$0xf]  ;;  %v8555_v59 = vor.u32 %v11213_v47, %v8552_v32  ;;  %v8031_v3 = vor.u32 %v11148_v52, %v8030_v51  ;;  %v5695_v11 = vsel %vm5543_vm0, %v4693_v0, 0  ;;  %v5698_v12 = vsel %vm5543_vm0, %v4694_v1, 0  ;;  %v11663_v37 = vld [vmem:[%s12222_s5 + $0x12c4] sm:$0xf0] }
 0x1b0   : > { %v8039_v5 = vor.u32 %v11149_v60, %v8038_v53  ;;  %v11470_v47 = vld [vmem:[%s12222_s5 + $0xcc4] sm:$0xf]  ;;  %v10103_v50 = vor.u32 %v11663_v37, %v10102_v36  ;;  %v11151_v37 = vld [vmem:[%s12222_s5 + $0x2c4] sm:$0xf0]  ;;  %v11665_v14 = vld [vmem:[%s12222_s5 + $0x12d4] sm:$0xf0] }
 0x1b1   : > { %v9584_v52 = vld [vmem:[%s12222_s5 + $0xec0] sm:$0xf0] }
 0x1b2   : > { %6503 = vmatpush.bf16.msrb.mxu0 %v10079_v49  ;;  %6516 = vmatpush.bf16.msrb.mxu1 %v10083_v2  ;;  %v4692_v49 = vpack.c.b16 %v3796_v46, %v3796_v46  ;;  %v13052_v2 = vld [vmem:[%s12230_s26 + $0x18] sm:$0xff]  ;;  %v11534_v46 = vld [vmem:[%s12222_s5 + $0xebc] sm:$0xf0]  ;;  %v9587_v60 = vor.u32 %v11470_v47, %v9584_v52  ;;  %v9072_v1 = vld [vmem:[%s12222_s5 + $0xac0] sm:$0xf0] }
 0x1b3   : > { %6529 = vmatpush.bf16.msrb.mxu2 %v10087_v8  ;;  %6542 = vmatpush.bf16.msrb.mxu3 %v10091_v9  ;;  %v1147_v9 = vperm.slane %v13052_v2, 0  ;;  %v1148_v10 = vperm.slane %v13052_v2, 1  ;;  %v1149_v31 = vperm.slane %v13052_v2, 2  ;;  %v1150_v33 = vperm.slane %v13052_v2, 3 }
 0x1b4   : > { %v5692_v8 = vsel %vm5543_vm0, %v4692_v49, 0  ;;  %v1152_v52 = vperm.slane %v13052_v2, 5 }
 0x1b6   : > { %6504 = vmatpush.bf16.msrb.mxu0 %v9567_v18  ;;  %6517 = vmatpush.bf16.msrb.mxu1 %v9571_v19  ;;  %v10614_v18 = vld [vmem:[%s12222_s5 + $0x14c8] sm:$0xf]  ;;  %v6249_v22 = vpop.f32.mrf.mxu0 }
 0x1b7   : > { %6530 = vmatpush.bf16.msrb.mxu2 %v9575_v24  ;;  %6543 = vmatpush.bf16.msrb.mxu3 %v9579_v25  ;;  %v11791_v19 = vld [vmem:[%s12222_s5 + $0x16c4] sm:$0xf0]  ;;  %v6262_v24 = vpop.f32.mrf.mxu1  ;;  %v10094_v25 = vld [vmem:[%s12222_s5 + $0x10c0] sm:$0xf]  ;;  %v6250_v27 = vadd.f32 %v6249_v22, %v1147_v9 }
 0x1b8   : > { %v6263_v28 = vadd.f32 %v6262_v24, %v1148_v10 }
 0x1b9   : > { %7616 = vst [vmem:[%s12635_s11 + $0xc0] sm:$0xff] %v6250_v27 }
 0x1ba   : > { %6505 = vmatpush.bf16.msrb.mxu0 %v9055_v34  ;;  %6518 = vmatpush.bf16.msrb.mxu1 %v9059_v35  ;;  %v10615_v34 = vor.u32 %v11791_v19, %v10614_v18  ;;  %v10619_v35 = vor.u32 %v11727_v20, %v10616_v21  ;;  %7617 = vst [vmem:[%s12635_s11 + $0xc8] sm:$0xff] %v6263_v28  ;;  %v8560_v19 = vld [vmem:[%s12222_s5 + $0x6c0] sm:$0xf0]  ;;  %v8566_v20 = vld [vmem:[%s12222_s5 + $0x4c8] sm:$0xf] }
 0x1bb   : > { %6531 = vmatpush.bf16.msrb.mxu2 %v9063_v39  ;;  %6544 = vmatpush.bf16.msrb.mxu3 %v9067_v40  ;;  %v10104_v39 = vld [vmem:[%s12222_s5 + $0x12c8] sm:$0xf0]  ;;  %v10095_v40 = vor.u32 %v11662_v26, %v10094_v25  ;;  %v11279_v21 = vld [vmem:[%s12222_s5 + $0x6c4] sm:$0xf0]  ;;  %v8563_v44 = vor.u32 %v11214_v15, %v8560_v19  ;;  %v11601_v15 = vld [vmem:[%s12222_s5 + $0x10dc] sm:$0xf] }
 0x1bc   : > { %v10107_v51 = vor.u32 %v11599_v38, %v10104_v39  ;;  %v11215_v25 = vld [vmem:[%s12222_s5 + $0x4cc] sm:$0xf] }
 0x1bd   : > { %v8568_v26 = vld [vmem:[%s12222_s5 + $0x6c8] sm:$0xf0] }
 0x1be   : > { %6506 = vmatpush.bf16.msrb.mxu0 %v8543_v54  ;;  %6519 = vmatpush.bf16.msrb.mxu1 %v8547_v55  ;;  %v9590_v54 = vld [vmem:[%s12222_s5 + $0xcc8] sm:$0xf]  ;;  %v6251_v58 = vpop.f32.mrf.mxu0  ;;  %v8571_v36 = vor.u32 %v11215_v25, %v8568_v26  ;;  %v11087_v38 = vld [vmem:[%s12222_s5 + $0xcc] sm:$0xf] }
 0x1bf   : > { %6532 = vmatpush.bf16.msrb.mxu2 %v8551_v56  ;;  %6545 = vmatpush.bf16.msrb.mxu3 %v8555_v59  ;;  %v6275_v41 = vpop.f32.mrf.mxu2  ;;  %v6288_v42 = vpop.f32.mrf.mxu3  ;;  %v11535_v55 = vld [vmem:[%s12222_s5 + $0xec4] sm:$0xf0]  ;;  %v11471_v56 = vld [vmem:[%s12222_s5 + $0xccc] sm:$0xf]  ;;  %v9583_v59 = vor.u32 %v11534_v46, %v9582_v45  ;;  %v11728_v58 = vld [vmem:[%s12222_s5 + $0x14d4] sm:$0xf] }
 0x1c0   : > { %v6276_v32 = vadd.f32 %v6275_v41, %v1149_v31  ;;  %v6289_v48 = vadd.f32 %v6288_v42, %v1150_v33  ;;  %v6264_v53 = vpop.f32.mrf.mxu1  ;;  %v9591_v49 = vor.u32 %v11535_v55, %v9590_v54  ;;  %v9595_v0 = vor.u32 %v11471_v56, %v9592_v57  ;;  %v11086_v33 = vld [vmem:[%s12222_s5 + $0xc4] sm:$0xf]  ;;  %v8056_v39 = vld [vmem:[%s12222_s5 + $0x2c8] sm:$0xf0]  ;;  %v10622_v56 = vld [vmem:[%s12222_s5 + $0x14d0] sm:$0xf] }
 0x1c1   : > { %v8567_v31 = vor.u32 %v11279_v21, %v8566_v20  ;;  %v11792_v57 = vld [vmem:[%s12222_s5 + $0x16cc] sm:$0xf0]  ;;  %v10624_v53 = vld [vmem:[%s12222_s5 + $0x16d0] sm:$0xf0] }
 0x1c2   : > { %6507 = vmatpush.bf16.msrb.mxu0 %v8031_v3  ;;  %6520 = vmatpush.bf16.msrb.mxu1 %v8035_v4  ;;  %7618 = vst [vmem:[%s12635_s11 + $0xd0] sm:$0xff] %v6276_v32  ;;  %v9078_v3 = vld [vmem:[%s12222_s5 + $0x8c8] sm:$0xf]  ;;  %v8059_v32 = vor.u32 %v11087_v38, %v8056_v39  ;;  %v9598_v21 = vld [vmem:[%s12222_s5 + $0xcd0] sm:$0xf] }
 0x1c3   : > { %6533 = vmatpush.bf16.msrb.mxu2 %v8039_v5  ;;  %6546 = vmatpush.bf16.msrb.mxu3 %v8043_v6  ;;  %7619 = vst [vmem:[%s12635_s11 + $0xd8] sm:$0xff] %v6289_v48  ;;  %v11407_v4 = vld [vmem:[%s12222_s5 + $0xac4] sm:$0xf0]  ;;  %v11343_v5 = vld [vmem:[%s12222_s5 + $0x8cc] sm:$0xf] }
 0x1c4   : > { %v9080_v6 = vld [vmem:[%s12222_s5 + $0xac8] sm:$0xf0]  ;;  %v9079_v17 = vor.u32 %v11407_v4, %v9078_v3  ;;  %v11344_v38 = vld [vmem:[%s12222_s5 + $0x8d4] sm:$0xf] }
 0x1c5   : > { %10968 = vmatmul.msk.bf16.vlgmr.msrb.gmra.mxu0 %vm5539_vm1, %v12934_v23  ;;  %10969 = vmatmul.msk.bf16.vlgmr.msrb.gmra.mxu1 %vm5539_vm1, %v12934_v23  ;;  %v9083_v18 = vor.u32 %v11343_v5, %v9080_v6  ;;  %v10623_v5 = vor.u32 %v11792_v57, %v10622_v56  ;;  %v10627_v6 = vor.u32 %v11728_v58, %v10624_v53  ;;  %v11216_v56 = vld [vmem:[%s12222_s5 + $0x4d4] sm:$0xf] }
 0x1c6   : > { %6553 = vmatpush.bf16.msra.mxu0 %v5689_v7  ;;  %6566 = vmatpush.bf16.msra.mxu1 %v5692_v8  ;;  %v1053_v7 = vld [vmem:[%s12222_s5 + $0x18d0] sm:$0x33]  ;;  %v1054_v8 = vld [vmem:[%s12222_s5 + $0x18d8] sm:$0x33] }
 0x1c7   : > { %6579 = vmatpush.bf16.msra.mxu2 %v5695_v11  ;;  %6592 = vmatpush.bf16.msra.mxu3 %v5698_v12  ;;  %v6277_v9 = vpop.f32.mrf.mxu2  ;;  %v6290_v10 = vpop.f32.mrf.mxu3  ;;  %v9071_v11 = vor.u32 %v11406_v62, %v9070_v61  ;;  %v9075_v12 = vor.u32 %v11342_v63, %v9072_v1  ;;  %v3799_v22 = vunpack.c.l.b16 %v1053_v7  ;;  %v3800_v24 = vunpack.c.h.b16 %v1053_v7  ;;  %v11729_v61 = vld [vmem:[%s12222_s5 + $0x14dc] sm:$0xf]  ;;  %v11664_v1 = vld [vmem:[%s12222_s5 + $0x12cc] sm:$0xf0]  ;;  %v11600_v7 = vld [vmem:[%s12222_s5 + $0x10d4] sm:$0xf] }
 0x1c8   : > { %10970 = vmatmul.msk.bf16.vlgmr.msrb.gmra.mxu2 %vm5539_vm1, %v12934_v23  ;;  %10971 = vmatmul.msk.bf16.vlgmr.msrb.gmra.mxu3 %vm5539_vm1, %v12934_v23  ;;  %v3801_v27 = vunpack.c.l.b16 %v1054_v8  ;;  %v3802_v28 = vunpack.c.h.b16 %v1054_v8  ;;  %v10632_v62 = vld [vmem:[%s12222_s5 + $0x16d8] sm:$0xf0]  ;;  %v10112_v8 = vld [vmem:[%s12222_s5 + $0x12d0] sm:$0xf0]  ;;  %v1153_v9 = vperm.slane %v13052_v2, 6  ;;  %v1154_v10 = vperm.slane %v13052_v2, 7 }
 0x1c9   : > { %v4696_v41 = vpack.c.b16 %v3800_v24, %v3800_v24  ;;  %v10115_v20 = vor.u32 %v11600_v7, %v10112_v8  ;;  %v11472_v24 = vld [vmem:[%s12222_s5 + $0xcd4] sm:$0xf] }
 0x1ca   : > { %6554 = vmatpush.bf16.msra.mxu0 %v10607_v29  ;;  %6567 = vmatpush.bf16.msra.mxu1 %v10611_v30  ;;  %v8046_v29 = vld [vmem:[%s12222_s5 + $0xc0] sm:$0xf]  ;;  %v4697_v42 = vpack.c.b16 %v3801_v27, %v3801_v27  ;;  %v10119_v27 = vor.u32 %v11665_v14, %v10118_v13  ;;  %v8576_v53 = vld [vmem:[%s12222_s5 + $0x6d0] sm:$0xf0]  ;;  %v11089_v13 = vld [vmem:[%s12222_s5 + $0xdc] sm:$0xf] }
 0x1cb   : > { %6580 = vmatpush.bf16.msra.mxu2 %v10615_v34  ;;  %6593 = vmatpush.bf16.msra.mxu3 %v10619_v35  ;;  %v11150_v30 = vld [vmem:[%s12222_s5 + $0x2bc] sm:$0xf0]  ;;  %v8048_v34 = vld [vmem:[%s12222_s5 + $0x2c0] sm:$0xf0]  ;;  %v8054_v35 = vld [vmem:[%s12222_s5 + $0xc8] sm:$0xf] }
 0x1cc   : > { %v8047_v45 = vor.u32 %v11150_v30, %v8046_v29  ;;  %v8051_v46 = vor.u32 %v11086_v33, %v8048_v34  ;;  %v8055_v47 = vor.u32 %v11151_v37, %v8054_v35  ;;  %v5707_v54 = vsel %vm5543_vm0, %v4697_v42, 0  ;;  %v9606_v29 = vld [vmem:[%s12222_s5 + $0xcd8] sm:$0xf]  ;;  %v11408_v37 = vld [vmem:[%s12222_s5 + $0xacc] sm:$0xf0] }
 0x1cd   : > { %v11537_v30 = vld [vmem:[%s12222_s5 + $0xed4] sm:$0xf0]  ;;  %v11088_v8 = vld [vmem:[%s12222_s5 + $0xd4] sm:$0xf]  ;;  %v8072_v14 = vld [vmem:[%s12222_s5 + $0x2d8] sm:$0xf0] }
 0x1ce   : > { %6555 = vmatpush.bf16.msra.mxu0 %v10095_v40  ;;  %6568 = vmatpush.bf16.msra.mxu1 %v10099_v43  ;;  %v4695_v40 = vpack.c.b16 %v3799_v22, %v3799_v22  ;;  %v4698_v43 = vpack.c.b16 %v3802_v28, %v3802_v28  ;;  %v11536_v22 = vld [vmem:[%s12222_s5 + $0xecc] sm:$0xf0]  ;;  %v9607_v39 = vor.u32 %v11537_v30, %v9606_v29  ;;  %v9094_v42 = vld [vmem:[%s12222_s5 + $0x8d8] sm:$0xf]  ;;  %v10638_v30 = vld [vmem:[%s12222_s5 + $0x14e0] sm:$0xf] }
 0x1cf   : > { %6581 = vmatpush.bf16.msra.mxu2 %v10103_v50  ;;  %6594 = vmatpush.bf16.msra.mxu3 %v10107_v51  ;;  %v5704_v50 = vsel %vm5543_vm0, %v4696_v41, 0  ;;  %v1151_v51 = vperm.slane %v13052_v2, 4  ;;  %v9599_v34 = vor.u32 %v11536_v22, %v9598_v21  ;;  %v9088_v41 = vld [vmem:[%s12222_s5 + $0xad0] sm:$0xf0] }
 0x1d0   : > { %v5701_v48 = vsel %vm5543_vm0, %v4695_v40, 0  ;;  %v5710_v55 = vsel %vm5543_vm0, %v4698_v43, 0  ;;  %v11409_v43 = vld [vmem:[%s12222_s5 + $0xad4] sm:$0xf0] }
 0x1d1   : > { %v9095_v57 = vor.u32 %v11409_v43, %v9094_v42 }
 0x1d2   : > { %6556 = vmatpush.bf16.msra.mxu0 %v9583_v59  ;;  %6569 = vmatpush.bf16.msra.mxu1 %v9587_v60  ;;  %v10630_v59 = vld [vmem:[%s12222_s5 + $0x14d8] sm:$0xf]  ;;  %v6301_v63 = vpop.f32.mrf.mxu0 }
 0x1d3   : > { %6582 = vmatpush.bf16.msra.mxu2 %v9591_v49  ;;  %6595 = vmatpush.bf16.msra.mxu3 %v9595_v0  ;;  %v11793_v60 = vld [vmem:[%s12222_s5 + $0x16d4] sm:$0xf0]  ;;  %v6314_v49 = vpop.f32.mrf.mxu1  ;;  %v10110_v0 = vld [vmem:[%s12222_s5 + $0x10d0] sm:$0xf]  ;;  %v6302_v3 = vadd.f32 %v6301_v63, %v1151_v51  ;;  %v11217_v63 = vld [vmem:[%s12222_s5 + $0x4dc] sm:$0xf] }
 0x1d4   : > { %v6315_v4 = vadd.f32 %v6314_v49, %v1152_v52  ;;  %v10111_v2 = vor.u32 %v11664_v1, %v10110_v0  ;;  %v9091_v52 = vor.u32 %v11344_v38, %v9088_v41  ;;  %v8584_v49 = vld [vmem:[%s12222_s5 + $0x6d8] sm:$0xf0] }
 0x1d5   : > { %7620 = vst [vmem:[%s12635_s11 + $0xe0] sm:$0xff] %v6302_v3  ;;  %v8062_v3 = vld [vmem:[%s12222_s5 + $0xd0] sm:$0xf] }
 0x1d6   : > { %6557 = vmatpush.bf16.msra.mxu0 %v9071_v11  ;;  %6570 = vmatpush.bf16.msra.mxu1 %v9075_v12  ;;  %v10631_v11 = vor.u32 %v11793_v60, %v10630_v59  ;;  %v10635_v12 = vor.u32 %v11729_v61, %v10632_v62  ;;  %7621 = vst [vmem:[%s12635_s11 + $0xe8] sm:$0xff] %v6315_v4  ;;  %v8582_v59 = vld [vmem:[%s12222_s5 + $0x4d8] sm:$0xf]  ;;  %v11152_v4 = vld [vmem:[%s12222_s5 + $0x2cc] sm:$0xf0] }
 0x1d7   : > { %6583 = vmatpush.bf16.msra.mxu2 %v9079_v17  ;;  %6596 = vmatpush.bf16.msra.mxu3 %v9083_v18  ;;  %v10120_v17 = vld [vmem:[%s12222_s5 + $0x12d8] sm:$0xf0]  ;;  %v11281_v60 = vld [vmem:[%s12222_s5 + $0x6d4] sm:$0xf0] }
 0x1d8   : > { %v10123_v28 = vor.u32 %v11601_v15, %v10120_v17  ;;  %v8583_v7 = vor.u32 %v11281_v60, %v8582_v59 }
 0x1da   : > { %6558 = vmatpush.bf16.msra.mxu0 %v8559_v16  ;;  %6571 = vmatpush.bf16.msra.mxu1 %v8563_v44  ;;  %v11473_v16 = vld [vmem:[%s12222_s5 + $0xcdc] sm:$0xf] }
 0x1db   : > { %6584 = vmatpush.bf16.msra.mxu2 %v8567_v31  ;;  %6597 = vmatpush.bf16.msra.mxu3 %v8571_v36  ;;  %v6327_v18 = vpop.f32.mrf.mxu2  ;;  %v6340_v19 = vpop.f32.mrf.mxu3  ;;  %v9608_v44 = vld [vmem:[%s12222_s5 + $0xed8] sm:$0xf0]  ;;  %v9086_v36 = vld [vmem:[%s12222_s5 + $0x8d0] sm:$0xf] }
 0x1dc   : > { %v6328_v25 = vadd.f32 %v6327_v18, %v1153_v9  ;;  %v6341_v26 = vadd.f32 %v6340_v19, %v1154_v10  ;;  %v6303_v31 = vpop.f32.mrf.mxu0  ;;  %v6316_v33 = vpop.f32.mrf.mxu1  ;;  %v9611_v40 = vor.u32 %v11473_v16, %v9608_v44  ;;  %v9087_v51 = vor.u32 %v11408_v37, %v9086_v36  ;;  %v8064_v9 = vld [vmem:[%s12222_s5 + $0x2d0] sm:$0xf0]  ;;  %v8070_v10 = vld [vmem:[%s12222_s5 + $0xd8] sm:$0xf]  ;;  %v13195_v19 = vld [vmem:[%s12230_s26 + $0x20] sm:$0xff] }
 0x1dd   : > { %v8067_v21 = vor.u32 %v11088_v8, %v8064_v9  ;;  %v11794_v16 = vld [vmem:[%s12222_s5 + $0x16dc] sm:$0xf0]  ;;  %v11730_v44 = vld [vmem:[%s12222_s5 + $0x14e4] sm:$0xf]  ;;  %v10646_v33 = vld [vmem:[%s12222_s5 + $0x14e8] sm:$0xf] }
 0x1de   : > { %6559 = vmatpush.bf16.msra.mxu0 %v8047_v45  ;;  %6572 = vmatpush.bf16.msra.mxu1 %v8051_v46  ;;  %7622 = vst [vmem:[%s12635_s11 + $0xf0] sm:$0xff] %v6328_v25  ;;  %v11345_v45 = vld [vmem:[%s12222_s5 + $0x8dc] sm:$0xf]  ;;  %v10640_v31 = vld [vmem:[%s12222_s5 + $0x16e0] sm:$0xf0]  ;;  %v10639_v43 = vor.u32 %v11794_v16, %v10638_v30 }
 0x1df   : > { %6585 = vmatpush.bf16.msra.mxu2 %v8055_v47  ;;  %6598 = vmatpush.bf16.msra.mxu3 %v8059_v32  ;;  %7623 = vst [vmem:[%s12635_s11 + $0xf8] sm:$0xff] %v6341_v26  ;;  %v9096_v46 = vld [vmem:[%s12222_s5 + $0xad8] sm:$0xf0]  ;;  %v1055_v47 = vld [vmem:[%s12222_s5 + $0x18e0] sm:$0x33] }
 0x1e0   : > { %v1056_v32 = vld [vmem:[%s12222_s5 + $0x18e8] sm:$0x33]  ;;  %v9099_v58 = vor.u32 %v11345_v45, %v9096_v46  ;;  %v3803_v61 = vunpack.c.l.b16 %v1055_v47  ;;  %v3804_v62 = vunpack.c.h.b16 %v1055_v47  ;;  %v10643_v45 = vor.u32 %v11730_v44, %v10640_v31  ;;  %v11602_v46 = vld [vmem:[%s12222_s5 + $0x10e4] sm:$0xf]  ;;  %v8590_v30 = vld [vmem:[%s12222_s5 + $0x4e0] sm:$0xf] }
 0x1e1   : > { %10972 = vmatmul.msk.bf16.vlgmr.msra.gmra.mxu0 %vm5539_vm1, %v12934_v23  ;;  %10973 = vmatmul.msk.bf16.vlgmr.msra.gmra.mxu1 %vm5539_vm1, %v12934_v23  ;;  %v3805_v0 = vunpack.c.l.b16 %v1056_v32  ;;  %v3806_v1 = vunpack.c.h.b16 %v1056_v32  ;;  %v10648_v36 = vld [vmem:[%s12222_s5 + $0x16e8] sm:$0xf0]  ;;  %v10128_v47 = vld [vmem:[%s12222_s5 + $0x12e0] sm:$0xf0]  ;;  %v1157_v32 = vperm.slane %v13195_v19, 2 }
 0x1e2   : > { %6605 = vmatpush.bf16.msrb.mxu0 %v5701_v48  ;;  %6618 = vmatpush.bf16.msrb.mxu1 %v5704_v50  ;;  %v4699_v15 = vpack.c.b16 %v3803_v61, %v3803_v61  ;;  %v4700_v17 = vpack.c.b16 %v3804_v62, %v3804_v62  ;;  %v10131_v60 = vor.u32 %v11602_v46, %v10128_v47  ;;  %v9614_v61 = vld [vmem:[%s12222_s5 + $0xce0] sm:$0xf]  ;;  %v9624_v8 = vld [vmem:[%s12222_s5 + $0xee8] sm:$0xf0]  ;;  %v11218_v44 = vld [vmem:[%s12222_s5 + $0x4e4] sm:$0xf] }
 0x1e3   : > { %6631 = vmatpush.bf16.msrb.mxu2 %v5707_v54  ;;  %6644 = vmatpush.bf16.msrb.mxu3 %v5710_v55  ;;  %v6329_v48 = vpop.f32.mrf.mxu2  ;;  %v6342_v50 = vpop.f32.mrf.mxu3  ;;  %v8574_v54 = vld [vmem:[%s12222_s5 + $0x4d0] sm:$0xf]  ;;  %v4702_v18 = vpack.c.b16 %v3806_v1, %v3806_v1  ;;  %v11538_v62 = vld [vmem:[%s12222_s5 + $0xedc] sm:$0xf0] }
 0x1e4   : > { %10974 = vmatmul.msk.bf16.vlgmr.msra.gmra.mxu2 %vm5539_vm1, %v12934_v23  ;;  %10975 = vmatmul.msk.bf16.vlgmr.msra.gmra.mxu3 %vm5539_vm1, %v12934_v23  ;;  %v9600_v23 = vld [vmem:[%s12222_s5 + $0xed0] sm:$0xf0]  ;;  %v11280_v55 = vld [vmem:[%s12222_s5 + $0x6cc] sm:$0xf0]  ;;  %v5713_v25 = vsel %vm5543_vm0, %v4699_v15, 0  ;;  %v5716_v26 = vsel %vm5543_vm0, %v4700_v17, 0 }
 0x1e5   : > { %v9603_v35 = vor.u32 %v11472_v24, %v9600_v23  ;;  %v8075_v24 = vor.u32 %v11089_v13, %v8072_v14  ;;  %v5722_v29 = vsel %vm5543_vm0, %v4702_v18, 0  ;;  %v1158_v48 = vperm.slane %v13195_v19, 3  ;;  %v9102_v13 = vld [vmem:[%s12222_s5 + $0x8e0] sm:$0xf]  ;;  %v11346_v15 = vld [vmem:[%s12222_s5 + $0x8e4] sm:$0xf] }
 0x1e6   : > { %6606 = vmatpush.bf16.msrb.mxu0 %v10623_v5  ;;  %6619 = vmatpush.bf16.msrb.mxu1 %v10627_v6  ;;  %v8575_v5 = vor.u32 %v11280_v55, %v8574_v54  ;;  %v8579_v6 = vor.u32 %v11216_v56, %v8576_v53  ;;  %v11667_v54 = vld [vmem:[%s12222_s5 + $0x12e4] sm:$0xf0]  ;;  %v11603_v55 = vld [vmem:[%s12222_s5 + $0x10ec] sm:$0xf]  ;;  %v11410_v14 = vld [vmem:[%s12222_s5 + $0xadc] sm:$0xf0] }
 0x1e7   : > { %6632 = vmatpush.bf16.msrb.mxu2 %v10631_v11  ;;  %6645 = vmatpush.bf16.msrb.mxu3 %v10635_v12  ;;  %v8587_v11 = vor.u32 %v11217_v63, %v8584_v49  ;;  %v11153_v12 = vld [vmem:[%s12222_s5 + $0x2d4] sm:$0xf0]  ;;  %v10136_v56 = vld [vmem:[%s12222_s5 + $0x12e8] sm:$0xf0]  ;;  %v11474_v63 = vld [vmem:[%s12222_s5 + $0xce4] sm:$0xf] }
 0x1e8   : > { %v8071_v22 = vor.u32 %v11153_v12, %v8070_v10  ;;  %v9104_v18 = vld [vmem:[%s12222_s5 + $0xae0] sm:$0xf0]  ;;  %v11282_v16 = vld [vmem:[%s12222_s5 + $0x6dc] sm:$0xf0] }
 0x1e9   : > { %v8591_v46 = vor.u32 %v11282_v16, %v8590_v30  ;;  %v10150_v30 = vld [vmem:[%s12222_s5 + $0x10f8] sm:$0xf] }
 0x1ea   : > { %6607 = vmatpush.bf16.msrb.mxu0 %v10111_v2  ;;  %6620 = vmatpush.bf16.msrb.mxu1 %v10115_v20  ;;  %v4701_v2 = vpack.c.b16 %v3805_v0, %v3805_v0  ;;  %v8063_v20 = vor.u32 %v11152_v4, %v8062_v3  ;;  %v10139_v3 = vor.u32 %v11603_v55, %v10136_v56  ;;  %v9616_v4 = vld [vmem:[%s12222_s5 + $0xee0] sm:$0xf0]  ;;  %v11091_v55 = vld [vmem:[%s12222_s5 + $0xec] sm:$0xf]  ;;  %v11669_v16 = vld [vmem:[%s12222_s5 + $0x12f4] sm:$0xf0] }
 0x1eb   : > { %6633 = vmatpush.bf16.msrb.mxu2 %v10119_v27  ;;  %6646 = vmatpush.bf16.msrb.mxu3 %v10123_v28  ;;  %v1155_v27 = vperm.slane %v13195_v19, 0  ;;  %v1156_v28 = vperm.slane %v13195_v19, 1  ;;  %v9619_v12 = vor.u32 %v11474_v63, %v9616_v4  ;;  %v8088_v56 = vld [vmem:[%s12222_s5 + $0x2e8] sm:$0xf0]  ;;  %v1160_v4 = vperm.slane %v13195_v19, 5 }
 0x1ec   : > { %v5719_v23 = vsel %vm5543_vm0, %v4701_v2, 0 }
 0x1ee   : > { %6608 = vmatpush.bf16.msrb.mxu0 %v9599_v34  ;;  %6621 = vmatpush.bf16.msrb.mxu1 %v9603_v35  ;;  %v11795_v34 = vld [vmem:[%s12222_s5 + $0x16e4] sm:$0xf0]  ;;  %v11731_v35 = vld [vmem:[%s12222_s5 + $0x14ec] sm:$0xf]  ;;  %v6353_v37 = vpop.f32.mrf.mxu0  ;;  %v6366_v38 = vpop.f32.mrf.mxu1 }
 0x1ef   : > { %6634 = vmatpush.bf16.msrb.mxu2 %v9607_v39  ;;  %6647 = vmatpush.bf16.msrb.mxu3 %v9611_v40  ;;  %v10126_v39 = vld [vmem:[%s12222_s5 + $0x10e0] sm:$0xf]  ;;  %v6354_v41 = vadd.f32 %v6353_v37, %v1155_v27  ;;  %v6367_v42 = vadd.f32 %v6366_v38, %v1156_v28  ;;  %v10647_v50 = vor.u32 %v11795_v34, %v10646_v33  ;;  %v8592_v34 = vld [vmem:[%s12222_s5 + $0x6e0] sm:$0xf0] }
 0x1f0   : > { %v11666_v40 = vld [vmem:[%s12222_s5 + $0x12dc] sm:$0xf0]  ;;  %v8595_v47 = vor.u32 %v11218_v44, %v8592_v34  ;;  %v11605_v44 = vld [vmem:[%s12222_s5 + $0x10fc] sm:$0xf] }
 0x1f1   : > { %7624 = vst [vmem:[%s12635_s11 + $0x100] sm:$0xff] %v6354_v41 }
 0x1f2   : > { %6609 = vmatpush.bf16.msrb.mxu0 %v9087_v51  ;;  %6622 = vmatpush.bf16.msrb.mxu1 %v9091_v52  ;;  %v10651_v51 = vor.u32 %v11731_v35, %v10648_v36  ;;  %v10134_v52 = vld [vmem:[%s12222_s5 + $0x10e8] sm:$0xf]  ;;  %7625 = vst [vmem:[%s12635_s11 + $0x108] sm:$0xff] %v6367_v42 }
 0x1f3   : > { %6635 = vmatpush.bf16.msrb.mxu2 %v9095_v57  ;;  %6648 = vmatpush.bf16.msrb.mxu3 %v9099_v58  ;;  %v13225_v57 = vld [vmem:[%s14593_s0] sm:$0xf]  ;;  %v10127_v58 = vor.u32 %v11666_v40, %v10126_v39  ;;  %v10135_v1 = vor.u32 %v11667_v54, %v10134_v52  ;;  %v8598_v35 = vld [vmem:[%s12222_s5 + $0x4e8] sm:$0xf]  ;;  %v11219_v39 = vld [vmem:[%s12222_s5 + $0x4ec] sm:$0xf] }
 0x1f4   : > { %v11283_v36 = vld [vmem:[%s12222_s5 + $0x6e4] sm:$0xf0]  ;;  %v8600_v40 = vld [vmem:[%s12222_s5 + $0x6e8] sm:$0xf0] }
 0x1f5   : > { %v8603_v52 = vor.u32 %v11219_v39, %v8600_v40  ;;  %v11155_v54 = vld [vmem:[%s12222_s5 + $0x2e4] sm:$0xf0] }
 0x1f6   : > { %6610 = vmatpush.bf16.msrb.mxu0 %v8575_v5  ;;  %6623 = vmatpush.bf16.msrb.mxu1 %v8579_v6  ;;  %v9622_v5 = vld [vmem:[%s12222_s5 + $0xce8] sm:$0xf]  ;;  %v6355_v9 = vpop.f32.mrf.mxu0  ;;  %v6368_v10 = vpop.f32.mrf.mxu1 }
 0x1f7   : > { %6636 = vmatpush.bf16.msrb.mxu2 %v8583_v7  ;;  %6649 = vmatpush.bf16.msrb.mxu3 %v8587_v11  ;;  %v6379_v53 = vpop.f32.mrf.mxu2  ;;  %v6392_v59 = vpop.f32.mrf.mxu3  ;;  %v11539_v6 = vld [vmem:[%s12222_s5 + $0xee4] sm:$0xf0]  ;;  %v11475_v7 = vld [vmem:[%s12222_s5 + $0xcec] sm:$0xf]  ;;  %v9615_v11 = vor.u32 %v11538_v62, %v9614_v61  ;;  %v11732_v9 = vld [vmem:[%s12222_s5 + $0x14f4] sm:$0xf] }
 0x1f8   : > { %v6380_v49 = vadd.f32 %v6379_v53, %v1157_v32  ;;  %v6393_v0 = vadd.f32 %v6392_v59, %v1158_v48  ;;  %v9623_v17 = vor.u32 %v11539_v6, %v9622_v5  ;;  %v9627_v2 = vor.u32 %v11475_v7, %v9624_v8  ;;  %v11090_v48 = vld [vmem:[%s12222_s5 + $0xe4] sm:$0xf]  ;;  %v10654_v7 = vld [vmem:[%s12222_s5 + $0x14f0] sm:$0xf]  ;;  %v10656_v10 = vld [vmem:[%s12222_s5 + $0x16f0] sm:$0xf0] }
 0x1f9   : > { %v8599_v32 = vor.u32 %v11283_v36, %v8598_v35  ;;  %v11796_v8 = vld [vmem:[%s12222_s5 + $0x16ec] sm:$0xf0] }
 0x1fa   : > { %6611 = vmatpush.bf16.msrb.mxu0 %v8063_v20  ;;  %6624 = vmatpush.bf16.msrb.mxu1 %v8067_v21  ;;  %7626 = vst [vmem:[%s12635_s11 + $0x110] sm:$0xff] %v6380_v49  ;;  %v9110_v20 = vld [vmem:[%s12222_s5 + $0x8e8] sm:$0xf]  ;;  %v8091_v49 = vor.u32 %v11091_v55, %v8088_v56  ;;  %v9630_v36 = vld [vmem:[%s12222_s5 + $0xcf0] sm:$0xf] }
 0x1fb   : > { %6637 = vmatpush.bf16.msrb.mxu2 %v8071_v22  ;;  %6650 = vmatpush.bf16.msrb.mxu3 %v8075_v24  ;;  %7627 = vst [vmem:[%s12635_s11 + $0x118] sm:$0xff] %v6393_v0  ;;  %v11411_v21 = vld [vmem:[%s12222_s5 + $0xae4] sm:$0xf0]  ;;  %v11347_v22 = vld [vmem:[%s12222_s5 + $0x8ec] sm:$0xf] }
 0x1fc   : > { %v9112_v24 = vld [vmem:[%s12222_s5 + $0xae8] sm:$0xf0]  ;;  %v9111_v31 = vor.u32 %v11411_v21, %v9110_v20  ;;  %v11412_v55 = vld [vmem:[%s12222_s5 + $0xaec] sm:$0xf0]  ;;  %v11348_v56 = vld [vmem:[%s12222_s5 + $0x8f4] sm:$0xf] }
 0x1fd   : > { %10976 = vmatmul.msk.bf16.vlgmr.msrb.gmra.mxu0 %vm5539_vm1, %v13225_v57  ;;  %10977 = vmatmul.msk.bf16.vlgmr.msrb.gmra.mxu1 %vm5539_vm1, %v13225_v57  ;;  %v9115_v33 = vor.u32 %v11347_v22, %v9112_v24  ;;  %v10655_v22 = vor.u32 %v11796_v8, %v10654_v7  ;;  %v10659_v24 = vor.u32 %v11732_v9, %v10656_v10  ;;  %v11284_v7 = vld [vmem:[%s12222_s5 + $0x6ec] sm:$0xf0]  ;;  %v11220_v8 = vld [vmem:[%s12222_s5 + $0x4f4] sm:$0xf] }
 0x1fe   : > { %6657 = vmatpush.bf16.msra.mxu0 %v5713_v25  ;;  %6670 = vmatpush.bf16.msra.mxu1 %v5716_v26  ;;  %v1057_v25 = vld [vmem:[%s12222_s5 + $0x18f0] sm:$0x33]  ;;  %v1058_v26 = vld [vmem:[%s12222_s5 + $0x18f8] sm:$0x33] }
 0x1ff   : > { %6683 = vmatpush.bf16.msra.mxu2 %v5719_v23  ;;  %6696 = vmatpush.bf16.msra.mxu3 %v5722_v29  ;;  %v6381_v27 = vpop.f32.mrf.mxu2  ;;  %v6394_v28 = vpop.f32.mrf.mxu3  ;;  %v9103_v23 = vor.u32 %v11410_v14, %v9102_v13  ;;  %v9107_v29 = vor.u32 %v11346_v15, %v9104_v18  ;;  %v3807_v37 = vunpack.c.l.b16 %v1057_v25  ;;  %v3808_v38 = vunpack.c.h.b16 %v1057_v25  ;;  %v11733_v13 = vld [vmem:[%s12222_s5 + $0x14fc] sm:$0xf]  ;;  %v11668_v18 = vld [vmem:[%s12222_s5 + $0x12ec] sm:$0xf0]  ;;  %v11604_v25 = vld [vmem:[%s12222_s5 + $0x10f4] sm:$0xf] }
 0x200   : > { %10978 = vmatmul.msk.bf16.vlgmr.msrb.gmra.mxu2 %vm5539_vm1, %v13225_v57  ;;  %10979 = vmatmul.msk.bf16.vlgmr.msrb.gmra.mxu3 %vm5539_vm1, %v13225_v57  ;;  %v3809_v41 = vunpack.c.l.b16 %v1058_v26  ;;  %v3810_v42 = vunpack.c.h.b16 %v1058_v26  ;;  %v10664_v14 = vld [vmem:[%s12222_s5 + $0x16f8] sm:$0xf0]  ;;  %v10144_v26 = vld [vmem:[%s12222_s5 + $0x12f0] sm:$0xf0]  ;;  %v1161_v27 = vperm.slane %v13195_v19, 6  ;;  %v1162_v28 = vperm.slane %v13195_v19, 7 }
 0x201   : > { %v4704_v53 = vpack.c.b16 %v3808_v38, %v3808_v38  ;;  %v10147_v35 = vor.u32 %v11604_v25, %v10144_v26  ;;  %v11476_v38 = vld [vmem:[%s12222_s5 + $0xcf4] sm:$0xf] }
 0x202   : > { %6658 = vmatpush.bf16.msra.mxu0 %v10639_v43  ;;  %6671 = vmatpush.bf16.msra.mxu1 %v10643_v45  ;;  %v8078_v43 = vld [vmem:[%s12222_s5 + $0xe0] sm:$0xf]  ;;  %v4705_v59 = vpack.c.b16 %v3809_v41, %v3809_v41  ;;  %v10151_v41 = vor.u32 %v11669_v16, %v10150_v30  ;;  %v11157_v30 = vld [vmem:[%s12222_s5 + $0x2f4] sm:$0xf0]  ;;  %v11093_v16 = vld [vmem:[%s12222_s5 + $0xfc] sm:$0xf] }
 0x203   : > { %6684 = vmatpush.bf16.msra.mxu2 %v10647_v50  ;;  %6697 = vmatpush.bf16.msra.mxu3 %v10651_v51  ;;  %v11154_v45 = vld [vmem:[%s12222_s5 + $0x2dc] sm:$0xf0]  ;;  %v8080_v50 = vld [vmem:[%s12222_s5 + $0x2e0] sm:$0xf0]  ;;  %v8086_v51 = vld [vmem:[%s12222_s5 + $0xe8] sm:$0xf] }
 0x204   : > { %v8079_v61 = vor.u32 %v11154_v45, %v8078_v43  ;;  %v8083_v62 = vor.u32 %v11090_v48, %v8080_v50  ;;  %v8087_v63 = vor.u32 %v11155_v54, %v8086_v51  ;;  %v5731_v5 = vsel %vm5543_vm0, %v4705_v59, 0  ;;  %v9632_v43 = vld [vmem:[%s12222_s5 + $0xef0] sm:$0xf0]  ;;  %v9638_v45 = vld [vmem:[%s12222_s5 + $0xcf8] sm:$0xf] }
 0x205   : > { %v9118_v54 = vld [vmem:[%s12222_s5 + $0x8f0] sm:$0xf]  ;;  %v9120_v59 = vld [vmem:[%s12222_s5 + $0xaf0] sm:$0xf0] }
 0x206   : > { %6659 = vmatpush.bf16.msra.mxu0 %v10127_v58  ;;  %6672 = vmatpush.bf16.msra.mxu1 %v10131_v60  ;;  %v4703_v58 = vpack.c.b16 %v3807_v37, %v3807_v37  ;;  %v4706_v60 = vpack.c.b16 %v3810_v42, %v3810_v42  ;;  %v11540_v37 = vld [vmem:[%s12222_s5 + $0xeec] sm:$0xf0] }
 0x207   : > { %6685 = vmatpush.bf16.msra.mxu2 %v10135_v1  ;;  %6698 = vmatpush.bf16.msra.mxu3 %v10139_v3  ;;  %v5728_v1 = vsel %vm5543_vm0, %v4704_v53, 0  ;;  %v1159_v3 = vperm.slane %v13195_v19, 4  ;;  %v9631_v51 = vor.u32 %v11540_v37, %v9630_v36 }
 0x208   : > { %v5725_v0 = vsel %vm5543_vm0, %v4703_v58, 0  ;;  %v5734_v6 = vsel %vm5543_vm0, %v4706_v60, 0  ;;  %v9126_v60 = vld [vmem:[%s12222_s5 + $0x8f8] sm:$0xf] }
 0x20a   : > { %6660 = vmatpush.bf16.msra.mxu0 %v9615_v11  ;;  %6673 = vmatpush.bf16.msra.mxu1 %v9619_v12  ;;  %v10662_v11 = vld [vmem:[%s12222_s5 + $0x14f8] sm:$0xf]  ;;  %v6405_v15 = vpop.f32.mrf.mxu0 }
 0x20b   : > { %6686 = vmatpush.bf16.msra.mxu2 %v9623_v17  ;;  %6699 = vmatpush.bf16.msra.mxu3 %v9627_v2  ;;  %v11797_v12 = vld [vmem:[%s12222_s5 + $0x16f4] sm:$0xf0]  ;;  %v6418_v17 = vpop.f32.mrf.mxu1  ;;  %v10142_v2 = vld [vmem:[%s12222_s5 + $0x10f0] sm:$0xf]  ;;  %v6406_v20 = vadd.f32 %v6405_v15, %v1159_v3 }
 0x20c   : > { %v6419_v21 = vadd.f32 %v6418_v17, %v1160_v4  ;;  %v10143_v19 = vor.u32 %v11668_v18, %v10142_v2  ;;  %v9119_v4 = vor.u32 %v11412_v55, %v9118_v54  ;;  %v11221_v17 = vld [vmem:[%s12222_s5 + $0x4fc] sm:$0xf]  ;;  %v11735_v54 = vld [vmem:[%s12222_s5 + $0x150c] sm:$0xf] }
 0x20d   : > { %7628 = vst [vmem:[%s12635_s11 + $0x120] sm:$0xff] %v6406_v20  ;;  %v8616_v2 = vld [vmem:[%s12222_s5 + $0x6f8] sm:$0xf0]  ;;  %v10680_v55 = vld [vmem:[%s12222_s5 + $0x1708] sm:$0xf0] }
 0x20e   : > { %6661 = vmatpush.bf16.msra.mxu0 %v9103_v23  ;;  %6674 = vmatpush.bf16.msra.mxu1 %v9107_v29  ;;  %v10663_v23 = vor.u32 %v11797_v12, %v10662_v11  ;;  %v10667_v29 = vor.u32 %v11733_v13, %v10664_v14  ;;  %7629 = vst [vmem:[%s12635_s11 + $0x128] sm:$0xff] %v6419_v21  ;;  %v8608_v11 = vld [vmem:[%s12222_s5 + $0x6f0] sm:$0xf0]  ;;  %v8614_v12 = vld [vmem:[%s12222_s5 + $0x4f8] sm:$0xf] }
 0x20f   : > { %6687 = vmatpush.bf16.msra.mxu2 %v9111_v31  ;;  %6700 = vmatpush.bf16.msra.mxu3 %v9115_v33  ;;  %v10152_v31 = vld [vmem:[%s12222_s5 + $0x12f8] sm:$0xf0]  ;;  %v11285_v13 = vld [vmem:[%s12222_s5 + $0x6f4] sm:$0xf0]  ;;  %v8094_v21 = vld [vmem:[%s12222_s5 + $0xf0] sm:$0xf]  ;;  %v8611_v25 = vor.u32 %v11220_v8, %v8608_v11 }
 0x210   : > { %v10155_v42 = vor.u32 %v11605_v44, %v10152_v31  ;;  %v8615_v26 = vor.u32 %v11285_v13, %v8614_v12  ;;  %v8104_v44 = vld [vmem:[%s12222_s5 + $0x2f8] sm:$0xf0]  ;;  %v11607_v8 = vld [vmem:[%s12222_s5 + $0x110c] sm:$0xf] }
 0x212   : > { %6662 = vmatpush.bf16.msra.mxu0 %v8591_v46  ;;  %6675 = vmatpush.bf16.msra.mxu1 %v8595_v47  ;;  %v11541_v46 = vld [vmem:[%s12222_s5 + $0xef4] sm:$0xf0]  ;;  %v11477_v47 = vld [vmem:[%s12222_s5 + $0xcfc] sm:$0xf]  ;;  %v6407_v48 = vpop.f32.mrf.mxu0 }
 0x213   : > { %6688 = vmatpush.bf16.msra.mxu2 %v8599_v32  ;;  %6701 = vmatpush.bf16.msra.mxu3 %v8603_v52  ;;  %v6431_v33 = vpop.f32.mrf.mxu2  ;;  %v6444_v34 = vpop.f32.mrf.mxu3  ;;  %v9640_v32 = vld [vmem:[%s12222_s5 + $0xef8] sm:$0xf0]  ;;  %v9635_v52 = vor.u32 %v11476_v38, %v9632_v43  ;;  %v9639_v58 = vor.u32 %v11541_v46, %v9638_v45  ;;  %v11734_v48 = vld [vmem:[%s12222_s5 + $0x1504] sm:$0xf] }
 0x214   : > { %v6432_v39 = vadd.f32 %v6431_v33, %v1161_v27  ;;  %v6445_v40 = vadd.f32 %v6444_v34, %v1162_v28  ;;  %v6420_v50 = vpop.f32.mrf.mxu1  ;;  %v9643_v53 = vor.u32 %v11477_v47, %v9640_v32  ;;  %v11092_v27 = vld [vmem:[%s12222_s5 + $0xf4] sm:$0xf]  ;;  %v10670_v47 = vld [vmem:[%s12222_s5 + $0x1500] sm:$0xf] }
 0x215   : > { %v8096_v28 = vld [vmem:[%s12222_s5 + $0x2f0] sm:$0xf0]  ;;  %v11798_v32 = vld [vmem:[%s12222_s5 + $0x16fc] sm:$0xf0]  ;;  %v10672_v50 = vld [vmem:[%s12222_s5 + $0x1700] sm:$0xf0] }
 0x216   : > { %6663 = vmatpush.bf16.msra.mxu0 %v8079_v61  ;;  %6676 = vmatpush.bf16.msra.mxu1 %v8083_v62  ;;  %7630 = vst [vmem:[%s12635_s11 + $0x130] sm:$0xff] %v6432_v39  ;;  %v11413_v61 = vld [vmem:[%s12222_s5 + $0xaf4] sm:$0xf0]  ;;  %v11349_v62 = vld [vmem:[%s12222_s5 + $0x8fc] sm:$0xf]  ;;  %v8099_v37 = vor.u32 %v11092_v27, %v8096_v28  ;;  %v8107_v39 = vor.u32 %v11093_v16, %v8104_v44 }
 0x217   : > { %6689 = vmatpush.bf16.msra.mxu2 %v8087_v63  ;;  %6702 = vmatpush.bf16.msra.mxu3 %v8091_v49  ;;  %7631 = vst [vmem:[%s12635_s11 + $0x138] sm:$0xff] %v6445_v40  ;;  %v9128_v63 = vld [vmem:[%s12222_s5 + $0xaf8] sm:$0xf0]  ;;  %v1059_v49 = vld [vmem:[%s12222_s5 + $0x1900] sm:$0x33]  ;;  %v9127_v9 = vor.u32 %v11413_v61, %v9126_v60 }
 0x218   : > { %v9131_v10 = vor.u32 %v11349_v62, %v9128_v63  ;;  %v3811_v14 = vunpack.c.l.b16 %v1059_v49  ;;  %v3812_v15 = vunpack.c.h.b16 %v1059_v49  ;;  %v10671_v62 = vor.u32 %v11798_v32, %v10670_v47  ;;  %v11606_v49 = vld [vmem:[%s12222_s5 + $0x1104] sm:$0xf]  ;;  %v9656_v27 = vld [vmem:[%s12222_s5 + $0xf08] sm:$0xf0]  ;;  %v9134_v16 = vld [vmem:[%s12222_s5 + $0x900] sm:$0xf] }
 0x219   : > { %10980 = vmatmul.msk.bf16.vlgmr.msra.gmra.mxu0 %vm5539_vm1, %v13225_v57  ;;  %10981 = vmatmul.msk.bf16.vlgmr.msra.gmra.mxu1 %vm5539_vm1, %v13225_v57  ;;  %v10675_v63 = vor.u32 %v11734_v48, %v10672_v50  ;;  %v11414_v44 = vld [vmem:[%s12222_s5 + $0xafc] sm:$0xf0]  ;;  %v11222_v48 = vld [vmem:[%s12222_s5 + $0x504] sm:$0xf] }
 0x21a   : > { %6709 = vmatpush.bf16.msrb.mxu0 %v5725_v0  ;;  %6722 = vmatpush.bf16.msrb.mxu1 %v5728_v1  ;;  %v1060_v0 = vld [vmem:[%s12222_s5 + $0x1908] sm:$0x33]  ;;  %v4707_v31 = vpack.c.b16 %v3811_v14, %v3811_v14  ;;  %v9646_v14 = vld [vmem:[%s12222_s5 + $0xd00] sm:$0xf] }
 0x21b   : > { %6735 = vmatpush.bf16.msrb.mxu2 %v5731_v5  ;;  %6748 = vmatpush.bf16.msrb.mxu3 %v5734_v6  ;;  %v6433_v1 = vpop.f32.mrf.mxu2  ;;  %v6446_v3 = vpop.f32.mrf.mxu3  ;;  %v9123_v5 = vor.u32 %v11348_v56, %v9120_v59  ;;  %v8606_v6 = vld [vmem:[%s12222_s5 + $0x4f0] sm:$0xf]  ;;  %v3813_v18 = vunpack.c.l.b16 %v1060_v0  ;;  %v3814_v20 = vunpack.c.h.b16 %v1060_v0  ;;  %v11670_v59 = vld [vmem:[%s12222_s5 + $0x12fc] sm:$0xf0]  ;;  %v10160_v0 = vld [vmem:[%s12222_s5 + $0x1300] sm:$0xf0] }
 0x21c   : > { %10982 = vmatmul.msk.bf16.vlgmr.msra.gmra.mxu2 %vm5539_vm1, %v13225_v57  ;;  %10983 = vmatmul.msk.bf16.vlgmr.msra.gmra.mxu3 %vm5539_vm1, %v13225_v57  ;;  %v5737_v40 = vsel %vm5543_vm0, %v4707_v31, 0  ;;  %v10163_v13 = vor.u32 %v11606_v49, %v10160_v0  ;;  %v11350_v31 = vld [vmem:[%s12222_s5 + $0x904] sm:$0xf]  ;;  %v8622_v47 = vld [vmem:[%s12222_s5 + $0x500] sm:$0xf] }
 0x21d   : > { %v4709_v33 = vpack.c.b16 %v3813_v18, %v3813_v18  ;;  %v4710_v34 = vpack.c.b16 %v3814_v20, %v3814_v20  ;;  %v11286_v32 = vld [vmem:[%s12222_s5 + $0x6fc] sm:$0xf0] }
 0x21e   : > { %6710 = vmatpush.bf16.msrb.mxu0 %v10655_v22  ;;  %6723 = vmatpush.bf16.msrb.mxu1 %v10659_v24  ;;  %v11156_v22 = vld [vmem:[%s12222_s5 + $0x2ec] sm:$0xf0]  ;;  %v8607_v24 = vor.u32 %v11284_v7, %v8606_v6  ;;  %v10166_v6 = vld [vmem:[%s12222_s5 + $0x1108] sm:$0xf]  ;;  %v8623_v49 = vor.u32 %v11286_v32, %v8622_v47  ;;  %v10182_v47 = vld [vmem:[%s12222_s5 + $0x1118] sm:$0xf] }
 0x21f   : > { %6736 = vmatpush.bf16.msrb.mxu2 %v10663_v23  ;;  %6749 = vmatpush.bf16.msrb.mxu3 %v10667_v29  ;;  %v8102_v23 = vld [vmem:[%s12222_s5 + $0xf8] sm:$0xf]  ;;  %v8619_v29 = vor.u32 %v11221_v17, %v8616_v2  ;;  %v8095_v36 = vor.u32 %v11156_v22, %v8094_v21  ;;  %v5743_v45 = vsel %vm5543_vm0, %v4709_v33, 0  ;;  %v5746_v46 = vsel %vm5543_vm0, %v4710_v34, 0  ;;  %v11671_v7 = vld [vmem:[%s12222_s5 + $0x1304] sm:$0xf0] }
 0x220   : > { %v8103_v38 = vor.u32 %v11157_v30, %v8102_v23  ;;  %v11478_v17 = vld [vmem:[%s12222_s5 + $0xd04] sm:$0xf]  ;;  %v10167_v20 = vor.u32 %v11671_v7, %v10166_v6  ;;  %v11159_v7 = vld [vmem:[%s12222_s5 + $0x304] sm:$0xf0]  ;;  %v11673_v32 = vld [vmem:[%s12222_s5 + $0x1314] sm:$0xf0] }
 0x221   : > { %v9648_v22 = vld [vmem:[%s12222_s5 + $0xf00] sm:$0xf0] }
 0x222   : > { %6711 = vmatpush.bf16.msrb.mxu0 %v10143_v19  ;;  %6724 = vmatpush.bf16.msrb.mxu1 %v10147_v35  ;;  %v4708_v19 = vpack.c.b16 %v3812_v15, %v3812_v15  ;;  %v13343_v35 = vld [vmem:[%s12230_s26 + $0x28] sm:$0xff]  ;;  %v11542_v15 = vld [vmem:[%s12222_s5 + $0xefc] sm:$0xf0]  ;;  %v9651_v30 = vor.u32 %v11478_v17, %v9648_v22  ;;  %v9136_v34 = vld [vmem:[%s12222_s5 + $0xb00] sm:$0xf0] }
 0x223   : > { %6737 = vmatpush.bf16.msrb.mxu2 %v10151_v41  ;;  %6750 = vmatpush.bf16.msrb.mxu3 %v10155_v42  ;;  %v1163_v42 = vperm.slane %v13343_v35, 0  ;;  %v1164_v43 = vperm.slane %v13343_v35, 1  ;;  %v1165_v1 = vperm.slane %v13343_v35, 2  ;;  %v1166_v3 = vperm.slane %v13343_v35, 3 }
 0x224   : > { %v5740_v41 = vsel %vm5543_vm0, %v4708_v19, 0  ;;  %v1168_v22 = vperm.slane %v13343_v35, 5 }
 0x226   : > { %6712 = vmatpush.bf16.msrb.mxu0 %v9631_v51  ;;  %6725 = vmatpush.bf16.msrb.mxu1 %v9635_v52  ;;  %v10678_v51 = vld [vmem:[%s12222_s5 + $0x1508] sm:$0xf]  ;;  %v6457_v56 = vpop.f32.mrf.mxu0 }
 0x227   : > { %6738 = vmatpush.bf16.msrb.mxu2 %v9639_v58  ;;  %6751 = vmatpush.bf16.msrb.mxu3 %v9643_v53  ;;  %v11799_v52 = vld [vmem:[%s12222_s5 + $0x1704] sm:$0xf0]  ;;  %v6470_v58 = vpop.f32.mrf.mxu1  ;;  %v10158_v53 = vld [vmem:[%s12222_s5 + $0x1100] sm:$0xf]  ;;  %v6458_v60 = vadd.f32 %v6457_v56, %v1163_v42 }
 0x228   : > { %v6471_v61 = vadd.f32 %v6470_v58, %v1164_v43 }
 0x229   : > { %7632 = vst [vmem:[%s12635_s11 + $0x140] sm:$0xff] %v6458_v60 }
 0x22a   : > { %6713 = vmatpush.bf16.msrb.mxu0 %v9119_v4  ;;  %6726 = vmatpush.bf16.msrb.mxu1 %v9123_v5  ;;  %v10679_v4 = vor.u32 %v11799_v52, %v10678_v51  ;;  %v10683_v5 = vor.u32 %v11735_v54, %v10680_v55  ;;  %7633 = vst [vmem:[%s12635_s11 + $0x148] sm:$0xff] %v6471_v61  ;;  %v8624_v52 = vld [vmem:[%s12222_s5 + $0x700] sm:$0xf0]  ;;  %v8630_v54 = vld [vmem:[%s12222_s5 + $0x508] sm:$0xf] }
 0x22b   : > { %6739 = vmatpush.bf16.msrb.mxu2 %v9127_v9  ;;  %6752 = vmatpush.bf16.msrb.mxu3 %v9131_v10  ;;  %v10168_v9 = vld [vmem:[%s12222_s5 + $0x1308] sm:$0xf0]  ;;  %v10159_v10 = vor.u32 %v11670_v59, %v10158_v53  ;;  %v11287_v55 = vld [vmem:[%s12222_s5 + $0x704] sm:$0xf0]  ;;  %v8627_v0 = vor.u32 %v11222_v48, %v8624_v52  ;;  %v11609_v48 = vld [vmem:[%s12222_s5 + $0x111c] sm:$0xf] }
 0x22c   : > { %v10171_v21 = vor.u32 %v11607_v8, %v10168_v9  ;;  %v11223_v53 = vld [vmem:[%s12222_s5 + $0x50c] sm:$0xf] }
 0x22d   : > { %v8632_v59 = vld [vmem:[%s12222_s5 + $0x708] sm:$0xf0] }
 0x22e   : > { %6714 = vmatpush.bf16.msrb.mxu0 %v8607_v24  ;;  %6727 = vmatpush.bf16.msrb.mxu1 %v8611_v25  ;;  %v9654_v24 = vld [vmem:[%s12222_s5 + $0xd08] sm:$0xf]  ;;  %v6459_v28 = vpop.f32.mrf.mxu0  ;;  %v8635_v6 = vor.u32 %v11223_v53, %v8632_v59  ;;  %v11095_v8 = vld [vmem:[%s12222_s5 + $0x10c] sm:$0xf] }
 0x22f   : > { %6740 = vmatpush.bf16.msrb.mxu2 %v8615_v26  ;;  %6753 = vmatpush.bf16.msrb.mxu3 %v8619_v29  ;;  %v6483_v11 = vpop.f32.mrf.mxu2  ;;  %v6496_v12 = vpop.f32.mrf.mxu3  ;;  %v11543_v25 = vld [vmem:[%s12222_s5 + $0xf04] sm:$0xf0]  ;;  %v11479_v26 = vld [vmem:[%s12222_s5 + $0xd0c] sm:$0xf]  ;;  %v9647_v29 = vor.u32 %v11542_v15, %v9646_v14  ;;  %v11736_v28 = vld [vmem:[%s12222_s5 + $0x1514] sm:$0xf] }
 0x230   : > { %v6484_v2 = vadd.f32 %v6483_v11, %v1165_v1  ;;  %v6497_v18 = vadd.f32 %v6496_v12, %v1166_v3  ;;  %v6472_v23 = vpop.f32.mrf.mxu1  ;;  %v9655_v19 = vor.u32 %v11543_v25, %v9654_v24  ;;  %v9659_v33 = vor.u32 %v11479_v26, %v9656_v27  ;;  %v11094_v3 = vld [vmem:[%s12222_s5 + $0x104] sm:$0xf]  ;;  %v8120_v9 = vld [vmem:[%s12222_s5 + $0x308] sm:$0xf0]  ;;  %v10686_v26 = vld [vmem:[%s12222_s5 + $0x1510] sm:$0xf] }
 0x231   : > { %v8631_v1 = vor.u32 %v11287_v55, %v8630_v54  ;;  %v11800_v27 = vld [vmem:[%s12222_s5 + $0x170c] sm:$0xf0]  ;;  %v10688_v23 = vld [vmem:[%s12222_s5 + $0x1710] sm:$0xf0] }
 0x232   : > { %6715 = vmatpush.bf16.msrb.mxu0 %v8095_v36  ;;  %6728 = vmatpush.bf16.msrb.mxu1 %v8099_v37  ;;  %7634 = vst [vmem:[%s12635_s11 + $0x150] sm:$0xff] %v6484_v2  ;;  %v9142_v36 = vld [vmem:[%s12222_s5 + $0x908] sm:$0xf]  ;;  %v8123_v2 = vor.u32 %v11095_v8, %v8120_v9  ;;  %v9662_v55 = vld [vmem:[%s12222_s5 + $0xd10] sm:$0xf] }
 0x233   : > { %6741 = vmatpush.bf16.msrb.mxu2 %v8103_v38  ;;  %6754 = vmatpush.bf16.msrb.mxu3 %v8107_v39  ;;  %7635 = vst [vmem:[%s12635_s11 + $0x158] sm:$0xff] %v6497_v18  ;;  %v11415_v37 = vld [vmem:[%s12222_s5 + $0xb04] sm:$0xf0]  ;;  %v11351_v38 = vld [vmem:[%s12222_s5 + $0x90c] sm:$0xf] }
 0x234   : > { %v9144_v39 = vld [vmem:[%s12222_s5 + $0xb08] sm:$0xf0]  ;;  %v9143_v50 = vor.u32 %v11415_v37, %v9142_v36  ;;  %v11352_v8 = vld [vmem:[%s12222_s5 + $0x914] sm:$0xf] }
 0x235   : > { %10984 = vmatmul.msk.bf16.vlgmr.msrb.gmra.mxu0 %vm5539_vm1, %v13225_v57  ;;  %10985 = vmatmul.msk.bf16.vlgmr.msrb.gmra.mxu1 %vm5539_vm1, %v13225_v57  ;;  %v9147_v51 = vor.u32 %v11351_v38, %v9144_v39  ;;  %v10687_v38 = vor.u32 %v11800_v27, %v10686_v26  ;;  %v10691_v39 = vor.u32 %v11736_v28, %v10688_v23  ;;  %v11224_v26 = vld [vmem:[%s12222_s5 + $0x514] sm:$0xf] }
 0x236   : > { %6761 = vmatpush.bf16.msra.mxu0 %v5737_v40  ;;  %6774 = vmatpush.bf16.msra.mxu1 %v5740_v41  ;;  %v1061_v40 = vld [vmem:[%s12222_s5 + $0x1910] sm:$0x33]  ;;  %v1062_v41 = vld [vmem:[%s12222_s5 + $0x1918] sm:$0x33] }
 0x237   : > { %6787 = vmatpush.bf16.msra.mxu2 %v5743_v45  ;;  %6800 = vmatpush.bf16.msra.mxu3 %v5746_v46  ;;  %v6485_v42 = vpop.f32.mrf.mxu2  ;;  %v6498_v43 = vpop.f32.mrf.mxu3  ;;  %v9135_v45 = vor.u32 %v11414_v44, %v9134_v16  ;;  %v9139_v46 = vor.u32 %v11350_v31, %v9136_v34  ;;  %v3815_v56 = vunpack.c.l.b16 %v1061_v40  ;;  %v3816_v58 = vunpack.c.h.b16 %v1061_v40  ;;  %v11737_v16 = vld [vmem:[%s12222_s5 + $0x151c] sm:$0xf]  ;;  %v11672_v34 = vld [vmem:[%s12222_s5 + $0x130c] sm:$0xf0]  ;;  %v11608_v40 = vld [vmem:[%s12222_s5 + $0x1114] sm:$0xf] }
 0x238   : > { %10986 = vmatmul.msk.bf16.vlgmr.msrb.gmra.mxu2 %vm5539_vm1, %v13225_v57  ;;  %10987 = vmatmul.msk.bf16.vlgmr.msrb.gmra.mxu3 %vm5539_vm1, %v13225_v57  ;;  %v3817_v60 = vunpack.c.l.b16 %v1062_v41  ;;  %v3818_v61 = vunpack.c.h.b16 %v1062_v41  ;;  %v10696_v44 = vld [vmem:[%s12222_s5 + $0x1718] sm:$0xf0]  ;;  %v10176_v41 = vld [vmem:[%s12222_s5 + $0x1310] sm:$0xf0]  ;;  %v1169_v42 = vperm.slane %v13343_v35, 6  ;;  %v1170_v43 = vperm.slane %v13343_v35, 7 }
 0x239   : > { %v4712_v11 = vpack.c.b16 %v3816_v58, %v3816_v58  ;;  %v10179_v54 = vor.u32 %v11608_v40, %v10176_v41  ;;  %v11480_v58 = vld [vmem:[%s12222_s5 + $0xd14] sm:$0xf] }
 0x23a   : > { %6762 = vmatpush.bf16.msra.mxu0 %v10671_v62  ;;  %6775 = vmatpush.bf16.msra.mxu1 %v10675_v63  ;;  %v8110_v62 = vld [vmem:[%s12222_s5 + $0x100] sm:$0xf]  ;;  %v4713_v12 = vpack.c.b16 %v3817_v60, %v3817_v60  ;;  %v10183_v60 = vor.u32 %v11673_v32, %v10182_v47  ;;  %v8640_v23 = vld [vmem:[%s12222_s5 + $0x710] sm:$0xf0]  ;;  %v11097_v47 = vld [vmem:[%s12222_s5 + $0x11c] sm:$0xf] }
 0x23b   : > { %6788 = vmatpush.bf16.msra.mxu2 %v10679_v4  ;;  %6801 = vmatpush.bf16.msra.mxu3 %v10683_v5  ;;  %v11158_v63 = vld [vmem:[%s12222_s5 + $0x2fc] sm:$0xf0]  ;;  %v8112_v4 = vld [vmem:[%s12222_s5 + $0x300] sm:$0xf0]  ;;  %v8118_v5 = vld [vmem:[%s12222_s5 + $0x108] sm:$0xf] }
 0x23c   : > { %v8111_v14 = vor.u32 %v11158_v63, %v8110_v62  ;;  %v8115_v15 = vor.u32 %v11094_v3, %v8112_v4  ;;  %v8119_v17 = vor.u32 %v11159_v7, %v8118_v5  ;;  %v5755_v24 = vsel %vm5543_vm0, %v4713_v12, 0  ;;  %v9670_v62 = vld [vmem:[%s12222_s5 + $0xd18] sm:$0xf]  ;;  %v11416_v7 = vld [vmem:[%s12222_s5 + $0xb0c] sm:$0xf0] }
 0x23d   : > { %v11545_v63 = vld [vmem:[%s12222_s5 + $0xf14] sm:$0xf0]  ;;  %v11096_v41 = vld [vmem:[%s12222_s5 + $0x114] sm:$0xf]  ;;  %v8136_v32 = vld [vmem:[%s12222_s5 + $0x318] sm:$0xf0] }
 0x23e   : > { %6763 = vmatpush.bf16.msra.mxu0 %v10159_v10  ;;  %6776 = vmatpush.bf16.msra.mxu1 %v10163_v13  ;;  %v4711_v10 = vpack.c.b16 %v3815_v56, %v3815_v56  ;;  %v4714_v13 = vpack.c.b16 %v3818_v61, %v3818_v61  ;;  %v11544_v56 = vld [vmem:[%s12222_s5 + $0xf0c] sm:$0xf0]  ;;  %v9671_v9 = vor.u32 %v11545_v63, %v9670_v62  ;;  %v9158_v12 = vld [vmem:[%s12222_s5 + $0x918] sm:$0xf]  ;;  %v10702_v63 = vld [vmem:[%s12222_s5 + $0x1520] sm:$0xf] }
 0x23f   : > { %6789 = vmatpush.bf16.msra.mxu2 %v10167_v20  ;;  %6802 = vmatpush.bf16.msra.mxu3 %v10171_v21  ;;  %v5752_v20 = vsel %vm5543_vm0, %v4712_v11, 0  ;;  %v1167_v21 = vperm.slane %v13343_v35, 4  ;;  %v9663_v4 = vor.u32 %v11544_v56, %v9662_v55  ;;  %v9152_v11 = vld [vmem:[%s12222_s5 + $0xb10] sm:$0xf0] }
 0x240   : > { %v5749_v18 = vsel %vm5543_vm0, %v4711_v10, 0  ;;  %v5758_v25 = vsel %vm5543_vm0, %v4714_v13, 0  ;;  %v11417_v13 = vld [vmem:[%s12222_s5 + $0xb14] sm:$0xf0] }
 0x241   : > { %v9159_v27 = vor.u32 %v11417_v13, %v9158_v12 }
 0x242   : > { %6764 = vmatpush.bf16.msra.mxu0 %v9647_v29  ;;  %6777 = vmatpush.bf16.msra.mxu1 %v9651_v30  ;;  %v10694_v29 = vld [vmem:[%s12222_s5 + $0x1518] sm:$0xf]  ;;  %v6509_v31 = vpop.f32.mrf.mxu0 }
 0x243   : > { %6790 = vmatpush.bf16.msra.mxu2 %v9655_v19  ;;  %6803 = vmatpush.bf16.msra.mxu3 %v9659_v33  ;;  %v11801_v30 = vld [vmem:[%s12222_s5 + $0x1714] sm:$0xf0]  ;;  %v6522_v19 = vpop.f32.mrf.mxu1  ;;  %v10174_v33 = vld [vmem:[%s12222_s5 + $0x1110] sm:$0xf]  ;;  %v6510_v36 = vadd.f32 %v6509_v31, %v1167_v21  ;;  %v11225_v31 = vld [vmem:[%s12222_s5 + $0x51c] sm:$0xf] }
 0x244   : > { %v6523_v37 = vadd.f32 %v6522_v19, %v1168_v22  ;;  %v10175_v35 = vor.u32 %v11672_v34, %v10174_v33  ;;  %v9155_v22 = vor.u32 %v11352_v8, %v9152_v11  ;;  %v8648_v19 = vld [vmem:[%s12222_s5 + $0x718] sm:$0xf0] }
 0x245   : > { %7636 = vst [vmem:[%s12635_s11 + $0x160] sm:$0xff] %v6510_v36  ;;  %v8126_v36 = vld [vmem:[%s12222_s5 + $0x110] sm:$0xf] }
 0x246   : > { %6765 = vmatpush.bf16.msra.mxu0 %v9135_v45  ;;  %6778 = vmatpush.bf16.msra.mxu1 %v9139_v46  ;;  %v10695_v45 = vor.u32 %v11801_v30, %v10694_v29  ;;  %v10699_v46 = vor.u32 %v11737_v16, %v10696_v44  ;;  %7637 = vst [vmem:[%s12635_s11 + $0x168] sm:$0xff] %v6523_v37  ;;  %v8646_v29 = vld [vmem:[%s12222_s5 + $0x518] sm:$0xf]  ;;  %v11160_v37 = vld [vmem:[%s12222_s5 + $0x30c] sm:$0xf0] }
 0x247   : > { %6791 = vmatpush.bf16.msra.mxu2 %v9143_v50  ;;  %6804 = vmatpush.bf16.msra.mxu3 %v9147_v51  ;;  %v10184_v50 = vld [vmem:[%s12222_s5 + $0x1318] sm:$0xf0]  ;;  %v11289_v30 = vld [vmem:[%s12222_s5 + $0x714] sm:$0xf0] }
 0x248   : > { %v10187_v61 = vor.u32 %v11609_v48, %v10184_v50  ;;  %v8647_v40 = vor.u32 %v11289_v30, %v8646_v29 }
 0x24a   : > { %6766 = vmatpush.bf16.msra.mxu0 %v8623_v49  ;;  %6779 = vmatpush.bf16.msra.mxu1 %v8627_v0  ;;  %v11481_v49 = vld [vmem:[%s12222_s5 + $0xd1c] sm:$0xf] }
 0x24b   : > { %6792 = vmatpush.bf16.msra.mxu2 %v8631_v1  ;;  %6805 = vmatpush.bf16.msra.mxu3 %v8635_v6  ;;  %v6535_v51 = vpop.f32.mrf.mxu2  ;;  %v6548_v52 = vpop.f32.mrf.mxu3  ;;  %v9672_v0 = vld [vmem:[%s12222_s5 + $0xf18] sm:$0xf0]  ;;  %v9150_v6 = vld [vmem:[%s12222_s5 + $0x910] sm:$0xf] }
 0x24c   : > { %v6536_v53 = vadd.f32 %v6535_v51, %v1169_v42  ;;  %v6549_v59 = vadd.f32 %v6548_v52, %v1170_v43  ;;  %v6511_v1 = vpop.f32.mrf.mxu0  ;;  %v6524_v3 = vpop.f32.mrf.mxu1  ;;  %v9675_v10 = vor.u32 %v11481_v49, %v9672_v0  ;;  %v9151_v21 = vor.u32 %v11416_v7, %v9150_v6  ;;  %v8128_v42 = vld [vmem:[%s12222_s5 + $0x310] sm:$0xf0]  ;;  %v8134_v43 = vld [vmem:[%s12222_s5 + $0x118] sm:$0xf]  ;;  %v11802_v49 = vld [vmem:[%s12222_s5 + $0x171c] sm:$0xf0] }
 0x24d   : > { %v13486_v52 = vld [vmem:[%s12230_s26 + $0x30] sm:$0xff]  ;;  %v8131_v55 = vor.u32 %v11096_v41, %v8128_v42  ;;  %v11738_v0 = vld [vmem:[%s12222_s5 + $0x1524] sm:$0xf]  ;;  %v10710_v3 = vld [vmem:[%s12222_s5 + $0x1528] sm:$0xf]  ;;  %v10703_v13 = vor.u32 %v11802_v49, %v10702_v63 }
 0x24e   : > { %6767 = vmatpush.bf16.msra.mxu0 %v8111_v14  ;;  %6780 = vmatpush.bf16.msra.mxu1 %v8115_v15  ;;  %7638 = vst [vmem:[%s12635_s11 + $0x170] sm:$0xff] %v6536_v53  ;;  %v11353_v14 = vld [vmem:[%s12222_s5 + $0x91c] sm:$0xf]  ;;  %v10704_v1 = vld [vmem:[%s12222_s5 + $0x1720] sm:$0xf0] }
 0x24f   : > { %6793 = vmatpush.bf16.msra.mxu2 %v8119_v17  ;;  %6806 = vmatpush.bf16.msra.mxu3 %v8123_v2  ;;  %7639 = vst [vmem:[%s12635_s11 + $0x178] sm:$0xff] %v6549_v59  ;;  %v9160_v15 = vld [vmem:[%s12222_s5 + $0xb18] sm:$0xf0]  ;;  %v1063_v17 = vld [vmem:[%s12222_s5 + $0x1920] sm:$0x33] }
 0x250   : > { %v1064_v2 = vld [vmem:[%s12222_s5 + $0x1928] sm:$0x33]  ;;  %v9163_v28 = vor.u32 %v11353_v14, %v9160_v15  ;;  %v3819_v16 = vunpack.c.l.b16 %v1063_v17  ;;  %v3820_v44 = vunpack.c.h.b16 %v1063_v17  ;;  %v10707_v14 = vor.u32 %v11738_v0, %v10704_v1  ;;  %v11610_v15 = vld [vmem:[%s12222_s5 + $0x1124] sm:$0xf]  ;;  %v8654_v63 = vld [vmem:[%s12222_s5 + $0x520] sm:$0xf] }
 0x251   : > { %10988 = vmatmul.msk.bf16.vlgmr.msra.gmra.mxu0 %vm5539_vm1, %v13225_v57  ;;  %10989 = vmatmul.msk.bf16.vlgmr.msra.gmra.mxu1 %vm5539_vm1, %v13225_v57  ;;  %v3821_v33 = vunpack.c.l.b16 %v1064_v2  ;;  %v3822_v34 = vunpack.c.h.b16 %v1064_v2  ;;  %v10712_v6 = vld [vmem:[%s12222_s5 + $0x1728] sm:$0xf0]  ;;  %v10192_v17 = vld [vmem:[%s12222_s5 + $0x1320] sm:$0xf0]  ;;  %v1173_v2 = vperm.slane %v13486_v52, 2 }
 0x252   : > { %6813 = vmatpush.bf16.msrb.mxu0 %v5749_v18  ;;  %6826 = vmatpush.bf16.msrb.mxu1 %v5752_v20  ;;  %v4715_v48 = vpack.c.b16 %v3819_v16, %v3819_v16  ;;  %v4716_v50 = vpack.c.b16 %v3820_v44, %v3820_v44  ;;  %v10195_v30 = vor.u32 %v11610_v15, %v10192_v17  ;;  %v9678_v16 = vld [vmem:[%s12222_s5 + $0xd20] sm:$0xf]  ;;  %v9688_v41 = vld [vmem:[%s12222_s5 + $0xf28] sm:$0xf0]  ;;  %v11226_v0 = vld [vmem:[%s12222_s5 + $0x524] sm:$0xf] }
 0x253   : > { %6839 = vmatpush.bf16.msrb.mxu2 %v5755_v24  ;;  %6852 = vmatpush.bf16.msrb.mxu3 %v5758_v25  ;;  %v6537_v18 = vpop.f32.mrf.mxu2  ;;  %v6550_v20 = vpop.f32.mrf.mxu3  ;;  %v8638_v24 = vld [vmem:[%s12222_s5 + $0x510] sm:$0xf]  ;;  %v4718_v51 = vpack.c.b16 %v3822_v34, %v3822_v34  ;;  %v11546_v44 = vld [vmem:[%s12222_s5 + $0xf1c] sm:$0xf0] }
 0x254   : > { %10990 = vmatmul.msk.bf16.vlgmr.msra.gmra.mxu2 %vm5539_vm1, %v13225_v57  ;;  %10991 = vmatmul.msk.bf16.vlgmr.msra.gmra.mxu3 %vm5539_vm1, %v13225_v57  ;;  %v9664_v57 = vld [vmem:[%s12222_s5 + $0xf10] sm:$0xf0]  ;;  %v11288_v25 = vld [vmem:[%s12222_s5 + $0x70c] sm:$0xf0]  ;;  %v5761_v53 = vsel %vm5543_vm0, %v4715_v48, 0  ;;  %v5764_v59 = vsel %vm5543_vm0, %v4716_v50, 0 }
 0x255   : > { %v9667_v5 = vor.u32 %v11480_v58, %v9664_v57  ;;  %v8139_v58 = vor.u32 %v11097_v47, %v8136_v32  ;;  %v5770_v62 = vsel %vm5543_vm0, %v4718_v51, 0  ;;  %v1174_v18 = vperm.slane %v13486_v52, 3  ;;  %v9166_v47 = vld [vmem:[%s12222_s5 + $0x920] sm:$0xf]  ;;  %v11354_v48 = vld [vmem:[%s12222_s5 + $0x924] sm:$0xf] }
 0x256   : > { %6814 = vmatpush.bf16.msrb.mxu0 %v10687_v38  ;;  %6827 = vmatpush.bf16.msrb.mxu1 %v10691_v39  ;;  %v8639_v38 = vor.u32 %v11288_v25, %v8638_v24  ;;  %v8643_v39 = vor.u32 %v11224_v26, %v8640_v23  ;;  %v11675_v24 = vld [vmem:[%s12222_s5 + $0x1324] sm:$0xf0]  ;;  %v11611_v25 = vld [vmem:[%s12222_s5 + $0x112c] sm:$0xf]  ;;  %v11418_v32 = vld [vmem:[%s12222_s5 + $0xb1c] sm:$0xf0] }
 0x257   : > { %6840 = vmatpush.bf16.msrb.mxu2 %v10695_v45  ;;  %6853 = vmatpush.bf16.msrb.mxu3 %v10699_v46  ;;  %v8651_v45 = vor.u32 %v11225_v31, %v8648_v19  ;;  %v11161_v46 = vld [vmem:[%s12222_s5 + $0x314] sm:$0xf0]  ;;  %v10200_v26 = vld [vmem:[%s12222_s5 + $0x1328] sm:$0xf0]  ;;  %v11482_v31 = vld [vmem:[%s12222_s5 + $0xd24] sm:$0xf] }
 0x258   : > { %v8135_v56 = vor.u32 %v11161_v46, %v8134_v43  ;;  %v9168_v51 = vld [vmem:[%s12222_s5 + $0xb20] sm:$0xf0]  ;;  %v11290_v49 = vld [vmem:[%s12222_s5 + $0x71c] sm:$0xf0] }
 0x259   : > { %v8655_v15 = vor.u32 %v11290_v49, %v8654_v63  ;;  %v10214_v63 = vld [vmem:[%s12222_s5 + $0x1138] sm:$0xf] }
 0x25a   : > { %6815 = vmatpush.bf16.msrb.mxu0 %v10175_v35  ;;  %6828 = vmatpush.bf16.msrb.mxu1 %v10179_v54  ;;  %v4717_v35 = vpack.c.b16 %v3821_v33, %v3821_v33  ;;  %v8127_v54 = vor.u32 %v11160_v37, %v8126_v36  ;;  %v10203_v36 = vor.u32 %v11611_v25, %v10200_v26  ;;  %v9680_v37 = vld [vmem:[%s12222_s5 + $0xf20] sm:$0xf0]  ;;  %v11099_v25 = vld [vmem:[%s12222_s5 + $0x12c] sm:$0xf]  ;;  %v11677_v49 = vld [vmem:[%s12222_s5 + $0x1334] sm:$0xf0] }
 0x25b   : > { %6841 = vmatpush.bf16.msrb.mxu2 %v10183_v60  ;;  %6854 = vmatpush.bf16.msrb.mxu3 %v10187_v61  ;;  %v1171_v60 = vperm.slane %v13486_v52, 0  ;;  %v1172_v61 = vperm.slane %v13486_v52, 1  ;;  %v9683_v46 = vor.u32 %v11482_v31, %v9680_v37  ;;  %v8152_v26 = vld [vmem:[%s12222_s5 + $0x328] sm:$0xf0]  ;;  %v1176_v37 = vperm.slane %v13486_v52, 5 }
 0x25c   : > { %v5767_v57 = vsel %vm5543_vm0, %v4717_v35, 0 }
 0x25e   : > { %6816 = vmatpush.bf16.msrb.mxu0 %v9663_v4  ;;  %6829 = vmatpush.bf16.msrb.mxu1 %v9667_v5  ;;  %v11803_v4 = vld [vmem:[%s12222_s5 + $0x1724] sm:$0xf0]  ;;  %v11739_v5 = vld [vmem:[%s12222_s5 + $0x152c] sm:$0xf]  ;;  %v6561_v7 = vpop.f32.mrf.mxu0  ;;  %v6574_v8 = vpop.f32.mrf.mxu1 }
 0x25f   : > { %6842 = vmatpush.bf16.msrb.mxu2 %v9671_v9  ;;  %6855 = vmatpush.bf16.msrb.mxu3 %v9675_v10  ;;  %v10190_v9 = vld [vmem:[%s12222_s5 + $0x1120] sm:$0xf]  ;;  %v6562_v11 = vadd.f32 %v6561_v7, %v1171_v60  ;;  %v6575_v12 = vadd.f32 %v6574_v8, %v1172_v61  ;;  %v10711_v20 = vor.u32 %v11803_v4, %v10710_v3  ;;  %v8656_v4 = vld [vmem:[%s12222_s5 + $0x720] sm:$0xf0] }
 0x260   : > { %v11674_v10 = vld [vmem:[%s12222_s5 + $0x131c] sm:$0xf0]  ;;  %v8659_v17 = vor.u32 %v11226_v0, %v8656_v4  ;;  %v11613_v0 = vld [vmem:[%s12222_s5 + $0x113c] sm:$0xf] }
 0x261   : > { %7640 = vst [vmem:[%s12635_s11 + $0x180] sm:$0xff] %v6562_v11 }
 0x262   : > { %6817 = vmatpush.bf16.msrb.mxu0 %v9151_v21  ;;  %6830 = vmatpush.bf16.msrb.mxu1 %v9155_v22  ;;  %v10715_v21 = vor.u32 %v11739_v5, %v10712_v6  ;;  %v10198_v22 = vld [vmem:[%s12222_s5 + $0x1128] sm:$0xf]  ;;  %7641 = vst [vmem:[%s12635_s11 + $0x188] sm:$0xff] %v6575_v12 }
 0x263   : > { %6843 = vmatpush.bf16.msrb.mxu2 %v9159_v27  ;;  %6856 = vmatpush.bf16.msrb.mxu3 %v9163_v28  ;;  %v13516_v27 = vld [vmem:[%s14593_s0] sm:$0xf]  ;;  %v10191_v28 = vor.u32 %v11674_v10, %v10190_v9  ;;  %v10199_v34 = vor.u32 %v11675_v24, %v10198_v22  ;;  %v8662_v5 = vld [vmem:[%s12222_s5 + $0x528] sm:$0xf]  ;;  %v11227_v9 = vld [vmem:[%s12222_s5 + $0x52c] sm:$0xf] }
 0x264   : > { %v11291_v6 = vld [vmem:[%s12222_s5 + $0x724] sm:$0xf0]  ;;  %v8664_v10 = vld [vmem:[%s12222_s5 + $0x728] sm:$0xf0] }
 0x265   : > { %v8667_v22 = vor.u32 %v11227_v9, %v8664_v10  ;;  %v11163_v24 = vld [vmem:[%s12222_s5 + $0x324] sm:$0xf0] }
 0x266   : > { %6818 = vmatpush.bf16.msrb.mxu0 %v8639_v38  ;;  %6831 = vmatpush.bf16.msrb.mxu1 %v8643_v39  ;;  %v9686_v38 = vld [vmem:[%s12222_s5 + $0xd28] sm:$0xf]  ;;  %v6563_v42 = vpop.f32.mrf.mxu0  ;;  %v6576_v43 = vpop.f32.mrf.mxu1 }
 0x267   : > { %6844 = vmatpush.bf16.msrb.mxu2 %v8647_v40  ;;  %6857 = vmatpush.bf16.msrb.mxu3 %v8651_v45  ;;  %v6587_v23 = vpop.f32.mrf.mxu2  ;;  %v6600_v29 = vpop.f32.mrf.mxu3  ;;  %v11547_v39 = vld [vmem:[%s12222_s5 + $0xf24] sm:$0xf0]  ;;  %v11483_v40 = vld [vmem:[%s12222_s5 + $0xd2c] sm:$0xf]  ;;  %v9679_v45 = vor.u32 %v11546_v44, %v9678_v16  ;;  %v11740_v42 = vld [vmem:[%s12222_s5 + $0x1534] sm:$0xf] }
 0x268   : > { %v6588_v19 = vadd.f32 %v6587_v23, %v1173_v2  ;;  %v6601_v33 = vadd.f32 %v6600_v29, %v1174_v18  ;;  %v9687_v50 = vor.u32 %v11547_v39, %v9686_v38  ;;  %v9691_v35 = vor.u32 %v11483_v40, %v9688_v41  ;;  %v11098_v18 = vld [vmem:[%s12222_s5 + $0x124] sm:$0xf]  ;;  %v10718_v40 = vld [vmem:[%s12222_s5 + $0x1530] sm:$0xf]  ;;  %v10720_v43 = vld [vmem:[%s12222_s5 + $0x1730] sm:$0xf0] }
 0x269   : > { %v8663_v2 = vor.u32 %v11291_v6, %v8662_v5  ;;  %v11804_v41 = vld [vmem:[%s12222_s5 + $0x172c] sm:$0xf0] }
 0x26a   : > { %6819 = vmatpush.bf16.msrb.mxu0 %v8127_v54  ;;  %6832 = vmatpush.bf16.msrb.mxu1 %v8131_v55  ;;  %7642 = vst [vmem:[%s12635_s11 + $0x190] sm:$0xff] %v6588_v19  ;;  %v9174_v54 = vld [vmem:[%s12222_s5 + $0x928] sm:$0xf]  ;;  %v8155_v19 = vor.u32 %v11099_v25, %v8152_v26  ;;  %v9694_v6 = vld [vmem:[%s12222_s5 + $0xd30] sm:$0xf] }
 0x26b   : > { %6845 = vmatpush.bf16.msrb.mxu2 %v8135_v56  ;;  %6858 = vmatpush.bf16.msrb.mxu3 %v8139_v58  ;;  %7643 = vst [vmem:[%s12635_s11 + $0x198] sm:$0xff] %v6601_v33  ;;  %v11419_v55 = vld [vmem:[%s12222_s5 + $0xb24] sm:$0xf0]  ;;  %v11355_v56 = vld [vmem:[%s12222_s5 + $0x92c] sm:$0xf] }
 0x26c   : > { %v9176_v58 = vld [vmem:[%s12222_s5 + $0xb28] sm:$0xf0]  ;;  %v9175_v1 = vor.u32 %v11419_v55, %v9174_v54  ;;  %v11420_v25 = vld [vmem:[%s12222_s5 + $0xb2c] sm:$0xf0]  ;;  %v11356_v26 = vld [vmem:[%s12222_s5 + $0x934] sm:$0xf] }
 0x26d   : > { %10992 = vmatmul.msk.bf16.vlgmr.msrb.gmra.mxu0 %vm5539_vm1, %v13516_v27  ;;  %10993 = vmatmul.msk.bf16.vlgmr.msrb.gmra.mxu1 %vm5539_vm1, %v13516_v27  ;;  %v9179_v3 = vor.u32 %v11355_v56, %v9176_v58  ;;  %v10719_v56 = vor.u32 %v11804_v41, %v10718_v40  ;;  %v10723_v58 = vor.u32 %v11740_v42, %v10720_v43  ;;  %v11292_v40 = vld [vmem:[%s12222_s5 + $0x72c] sm:$0xf0]  ;;  %v11228_v41 = vld [vmem:[%s12222_s5 + $0x534] sm:$0xf] }
 0x26e   : > { %6865 = vmatpush.bf16.msra.mxu0 %v5761_v53  ;;  %6878 = vmatpush.bf16.msra.mxu1 %v5764_v59  ;;  %v1065_v53 = vld [vmem:[%s12222_s5 + $0x1930] sm:$0x33]  ;;  %v1066_v59 = vld [vmem:[%s12222_s5 + $0x1938] sm:$0x33] }
 0x26f   : > { %6891 = vmatpush.bf16.msra.mxu2 %v5767_v57  ;;  %6904 = vmatpush.bf16.msra.mxu3 %v5770_v62  ;;  %v6589_v60 = vpop.f32.mrf.mxu2  ;;  %v6602_v61 = vpop.f32.mrf.mxu3  ;;  %v9167_v57 = vor.u32 %v11418_v32, %v9166_v47  ;;  %v9171_v62 = vor.u32 %v11354_v48, %v9168_v51  ;;  %v3823_v7 = vunpack.c.l.b16 %v1065_v53  ;;  %v3824_v8 = vunpack.c.h.b16 %v1065_v53  ;;  %v11741_v47 = vld [vmem:[%s12222_s5 + $0x153c] sm:$0xf]  ;;  %v11676_v51 = vld [vmem:[%s12222_s5 + $0x132c] sm:$0xf0]  ;;  %v11612_v53 = vld [vmem:[%s12222_s5 + $0x1134] sm:$0xf] }
 0x270   : > { %10994 = vmatmul.msk.bf16.vlgmr.msrb.gmra.mxu2 %vm5539_vm1, %v13516_v27  ;;  %10995 = vmatmul.msk.bf16.vlgmr.msrb.gmra.mxu3 %vm5539_vm1, %v13516_v27  ;;  %v3825_v11 = vunpack.c.l.b16 %v1066_v59  ;;  %v3826_v12 = vunpack.c.h.b16 %v1066_v59  ;;  %v10728_v32 = vld [vmem:[%s12222_s5 + $0x1738] sm:$0xf0]  ;;  %v10208_v59 = vld [vmem:[%s12222_s5 + $0x1330] sm:$0xf0]  ;;  %v1177_v60 = vperm.slane %v13486_v52, 6  ;;  %v1178_v61 = vperm.slane %v13486_v52, 7 }
 0x271   : > { %v4720_v23 = vpack.c.b16 %v3824_v8, %v3824_v8  ;;  %v10211_v5 = vor.u32 %v11612_v53, %v10208_v59  ;;  %v11484_v8 = vld [vmem:[%s12222_s5 + $0xd34] sm:$0xf] }
 0x272   : > { %6866 = vmatpush.bf16.msra.mxu0 %v10703_v13  ;;  %6879 = vmatpush.bf16.msra.mxu1 %v10707_v14  ;;  %v8142_v13 = vld [vmem:[%s12222_s5 + $0x120] sm:$0xf]  ;;  %v4721_v29 = vpack.c.b16 %v3825_v11, %v3825_v11  ;;  %v10215_v11 = vor.u32 %v11677_v49, %v10214_v63  ;;  %v11165_v63 = vld [vmem:[%s12222_s5 + $0x334] sm:$0xf0]  ;;  %v11101_v49 = vld [vmem:[%s12222_s5 + $0x13c] sm:$0xf] }
 0x273   : > { %6892 = vmatpush.bf16.msra.mxu2 %v10711_v20  ;;  %6905 = vmatpush.bf16.msra.mxu3 %v10715_v21  ;;  %v11162_v14 = vld [vmem:[%s12222_s5 + $0x31c] sm:$0xf0]  ;;  %v8144_v20 = vld [vmem:[%s12222_s5 + $0x320] sm:$0xf0]  ;;  %v8150_v21 = vld [vmem:[%s12222_s5 + $0x128] sm:$0xf] }
 0x274   : > { %v8143_v16 = vor.u32 %v11162_v14, %v8142_v13  ;;  %v8147_v44 = vor.u32 %v11098_v18, %v8144_v20  ;;  %v8151_v31 = vor.u32 %v11163_v24, %v8150_v21  ;;  %v5779_v38 = vsel %vm5543_vm0, %v4721_v29, 0  ;;  %v9696_v13 = vld [vmem:[%s12222_s5 + $0xf30] sm:$0xf0]  ;;  %v9702_v14 = vld [vmem:[%s12222_s5 + $0xd38] sm:$0xf] }
 0x275   : > { %v9182_v24 = vld [vmem:[%s12222_s5 + $0x930] sm:$0xf]  ;;  %v9184_v29 = vld [vmem:[%s12222_s5 + $0xb30] sm:$0xf0] }
 0x276   : > { %6867 = vmatpush.bf16.msra.mxu0 %v10191_v28  ;;  %6880 = vmatpush.bf16.msra.mxu1 %v10195_v30  ;;  %v4719_v28 = vpack.c.b16 %v3823_v7, %v3823_v7  ;;  %v4722_v30 = vpack.c.b16 %v3826_v12, %v3826_v12  ;;  %v11548_v7 = vld [vmem:[%s12222_s5 + $0xf2c] sm:$0xf0] }
 0x277   : > { %6893 = vmatpush.bf16.msra.mxu2 %v10199_v34  ;;  %6906 = vmatpush.bf16.msra.mxu3 %v10203_v36  ;;  %v5776_v34 = vsel %vm5543_vm0, %v4720_v23, 0  ;;  %v1175_v36 = vperm.slane %v13486_v52, 4  ;;  %v9695_v21 = vor.u32 %v11548_v7, %v9694_v6 }
 0x278   : > { %v5773_v33 = vsel %vm5543_vm0, %v4719_v28, 0  ;;  %v5782_v39 = vsel %vm5543_vm0, %v4722_v30, 0  ;;  %v9190_v30 = vld [vmem:[%s12222_s5 + $0x938] sm:$0xf] }
 0x27a   : > { %6868 = vmatpush.bf16.msra.mxu0 %v9679_v45  ;;  %6881 = vmatpush.bf16.msra.mxu1 %v9683_v46  ;;  %v10726_v45 = vld [vmem:[%s12222_s5 + $0x1538] sm:$0xf]  ;;  %v6613_v48 = vpop.f32.mrf.mxu0 }
 0x27b   : > { %6894 = vmatpush.bf16.msra.mxu2 %v9687_v50  ;;  %6907 = vmatpush.bf16.msra.mxu3 %v9691_v35  ;;  %v11805_v46 = vld [vmem:[%s12222_s5 + $0x1734] sm:$0xf0]  ;;  %v6626_v50 = vpop.f32.mrf.mxu1  ;;  %v10206_v35 = vld [vmem:[%s12222_s5 + $0x1130] sm:$0xf]  ;;  %v6614_v54 = vadd.f32 %v6613_v48, %v1175_v36 }
 0x27c   : > { %v6627_v55 = vadd.f32 %v6626_v50, %v1176_v37  ;;  %v10207_v52 = vor.u32 %v11676_v51, %v10206_v35  ;;  %v9183_v37 = vor.u32 %v11420_v25, %v9182_v24  ;;  %v11229_v50 = vld [vmem:[%s12222_s5 + $0x53c] sm:$0xf]  ;;  %v11743_v24 = vld [vmem:[%s12222_s5 + $0x154c] sm:$0xf] }
 0x27d   : > { %7644 = vst [vmem:[%s12635_s11 + $0x1a0] sm:$0xff] %v6614_v54  ;;  %v8680_v35 = vld [vmem:[%s12222_s5 + $0x738] sm:$0xf0]  ;;  %v10744_v25 = vld [vmem:[%s12222_s5 + $0x1748] sm:$0xf0] }
 0x27e   : > { %6869 = vmatpush.bf16.msra.mxu0 %v9167_v57  ;;  %6882 = vmatpush.bf16.msra.mxu1 %v9171_v62  ;;  %v10727_v57 = vor.u32 %v11805_v46, %v10726_v45  ;;  %v10731_v62 = vor.u32 %v11741_v47, %v10728_v32  ;;  %7645 = vst [vmem:[%s12635_s11 + $0x1a8] sm:$0xff] %v6627_v55  ;;  %v8672_v45 = vld [vmem:[%s12222_s5 + $0x730] sm:$0xf0]  ;;  %v8678_v46 = vld [vmem:[%s12222_s5 + $0x538] sm:$0xf] }
 0x27f   : > { %6895 = vmatpush.bf16.msra.mxu2 %v9175_v1  ;;  %6908 = vmatpush.bf16.msra.mxu3 %v9179_v3  ;;  %v10216_v1 = vld [vmem:[%s12222_s5 + $0x1338] sm:$0xf0]  ;;  %v11293_v47 = vld [vmem:[%s12222_s5 + $0x734] sm:$0xf0]  ;;  %v8158_v55 = vld [vmem:[%s12222_s5 + $0x130] sm:$0xf]  ;;  %v8675_v53 = vor.u32 %v11228_v41, %v8672_v45 }
 0x280   : > { %v10219_v12 = vor.u32 %v11613_v0, %v10216_v1  ;;  %v8679_v59 = vor.u32 %v11293_v47, %v8678_v46  ;;  %v8168_v0 = vld [vmem:[%s12222_s5 + $0x338] sm:$0xf0]  ;;  %v11615_v41 = vld [vmem:[%s12222_s5 + $0x114c] sm:$0xf] }
 0x282   : > { %6870 = vmatpush.bf16.msra.mxu0 %v8655_v15  ;;  %6883 = vmatpush.bf16.msra.mxu1 %v8659_v17  ;;  %v11549_v15 = vld [vmem:[%s12222_s5 + $0xf34] sm:$0xf0]  ;;  %v11485_v17 = vld [vmem:[%s12222_s5 + $0xd3c] sm:$0xf]  ;;  %v6615_v18 = vpop.f32.mrf.mxu0 }
 0x283   : > { %6896 = vmatpush.bf16.msra.mxu2 %v8663_v2  ;;  %6909 = vmatpush.bf16.msra.mxu3 %v8667_v22  ;;  %v6639_v3 = vpop.f32.mrf.mxu2  ;;  %v6652_v4 = vpop.f32.mrf.mxu3  ;;  %v9704_v2 = vld [vmem:[%s12222_s5 + $0xf38] sm:$0xf0]  ;;  %v9699_v22 = vor.u32 %v11484_v8, %v9696_v13  ;;  %v9703_v28 = vor.u32 %v11549_v15, %v9702_v14  ;;  %v11742_v18 = vld [vmem:[%s12222_s5 + $0x1544] sm:$0xf] }
 0x284   : > { %v6640_v9 = vadd.f32 %v6639_v3, %v1177_v60  ;;  %v6653_v10 = vadd.f32 %v6652_v4, %v1178_v61  ;;  %v6628_v20 = vpop.f32.mrf.mxu1  ;;  %v9707_v23 = vor.u32 %v11485_v17, %v9704_v2  ;;  %v11100_v60 = vld [vmem:[%s12222_s5 + $0x134] sm:$0xf]  ;;  %v10734_v17 = vld [vmem:[%s12222_s5 + $0x1540] sm:$0xf] }
 0x285   : > { %v8160_v61 = vld [vmem:[%s12222_s5 + $0x330] sm:$0xf0]  ;;  %v11806_v2 = vld [vmem:[%s12222_s5 + $0x173c] sm:$0xf0]  ;;  %v10736_v20 = vld [vmem:[%s12222_s5 + $0x1740] sm:$0xf0] }
 0x286   : > { %6871 = vmatpush.bf16.msra.mxu0 %v8143_v16  ;;  %6884 = vmatpush.bf16.msra.mxu1 %v8147_v44  ;;  %7646 = vst [vmem:[%s12635_s11 + $0x1b0] sm:$0xff] %v6640_v9  ;;  %v11421_v16 = vld [vmem:[%s12222_s5 + $0xb34] sm:$0xf0]  ;;  %v11357_v44 = vld [vmem:[%s12222_s5 + $0x93c] sm:$0xf]  ;;  %v8163_v7 = vor.u32 %v11100_v60, %v8160_v61  ;;  %v8171_v9 = vor.u32 %v11101_v49, %v8168_v0 }
 0x287   : > { %6897 = vmatpush.bf16.msra.mxu2 %v8151_v31  ;;  %6910 = vmatpush.bf16.msra.mxu3 %v8155_v19  ;;  %7647 = vst [vmem:[%s12635_s11 + $0x1b8] sm:$0xff] %v6653_v10  ;;  %v9192_v31 = vld [vmem:[%s12222_s5 + $0xb38] sm:$0xf0]  ;;  %v1067_v19 = vld [vmem:[%s12222_s5 + $0x1940] sm:$0x33]  ;;  %v9191_v42 = vor.u32 %v11421_v16, %v9190_v30 }
 0x288   : > { %v9195_v43 = vor.u32 %v11357_v44, %v9192_v31  ;;  %v3827_v32 = vunpack.c.l.b16 %v1067_v19  ;;  %v3828_v48 = vunpack.c.h.b16 %v1067_v19  ;;  %v10735_v44 = vor.u32 %v11806_v2, %v10734_v17  ;;  %v11614_v19 = vld [vmem:[%s12222_s5 + $0x1144] sm:$0xf]  ;;  %v9720_v60 = vld [vmem:[%s12222_s5 + $0xf48] sm:$0xf0]  ;;  %v9198_v49 = vld [vmem:[%s12222_s5 + $0x940] sm:$0xf] }
 0x289   : > { %10996 = vmatmul.msk.bf16.vlgmr.msra.gmra.mxu0 %vm5539_vm1, %v13516_v27  ;;  %10997 = vmatmul.msk.bf16.vlgmr.msra.gmra.mxu1 %vm5539_vm1, %v13516_v27  ;;  %v10739_v31 = vor.u32 %v11742_v18, %v10736_v20  ;;  %v11422_v0 = vld [vmem:[%s12222_s5 + $0xb3c] sm:$0xf0]  ;;  %v11230_v18 = vld [vmem:[%s12222_s5 + $0x544] sm:$0xf] }
 0x28a   : > { %6917 = vmatpush.bf16.msrb.mxu0 %v5773_v33  ;;  %6930 = vmatpush.bf16.msrb.mxu1 %v5776_v34  ;;  %v1068_v33 = vld [vmem:[%s12222_s5 + $0x1948] sm:$0x33]  ;;  %v4723_v1 = vpack.c.b16 %v3827_v32, %v3827_v32  ;;  %v9710_v32 = vld [vmem:[%s12222_s5 + $0xd40] sm:$0xf] }
 0x28b   : > { %6943 = vmatpush.bf16.msrb.mxu2 %v5779_v38  ;;  %6956 = vmatpush.bf16.msrb.mxu3 %v5782_v39  ;;  %v6641_v34 = vpop.f32.mrf.mxu2  ;;  %v6654_v36 = vpop.f32.mrf.mxu3  ;;  %v9187_v38 = vor.u32 %v11356_v26, %v9184_v29  ;;  %v8670_v39 = vld [vmem:[%s12222_s5 + $0x530] sm:$0xf]  ;;  %v3829_v51 = vunpack.c.l.b16 %v1068_v33  ;;  %v3830_v54 = vunpack.c.h.b16 %v1068_v33  ;;  %v11678_v29 = vld [vmem:[%s12222_s5 + $0x133c] sm:$0xf0]  ;;  %v10224_v33 = vld [vmem:[%s12222_s5 + $0x1340] sm:$0xf0] }
 0x28c   : > { %10998 = vmatmul.msk.bf16.vlgmr.msra.gmra.mxu2 %vm5539_vm1, %v13516_v27  ;;  %10999 = vmatmul.msk.bf16.vlgmr.msra.gmra.mxu3 %vm5539_vm1, %v13516_v27  ;;  %v5785_v10 = vsel %vm5543_vm0, %v4723_v1, 0  ;;  %v10227_v47 = vor.u32 %v11614_v19, %v10224_v33  ;;  %v11358_v1 = vld [vmem:[%s12222_s5 + $0x944] sm:$0xf]  ;;  %v8686_v17 = vld [vmem:[%s12222_s5 + $0x540] sm:$0xf] }
 0x28d   : > { %v4725_v3 = vpack.c.b16 %v3829_v51, %v3829_v51  ;;  %v4726_v4 = vpack.c.b16 %v3830_v54, %v3830_v54  ;;  %v11294_v2 = vld [vmem:[%s12222_s5 + $0x73c] sm:$0xf0] }
 0x28e   : > { %6918 = vmatpush.bf16.msrb.mxu0 %v10719_v56  ;;  %6931 = vmatpush.bf16.msrb.mxu1 %v10723_v58  ;;  %v11164_v56 = vld [vmem:[%s12222_s5 + $0x32c] sm:$0xf0]  ;;  %v8671_v58 = vor.u32 %v11292_v40, %v8670_v39  ;;  %v10230_v39 = vld [vmem:[%s12222_s5 + $0x1148] sm:$0xf]  ;;  %v8687_v19 = vor.u32 %v11294_v2, %v8686_v17  ;;  %v10246_v17 = vld [vmem:[%s12222_s5 + $0x1158] sm:$0xf] }
 0x28f   : > { %6944 = vmatpush.bf16.msrb.mxu2 %v10727_v57  ;;  %6957 = vmatpush.bf16.msrb.mxu3 %v10731_v62  ;;  %v8166_v57 = vld [vmem:[%s12222_s5 + $0x138] sm:$0xf]  ;;  %v8683_v62 = vor.u32 %v11229_v50, %v8680_v35  ;;  %v8159_v6 = vor.u32 %v11164_v56, %v8158_v55  ;;  %v5791_v14 = vsel %vm5543_vm0, %v4725_v3, 0  ;;  %v5794_v15 = vsel %vm5543_vm0, %v4726_v4, 0  ;;  %v11679_v40 = vld [vmem:[%s12222_s5 + $0x1344] sm:$0xf0] }
 0x290   : > { %v8167_v8 = vor.u32 %v11165_v63, %v8166_v57  ;;  %v11486_v50 = vld [vmem:[%s12222_s5 + $0xd44] sm:$0xf]  ;;  %v10231_v54 = vor.u32 %v11679_v40, %v10230_v39  ;;  %v11167_v40 = vld [vmem:[%s12222_s5 + $0x344] sm:$0xf0]  ;;  %v11681_v2 = vld [vmem:[%s12222_s5 + $0x1354] sm:$0xf0] }
 0x291   : > { %v9712_v56 = vld [vmem:[%s12222_s5 + $0xf40] sm:$0xf0] }
 0x292   : > { %6919 = vmatpush.bf16.msrb.mxu0 %v10207_v52  ;;  %6932 = vmatpush.bf16.msrb.mxu1 %v10211_v5  ;;  %v4724_v52 = vpack.c.b16 %v3828_v48, %v3828_v48  ;;  %v13634_v5 = vld [vmem:[%s12230_s26 + $0x38] sm:$0xff]  ;;  %v11550_v48 = vld [vmem:[%s12222_s5 + $0xf3c] sm:$0xf0]  ;;  %v9715_v63 = vor.u32 %v11486_v50, %v9712_v56  ;;  %v9200_v4 = vld [vmem:[%s12222_s5 + $0xb40] sm:$0xf0] }
 0x293   : > { %6945 = vmatpush.bf16.msrb.mxu2 %v10215_v11  ;;  %6958 = vmatpush.bf16.msrb.mxu3 %v10219_v12  ;;  %v1179_v12 = vperm.slane %v13634_v5, 0  ;;  %v1180_v13 = vperm.slane %v13634_v5, 1  ;;  %v1181_v34 = vperm.slane %v13634_v5, 2  ;;  %v1182_v36 = vperm.slane %v13634_v5, 3 }
 0x294   : > { %v5788_v11 = vsel %vm5543_vm0, %v4724_v52, 0  ;;  %v1184_v56 = vperm.slane %v13634_v5, 5 }
 0x296   : > { %6920 = vmatpush.bf16.msrb.mxu0 %v9695_v21  ;;  %6933 = vmatpush.bf16.msrb.mxu1 %v9699_v22  ;;  %v10742_v21 = vld [vmem:[%s12222_s5 + $0x1548] sm:$0xf]  ;;  %v6665_v26 = vpop.f32.mrf.mxu0 }
 0x297   : > { %6946 = vmatpush.bf16.msrb.mxu2 %v9703_v28  ;;  %6959 = vmatpush.bf16.msrb.mxu3 %v9707_v23  ;;  %v11807_v22 = vld [vmem:[%s12222_s5 + $0x1744] sm:$0xf0]  ;;  %v6678_v28 = vpop.f32.mrf.mxu1  ;;  %v10222_v23 = vld [vmem:[%s12222_s5 + $0x1140] sm:$0xf]  ;;  %v6666_v30 = vadd.f32 %v6665_v26, %v1179_v12 }
 0x298   : > { %v6679_v16 = vadd.f32 %v6678_v28, %v1180_v13 }
 0x299   : > { %7648 = vst [vmem:[%s12635_s11 + $0x1c0] sm:$0xff] %v6666_v30 }
 0x29a   : > { %6921 = vmatpush.bf16.msrb.mxu0 %v9183_v37  ;;  %6934 = vmatpush.bf16.msrb.mxu1 %v9187_v38  ;;  %v10743_v37 = vor.u32 %v11807_v22, %v10742_v21  ;;  %v10747_v38 = vor.u32 %v11743_v24, %v10744_v25  ;;  %7649 = vst [vmem:[%s12635_s11 + $0x1c8] sm:$0xff] %v6679_v16  ;;  %v8688_v22 = vld [vmem:[%s12222_s5 + $0x740] sm:$0xf0]  ;;  %v8694_v24 = vld [vmem:[%s12222_s5 + $0x548] sm:$0xf] }
 0x29b   : > { %6947 = vmatpush.bf16.msrb.mxu2 %v9191_v42  ;;  %6960 = vmatpush.bf16.msrb.mxu3 %v9195_v43  ;;  %v10232_v42 = vld [vmem:[%s12222_s5 + $0x1348] sm:$0xf0]  ;;  %v10223_v43 = vor.u32 %v11678_v29, %v10222_v23  ;;  %v11295_v25 = vld [vmem:[%s12222_s5 + $0x744] sm:$0xf0]  ;;  %v8691_v33 = vor.u32 %v11230_v18, %v8688_v22  ;;  %v11617_v18 = vld [vmem:[%s12222_s5 + $0x115c] sm:$0xf] }
 0x29c   : > { %v10235_v55 = vor.u32 %v11615_v41, %v10232_v42  ;;  %v11231_v23 = vld [vmem:[%s12222_s5 + $0x54c] sm:$0xf] }
 0x29d   : > { %v8696_v29 = vld [vmem:[%s12222_s5 + $0x748] sm:$0xf0] }
 0x29e   : > { %6922 = vmatpush.bf16.msrb.mxu0 %v8671_v58  ;;  %6935 = vmatpush.bf16.msrb.mxu1 %v8675_v53  ;;  %v9718_v58 = vld [vmem:[%s12222_s5 + $0xd48] sm:$0xf]  ;;  %v6667_v61 = vpop.f32.mrf.mxu0  ;;  %v8699_v39 = vor.u32 %v11231_v23, %v8696_v29  ;;  %v11103_v41 = vld [vmem:[%s12222_s5 + $0x14c] sm:$0xf] }
 0x29f   : > { %6948 = vmatpush.bf16.msrb.mxu2 %v8679_v59  ;;  %6961 = vmatpush.bf16.msrb.mxu3 %v8683_v62  ;;  %v6691_v45 = vpop.f32.mrf.mxu2  ;;  %v6704_v46 = vpop.f32.mrf.mxu3  ;;  %v11551_v53 = vld [vmem:[%s12222_s5 + $0xf44] sm:$0xf0]  ;;  %v11487_v59 = vld [vmem:[%s12222_s5 + $0xd4c] sm:$0xf]  ;;  %v9711_v62 = vor.u32 %v11550_v48, %v9710_v32  ;;  %v11744_v61 = vld [vmem:[%s12222_s5 + $0x1554] sm:$0xf] }
 0x2a0   : > { %v6692_v35 = vadd.f32 %v6691_v45, %v1181_v34  ;;  %v6705_v51 = vadd.f32 %v6704_v46, %v1182_v36  ;;  %v6680_v57 = vpop.f32.mrf.mxu1  ;;  %v9719_v52 = vor.u32 %v11551_v53, %v9718_v58  ;;  %v9723_v3 = vor.u32 %v11487_v59, %v9720_v60  ;;  %v11102_v36 = vld [vmem:[%s12222_s5 + $0x144] sm:$0xf]  ;;  %v8184_v42 = vld [vmem:[%s12222_s5 + $0x348] sm:$0xf0]  ;;  %v10750_v59 = vld [vmem:[%s12222_s5 + $0x1550] sm:$0xf] }
 0x2a1   : > { %v8695_v34 = vor.u32 %v11295_v25, %v8694_v24  ;;  %v11808_v60 = vld [vmem:[%s12222_s5 + $0x174c] sm:$0xf0]  ;;  %v10752_v57 = vld [vmem:[%s12222_s5 + $0x1750] sm:$0xf0] }
 0x2a2   : > { %6923 = vmatpush.bf16.msrb.mxu0 %v8159_v6  ;;  %6936 = vmatpush.bf16.msrb.mxu1 %v8163_v7  ;;  %7650 = vst [vmem:[%s12635_s11 + $0x1d0] sm:$0xff] %v6692_v35  ;;  %v9206_v6 = vld [vmem:[%s12222_s5 + $0x948] sm:$0xf]  ;;  %v8187_v35 = vor.u32 %v11103_v41, %v8184_v42  ;;  %v9726_v25 = vld [vmem:[%s12222_s5 + $0xd50] sm:$0xf] }
 0x2a3   : > { %6949 = vmatpush.bf16.msrb.mxu2 %v8167_v8  ;;  %6962 = vmatpush.bf16.msrb.mxu3 %v8171_v9  ;;  %7651 = vst [vmem:[%s12635_s11 + $0x1d8] sm:$0xff] %v6705_v51  ;;  %v11423_v7 = vld [vmem:[%s12222_s5 + $0xb44] sm:$0xf0]  ;;  %v11359_v8 = vld [vmem:[%s12222_s5 + $0x94c] sm:$0xf] }
 0x2a4   : > { %v9208_v9 = vld [vmem:[%s12222_s5 + $0xb48] sm:$0xf0]  ;;  %v9207_v20 = vor.u32 %v11423_v7, %v9206_v6  ;;  %v11360_v41 = vld [vmem:[%s12222_s5 + $0x954] sm:$0xf] }
 0x2a5   : > { %11000 = vmatmul.msk.bf16.vlgmr.msrb.gmra.mxu0 %vm5539_vm1, %v13516_v27  ;;  %11001 = vmatmul.msk.bf16.vlgmr.msrb.gmra.mxu1 %vm5539_vm1, %v13516_v27  ;;  %v9211_v21 = vor.u32 %v11359_v8, %v9208_v9  ;;  %v10751_v8 = vor.u32 %v11808_v60, %v10750_v59  ;;  %v10755_v9 = vor.u32 %v11744_v61, %v10752_v57  ;;  %v11232_v59 = vld [vmem:[%s12222_s5 + $0x554] sm:$0xf] }
 0x2a6   : > { %6969 = vmatpush.bf16.msra.mxu0 %v5785_v10  ;;  %6982 = vmatpush.bf16.msra.mxu1 %v5788_v11  ;;  %v1069_v10 = vld [vmem:[%s12222_s5 + $0x1950] sm:$0x33]  ;;  %v1070_v11 = vld [vmem:[%s12222_s5 + $0x1958] sm:$0x33] }
 0x2a7   : > { %6995 = vmatpush.bf16.msra.mxu2 %v5791_v14  ;;  %7008 = vmatpush.bf16.msra.mxu3 %v5794_v15  ;;  %v6693_v12 = vpop.f32.mrf.mxu2  ;;  %v6706_v13 = vpop.f32.mrf.mxu3  ;;  %v9199_v14 = vor.u32 %v11422_v0, %v9198_v49  ;;  %v9203_v15 = vor.u32 %v11358_v1, %v9200_v4  ;;  %v3831_v26 = vunpack.c.l.b16 %v1069_v10  ;;  %v3832_v28 = vunpack.c.h.b16 %v1069_v10  ;;  %v11745_v49 = vld [vmem:[%s12222_s5 + $0x155c] sm:$0xf]  ;;  %v11680_v4 = vld [vmem:[%s12222_s5 + $0x134c] sm:$0xf0]  ;;  %v11616_v10 = vld [vmem:[%s12222_s5 + $0x1154] sm:$0xf] }
 0x2a8   : > { %11002 = vmatmul.msk.bf16.vlgmr.msrb.gmra.mxu2 %vm5539_vm1, %v13516_v27  ;;  %11003 = vmatmul.msk.bf16.vlgmr.msrb.gmra.mxu3 %vm5539_vm1, %v13516_v27  ;;  %v3833_v30 = vunpack.c.l.b16 %v1070_v11  ;;  %v3834_v16 = vunpack.c.h.b16 %v1070_v11  ;;  %v10760_v0 = vld [vmem:[%s12222_s5 + $0x1758] sm:$0xf0]  ;;  %v10240_v11 = vld [vmem:[%s12222_s5 + $0x1350] sm:$0xf0]  ;;  %v1185_v12 = vperm.slane %v13634_v5, 6  ;;  %v1186_v13 = vperm.slane %v13634_v5, 7 }
 0x2a9   : > { %v4728_v45 = vpack.c.b16 %v3832_v28, %v3832_v28  ;;  %v10243_v24 = vor.u32 %v11616_v10, %v10240_v11  ;;  %v11488_v28 = vld [vmem:[%s12222_s5 + $0xd54] sm:$0xf] }
 0x2aa   : > { %6970 = vmatpush.bf16.msra.mxu0 %v10735_v44  ;;  %6983 = vmatpush.bf16.msra.mxu1 %v10739_v31  ;;  %v8174_v44 = vld [vmem:[%s12222_s5 + $0x140] sm:$0xf]  ;;  %v4729_v46 = vpack.c.b16 %v3833_v30, %v3833_v30  ;;  %v10247_v30 = vor.u32 %v11681_v2, %v10246_v17  ;;  %v8704_v57 = vld [vmem:[%s12222_s5 + $0x750] sm:$0xf0]  ;;  %v11105_v17 = vld [vmem:[%s12222_s5 + $0x15c] sm:$0xf] }
 0x2ab   : > { %6996 = vmatpush.bf16.msra.mxu2 %v10743_v37  ;;  %7009 = vmatpush.bf16.msra.mxu3 %v10747_v38  ;;  %v11166_v31 = vld [vmem:[%s12222_s5 + $0x33c] sm:$0xf0]  ;;  %v8176_v37 = vld [vmem:[%s12222_s5 + $0x340] sm:$0xf0]  ;;  %v8182_v38 = vld [vmem:[%s12222_s5 + $0x148] sm:$0xf] }
 0x2ac   : > { %v8175_v32 = vor.u32 %v11166_v31, %v8174_v44  ;;  %v8179_v48 = vor.u32 %v11102_v36, %v8176_v37  ;;  %v8183_v50 = vor.u32 %v11167_v40, %v8182_v38  ;;  %v5803_v58 = vsel %vm5543_vm0, %v4729_v46, 0  ;;  %v9734_v44 = vld [vmem:[%s12222_s5 + $0xd58] sm:$0xf]  ;;  %v11424_v40 = vld [vmem:[%s12222_s5 + $0xb4c] sm:$0xf0] }
 0x2ad   : > { %v11553_v31 = vld [vmem:[%s12222_s5 + $0xf54] sm:$0xf0]  ;;  %v11104_v11 = vld [vmem:[%s12222_s5 + $0x154] sm:$0xf]  ;;  %v8200_v2 = vld [vmem:[%s12222_s5 + $0x358] sm:$0xf0] }
 0x2ae   : > { %6971 = vmatpush.bf16.msra.mxu0 %v10223_v43  ;;  %6984 = vmatpush.bf16.msra.mxu1 %v10227_v47  ;;  %v4727_v43 = vpack.c.b16 %v3831_v26, %v3831_v26  ;;  %v4730_v47 = vpack.c.b16 %v3834_v16, %v3834_v16  ;;  %v11552_v26 = vld [vmem:[%s12222_s5 + $0xf4c] sm:$0xf0]  ;;  %v9735_v42 = vor.u32 %v11553_v31, %v9734_v44  ;;  %v9222_v46 = vld [vmem:[%s12222_s5 + $0x958] sm:$0xf]  ;;  %v10766_v31 = vld [vmem:[%s12222_s5 + $0x1560] sm:$0xf] }
 0x2af   : > { %6997 = vmatpush.bf16.msra.mxu2 %v10231_v54  ;;  %7010 = vmatpush.bf16.msra.mxu3 %v10235_v55  ;;  %v5800_v54 = vsel %vm5543_vm0, %v4728_v45, 0  ;;  %v1183_v55 = vperm.slane %v13634_v5, 4  ;;  %v9727_v37 = vor.u32 %v11552_v26, %v9726_v25  ;;  %v9216_v45 = vld [vmem:[%s12222_s5 + $0xb50] sm:$0xf0] }
 0x2b0   : > { %v5797_v51 = vsel %vm5543_vm0, %v4727_v43, 0  ;;  %v5806_v53 = vsel %vm5543_vm0, %v4730_v47, 0  ;;  %v11425_v47 = vld [vmem:[%s12222_s5 + $0xb54] sm:$0xf0] }
 0x2b1   : > { %v9223_v60 = vor.u32 %v11425_v47, %v9222_v46 }
 0x2b2   : > { %6972 = vmatpush.bf16.msra.mxu0 %v9711_v62  ;;  %6985 = vmatpush.bf16.msra.mxu1 %v9715_v63  ;;  %v10758_v62 = vld [vmem:[%s12222_s5 + $0x1558] sm:$0xf]  ;;  %v6717_v1 = vpop.f32.mrf.mxu0 }
 0x2b3   : > { %6998 = vmatpush.bf16.msra.mxu2 %v9719_v52  ;;  %7011 = vmatpush.bf16.msra.mxu3 %v9723_v3  ;;  %v11809_v63 = vld [vmem:[%s12222_s5 + $0x1754] sm:$0xf0]  ;;  %v6730_v52 = vpop.f32.mrf.mxu1  ;;  %v10238_v3 = vld [vmem:[%s12222_s5 + $0x1150] sm:$0xf]  ;;  %v6718_v6 = vadd.f32 %v6717_v1, %v1183_v55  ;;  %v11233_v1 = vld [vmem:[%s12222_s5 + $0x55c] sm:$0xf] }
 0x2b4   : > { %v6731_v7 = vadd.f32 %v6730_v52, %v1184_v56  ;;  %v10239_v5 = vor.u32 %v11680_v4, %v10238_v3  ;;  %v9219_v56 = vor.u32 %v11360_v41, %v9216_v45  ;;  %v8712_v52 = vld [vmem:[%s12222_s5 + $0x758] sm:$0xf0] }
 0x2b5   : > { %7652 = vst [vmem:[%s12635_s11 + $0x1e0] sm:$0xff] %v6718_v6  ;;  %v8190_v6 = vld [vmem:[%s12222_s5 + $0x150] sm:$0xf] }
 0x2b6   : > { %6973 = vmatpush.bf16.msra.mxu0 %v9199_v14  ;;  %6986 = vmatpush.bf16.msra.mxu1 %v9203_v15  ;;  %v10759_v14 = vor.u32 %v11809_v63, %v10758_v62  ;;  %v10763_v15 = vor.u32 %v11745_v49, %v10760_v0  ;;  %7653 = vst [vmem:[%s12635_s11 + $0x1e8] sm:$0xff] %v6731_v7  ;;  %v8710_v62 = vld [vmem:[%s12222_s5 + $0x558] sm:$0xf]  ;;  %v11168_v7 = vld [vmem:[%s12222_s5 + $0x34c] sm:$0xf0] }
 0x2b7   : > { %6999 = vmatpush.bf16.msra.mxu2 %v9207_v20  ;;  %7012 = vmatpush.bf16.msra.mxu3 %v9211_v21  ;;  %v10248_v20 = vld [vmem:[%s12222_s5 + $0x1358] sm:$0xf0]  ;;  %v11297_v63 = vld [vmem:[%s12222_s5 + $0x754] sm:$0xf0] }
 0x2b8   : > { %v10251_v16 = vor.u32 %v11617_v18, %v10248_v20  ;;  %v8711_v10 = vor.u32 %v11297_v63, %v8710_v62 }
 0x2ba   : > { %6974 = vmatpush.bf16.msra.mxu0 %v8687_v19  ;;  %6987 = vmatpush.bf16.msra.mxu1 %v8691_v33  ;;  %v11489_v19 = vld [vmem:[%s12222_s5 + $0xd5c] sm:$0xf] }
 0x2bb   : > { %7000 = vmatpush.bf16.msra.mxu2 %v8695_v34  ;;  %7013 = vmatpush.bf16.msra.mxu3 %v8699_v39  ;;  %v6743_v21 = vpop.f32.mrf.mxu2  ;;  %v6756_v22 = vpop.f32.mrf.mxu3  ;;  %v9736_v33 = vld [vmem:[%s12222_s5 + $0xf58] sm:$0xf0]  ;;  %v9214_v39 = vld [vmem:[%s12222_s5 + $0x950] sm:$0xf] }
 0x2bc   : > { %v6744_v23 = vadd.f32 %v6743_v21, %v1185_v12  ;;  %v6757_v29 = vadd.f32 %v6756_v22, %v1186_v13  ;;  %v6719_v34 = vpop.f32.mrf.mxu0  ;;  %v6732_v36 = vpop.f32.mrf.mxu1  ;;  %v9739_v43 = vor.u32 %v11489_v19, %v9736_v33  ;;  %v9215_v55 = vor.u32 %v11424_v40, %v9214_v39  ;;  %v8192_v12 = vld [vmem:[%s12222_s5 + $0x350] sm:$0xf0]  ;;  %v8198_v13 = vld [vmem:[%s12222_s5 + $0x158] sm:$0xf]  ;;  %v13777_v22 = vld [vmem:[%s12230_s26 + $0x40] sm:$0xff] }
 0x2bd   : > { %v8195_v25 = vor.u32 %v11104_v11, %v8192_v12  ;;  %v11810_v19 = vld [vmem:[%s12222_s5 + $0x175c] sm:$0xf0]  ;;  %v11746_v33 = vld [vmem:[%s12222_s5 + $0x1564] sm:$0xf]  ;;  %v10774_v36 = vld [vmem:[%s12222_s5 + $0x1568] sm:$0xf] }
 0x2be   : > { %6975 = vmatpush.bf16.msra.mxu0 %v8175_v32  ;;  %6988 = vmatpush.bf16.msra.mxu1 %v8179_v48  ;;  %7654 = vst [vmem:[%s12635_s11 + $0x1f0] sm:$0xff] %v6744_v23  ;;  %v11361_v32 = vld [vmem:[%s12222_s5 + $0x95c] sm:$0xf]  ;;  %v10768_v34 = vld [vmem:[%s12222_s5 + $0x1760] sm:$0xf0]  ;;  %v10767_v47 = vor.u32 %v11810_v19, %v10766_v31 }
 0x2bf   : > { %7001 = vmatpush.bf16.msra.mxu2 %v8183_v50  ;;  %7014 = vmatpush.bf16.msra.mxu3 %v8187_v35  ;;  %7655 = vst [vmem:[%s12635_s11 + $0x1f8] sm:$0xff] %v6757_v29  ;;  %v9224_v48 = vld [vmem:[%s12222_s5 + $0xb58] sm:$0xf0]  ;;  %v1071_v50 = vld [vmem:[%s12222_s5 + $0x1960] sm:$0x33] }
 0x2c0   : > { %v1072_v35 = vld [vmem:[%s12222_s5 + $0x1968] sm:$0x33]  ;;  %v9227_v61 = vor.u32 %v11361_v32, %v9224_v48  ;;  %v3835_v49 = vunpack.c.l.b16 %v1071_v50  ;;  %v3836_v0 = vunpack.c.h.b16 %v1071_v50  ;;  %v10771_v32 = vor.u32 %v11746_v33, %v10768_v34  ;;  %v11618_v48 = vld [vmem:[%s12222_s5 + $0x1164] sm:$0xf]  ;;  %v8718_v31 = vld [vmem:[%s12222_s5 + $0x560] sm:$0xf] }
 0x2c1   : > { %11004 = vmatmul.msk.bf16.vlgmr.msra.gmra.mxu0 %vm5539_vm1, %v13516_v27  ;;  %11005 = vmatmul.msk.bf16.vlgmr.msra.gmra.mxu1 %vm5539_vm1, %v13516_v27  ;;  %v3837_v3 = vunpack.c.l.b16 %v1072_v35  ;;  %v3838_v4 = vunpack.c.h.b16 %v1072_v35  ;;  %v10776_v39 = vld [vmem:[%s12222_s5 + $0x1768] sm:$0xf0]  ;;  %v10256_v50 = vld [vmem:[%s12222_s5 + $0x1360] sm:$0xf0]  ;;  %v1189_v35 = vperm.slane %v13777_v22, 2 }
 0x2c2   : > { %7021 = vmatpush.bf16.msrb.mxu0 %v5797_v51  ;;  %7034 = vmatpush.bf16.msrb.mxu1 %v5800_v54  ;;  %v4731_v18 = vpack.c.b16 %v3835_v49, %v3835_v49  ;;  %v4732_v20 = vpack.c.b16 %v3836_v0, %v3836_v0  ;;  %v10259_v63 = vor.u32 %v11618_v48, %v10256_v50  ;;  %v9742_v49 = vld [vmem:[%s12222_s5 + $0xd60] sm:$0xf]  ;;  %v9752_v11 = vld [vmem:[%s12222_s5 + $0xf68] sm:$0xf0]  ;;  %v11234_v33 = vld [vmem:[%s12222_s5 + $0x564] sm:$0xf] }
 0x2c3   : > { %7047 = vmatpush.bf16.msrb.mxu2 %v5803_v58  ;;  %7060 = vmatpush.bf16.msrb.mxu3 %v5806_v53  ;;  %v6745_v51 = vpop.f32.mrf.mxu2  ;;  %v6758_v54 = vpop.f32.mrf.mxu3  ;;  %v8702_v58 = vld [vmem:[%s12222_s5 + $0x550] sm:$0xf]  ;;  %v4734_v21 = vpack.c.b16 %v3838_v4, %v3838_v4  ;;  %v11554_v0 = vld [vmem:[%s12222_s5 + $0xf5c] sm:$0xf0] }
 0x2c4   : > { %11006 = vmatmul.msk.bf16.vlgmr.msra.gmra.mxu2 %vm5539_vm1, %v13516_v27  ;;  %11007 = vmatmul.msk.bf16.vlgmr.msra.gmra.mxu3 %vm5539_vm1, %v13516_v27  ;;  %v9728_v27 = vld [vmem:[%s12222_s5 + $0xf50] sm:$0xf0]  ;;  %v11296_v53 = vld [vmem:[%s12222_s5 + $0x74c] sm:$0xf0]  ;;  %v5809_v23 = vsel %vm5543_vm0, %v4731_v18, 0  ;;  %v5812_v29 = vsel %vm5543_vm0, %v4732_v20, 0 }
 0x2c5   : > { %v9731_v38 = vor.u32 %v11488_v28, %v9728_v27  ;;  %v8203_v28 = vor.u32 %v11105_v17, %v8200_v2  ;;  %v5818_v44 = vsel %vm5543_vm0, %v4734_v21, 0  ;;  %v1190_v51 = vperm.slane %v13777_v22, 3  ;;  %v9230_v17 = vld [vmem:[%s12222_s5 + $0x960] sm:$0xf]  ;;  %v11362_v18 = vld [vmem:[%s12222_s5 + $0x964] sm:$0xf] }
 0x2c6   : > { %7022 = vmatpush.bf16.msrb.mxu0 %v10751_v8  ;;  %7035 = vmatpush.bf16.msrb.mxu1 %v10755_v9  ;;  %v8703_v8 = vor.u32 %v11296_v53, %v8702_v58  ;;  %v8707_v9 = vor.u32 %v11232_v59, %v8704_v57  ;;  %v11683_v58 = vld [vmem:[%s12222_s5 + $0x1364] sm:$0xf0]  ;;  %v11619_v53 = vld [vmem:[%s12222_s5 + $0x116c] sm:$0xf]  ;;  %v11426_v2 = vld [vmem:[%s12222_s5 + $0xb5c] sm:$0xf0] }
 0x2c7   : > { %7048 = vmatpush.bf16.msrb.mxu2 %v10759_v14  ;;  %7061 = vmatpush.bf16.msrb.mxu3 %v10763_v15  ;;  %v8715_v14 = vor.u32 %v11233_v1, %v8712_v52  ;;  %v11169_v15 = vld [vmem:[%s12222_s5 + $0x354] sm:$0xf0]  ;;  %v10264_v59 = vld [vmem:[%s12222_s5 + $0x1368] sm:$0xf0]  ;;  %v11490_v1 = vld [vmem:[%s12222_s5 + $0xd64] sm:$0xf] }
 0x2c8   : > { %v8199_v26 = vor.u32 %v11169_v15, %v8198_v13  ;;  %v9232_v21 = vld [vmem:[%s12222_s5 + $0xb60] sm:$0xf0]  ;;  %v11298_v19 = vld [vmem:[%s12222_s5 + $0x75c] sm:$0xf0] }
 0x2c9   : > { %v8719_v48 = vor.u32 %v11298_v19, %v8718_v31  ;;  %v10278_v31 = vld [vmem:[%s12222_s5 + $0x1178] sm:$0xf] }
 0x2ca   : > { %7023 = vmatpush.bf16.msrb.mxu0 %v10239_v5  ;;  %7036 = vmatpush.bf16.msrb.mxu1 %v10243_v24  ;;  %v4733_v5 = vpack.c.b16 %v3837_v3, %v3837_v3  ;;  %v8191_v24 = vor.u32 %v11168_v7, %v8190_v6  ;;  %v10267_v6 = vor.u32 %v11619_v53, %v10264_v59  ;;  %v9744_v7 = vld [vmem:[%s12222_s5 + $0xf60] sm:$0xf0]  ;;  %v11107_v53 = vld [vmem:[%s12222_s5 + $0x16c] sm:$0xf]  ;;  %v11685_v19 = vld [vmem:[%s12222_s5 + $0x1374] sm:$0xf0] }
 0x2cb   : > { %7049 = vmatpush.bf16.msrb.mxu2 %v10247_v30  ;;  %7062 = vmatpush.bf16.msrb.mxu3 %v10251_v16  ;;  %v1187_v30 = vperm.slane %v13777_v22, 0  ;;  %v1188_v16 = vperm.slane %v13777_v22, 1  ;;  %v9747_v15 = vor.u32 %v11490_v1, %v9744_v7  ;;  %v8216_v59 = vld [vmem:[%s12222_s5 + $0x368] sm:$0xf0]  ;;  %v1192_v7 = vperm.slane %v13777_v22, 5 }
 0x2cc   : > { %v5815_v27 = vsel %vm5543_vm0, %v4733_v5, 0 }
 0x2ce   : > { %7024 = vmatpush.bf16.msrb.mxu0 %v9727_v37  ;;  %7037 = vmatpush.bf16.msrb.mxu1 %v9731_v38  ;;  %v11811_v37 = vld [vmem:[%s12222_s5 + $0x1764] sm:$0xf0]  ;;  %v11747_v38 = vld [vmem:[%s12222_s5 + $0x156c] sm:$0xf]  ;;  %v6769_v40 = vpop.f32.mrf.mxu0  ;;  %v6782_v41 = vpop.f32.mrf.mxu1 }
 0x2cf   : > { %7050 = vmatpush.bf16.msrb.mxu2 %v9735_v42  ;;  %7063 = vmatpush.bf16.msrb.mxu3 %v9739_v43  ;;  %v10254_v42 = vld [vmem:[%s12222_s5 + $0x1160] sm:$0xf]  ;;  %v6770_v45 = vadd.f32 %v6769_v40, %v1187_v30  ;;  %v6783_v46 = vadd.f32 %v6782_v41, %v1188_v16  ;;  %v10775_v54 = vor.u32 %v11811_v37, %v10774_v36  ;;  %v8720_v37 = vld [vmem:[%s12222_s5 + $0x760] sm:$0xf0] }
 0x2d0   : > { %v11682_v43 = vld [vmem:[%s12222_s5 + $0x135c] sm:$0xf0]  ;;  %v8723_v50 = vor.u32 %v11234_v33, %v8720_v37  ;;  %v11621_v33 = vld [vmem:[%s12222_s5 + $0x117c] sm:$0xf] }
 0x2d1   : > { %7656 = vst [vmem:[%s12635_s11 + $0x200] sm:$0xff] %v6770_v45 }
 0x2d2   : > { %7025 = vmatpush.bf16.msrb.mxu0 %v9215_v55  ;;  %7038 = vmatpush.bf16.msrb.mxu1 %v9219_v56  ;;  %v10779_v55 = vor.u32 %v11747_v38, %v10776_v39  ;;  %v10262_v56 = vld [vmem:[%s12222_s5 + $0x1168] sm:$0xf]  ;;  %7657 = vst [vmem:[%s12635_s11 + $0x208] sm:$0xff] %v6783_v46 }
 0x2d3   : > { %7051 = vmatpush.bf16.msrb.mxu2 %v9223_v60  ;;  %7064 = vmatpush.bf16.msrb.mxu3 %v9227_v61  ;;  %v13807_v60 = vld [vmem:[%s14593_s0] sm:$0xf]  ;;  %v10255_v61 = vor.u32 %v11682_v43, %v10254_v42  ;;  %v10263_v4 = vor.u32 %v11683_v58, %v10262_v56  ;;  %v8726_v38 = vld [vmem:[%s12222_s5 + $0x568] sm:$0xf]  ;;  %v11235_v42 = vld [vmem:[%s12222_s5 + $0x56c] sm:$0xf] }
 0x2d4   : > { %v11299_v39 = vld [vmem:[%s12222_s5 + $0x764] sm:$0xf0]  ;;  %v8728_v43 = vld [vmem:[%s12222_s5 + $0x768] sm:$0xf0] }
 0x2d5   : > { %v8731_v56 = vor.u32 %v11235_v42, %v8728_v43  ;;  %v11171_v58 = vld [vmem:[%s12222_s5 + $0x364] sm:$0xf0] }
 0x2d6   : > { %7026 = vmatpush.bf16.msrb.mxu0 %v8703_v8  ;;  %7039 = vmatpush.bf16.msrb.mxu1 %v8707_v9  ;;  %v9750_v8 = vld [vmem:[%s12222_s5 + $0xd68] sm:$0xf]  ;;  %v6771_v12 = vpop.f32.mrf.mxu0  ;;  %v6784_v13 = vpop.f32.mrf.mxu1 }
 0x2d7   : > { %7052 = vmatpush.bf16.msrb.mxu2 %v8711_v10  ;;  %7065 = vmatpush.bf16.msrb.mxu3 %v8715_v14  ;;  %v6795_v57 = vpop.f32.mrf.mxu2  ;;  %v6808_v62 = vpop.f32.mrf.mxu3  ;;  %v11555_v9 = vld [vmem:[%s12222_s5 + $0xf64] sm:$0xf0]  ;;  %v11491_v10 = vld [vmem:[%s12222_s5 + $0xd6c] sm:$0xf]  ;;  %v9743_v14 = vor.u32 %v11554_v0, %v9742_v49  ;;  %v11748_v12 = vld [vmem:[%s12222_s5 + $0x1574] sm:$0xf] }
 0x2d8   : > { %v6796_v52 = vadd.f32 %v6795_v57, %v1189_v35  ;;  %v6809_v3 = vadd.f32 %v6808_v62, %v1190_v51  ;;  %v9751_v20 = vor.u32 %v11555_v9, %v9750_v8  ;;  %v9755_v5 = vor.u32 %v11491_v10, %v9752_v11  ;;  %v11106_v51 = vld [vmem:[%s12222_s5 + $0x164] sm:$0xf]  ;;  %v10782_v10 = vld [vmem:[%s12222_s5 + $0x1570] sm:$0xf]  ;;  %v10784_v13 = vld [vmem:[%s12222_s5 + $0x1770] sm:$0xf0] }
 0x2d9   : > { %v8727_v35 = vor.u32 %v11299_v39, %v8726_v38  ;;  %v11812_v11 = vld [vmem:[%s12222_s5 + $0x176c] sm:$0xf0] }
 0x2da   : > { %7027 = vmatpush.bf16.msrb.mxu0 %v8191_v24  ;;  %7040 = vmatpush.bf16.msrb.mxu1 %v8195_v25  ;;  %7658 = vst [vmem:[%s12635_s11 + $0x210] sm:$0xff] %v6796_v52  ;;  %v9238_v24 = vld [vmem:[%s12222_s5 + $0x968] sm:$0xf]  ;;  %v8219_v52 = vor.u32 %v11107_v53, %v8216_v59  ;;  %v9758_v39 = vld [vmem:[%s12222_s5 + $0xd70] sm:$0xf] }
 0x2db   : > { %7053 = vmatpush.bf16.msrb.mxu2 %v8199_v26  ;;  %7066 = vmatpush.bf16.msrb.mxu3 %v8203_v28  ;;  %7659 = vst [vmem:[%s12635_s11 + $0x218] sm:$0xff] %v6809_v3  ;;  %v11427_v25 = vld [vmem:[%s12222_s5 + $0xb64] sm:$0xf0]  ;;  %v11363_v26 = vld [vmem:[%s12222_s5 + $0x96c] sm:$0xf] }
 0x2dc   : > { %v9240_v28 = vld [vmem:[%s12222_s5 + $0xb68] sm:$0xf0]  ;;  %v9239_v34 = vor.u32 %v11427_v25, %v9238_v24  ;;  %v11428_v53 = vld [vmem:[%s12222_s5 + $0xb6c] sm:$0xf0]  ;;  %v11364_v59 = vld [vmem:[%s12222_s5 + $0x974] sm:$0xf] }
 0x2dd   : > { %11008 = vmatmul.msk.bf16.vlgmr.msrb.gmra.mxu0 %vm5539_vm1, %v13807_v60  ;;  %11009 = vmatmul.msk.bf16.vlgmr.msrb.gmra.mxu1 %vm5539_vm1, %v13807_v60  ;;  %v9243_v36 = vor.u32 %v11363_v26, %v9240_v28  ;;  %v10783_v26 = vor.u32 %v11812_v11, %v10782_v10  ;;  %v10787_v28 = vor.u32 %v11748_v12, %v10784_v13  ;;  %v11300_v10 = vld [vmem:[%s12222_s5 + $0x76c] sm:$0xf0]  ;;  %v11236_v11 = vld [vmem:[%s12222_s5 + $0x574] sm:$0xf] }
 0x2de   : > { %7073 = vmatpush.bf16.msra.mxu0 %v5809_v23  ;;  %7086 = vmatpush.bf16.msra.mxu1 %v5812_v29  ;;  %v1073_v23 = vld [vmem:[%s12222_s5 + $0x1970] sm:$0x33]  ;;  %v1074_v29 = vld [vmem:[%s12222_s5 + $0x1978] sm:$0x33] }
 0x2df   : > { %7099 = vmatpush.bf16.msra.mxu2 %v5815_v27  ;;  %7112 = vmatpush.bf16.msra.mxu3 %v5818_v44  ;;  %v6797_v30 = vpop.f32.mrf.mxu2  ;;  %v6810_v16 = vpop.f32.mrf.mxu3  ;;  %v9231_v27 = vor.u32 %v11426_v2, %v9230_v17  ;;  %v9235_v44 = vor.u32 %v11362_v18, %v9232_v21  ;;  %v3839_v40 = vunpack.c.l.b16 %v1073_v23  ;;  %v3840_v41 = vunpack.c.h.b16 %v1073_v23  ;;  %v11749_v17 = vld [vmem:[%s12222_s5 + $0x157c] sm:$0xf]  ;;  %v11684_v21 = vld [vmem:[%s12222_s5 + $0x136c] sm:$0xf0]  ;;  %v11620_v23 = vld [vmem:[%s12222_s5 + $0x1174] sm:$0xf] }
 0x2e0   : > { %11010 = vmatmul.msk.bf16.vlgmr.msrb.gmra.mxu2 %vm5539_vm1, %v13807_v60  ;;  %11011 = vmatmul.msk.bf16.vlgmr.msrb.gmra.mxu3 %vm5539_vm1, %v13807_v60  ;;  %v3841_v45 = vunpack.c.l.b16 %v1074_v29  ;;  %v3842_v46 = vunpack.c.h.b16 %v1074_v29  ;;  %v10792_v2 = vld [vmem:[%s12222_s5 + $0x1778] sm:$0xf0]  ;;  %v10272_v29 = vld [vmem:[%s12222_s5 + $0x1370] sm:$0xf0]  ;;  %v1193_v30 = vperm.slane %v13777_v22, 6  ;;  %v1194_v16 = vperm.slane %v13777_v22, 7 }
 0x2e1   : > { %v4736_v57 = vpack.c.b16 %v3840_v41, %v3840_v41  ;;  %v10275_v38 = vor.u32 %v11620_v23, %v10272_v29  ;;  %v11492_v41 = vld [vmem:[%s12222_s5 + $0xd74] sm:$0xf] }
 0x2e2   : > { %7074 = vmatpush.bf16.msra.mxu0 %v10767_v47  ;;  %7087 = vmatpush.bf16.msra.mxu1 %v10771_v32  ;;  %v8206_v47 = vld [vmem:[%s12222_s5 + $0x160] sm:$0xf]  ;;  %v4737_v62 = vpack.c.b16 %v3841_v45, %v3841_v45  ;;  %v10279_v45 = vor.u32 %v11685_v19, %v10278_v31  ;;  %v11173_v31 = vld [vmem:[%s12222_s5 + $0x374] sm:$0xf0]  ;;  %v11109_v19 = vld [vmem:[%s12222_s5 + $0x17c] sm:$0xf] }
 0x2e3   : > { %7100 = vmatpush.bf16.msra.mxu2 %v10775_v54  ;;  %7113 = vmatpush.bf16.msra.mxu3 %v10779_v55  ;;  %v11170_v32 = vld [vmem:[%s12222_s5 + $0x35c] sm:$0xf0]  ;;  %v8208_v54 = vld [vmem:[%s12222_s5 + $0x360] sm:$0xf0]  ;;  %v8214_v55 = vld [vmem:[%s12222_s5 + $0x168] sm:$0xf] }
 0x2e4   : > { %v8207_v49 = vor.u32 %v11170_v32, %v8206_v47  ;;  %v8211_v0 = vor.u32 %v11106_v51, %v8208_v54  ;;  %v8215_v1 = vor.u32 %v11171_v58, %v8214_v55  ;;  %v5827_v8 = vsel %vm5543_vm0, %v4737_v62, 0  ;;  %v9760_v47 = vld [vmem:[%s12222_s5 + $0xf70] sm:$0xf0]  ;;  %v9766_v32 = vld [vmem:[%s12222_s5 + $0xd78] sm:$0xf] }
 0x2e5   : > { %v9246_v58 = vld [vmem:[%s12222_s5 + $0x970] sm:$0xf]  ;;  %v9248_v62 = vld [vmem:[%s12222_s5 + $0xb70] sm:$0xf0] }
 0x2e6   : > { %7075 = vmatpush.bf16.msra.mxu0 %v10255_v61  ;;  %7088 = vmatpush.bf16.msra.mxu1 %v10259_v63  ;;  %v4735_v61 = vpack.c.b16 %v3839_v40, %v3839_v40  ;;  %v4738_v63 = vpack.c.b16 %v3842_v46, %v3842_v46  ;;  %v11556_v40 = vld [vmem:[%s12222_s5 + $0xf6c] sm:$0xf0] }
 0x2e7   : > { %7101 = vmatpush.bf16.msra.mxu2 %v10263_v4  ;;  %7114 = vmatpush.bf16.msra.mxu3 %v10267_v6  ;;  %v5824_v4 = vsel %vm5543_vm0, %v4736_v57, 0  ;;  %v1191_v6 = vperm.slane %v13777_v22, 4  ;;  %v9759_v55 = vor.u32 %v11556_v40, %v9758_v39 }
 0x2e8   : > { %v5821_v3 = vsel %vm5543_vm0, %v4735_v61, 0  ;;  %v5830_v9 = vsel %vm5543_vm0, %v4738_v63, 0  ;;  %v9254_v63 = vld [vmem:[%s12222_s5 + $0x978] sm:$0xf] }
 0x2ea   : > { %7076 = vmatpush.bf16.msra.mxu0 %v9743_v14  ;;  %7089 = vmatpush.bf16.msra.mxu1 %v9747_v15  ;;  %v10790_v14 = vld [vmem:[%s12222_s5 + $0x1578] sm:$0xf]  ;;  %v6821_v18 = vpop.f32.mrf.mxu0 }
 0x2eb   : > { %7102 = vmatpush.bf16.msra.mxu2 %v9751_v20  ;;  %7115 = vmatpush.bf16.msra.mxu3 %v9755_v5  ;;  %v11813_v15 = vld [vmem:[%s12222_s5 + $0x1774] sm:$0xf0]  ;;  %v6834_v20 = vpop.f32.mrf.mxu1  ;;  %v10270_v5 = vld [vmem:[%s12222_s5 + $0x1170] sm:$0xf]  ;;  %v6822_v24 = vadd.f32 %v6821_v18, %v1191_v6 }
 0x2ec   : > { %v6835_v25 = vadd.f32 %v6834_v20, %v1192_v7  ;;  %v10271_v22 = vor.u32 %v11684_v21, %v10270_v5  ;;  %v9247_v7 = vor.u32 %v11428_v53, %v9246_v58  ;;  %v11237_v20 = vld [vmem:[%s12222_s5 + $0x57c] sm:$0xf]  ;;  %v11751_v58 = vld [vmem:[%s12222_s5 + $0x158c] sm:$0xf] }
 0x2ed   : > { %7660 = vst [vmem:[%s12635_s11 + $0x220] sm:$0xff] %v6822_v24  ;;  %v8744_v5 = vld [vmem:[%s12222_s5 + $0x778] sm:$0xf0]  ;;  %v10808_v53 = vld [vmem:[%s12222_s5 + $0x1788] sm:$0xf0] }
 0x2ee   : > { %7077 = vmatpush.bf16.msra.mxu0 %v9231_v27  ;;  %7090 = vmatpush.bf16.msra.mxu1 %v9235_v44  ;;  %v10791_v27 = vor.u32 %v11813_v15, %v10790_v14  ;;  %v10795_v44 = vor.u32 %v11749_v17, %v10792_v2  ;;  %7661 = vst [vmem:[%s12635_s11 + $0x228] sm:$0xff] %v6835_v25  ;;  %v8736_v14 = vld [vmem:[%s12222_s5 + $0x770] sm:$0xf0]  ;;  %v8742_v15 = vld [vmem:[%s12222_s5 + $0x578] sm:$0xf] }
 0x2ef   : > { %7103 = vmatpush.bf16.msra.mxu2 %v9239_v34  ;;  %7116 = vmatpush.bf16.msra.mxu3 %v9243_v36  ;;  %v10280_v34 = vld [vmem:[%s12222_s5 + $0x1378] sm:$0xf0]  ;;  %v11301_v17 = vld [vmem:[%s12222_s5 + $0x774] sm:$0xf0]  ;;  %v8222_v25 = vld [vmem:[%s12222_s5 + $0x170] sm:$0xf]  ;;  %v8739_v23 = vor.u32 %v11236_v11, %v8736_v14 }
 0x2f0   : > { %v10283_v46 = vor.u32 %v11621_v33, %v10280_v34  ;;  %v8743_v29 = vor.u32 %v11301_v17, %v8742_v15  ;;  %v8232_v33 = vld [vmem:[%s12222_s5 + $0x378] sm:$0xf0]  ;;  %v11623_v11 = vld [vmem:[%s12222_s5 + $0x118c] sm:$0xf] }
 0x2f2   : > { %7078 = vmatpush.bf16.msra.mxu0 %v8719_v48  ;;  %7091 = vmatpush.bf16.msra.mxu1 %v8723_v50  ;;  %v11557_v48 = vld [vmem:[%s12222_s5 + $0xf74] sm:$0xf0]  ;;  %v11493_v50 = vld [vmem:[%s12222_s5 + $0xd7c] sm:$0xf]  ;;  %v6823_v51 = vpop.f32.mrf.mxu0 }
 0x2f3   : > { %7104 = vmatpush.bf16.msra.mxu2 %v8727_v35  ;;  %7117 = vmatpush.bf16.msra.mxu3 %v8731_v56  ;;  %v6847_v36 = vpop.f32.mrf.mxu2  ;;  %v6860_v37 = vpop.f32.mrf.mxu3  ;;  %v9768_v35 = vld [vmem:[%s12222_s5 + $0xf78] sm:$0xf0]  ;;  %v9763_v56 = vor.u32 %v11492_v41, %v9760_v47  ;;  %v9767_v61 = vor.u32 %v11557_v48, %v9766_v32  ;;  %v11750_v51 = vld [vmem:[%s12222_s5 + $0x1584] sm:$0xf] }
 0x2f4   : > { %v6848_v42 = vadd.f32 %v6847_v36, %v1193_v30  ;;  %v6861_v43 = vadd.f32 %v6860_v37, %v1194_v16  ;;  %v6836_v54 = vpop.f32.mrf.mxu1  ;;  %v9771_v57 = vor.u32 %v11493_v50, %v9768_v35  ;;  %v11108_v30 = vld [vmem:[%s12222_s5 + $0x174] sm:$0xf]  ;;  %v10798_v50 = vld [vmem:[%s12222_s5 + $0x1580] sm:$0xf] }
 0x2f5   : > { %v8224_v16 = vld [vmem:[%s12222_s5 + $0x370] sm:$0xf0]  ;;  %v11814_v35 = vld [vmem:[%s12222_s5 + $0x177c] sm:$0xf0]  ;;  %v10800_v54 = vld [vmem:[%s12222_s5 + $0x1780] sm:$0xf0] }
 0x2f6   : > { %7079 = vmatpush.bf16.msra.mxu0 %v8207_v49  ;;  %7092 = vmatpush.bf16.msra.mxu1 %v8211_v0  ;;  %7662 = vst [vmem:[%s12635_s11 + $0x230] sm:$0xff] %v6848_v42  ;;  %v11429_v49 = vld [vmem:[%s12222_s5 + $0xb74] sm:$0xf0]  ;;  %v11365_v0 = vld [vmem:[%s12222_s5 + $0x97c] sm:$0xf]  ;;  %v8227_v40 = vor.u32 %v11108_v30, %v8224_v16  ;;  %v8235_v42 = vor.u32 %v11109_v19, %v8232_v33 }
 0x2f7   : > { %7105 = vmatpush.bf16.msra.mxu2 %v8215_v1  ;;  %7118 = vmatpush.bf16.msra.mxu3 %v8219_v52  ;;  %7663 = vst [vmem:[%s12635_s11 + $0x238] sm:$0xff] %v6861_v43  ;;  %v9256_v1 = vld [vmem:[%s12222_s5 + $0xb78] sm:$0xf0]  ;;  %v1075_v52 = vld [vmem:[%s12222_s5 + $0x1980] sm:$0x33]  ;;  %v9255_v12 = vor.u32 %v11429_v49, %v9254_v63 }
 0x2f8   : > { %v9259_v13 = vor.u32 %v11365_v0, %v9256_v1  ;;  %v3843_v2 = vunpack.c.l.b16 %v1075_v52  ;;  %v3844_v18 = vunpack.c.h.b16 %v1075_v52  ;;  %v10799_v0 = vor.u32 %v11814_v35, %v10798_v50  ;;  %v11622_v52 = vld [vmem:[%s12222_s5 + $0x1184] sm:$0xf]  ;;  %v9784_v30 = vld [vmem:[%s12222_s5 + $0xf88] sm:$0xf0]  ;;  %v9262_v19 = vld [vmem:[%s12222_s5 + $0x980] sm:$0xf] }
 0x2f9   : > { %11012 = vmatmul.msk.bf16.vlgmr.msra.gmra.mxu0 %vm5539_vm1, %v13807_v60  ;;  %11013 = vmatmul.msk.bf16.vlgmr.msra.gmra.mxu1 %vm5539_vm1, %v13807_v60  ;;  %v10803_v1 = vor.u32 %v11750_v51, %v10800_v54  ;;  %v11430_v33 = vld [vmem:[%s12222_s5 + $0xb7c] sm:$0xf0]  ;;  %v11238_v51 = vld [vmem:[%s12222_s5 + $0x584] sm:$0xf] }
 0x2fa   : > { %7125 = vmatpush.bf16.msrb.mxu0 %v5821_v3  ;;  %7138 = vmatpush.bf16.msrb.mxu1 %v5824_v4  ;;  %v1076_v3 = vld [vmem:[%s12222_s5 + $0x1988] sm:$0x33]  ;;  %v4739_v34 = vpack.c.b16 %v3843_v2, %v3843_v2  ;;  %v9774_v2 = vld [vmem:[%s12222_s5 + $0xd80] sm:$0xf] }
 0x2fb   : > { %7151 = vmatpush.bf16.msrb.mxu2 %v5827_v8  ;;  %7164 = vmatpush.bf16.msrb.mxu3 %v5830_v9  ;;  %v6849_v4 = vpop.f32.mrf.mxu2  ;;  %v6862_v6 = vpop.f32.mrf.mxu3  ;;  %v9251_v8 = vor.u32 %v11364_v59, %v9248_v62  ;;  %v8734_v9 = vld [vmem:[%s12222_s5 + $0x570] sm:$0xf]  ;;  %v3845_v21 = vunpack.c.l.b16 %v1076_v3  ;;  %v3846_v24 = vunpack.c.h.b16 %v1076_v3  ;;  %v11686_v62 = vld [vmem:[%s12222_s5 + $0x137c] sm:$0xf0]  ;;  %v10288_v3 = vld [vmem:[%s12222_s5 + $0x1380] sm:$0xf0] }
 0x2fc   : > { %11014 = vmatmul.msk.bf16.vlgmr.msra.gmra.mxu2 %vm5539_vm1, %v13807_v60  ;;  %11015 = vmatmul.msk.bf16.vlgmr.msra.gmra.mxu3 %vm5539_vm1, %v13807_v60  ;;  %v5833_v43 = vsel %vm5543_vm0, %v4739_v34, 0  ;;  %v10291_v17 = vor.u32 %v11622_v52, %v10288_v3  ;;  %v11366_v34 = vld [vmem:[%s12222_s5 + $0x984] sm:$0xf]  ;;  %v8750_v50 = vld [vmem:[%s12222_s5 + $0x580] sm:$0xf] }
 0x2fd   : > { %v4741_v36 = vpack.c.b16 %v3845_v21, %v3845_v21  ;;  %v4742_v37 = vpack.c.b16 %v3846_v24, %v3846_v24  ;;  %v11302_v35 = vld [vmem:[%s12222_s5 + $0x77c] sm:$0xf0] }
 0x2fe   : > { %7126 = vmatpush.bf16.msrb.mxu0 %v10783_v26  ;;  %7139 = vmatpush.bf16.msrb.mxu1 %v10787_v28  ;;  %v11172_v26 = vld [vmem:[%s12222_s5 + $0x36c] sm:$0xf0]  ;;  %v8735_v28 = vor.u32 %v11300_v10, %v8734_v9  ;;  %v10294_v9 = vld [vmem:[%s12222_s5 + $0x1188] sm:$0xf]  ;;  %v8751_v52 = vor.u32 %v11302_v35, %v8750_v50  ;;  %v10310_v50 = vld [vmem:[%s12222_s5 + $0x1198] sm:$0xf] }
 0x2ff   : > { %7152 = vmatpush.bf16.msrb.mxu2 %v10791_v27  ;;  %7165 = vmatpush.bf16.msrb.mxu3 %v10795_v44  ;;  %v8230_v27 = vld [vmem:[%s12222_s5 + $0x178] sm:$0xf]  ;;  %v8747_v44 = vor.u32 %v11237_v20, %v8744_v5  ;;  %v8223_v39 = vor.u32 %v11172_v26, %v8222_v25  ;;  %v5839_v32 = vsel %vm5543_vm0, %v4741_v36, 0  ;;  %v5842_v48 = vsel %vm5543_vm0, %v4742_v37, 0  ;;  %v11687_v10 = vld [vmem:[%s12222_s5 + $0x1384] sm:$0xf0] }
 0x300   : > { %v8231_v41 = vor.u32 %v11173_v31, %v8230_v27  ;;  %v11494_v20 = vld [vmem:[%s12222_s5 + $0xd84] sm:$0xf]  ;;  %v10295_v24 = vor.u32 %v11687_v10, %v10294_v9  ;;  %v11175_v10 = vld [vmem:[%s12222_s5 + $0x384] sm:$0xf0]  ;;  %v11689_v35 = vld [vmem:[%s12222_s5 + $0x1394] sm:$0xf0] }
 0x301   : > { %v9776_v26 = vld [vmem:[%s12222_s5 + $0xf80] sm:$0xf0] }
 0x302   : > { %7127 = vmatpush.bf16.msrb.mxu0 %v10271_v22  ;;  %7140 = vmatpush.bf16.msrb.mxu1 %v10275_v38  ;;  %v4740_v22 = vpack.c.b16 %v3844_v18, %v3844_v18  ;;  %v13925_v38 = vld [vmem:[%s12230_s26 + $0x48] sm:$0xff]  ;;  %v11558_v18 = vld [vmem:[%s12222_s5 + $0xf7c] sm:$0xf0]  ;;  %v9779_v31 = vor.u32 %v11494_v20, %v9776_v26  ;;  %v9264_v37 = vld [vmem:[%s12222_s5 + $0xb80] sm:$0xf0] }
 0x303   : > { %7153 = vmatpush.bf16.msrb.mxu2 %v10279_v45  ;;  %7166 = vmatpush.bf16.msrb.mxu3 %v10283_v46  ;;  %v1195_v46 = vperm.slane %v13925_v38, 0  ;;  %v1196_v47 = vperm.slane %v13925_v38, 1  ;;  %v1197_v4 = vperm.slane %v13925_v38, 2  ;;  %v1198_v6 = vperm.slane %v13925_v38, 3 }
 0x304   : > { %v5836_v45 = vsel %vm5543_vm0, %v4740_v22, 0  ;;  %v1200_v26 = vperm.slane %v13925_v38, 5 }
 0x306   : > { %7128 = vmatpush.bf16.msrb.mxu0 %v9759_v55  ;;  %7141 = vmatpush.bf16.msrb.mxu1 %v9763_v56  ;;  %v10806_v55 = vld [vmem:[%s12222_s5 + $0x1588] sm:$0xf]  ;;  %v6873_v59 = vpop.f32.mrf.mxu0 }
 0x307   : > { %7154 = vmatpush.bf16.msrb.mxu2 %v9767_v61  ;;  %7167 = vmatpush.bf16.msrb.mxu3 %v9771_v57  ;;  %v11815_v56 = vld [vmem:[%s12222_s5 + $0x1784] sm:$0xf0]  ;;  %v6886_v61 = vpop.f32.mrf.mxu1  ;;  %v10286_v57 = vld [vmem:[%s12222_s5 + $0x1180] sm:$0xf]  ;;  %v6874_v63 = vadd.f32 %v6873_v59, %v1195_v46 }
 0x308   : > { %v6887_v49 = vadd.f32 %v6886_v61, %v1196_v47 }
 0x309   : > { %7664 = vst [vmem:[%s12635_s11 + $0x240] sm:$0xff] %v6874_v63 }
 0x30a   : > { %7129 = vmatpush.bf16.msrb.mxu0 %v9247_v7  ;;  %7142 = vmatpush.bf16.msrb.mxu1 %v9251_v8  ;;  %v10807_v7 = vor.u32 %v11815_v56, %v10806_v55  ;;  %v10811_v8 = vor.u32 %v11751_v58, %v10808_v53  ;;  %7665 = vst [vmem:[%s12635_s11 + $0x248] sm:$0xff] %v6887_v49  ;;  %v8752_v56 = vld [vmem:[%s12222_s5 + $0x780] sm:$0xf0]  ;;  %v8758_v58 = vld [vmem:[%s12222_s5 + $0x588] sm:$0xf] }
 0x30b   : > { %7155 = vmatpush.bf16.msrb.mxu2 %v9255_v12  ;;  %7168 = vmatpush.bf16.msrb.mxu3 %v9259_v13  ;;  %v10296_v12 = vld [vmem:[%s12222_s5 + $0x1388] sm:$0xf0]  ;;  %v10287_v13 = vor.u32 %v11686_v62, %v10286_v57  ;;  %v11303_v53 = vld [vmem:[%s12222_s5 + $0x784] sm:$0xf0]  ;;  %v8755_v3 = vor.u32 %v11238_v51, %v8752_v56  ;;  %v11625_v51 = vld [vmem:[%s12222_s5 + $0x119c] sm:$0xf] }
 0x30c   : > { %v10299_v25 = vor.u32 %v11623_v11, %v10296_v12  ;;  %v11239_v57 = vld [vmem:[%s12222_s5 + $0x58c] sm:$0xf] }
 0x30d   : > { %v8760_v62 = vld [vmem:[%s12222_s5 + $0x788] sm:$0xf0] }
 0x30e   : > { %7130 = vmatpush.bf16.msrb.mxu0 %v8735_v28  ;;  %7143 = vmatpush.bf16.msrb.mxu1 %v8739_v23  ;;  %v9782_v28 = vld [vmem:[%s12222_s5 + $0xd88] sm:$0xf]  ;;  %v6875_v16 = vpop.f32.mrf.mxu0  ;;  %v8763_v9 = vor.u32 %v11239_v57, %v8760_v62  ;;  %v11111_v11 = vld [vmem:[%s12222_s5 + $0x18c] sm:$0xf] }
 0x30f   : > { %7156 = vmatpush.bf16.msrb.mxu2 %v8743_v29  ;;  %7169 = vmatpush.bf16.msrb.mxu3 %v8747_v44  ;;  %v6899_v14 = vpop.f32.mrf.mxu2  ;;  %v6912_v15 = vpop.f32.mrf.mxu3  ;;  %v11559_v23 = vld [vmem:[%s12222_s5 + $0xf84] sm:$0xf0]  ;;  %v11495_v29 = vld [vmem:[%s12222_s5 + $0xd8c] sm:$0xf]  ;;  %v9775_v44 = vor.u32 %v11558_v18, %v9774_v2  ;;  %v11752_v16 = vld [vmem:[%s12222_s5 + $0x1594] sm:$0xf] }
 0x310   : > { %v6900_v5 = vadd.f32 %v6899_v14, %v1197_v4  ;;  %v6913_v21 = vadd.f32 %v6912_v15, %v1198_v6  ;;  %v6888_v27 = vpop.f32.mrf.mxu1  ;;  %v9783_v22 = vor.u32 %v11559_v23, %v9782_v28  ;;  %v9787_v36 = vor.u32 %v11495_v29, %v9784_v30  ;;  %v11110_v6 = vld [vmem:[%s12222_s5 + $0x184] sm:$0xf]  ;;  %v8248_v12 = vld [vmem:[%s12222_s5 + $0x388] sm:$0xf0]  ;;  %v10814_v29 = vld [vmem:[%s12222_s5 + $0x1590] sm:$0xf] }
 0x311   : > { %v8759_v4 = vor.u32 %v11303_v53, %v8758_v58  ;;  %v11816_v30 = vld [vmem:[%s12222_s5 + $0x178c] sm:$0xf0]  ;;  %v10816_v27 = vld [vmem:[%s12222_s5 + $0x1790] sm:$0xf0] }
 0x312   : > { %7131 = vmatpush.bf16.msrb.mxu0 %v8223_v39  ;;  %7144 = vmatpush.bf16.msrb.mxu1 %v8227_v40  ;;  %7666 = vst [vmem:[%s12635_s11 + $0x250] sm:$0xff] %v6900_v5  ;;  %v9270_v39 = vld [vmem:[%s12222_s5 + $0x988] sm:$0xf]  ;;  %v8251_v5 = vor.u32 %v11111_v11, %v8248_v12  ;;  %v9790_v53 = vld [vmem:[%s12222_s5 + $0xd90] sm:$0xf] }
 0x313   : > { %7157 = vmatpush.bf16.msrb.mxu2 %v8231_v41  ;;  %7170 = vmatpush.bf16.msrb.mxu3 %v8235_v42  ;;  %7667 = vst [vmem:[%s12635_s11 + $0x258] sm:$0xff] %v6913_v21  ;;  %v11431_v40 = vld [vmem:[%s12222_s5 + $0xb84] sm:$0xf0]  ;;  %v11367_v41 = vld [vmem:[%s12222_s5 + $0x98c] sm:$0xf] }
 0x314   : > { %v9272_v42 = vld [vmem:[%s12222_s5 + $0xb88] sm:$0xf0]  ;;  %v9271_v54 = vor.u32 %v11431_v40, %v9270_v39  ;;  %v11368_v11 = vld [vmem:[%s12222_s5 + $0x994] sm:$0xf] }
 0x315   : > { %11016 = vmatmul.msk.bf16.vlgmr.msrb.gmra.mxu0 %vm5539_vm1, %v13807_v60  ;;  %11017 = vmatmul.msk.bf16.vlgmr.msrb.gmra.mxu1 %vm5539_vm1, %v13807_v60  ;;  %v9275_v55 = vor.u32 %v11367_v41, %v9272_v42  ;;  %v10815_v41 = vor.u32 %v11816_v30, %v10814_v29  ;;  %v10819_v42 = vor.u32 %v11752_v16, %v10816_v27  ;;  %v11240_v29 = vld [vmem:[%s12222_s5 + $0x594] sm:$0xf] }
 0x316   : > { %7177 = vmatpush.bf16.msra.mxu0 %v5833_v43  ;;  %7190 = vmatpush.bf16.msra.mxu1 %v5836_v45  ;;  %v1077_v43 = vld [vmem:[%s12222_s5 + $0x1990] sm:$0x33]  ;;  %v1078_v45 = vld [vmem:[%s12222_s5 + $0x1998] sm:$0x33] }
 0x317   : > { %7203 = vmatpush.bf16.msra.mxu2 %v5839_v32  ;;  %7216 = vmatpush.bf16.msra.mxu3 %v5842_v48  ;;  %v6901_v46 = vpop.f32.mrf.mxu2  ;;  %v6914_v47 = vpop.f32.mrf.mxu3  ;;  %v9263_v32 = vor.u32 %v11430_v33, %v9262_v19  ;;  %v9267_v48 = vor.u32 %v11366_v34, %v9264_v37  ;;  %v3847_v59 = vunpack.c.l.b16 %v1077_v43  ;;  %v3848_v61 = vunpack.c.h.b16 %v1077_v43  ;;  %v11753_v19 = vld [vmem:[%s12222_s5 + $0x159c] sm:$0xf]  ;;  %v11688_v37 = vld [vmem:[%s12222_s5 + $0x138c] sm:$0xf0]  ;;  %v11624_v43 = vld [vmem:[%s12222_s5 + $0x1194] sm:$0xf] }
 0x318   : > { %11018 = vmatmul.msk.bf16.vlgmr.msrb.gmra.mxu2 %vm5539_vm1, %v13807_v60  ;;  %11019 = vmatmul.msk.bf16.vlgmr.msrb.gmra.mxu3 %vm5539_vm1, %v13807_v60  ;;  %v3849_v63 = vunpack.c.l.b16 %v1078_v45  ;;  %v3850_v49 = vunpack.c.h.b16 %v1078_v45  ;;  %v10824_v33 = vld [vmem:[%s12222_s5 + $0x1798] sm:$0xf0]  ;;  %v10304_v45 = vld [vmem:[%s12222_s5 + $0x1390] sm:$0xf0]  ;;  %v1201_v46 = vperm.slane %v13925_v38, 6  ;;  %v1202_v47 = vperm.slane %v13925_v38, 7 }
 0x319   : > { %v4744_v14 = vpack.c.b16 %v3848_v61, %v3848_v61  ;;  %v10307_v58 = vor.u32 %v11624_v43, %v10304_v45  ;;  %v11496_v61 = vld [vmem:[%s12222_s5 + $0xd94] sm:$0xf] }
 0x31a   : > { %7178 = vmatpush.bf16.msra.mxu0 %v10799_v0  ;;  %7191 = vmatpush.bf16.msra.mxu1 %v10803_v1  ;;  %v8238_v0 = vld [vmem:[%s12222_s5 + $0x180] sm:$0xf]  ;;  %v4745_v15 = vpack.c.b16 %v3849_v63, %v3849_v63  ;;  %v10311_v63 = vor.u32 %v11689_v35, %v10310_v50  ;;  %v8768_v27 = vld [vmem:[%s12222_s5 + $0x790] sm:$0xf0]  ;;  %v11113_v50 = vld [vmem:[%s12222_s5 + $0x19c] sm:$0xf] }
 0x31b   : > { %7204 = vmatpush.bf16.msra.mxu2 %v10807_v7  ;;  %7217 = vmatpush.bf16.msra.mxu3 %v10811_v8  ;;  %v11174_v1 = vld [vmem:[%s12222_s5 + $0x37c] sm:$0xf0]  ;;  %v8240_v7 = vld [vmem:[%s12222_s5 + $0x380] sm:$0xf0]  ;;  %v8246_v8 = vld [vmem:[%s12222_s5 + $0x188] sm:$0xf] }
 0x31c   : > { %v8239_v2 = vor.u32 %v11174_v1, %v8238_v0  ;;  %v8243_v18 = vor.u32 %v11110_v6, %v8240_v7  ;;  %v8247_v20 = vor.u32 %v11175_v10, %v8246_v8  ;;  %v5851_v28 = vsel %vm5543_vm0, %v4745_v15, 0  ;;  %v9798_v0 = vld [vmem:[%s12222_s5 + $0xd98] sm:$0xf]  ;;  %v11432_v10 = vld [vmem:[%s12222_s5 + $0xb8c] sm:$0xf0] }
 0x31d   : > { %v11561_v1 = vld [vmem:[%s12222_s5 + $0xf94] sm:$0xf0]  ;;  %v11112_v45 = vld [vmem:[%s12222_s5 + $0x194] sm:$0xf]  ;;  %v8264_v35 = vld [vmem:[%s12222_s5 + $0x398] sm:$0xf0] }
 0x31e   : > { %7179 = vmatpush.bf16.msra.mxu0 %v10287_v13  ;;  %7192 = vmatpush.bf16.msra.mxu1 %v10291_v17  ;;  %v4743_v13 = vpack.c.b16 %v3847_v59, %v3847_v59  ;;  %v4746_v17 = vpack.c.b16 %v3850_v49, %v3850_v49  ;;  %v11560_v59 = vld [vmem:[%s12222_s5 + $0xf8c] sm:$0xf0]  ;;  %v9799_v12 = vor.u32 %v11561_v1, %v9798_v0  ;;  %v9286_v15 = vld [vmem:[%s12222_s5 + $0x998] sm:$0xf]  ;;  %v10830_v1 = vld [vmem:[%s12222_s5 + $0x15a0] sm:$0xf] }
 0x31f   : > { %7205 = vmatpush.bf16.msra.mxu2 %v10295_v24  ;;  %7218 = vmatpush.bf16.msra.mxu3 %v10299_v25  ;;  %v5848_v24 = vsel %vm5543_vm0, %v4744_v14, 0  ;;  %v1199_v25 = vperm.slane %v13925_v38, 4  ;;  %v9791_v7 = vor.u32 %v11560_v59, %v9790_v53  ;;  %v9280_v14 = vld [vmem:[%s12222_s5 + $0xb90] sm:$0xf0] }
 0x320   : > { %v5845_v21 = vsel %vm5543_vm0, %v4743_v13, 0  ;;  %v5854_v23 = vsel %vm5543_vm0, %v4746_v17, 0  ;;  %v11433_v17 = vld [vmem:[%s12222_s5 + $0xb94] sm:$0xf0] }
 0x321   : > { %v9287_v30 = vor.u32 %v11433_v17, %v9286_v15 }
 0x322   : > { %7180 = vmatpush.bf16.msra.mxu0 %v9775_v44  ;;  %7193 = vmatpush.bf16.msra.mxu1 %v9779_v31  ;;  %v10822_v44 = vld [vmem:[%s12222_s5 + $0x1598] sm:$0xf]  ;;  %v6925_v34 = vpop.f32.mrf.mxu0 }
 0x323   : > { %7206 = vmatpush.bf16.msra.mxu2 %v9783_v22  ;;  %7219 = vmatpush.bf16.msra.mxu3 %v9787_v36  ;;  %v11817_v31 = vld [vmem:[%s12222_s5 + $0x1794] sm:$0xf0]  ;;  %v6938_v22 = vpop.f32.mrf.mxu1  ;;  %v10302_v36 = vld [vmem:[%s12222_s5 + $0x1190] sm:$0xf]  ;;  %v6926_v39 = vadd.f32 %v6925_v34, %v1199_v25  ;;  %v11241_v34 = vld [vmem:[%s12222_s5 + $0x59c] sm:$0xf] }
 0x324   : > { %v6939_v40 = vadd.f32 %v6938_v22, %v1200_v26  ;;  %v10303_v38 = vor.u32 %v11688_v37, %v10302_v36  ;;  %v9283_v26 = vor.u32 %v11368_v11, %v9280_v14  ;;  %v8776_v22 = vld [vmem:[%s12222_s5 + $0x798] sm:$0xf0] }
 0x325   : > { %7668 = vst [vmem:[%s12635_s11 + $0x260] sm:$0xff] %v6926_v39  ;;  %v8254_v39 = vld [vmem:[%s12222_s5 + $0x190] sm:$0xf] }
 0x326   : > { %7181 = vmatpush.bf16.msra.mxu0 %v9263_v32  ;;  %7194 = vmatpush.bf16.msra.mxu1 %v9267_v48  ;;  %v10823_v32 = vor.u32 %v11817_v31, %v10822_v44  ;;  %v10827_v48 = vor.u32 %v11753_v19, %v10824_v33  ;;  %7669 = vst [vmem:[%s12635_s11 + $0x268] sm:$0xff] %v6939_v40  ;;  %v8774_v44 = vld [vmem:[%s12222_s5 + $0x598] sm:$0xf]  ;;  %v11176_v40 = vld [vmem:[%s12222_s5 + $0x38c] sm:$0xf0] }
 0x327   : > { %7207 = vmatpush.bf16.msra.mxu2 %v9271_v54  ;;  %7220 = vmatpush.bf16.msra.mxu3 %v9275_v55  ;;  %v10312_v54 = vld [vmem:[%s12222_s5 + $0x1398] sm:$0xf0]  ;;  %v11305_v31 = vld [vmem:[%s12222_s5 + $0x794] sm:$0xf0] }
 0x328   : > { %v10315_v49 = vor.u32 %v11625_v51, %v10312_v54  ;;  %v8775_v43 = vor.u32 %v11305_v31, %v8774_v44 }
 0x32a   : > { %7182 = vmatpush.bf16.msra.mxu0 %v8751_v52  ;;  %7195 = vmatpush.bf16.msra.mxu1 %v8755_v3  ;;  %v11497_v52 = vld [vmem:[%s12222_s5 + $0xd9c] sm:$0xf] }
 0x32b   : > { %7208 = vmatpush.bf16.msra.mxu2 %v8759_v4  ;;  %7221 = vmatpush.bf16.msra.mxu3 %v8763_v9  ;;  %v6951_v55 = vpop.f32.mrf.mxu2  ;;  %v6964_v56 = vpop.f32.mrf.mxu3  ;;  %v9800_v3 = vld [vmem:[%s12222_s5 + $0xf98] sm:$0xf0]  ;;  %v9278_v9 = vld [vmem:[%s12222_s5 + $0x990] sm:$0xf] }
 0x32c   : > { %v6952_v57 = vadd.f32 %v6951_v55, %v1201_v46  ;;  %v6965_v62 = vadd.f32 %v6964_v56, %v1202_v47  ;;  %v6927_v4 = vpop.f32.mrf.mxu0  ;;  %v6940_v6 = vpop.f32.mrf.mxu1  ;;  %v9803_v13 = vor.u32 %v11497_v52, %v9800_v3  ;;  %v9279_v25 = vor.u32 %v11432_v10, %v9278_v9  ;;  %v8256_v46 = vld [vmem:[%s12222_s5 + $0x390] sm:$0xf0]  ;;  %v8262_v47 = vld [vmem:[%s12222_s5 + $0x198] sm:$0xf]  ;;  %v11818_v52 = vld [vmem:[%s12222_s5 + $0x179c] sm:$0xf0] }
 0x32d   : > { %v14068_v56 = vld [vmem:[%s12230_s26 + $0x50] sm:$0xff]  ;;  %v8259_v53 = vor.u32 %v11112_v45, %v8256_v46  ;;  %v11754_v3 = vld [vmem:[%s12222_s5 + $0x15a4] sm:$0xf]  ;;  %v10838_v6 = vld [vmem:[%s12222_s5 + $0x15a8] sm:$0xf]  ;;  %v10831_v17 = vor.u32 %v11818_v52, %v10830_v1 }
 0x32e   : > { %7183 = vmatpush.bf16.msra.mxu0 %v8239_v2  ;;  %7196 = vmatpush.bf16.msra.mxu1 %v8243_v18  ;;  %7670 = vst [vmem:[%s12635_s11 + $0x270] sm:$0xff] %v6952_v57  ;;  %v11369_v2 = vld [vmem:[%s12222_s5 + $0x99c] sm:$0xf]  ;;  %v10832_v4 = vld [vmem:[%s12222_s5 + $0x17a0] sm:$0xf0] }
 0x32f   : > { %7209 = vmatpush.bf16.msra.mxu2 %v8247_v20  ;;  %7222 = vmatpush.bf16.msra.mxu3 %v8251_v5  ;;  %7671 = vst [vmem:[%s12635_s11 + $0x278] sm:$0xff] %v6965_v62  ;;  %v9288_v18 = vld [vmem:[%s12222_s5 + $0xb98] sm:$0xf0]  ;;  %v1079_v20 = vld [vmem:[%s12222_s5 + $0x19a0] sm:$0x33] }
 0x330   : > { %v1080_v5 = vld [vmem:[%s12222_s5 + $0x19a8] sm:$0x33]  ;;  %v9291_v16 = vor.u32 %v11369_v2, %v9288_v18  ;;  %v3851_v19 = vunpack.c.l.b16 %v1079_v20  ;;  %v3852_v33 = vunpack.c.h.b16 %v1079_v20  ;;  %v10835_v2 = vor.u32 %v11754_v3, %v10832_v4  ;;  %v11626_v18 = vld [vmem:[%s12222_s5 + $0x11a4] sm:$0xf]  ;;  %v8782_v1 = vld [vmem:[%s12222_s5 + $0x5a0] sm:$0xf] }
 0x331   : > { %11020 = vmatmul.msk.bf16.vlgmr.msra.gmra.mxu0 %vm5539_vm1, %v13807_v60  ;;  %11021 = vmatmul.msk.bf16.vlgmr.msra.gmra.mxu1 %vm5539_vm1, %v13807_v60  ;;  %v3853_v36 = vunpack.c.l.b16 %v1080_v5  ;;  %v3854_v37 = vunpack.c.h.b16 %v1080_v5  ;;  %v10840_v9 = vld [vmem:[%s12222_s5 + $0x17a8] sm:$0xf0]  ;;  %v10320_v20 = vld [vmem:[%s12222_s5 + $0x13a0] sm:$0xf0]  ;;  %v1205_v5 = vperm.slane %v14068_v56, 2 }
 0x332   : > { %7229 = vmatpush.bf16.msrb.mxu0 %v5845_v21  ;;  %7242 = vmatpush.bf16.msrb.mxu1 %v5848_v24  ;;  %v4747_v51 = vpack.c.b16 %v3851_v19, %v3851_v19  ;;  %v4748_v54 = vpack.c.b16 %v3852_v33, %v3852_v33  ;;  %v10323_v31 = vor.u32 %v11626_v18, %v10320_v20  ;;  %v9806_v19 = vld [vmem:[%s12222_s5 + $0xda0] sm:$0xf]  ;;  %v9816_v45 = vld [vmem:[%s12222_s5 + $0xfa8] sm:$0xf0]  ;;  %v11242_v3 = vld [vmem:[%s12222_s5 + $0x5a4] sm:$0xf] }
 0x333   : > { %7255 = vmatpush.bf16.msrb.mxu2 %v5851_v28  ;;  %7268 = vmatpush.bf16.msrb.mxu3 %v5854_v23  ;;  %v6953_v21 = vpop.f32.mrf.mxu2  ;;  %v6966_v24 = vpop.f32.mrf.mxu3  ;;  %v8766_v28 = vld [vmem:[%s12222_s5 + $0x590] sm:$0xf]  ;;  %v4750_v55 = vpack.c.b16 %v3854_v37, %v3854_v37  ;;  %v11562_v33 = vld [vmem:[%s12222_s5 + $0xf9c] sm:$0xf0] }
 0x334   : > { %11022 = vmatmul.msk.bf16.vlgmr.msra.gmra.mxu2 %vm5539_vm1, %v13807_v60  ;;  %11023 = vmatmul.msk.bf16.vlgmr.msra.gmra.mxu3 %vm5539_vm1, %v13807_v60  ;;  %v9792_v60 = vld [vmem:[%s12222_s5 + $0xf90] sm:$0xf0]  ;;  %v11304_v23 = vld [vmem:[%s12222_s5 + $0x78c] sm:$0xf0]  ;;  %v5857_v57 = vsel %vm5543_vm0, %v4747_v51, 0  ;;  %v5860_v62 = vsel %vm5543_vm0, %v4748_v54, 0 }
 0x335   : > { %v9795_v8 = vor.u32 %v11496_v61, %v9792_v60  ;;  %v8267_v61 = vor.u32 %v11113_v50, %v8264_v35  ;;  %v5866_v0 = vsel %vm5543_vm0, %v4750_v55, 0  ;;  %v1206_v21 = vperm.slane %v14068_v56, 3  ;;  %v9294_v50 = vld [vmem:[%s12222_s5 + $0x9a0] sm:$0xf]  ;;  %v11370_v51 = vld [vmem:[%s12222_s5 + $0x9a4] sm:$0xf] }
 0x336   : > { %7230 = vmatpush.bf16.msrb.mxu0 %v10815_v41  ;;  %7243 = vmatpush.bf16.msrb.mxu1 %v10819_v42  ;;  %v8767_v41 = vor.u32 %v11304_v23, %v8766_v28  ;;  %v8771_v42 = vor.u32 %v11240_v29, %v8768_v27  ;;  %v11691_v28 = vld [vmem:[%s12222_s5 + $0x13a4] sm:$0xf0]  ;;  %v11627_v23 = vld [vmem:[%s12222_s5 + $0x11ac] sm:$0xf]  ;;  %v11434_v35 = vld [vmem:[%s12222_s5 + $0xb9c] sm:$0xf0] }
 0x337   : > { %7256 = vmatpush.bf16.msrb.mxu2 %v10823_v32  ;;  %7269 = vmatpush.bf16.msrb.mxu3 %v10827_v48  ;;  %v8779_v32 = vor.u32 %v11241_v34, %v8776_v22  ;;  %v11177_v48 = vld [vmem:[%s12222_s5 + $0x394] sm:$0xf0]  ;;  %v10328_v29 = vld [vmem:[%s12222_s5 + $0x13a8] sm:$0xf0]  ;;  %v11498_v34 = vld [vmem:[%s12222_s5 + $0xda4] sm:$0xf] }
 0x338   : > { %v8263_v59 = vor.u32 %v11177_v48, %v8262_v47  ;;  %v9296_v55 = vld [vmem:[%s12222_s5 + $0xba0] sm:$0xf0]  ;;  %v11306_v52 = vld [vmem:[%s12222_s5 + $0x79c] sm:$0xf0] }
 0x339   : > { %v8783_v18 = vor.u32 %v11306_v52, %v8782_v1  ;;  %v10342_v1 = vld [vmem:[%s12222_s5 + $0x11b8] sm:$0xf] }
 0x33a   : > { %7231 = vmatpush.bf16.msrb.mxu0 %v10303_v38  ;;  %7244 = vmatpush.bf16.msrb.mxu1 %v10307_v58  ;;  %v4749_v38 = vpack.c.b16 %v3853_v36, %v3853_v36  ;;  %v8255_v58 = vor.u32 %v11176_v40, %v8254_v39  ;;  %v10331_v39 = vor.u32 %v11627_v23, %v10328_v29  ;;  %v9808_v40 = vld [vmem:[%s12222_s5 + $0xfa0] sm:$0xf0]  ;;  %v11115_v23 = vld [vmem:[%s12222_s5 + $0x1ac] sm:$0xf]  ;;  %v11693_v52 = vld [vmem:[%s12222_s5 + $0x13b4] sm:$0xf0] }
 0x33b   : > { %7257 = vmatpush.bf16.msrb.mxu2 %v10311_v63  ;;  %7270 = vmatpush.bf16.msrb.mxu3 %v10315_v49  ;;  %v1203_v63 = vperm.slane %v14068_v56, 0  ;;  %v1204_v49 = vperm.slane %v14068_v56, 1  ;;  %v9811_v48 = vor.u32 %v11498_v34, %v9808_v40  ;;  %v8280_v29 = vld [vmem:[%s12222_s5 + $0x3a8] sm:$0xf0]  ;;  %v1208_v40 = vperm.slane %v14068_v56, 5 }
 0x33c   : > { %v5863_v60 = vsel %vm5543_vm0, %v4749_v38, 0 }
 0x33e   : > { %7232 = vmatpush.bf16.msrb.mxu0 %v9791_v7  ;;  %7245 = vmatpush.bf16.msrb.mxu1 %v9795_v8  ;;  %v11819_v7 = vld [vmem:[%s12222_s5 + $0x17a4] sm:$0xf0]  ;;  %v11755_v8 = vld [vmem:[%s12222_s5 + $0x15ac] sm:$0xf]  ;;  %v6977_v10 = vpop.f32.mrf.mxu0  ;;  %v6990_v11 = vpop.f32.mrf.mxu1 }
 0x33f   : > { %7258 = vmatpush.bf16.msrb.mxu2 %v9799_v12  ;;  %7271 = vmatpush.bf16.msrb.mxu3 %v9803_v13  ;;  %v10318_v12 = vld [vmem:[%s12222_s5 + $0x11a0] sm:$0xf]  ;;  %v6978_v14 = vadd.f32 %v6977_v10, %v1203_v63  ;;  %v6991_v15 = vadd.f32 %v6990_v11, %v1204_v49  ;;  %v10839_v24 = vor.u32 %v11819_v7, %v10838_v6  ;;  %v8784_v7 = vld [vmem:[%s12222_s5 + $0x7a0] sm:$0xf0] }
 0x340   : > { %v11690_v13 = vld [vmem:[%s12222_s5 + $0x139c] sm:$0xf0]  ;;  %v8787_v20 = vor.u32 %v11242_v3, %v8784_v7  ;;  %v11629_v3 = vld [vmem:[%s12222_s5 + $0x11bc] sm:$0xf] }
 0x341   : > { %7672 = vst [vmem:[%s12635_s11 + $0x280] sm:$0xff] %v6978_v14 }
 0x342   : > { %7233 = vmatpush.bf16.msrb.mxu0 %v9279_v25  ;;  %7246 = vmatpush.bf16.msrb.mxu1 %v9283_v26  ;;  %v10843_v25 = vor.u32 %v11755_v8, %v10840_v9  ;;  %v10326_v26 = vld [vmem:[%s12222_s5 + $0x11a8] sm:$0xf]  ;;  %7673 = vst [vmem:[%s12635_s11 + $0x288] sm:$0xff] %v6991_v15 }
 0x343   : > { %7259 = vmatpush.bf16.msrb.mxu2 %v9287_v30  ;;  %7272 = vmatpush.bf16.msrb.mxu3 %v9291_v16  ;;  %v14098_v30 = vld [vmem:[%s14593_s0] sm:$0xf]  ;;  %v10319_v16 = vor.u32 %v11690_v13, %v10318_v12  ;;  %v10327_v37 = vor.u32 %v11691_v28, %v10326_v26  ;;  %v8790_v8 = vld [vmem:[%s12222_s5 + $0x5a8] sm:$0xf]  ;;  %v11243_v12 = vld [vmem:[%s12222_s5 + $0x5ac] sm:$0xf] }
 0x344   : > { %v11307_v9 = vld [vmem:[%s12222_s5 + $0x7a4] sm:$0xf0]  ;;  %v8792_v13 = vld [vmem:[%s12222_s5 + $0x7a8] sm:$0xf0] }
 0x345   : > { %v8795_v26 = vor.u32 %v11243_v12, %v8792_v13  ;;  %v11179_v28 = vld [vmem:[%s12222_s5 + $0x3a4] sm:$0xf0] }
 0x346   : > { %7234 = vmatpush.bf16.msrb.mxu0 %v8767_v41  ;;  %7247 = vmatpush.bf16.msrb.mxu1 %v8771_v42  ;;  %v9814_v41 = vld [vmem:[%s12222_s5 + $0xda8] sm:$0xf]  ;;  %v6979_v46 = vpop.f32.mrf.mxu0  ;;  %v6992_v47 = vpop.f32.mrf.mxu1 }
 0x347   : > { %7260 = vmatpush.bf16.msrb.mxu2 %v8775_v43  ;;  %7273 = vmatpush.bf16.msrb.mxu3 %v8779_v32  ;;  %v7003_v27 = vpop.f32.mrf.mxu2  ;;  %v7016_v44 = vpop.f32.mrf.mxu3  ;;  %v11563_v42 = vld [vmem:[%s12222_s5 + $0xfa4] sm:$0xf0]  ;;  %v11499_v43 = vld [vmem:[%s12222_s5 + $0xdac] sm:$0xf]  ;;  %v9807_v32 = vor.u32 %v11562_v33, %v9806_v19  ;;  %v11756_v46 = vld [vmem:[%s12222_s5 + $0x15b4] sm:$0xf] }
 0x348   : > { %v7004_v22 = vadd.f32 %v7003_v27, %v1205_v5  ;;  %v7017_v36 = vadd.f32 %v7016_v44, %v1206_v21  ;;  %v9815_v54 = vor.u32 %v11563_v42, %v9814_v41  ;;  %v9819_v38 = vor.u32 %v11499_v43, %v9816_v45  ;;  %v11114_v21 = vld [vmem:[%s12222_s5 + $0x1a4] sm:$0xf]  ;;  %v10846_v43 = vld [vmem:[%s12222_s5 + $0x15b0] sm:$0xf]  ;;  %v10848_v47 = vld [vmem:[%s12222_s5 + $0x17b0] sm:$0xf0] }
 0x349   : > { %v8791_v5 = vor.u32 %v11307_v9, %v8790_v8  ;;  %v11820_v45 = vld [vmem:[%s12222_s5 + $0x17ac] sm:$0xf0] }
 0x34a   : > { %7235 = vmatpush.bf16.msrb.mxu0 %v8255_v58  ;;  %7248 = vmatpush.bf16.msrb.mxu1 %v8259_v53  ;;  %7674 = vst [vmem:[%s12635_s11 + $0x290] sm:$0xff] %v7004_v22  ;;  %v9302_v58 = vld [vmem:[%s12222_s5 + $0x9a8] sm:$0xf]  ;;  %v8283_v22 = vor.u32 %v11115_v23, %v8280_v29  ;;  %v9822_v9 = vld [vmem:[%s12222_s5 + $0xdb0] sm:$0xf] }
 0x34b   : > { %7261 = vmatpush.bf16.msrb.mxu2 %v8263_v59  ;;  %7274 = vmatpush.bf16.msrb.mxu3 %v8267_v61  ;;  %7675 = vst [vmem:[%s12635_s11 + $0x298] sm:$0xff] %v7017_v36  ;;  %v11435_v53 = vld [vmem:[%s12222_s5 + $0xba4] sm:$0xf0]  ;;  %v11371_v59 = vld [vmem:[%s12222_s5 + $0x9ac] sm:$0xf] }
 0x34c   : > { %v9304_v61 = vld [vmem:[%s12222_s5 + $0xba8] sm:$0xf0]  ;;  %v9303_v4 = vor.u32 %v11435_v53, %v9302_v58  ;;  %v11436_v23 = vld [vmem:[%s12222_s5 + $0xbac] sm:$0xf0]  ;;  %v11372_v29 = vld [vmem:[%s12222_s5 + $0x9b4] sm:$0xf] }
 0x34d   : > { %11024 = vmatmul.msk.bf16.vlgmr.msrb.gmra.mxu0 %vm5539_vm1, %v14098_v30  ;;  %11025 = vmatmul.msk.bf16.vlgmr.msrb.gmra.mxu1 %vm5539_vm1, %v14098_v30  ;;  %v9307_v6 = vor.u32 %v11371_v59, %v9304_v61  ;;  %v10847_v59 = vor.u32 %v11820_v45, %v10846_v43  ;;  %v10851_v61 = vor.u32 %v11756_v46, %v10848_v47  ;;  %v11308_v43 = vld [vmem:[%s12222_s5 + $0x7ac] sm:$0xf0]  ;;  %v11244_v45 = vld [vmem:[%s12222_s5 + $0x5b4] sm:$0xf] }
 0x34e   : > { %7281 = vmatpush.bf16.msra.mxu0 %v5857_v57  ;;  %7294 = vmatpush.bf16.msra.mxu1 %v5860_v62  ;;  %v1081_v57 = vld [vmem:[%s12222_s5 + $0x19b0] sm:$0x33]  ;;  %v1082_v62 = vld [vmem:[%s12222_s5 + $0x19b8] sm:$0x33] }
 0x34f   : > { %7307 = vmatpush.bf16.msra.mxu2 %v5863_v60  ;;  %7320 = vmatpush.bf16.msra.mxu3 %v5866_v0  ;;  %v7005_v63 = vpop.f32.mrf.mxu2  ;;  %v7018_v49 = vpop.f32.mrf.mxu3  ;;  %v9295_v60 = vor.u32 %v11434_v35, %v9294_v50  ;;  %v9299_v0 = vor.u32 %v11370_v51, %v9296_v55  ;;  %v3855_v10 = vunpack.c.l.b16 %v1081_v57  ;;  %v3856_v11 = vunpack.c.h.b16 %v1081_v57  ;;  %v11757_v50 = vld [vmem:[%s12222_s5 + $0x15bc] sm:$0xf]  ;;  %v11692_v55 = vld [vmem:[%s12222_s5 + $0x13ac] sm:$0xf0]  ;;  %v11628_v57 = vld [vmem:[%s12222_s5 + $0x11b4] sm:$0xf] }
 0x350   : > { %11026 = vmatmul.msk.bf16.vlgmr.msrb.gmra.mxu2 %vm5539_vm1, %v14098_v30  ;;  %11027 = vmatmul.msk.bf16.vlgmr.msrb.gmra.mxu3 %vm5539_vm1, %v14098_v30  ;;  %v3857_v14 = vunpack.c.l.b16 %v1082_v62  ;;  %v3858_v15 = vunpack.c.h.b16 %v1082_v62  ;;  %v10856_v35 = vld [vmem:[%s12222_s5 + $0x17b8] sm:$0xf0]  ;;  %v10336_v62 = vld [vmem:[%s12222_s5 + $0x13b0] sm:$0xf0]  ;;  %v1209_v63 = vperm.slane %v14068_v56, 6  ;;  %v1210_v49 = vperm.slane %v14068_v56, 7 }
 0x351   : > { %v4752_v27 = vpack.c.b16 %v3856_v11, %v3856_v11  ;;  %v10339_v8 = vor.u32 %v11628_v57, %v10336_v62  ;;  %v11500_v11 = vld [vmem:[%s12222_s5 + $0xdb4] sm:$0xf] }
 0x352   : > { %7282 = vmatpush.bf16.msra.mxu0 %v10831_v17  ;;  %7295 = vmatpush.bf16.msra.mxu1 %v10835_v2  ;;  %v8270_v17 = vld [vmem:[%s12222_s5 + $0x1a0] sm:$0xf]  ;;  %v4753_v44 = vpack.c.b16 %v3857_v14, %v3857_v14  ;;  %v10343_v14 = vor.u32 %v11693_v52, %v10342_v1  ;;  %v11181_v1 = vld [vmem:[%s12222_s5 + $0x3b4] sm:$0xf0]  ;;  %v11117_v52 = vld [vmem:[%s12222_s5 + $0x1bc] sm:$0xf] }
 0x353   : > { %7308 = vmatpush.bf16.msra.mxu2 %v10839_v24  ;;  %7321 = vmatpush.bf16.msra.mxu3 %v10843_v25  ;;  %v11178_v2 = vld [vmem:[%s12222_s5 + $0x39c] sm:$0xf0]  ;;  %v8272_v24 = vld [vmem:[%s12222_s5 + $0x3a0] sm:$0xf0]  ;;  %v8278_v25 = vld [vmem:[%s12222_s5 + $0x1a8] sm:$0xf] }
 0x354   : > { %v8271_v19 = vor.u32 %v11178_v2, %v8270_v17  ;;  %v8275_v33 = vor.u32 %v11114_v21, %v8272_v24  ;;  %v8279_v34 = vor.u32 %v11179_v28, %v8278_v25  ;;  %v5875_v41 = vsel %vm5543_vm0, %v4753_v44, 0  ;;  %v9824_v17 = vld [vmem:[%s12222_s5 + $0xfb0] sm:$0xf0]  ;;  %v9830_v2 = vld [vmem:[%s12222_s5 + $0xdb8] sm:$0xf] }
 0x355   : > { %v9310_v28 = vld [vmem:[%s12222_s5 + $0x9b0] sm:$0xf]  ;;  %v9312_v44 = vld [vmem:[%s12222_s5 + $0xbb0] sm:$0xf0] }
 0x356   : > { %7283 = vmatpush.bf16.msra.mxu0 %v10319_v16  ;;  %7296 = vmatpush.bf16.msra.mxu1 %v10323_v31  ;;  %v4751_v16 = vpack.c.b16 %v3855_v10, %v3855_v10  ;;  %v4754_v31 = vpack.c.b16 %v3858_v15, %v3858_v15  ;;  %v11564_v10 = vld [vmem:[%s12222_s5 + $0xfac] sm:$0xf0] }
 0x357   : > { %7309 = vmatpush.bf16.msra.mxu2 %v10327_v37  ;;  %7322 = vmatpush.bf16.msra.mxu3 %v10331_v39  ;;  %v5872_v37 = vsel %vm5543_vm0, %v4752_v27, 0  ;;  %v1207_v39 = vperm.slane %v14068_v56, 4  ;;  %v9823_v25 = vor.u32 %v11564_v10, %v9822_v9 }
 0x358   : > { %v5869_v36 = vsel %vm5543_vm0, %v4751_v16, 0  ;;  %v5878_v42 = vsel %vm5543_vm0, %v4754_v31, 0  ;;  %v9318_v31 = vld [vmem:[%s12222_s5 + $0x9b8] sm:$0xf] }
 0x35a   : > { %7284 = vmatpush.bf16.msra.mxu0 %v9807_v32  ;;  %7297 = vmatpush.bf16.msra.mxu1 %v9811_v48  ;;  %v10854_v32 = vld [vmem:[%s12222_s5 + $0x15b8] sm:$0xf]  ;;  %v7029_v51 = vpop.f32.mrf.mxu0 }
 0x35b   : > { %7310 = vmatpush.bf16.msra.mxu2 %v9815_v54  ;;  %7323 = vmatpush.bf16.msra.mxu3 %v9819_v38  ;;  %v11821_v48 = vld [vmem:[%s12222_s5 + $0x17b4] sm:$0xf0]  ;;  %v7042_v54 = vpop.f32.mrf.mxu1  ;;  %v10334_v38 = vld [vmem:[%s12222_s5 + $0x11b0] sm:$0xf]  ;;  %v7030_v58 = vadd.f32 %v7029_v51, %v1207_v39 }
 0x35c   : > { %v7043_v53 = vadd.f32 %v7042_v54, %v1208_v40  ;;  %v10335_v56 = vor.u32 %v11692_v55, %v10334_v38  ;;  %v9311_v40 = vor.u32 %v11436_v23, %v9310_v28  ;;  %v11245_v54 = vld [vmem:[%s12222_s5 + $0x5bc] sm:$0xf]  ;;  %v11759_v28 = vld [vmem:[%s12222_s5 + $0x15cc] sm:$0xf] }
 0x35d   : > { %7676 = vst [vmem:[%s12635_s11 + $0x2a0] sm:$0xff] %v7030_v58  ;;  %v8808_v38 = vld [vmem:[%s12222_s5 + $0x7b8] sm:$0xf0]  ;;  %v10872_v23 = vld [vmem:[%s12222_s5 + $0x17c8] sm:$0xf0] }
 0x35e   : > { %7285 = vmatpush.bf16.msra.mxu0 %v9295_v60  ;;  %7298 = vmatpush.bf16.msra.mxu1 %v9299_v0  ;;  %v10855_v60 = vor.u32 %v11821_v48, %v10854_v32  ;;  %v10859_v0 = vor.u32 %v11757_v50, %v10856_v35  ;;  %7677 = vst [vmem:[%s12635_s11 + $0x2a8] sm:$0xff] %v7043_v53  ;;  %v8800_v32 = vld [vmem:[%s12222_s5 + $0x7b0] sm:$0xf0]  ;;  %v8806_v48 = vld [vmem:[%s12222_s5 + $0x5b8] sm:$0xf] }
 0x35f   : > { %7311 = vmatpush.bf16.msra.mxu2 %v9303_v4  ;;  %7324 = vmatpush.bf16.msra.mxu3 %v9307_v6  ;;  %v10344_v4 = vld [vmem:[%s12222_s5 + $0x13b8] sm:$0xf0]  ;;  %v11309_v50 = vld [vmem:[%s12222_s5 + $0x7b4] sm:$0xf0]  ;;  %v8286_v53 = vld [vmem:[%s12222_s5 + $0x1b0] sm:$0xf]  ;;  %v8803_v57 = vor.u32 %v11244_v45, %v8800_v32 }
 0x360   : > { %v10347_v15 = vor.u32 %v11629_v3, %v10344_v4  ;;  %v8807_v62 = vor.u32 %v11309_v50, %v8806_v48  ;;  %v8296_v3 = vld [vmem:[%s12222_s5 + $0x3b8] sm:$0xf0]  ;;  %v11631_v45 = vld [vmem:[%s12222_s5 + $0x11cc] sm:$0xf] }
 0x362   : > { %7286 = vmatpush.bf16.msra.mxu0 %v8783_v18  ;;  %7299 = vmatpush.bf16.msra.mxu1 %v8787_v20  ;;  %v11565_v18 = vld [vmem:[%s12222_s5 + $0xfb4] sm:$0xf0]  ;;  %v11501_v20 = vld [vmem:[%s12222_s5 + $0xdbc] sm:$0xf]  ;;  %v7031_v21 = vpop.f32.mrf.mxu0 }
 0x363   : > { %7312 = vmatpush.bf16.msra.mxu2 %v8791_v5  ;;  %7325 = vmatpush.bf16.msra.mxu3 %v8795_v26  ;;  %v7055_v6 = vpop.f32.mrf.mxu2  ;;  %v7068_v7 = vpop.f32.mrf.mxu3  ;;  %v9832_v5 = vld [vmem:[%s12222_s5 + $0xfb8] sm:$0xf0]  ;;  %v9827_v26 = vor.u32 %v11500_v11, %v9824_v17  ;;  %v9831_v16 = vor.u32 %v11565_v18, %v9830_v2  ;;  %v11758_v21 = vld [vmem:[%s12222_s5 + $0x15c4] sm:$0xf] }
 0x364   : > { %v7056_v12 = vadd.f32 %v7055_v6, %v1209_v63  ;;  %v7069_v13 = vadd.f32 %v7068_v7, %v1210_v49  ;;  %v7044_v24 = vpop.f32.mrf.mxu1  ;;  %v9835_v27 = vor.u32 %v11501_v20, %v9832_v5  ;;  %v11116_v63 = vld [vmem:[%s12222_s5 + $0x1b4] sm:$0xf]  ;;  %v10862_v20 = vld [vmem:[%s12222_s5 + $0x15c0] sm:$0xf] }
 0x365   : > { %v8288_v49 = vld [vmem:[%s12222_s5 + $0x3b0] sm:$0xf0]  ;;  %v11822_v5 = vld [vmem:[%s12222_s5 + $0x17bc] sm:$0xf0]  ;;  %v10864_v24 = vld [vmem:[%s12222_s5 + $0x17c0] sm:$0xf0] }
 0x366   : > { %7287 = vmatpush.bf16.msra.mxu0 %v8271_v19  ;;  %7300 = vmatpush.bf16.msra.mxu1 %v8275_v33  ;;  %7678 = vst [vmem:[%s12635_s11 + $0x2b0] sm:$0xff] %v7056_v12  ;;  %v11437_v19 = vld [vmem:[%s12222_s5 + $0xbb4] sm:$0xf0]  ;;  %v11373_v33 = vld [vmem:[%s12222_s5 + $0x9bc] sm:$0xf]  ;;  %v8291_v10 = vor.u32 %v11116_v63, %v8288_v49  ;;  %v8299_v12 = vor.u32 %v11117_v52, %v8296_v3 }
 0x367   : > { %7313 = vmatpush.bf16.msra.mxu2 %v8279_v34  ;;  %7326 = vmatpush.bf16.msra.mxu3 %v8283_v22  ;;  %7679 = vst [vmem:[%s12635_s11 + $0x2b8] sm:$0xff] %v7069_v13  ;;  %v9320_v34 = vld [vmem:[%s12222_s5 + $0xbb8] sm:$0xf0]  ;;  %v1083_v22 = vld [vmem:[%s12222_s5 + $0x19c0] sm:$0x33]  ;;  %v9319_v46 = vor.u32 %v11437_v19, %v9318_v31 }
 0x368   : > { %v9323_v47 = vor.u32 %v11373_v33, %v9320_v34  ;;  %v3859_v35 = vunpack.c.l.b16 %v1083_v22  ;;  %v3860_v51 = vunpack.c.h.b16 %v1083_v22  ;;  %v10863_v33 = vor.u32 %v11822_v5, %v10862_v20  ;;  %v11630_v22 = vld [vmem:[%s12222_s5 + $0x11c4] sm:$0xf]  ;;  %v9848_v63 = vld [vmem:[%s12222_s5 + $0xfc8] sm:$0xf0]  ;;  %v9326_v52 = vld [vmem:[%s12222_s5 + $0x9c0] sm:$0xf] }
 0x369   : > { %11028 = vmatmul.msk.bf16.vlgmr.msra.gmra.mxu0 %vm5539_vm1, %v14098_v30  ;;  %11029 = vmatmul.msk.bf16.vlgmr.msra.gmra.mxu1 %vm5539_vm1, %v14098_v30  ;;  %v10867_v34 = vor.u32 %v11758_v21, %v10864_v24  ;;  %v11438_v3 = vld [vmem:[%s12222_s5 + $0xbbc] sm:$0xf0]  ;;  %v11246_v21 = vld [vmem:[%s12222_s5 + $0x5c4] sm:$0xf] }
 0x36a   : > { %7333 = vmatpush.bf16.msrb.mxu0 %v5869_v36  ;;  %7346 = vmatpush.bf16.msrb.mxu1 %v5872_v37  ;;  %v1084_v36 = vld [vmem:[%s12222_s5 + $0x19c8] sm:$0x33]  ;;  %v4755_v4 = vpack.c.b16 %v3859_v35, %v3859_v35  ;;  %v9838_v35 = vld [vmem:[%s12222_s5 + $0xdc0] sm:$0xf] }
 0x36b   : > { %7359 = vmatpush.bf16.msrb.mxu2 %v5875_v41  ;;  %7372 = vmatpush.bf16.msrb.mxu3 %v5878_v42  ;;  %v7057_v37 = vpop.f32.mrf.mxu2  ;;  %v7070_v39 = vpop.f32.mrf.mxu3  ;;  %v9315_v41 = vor.u32 %v11372_v29, %v9312_v44  ;;  %v8798_v42 = vld [vmem:[%s12222_s5 + $0x5b0] sm:$0xf]  ;;  %v3861_v55 = vunpack.c.l.b16 %v1084_v36  ;;  %v3862_v58 = vunpack.c.h.b16 %v1084_v36  ;;  %v11694_v44 = vld [vmem:[%s12222_s5 + $0x13bc] sm:$0xf0]  ;;  %v10352_v36 = vld [vmem:[%s12222_s5 + $0x13c0] sm:$0xf0] }
 0x36c   : > { %11030 = vmatmul.msk.bf16.vlgmr.msra.gmra.mxu2 %vm5539_vm1, %v14098_v30  ;;  %11031 = vmatmul.msk.bf16.vlgmr.msra.gmra.mxu3 %vm5539_vm1, %v14098_v30  ;;  %v5881_v13 = vsel %vm5543_vm0, %v4755_v4, 0  ;;  %v10355_v50 = vor.u32 %v11630_v22, %v10352_v36  ;;  %v11374_v4 = vld [vmem:[%s12222_s5 + $0x9c4] sm:$0xf]  ;;  %v8814_v20 = vld [vmem:[%s12222_s5 + $0x5c0] sm:$0xf] }
 0x36d   : > { %v4757_v6 = vpack.c.b16 %v3861_v55, %v3861_v55  ;;  %v4758_v7 = vpack.c.b16 %v3862_v58, %v3862_v58  ;;  %v11310_v5 = vld [vmem:[%s12222_s5 + $0x7bc] sm:$0xf0] }
 0x36e   : > { %7334 = vmatpush.bf16.msrb.mxu0 %v10847_v59  ;;  %7347 = vmatpush.bf16.msrb.mxu1 %v10851_v61  ;;  %v11180_v59 = vld [vmem:[%s12222_s5 + $0x3ac] sm:$0xf0]  ;;  %v8799_v61 = vor.u32 %v11308_v43, %v8798_v42  ;;  %v10358_v42 = vld [vmem:[%s12222_s5 + $0x11c8] sm:$0xf]  ;;  %v8815_v22 = vor.u32 %v11310_v5, %v8814_v20  ;;  %v10374_v20 = vld [vmem:[%s12222_s5 + $0x11d8] sm:$0xf] }
 0x36f   : > { %7360 = vmatpush.bf16.msrb.mxu2 %v10855_v60  ;;  %7373 = vmatpush.bf16.msrb.mxu3 %v10859_v0  ;;  %v8294_v60 = vld [vmem:[%s12222_s5 + $0x1b8] sm:$0xf]  ;;  %v8811_v0 = vor.u32 %v11245_v54, %v8808_v38  ;;  %v8287_v9 = vor.u32 %v11180_v59, %v8286_v53  ;;  %v5887_v2 = vsel %vm5543_vm0, %v4757_v6, 0  ;;  %v5890_v18 = vsel %vm5543_vm0, %v4758_v7, 0  ;;  %v11695_v43 = vld [vmem:[%s12222_s5 + $0x13c4] sm:$0xf0] }
 0x370   : > { %v8295_v11 = vor.u32 %v11181_v1, %v8294_v60  ;;  %v11502_v54 = vld [vmem:[%s12222_s5 + $0xdc4] sm:$0xf]  ;;  %v10359_v58 = vor.u32 %v11695_v43, %v10358_v42  ;;  %v11183_v43 = vld [vmem:[%s12222_s5 + $0x3c4] sm:$0xf0]  ;;  %v11697_v5 = vld [vmem:[%s12222_s5 + $0x13d4] sm:$0xf0] }
 0x371   : > { %v9840_v59 = vld [vmem:[%s12222_s5 + $0xfc0] sm:$0xf0] }
 0x372   : > { %7335 = vmatpush.bf16.msrb.mxu0 %v10335_v56  ;;  %7348 = vmatpush.bf16.msrb.mxu1 %v10339_v8  ;;  %v4756_v56 = vpack.c.b16 %v3860_v51, %v3860_v51  ;;  %v14216_v8 = vld [vmem:[%s12230_s26 + $0x58] sm:$0xff]  ;;  %v11566_v51 = vld [vmem:[%s12222_s5 + $0xfbc] sm:$0xf0]  ;;  %v9843_v1 = vor.u32 %v11502_v54, %v9840_v59  ;;  %v9328_v7 = vld [vmem:[%s12222_s5 + $0xbc0] sm:$0xf0] }
 0x373   : > { %7361 = vmatpush.bf16.msrb.mxu2 %v10343_v14  ;;  %7374 = vmatpush.bf16.msrb.mxu3 %v10347_v15  ;;  %v1211_v15 = vperm.slane %v14216_v8, 0  ;;  %v1212_v17 = vperm.slane %v14216_v8, 1  ;;  %v1213_v37 = vperm.slane %v14216_v8, 2  ;;  %v1214_v39 = vperm.slane %v14216_v8, 3 }
 0x374   : > { %v5884_v14 = vsel %vm5543_vm0, %v4756_v56, 0  ;;  %v1216_v59 = vperm.slane %v14216_v8, 5 }
 0x376   : > { %7336 = vmatpush.bf16.msrb.mxu0 %v9823_v25  ;;  %7349 = vmatpush.bf16.msrb.mxu1 %v9827_v26  ;;  %v10870_v25 = vld [vmem:[%s12222_s5 + $0x15c8] sm:$0xf]  ;;  %v7081_v29 = vpop.f32.mrf.mxu0 }
 0x377   : > { %7362 = vmatpush.bf16.msrb.mxu2 %v9831_v16  ;;  %7375 = vmatpush.bf16.msrb.mxu3 %v9835_v27  ;;  %v11823_v26 = vld [vmem:[%s12222_s5 + $0x17c4] sm:$0xf0]  ;;  %v7094_v16 = vpop.f32.mrf.mxu1  ;;  %v10350_v27 = vld [vmem:[%s12222_s5 + $0x11c0] sm:$0xf]  ;;  %v7082_v31 = vadd.f32 %v7081_v29, %v1211_v15 }
 0x378   : > { %v7095_v19 = vadd.f32 %v7094_v16, %v1212_v17 }
 0x379   : > { %7680 = vst [vmem:[%s12635_s11 + $0x2c0] sm:$0xff] %v7082_v31 }
 0x37a   : > { %7337 = vmatpush.bf16.msrb.mxu0 %v9311_v40  ;;  %7350 = vmatpush.bf16.msrb.mxu1 %v9315_v41  ;;  %v10871_v40 = vor.u32 %v11823_v26, %v10870_v25  ;;  %v10875_v41 = vor.u32 %v11759_v28, %v10872_v23  ;;  %7681 = vst [vmem:[%s12635_s11 + $0x2c8] sm:$0xff] %v7095_v19  ;;  %v8816_v26 = vld [vmem:[%s12222_s5 + $0x7c0] sm:$0xf0]  ;;  %v8822_v28 = vld [vmem:[%s12222_s5 + $0x5c8] sm:$0xf] }
 0x37b   : > { %7363 = vmatpush.bf16.msrb.mxu2 %v9319_v46  ;;  %7376 = vmatpush.bf16.msrb.mxu3 %v9323_v47  ;;  %v10360_v46 = vld [vmem:[%s12222_s5 + $0x13c8] sm:$0xf0]  ;;  %v10351_v47 = vor.u32 %v11694_v44, %v10350_v27  ;;  %v11311_v23 = vld [vmem:[%s12222_s5 + $0x7c4] sm:$0xf0]  ;;  %v8819_v36 = vor.u32 %v11246_v21, %v8816_v26  ;;  %v11633_v21 = vld [vmem:[%s12222_s5 + $0x11dc] sm:$0xf] }
 0x37c   : > { %v10363_v53 = vor.u32 %v11631_v45, %v10360_v46  ;;  %v11247_v27 = vld [vmem:[%s12222_s5 + $0x5cc] sm:$0xf] }
 0x37d   : > { %v8824_v44 = vld [vmem:[%s12222_s5 + $0x7c8] sm:$0xf0] }
 0x37e   : > { %7338 = vmatpush.bf16.msrb.mxu0 %v8799_v61  ;;  %7351 = vmatpush.bf16.msrb.mxu1 %v8803_v57  ;;  %v9846_v61 = vld [vmem:[%s12222_s5 + $0xdc8] sm:$0xf]  ;;  %v7083_v49 = vpop.f32.mrf.mxu0  ;;  %v8827_v42 = vor.u32 %v11247_v27, %v8824_v44  ;;  %v11119_v45 = vld [vmem:[%s12222_s5 + $0x1cc] sm:$0xf] }
 0x37f   : > { %7364 = vmatpush.bf16.msrb.mxu2 %v8807_v62  ;;  %7377 = vmatpush.bf16.msrb.mxu3 %v8811_v0  ;;  %v7107_v32 = vpop.f32.mrf.mxu2  ;;  %v7120_v48 = vpop.f32.mrf.mxu3  ;;  %v11567_v57 = vld [vmem:[%s12222_s5 + $0xfc4] sm:$0xf0]  ;;  %v11503_v62 = vld [vmem:[%s12222_s5 + $0xdcc] sm:$0xf]  ;;  %v9839_v0 = vor.u32 %v11566_v51, %v9838_v35  ;;  %v11760_v49 = vld [vmem:[%s12222_s5 + $0x15d4] sm:$0xf] }
 0x380   : > { %v7108_v38 = vadd.f32 %v7107_v32, %v1213_v37  ;;  %v7121_v55 = vadd.f32 %v7120_v48, %v1214_v39  ;;  %v7096_v60 = vpop.f32.mrf.mxu1  ;;  %v9847_v56 = vor.u32 %v11567_v57, %v9846_v61  ;;  %v9851_v6 = vor.u32 %v11503_v62, %v9848_v63  ;;  %v11118_v39 = vld [vmem:[%s12222_s5 + $0x1c4] sm:$0xf]  ;;  %v8312_v46 = vld [vmem:[%s12222_s5 + $0x3c8] sm:$0xf0]  ;;  %v10878_v62 = vld [vmem:[%s12222_s5 + $0x15d0] sm:$0xf] }
 0x381   : > { %v8823_v37 = vor.u32 %v11311_v23, %v8822_v28  ;;  %v11824_v63 = vld [vmem:[%s12222_s5 + $0x17cc] sm:$0xf0]  ;;  %v10880_v60 = vld [vmem:[%s12222_s5 + $0x17d0] sm:$0xf0] }
 0x382   : > { %7339 = vmatpush.bf16.msrb.mxu0 %v8287_v9  ;;  %7352 = vmatpush.bf16.msrb.mxu1 %v8291_v10  ;;  %7682 = vst [vmem:[%s12635_s11 + $0x2d0] sm:$0xff] %v7108_v38  ;;  %v9334_v9 = vld [vmem:[%s12222_s5 + $0x9c8] sm:$0xf]  ;;  %v8315_v38 = vor.u32 %v11119_v45, %v8312_v46  ;;  %v9854_v23 = vld [vmem:[%s12222_s5 + $0xdd0] sm:$0xf] }
 0x383   : > { %7365 = vmatpush.bf16.msrb.mxu2 %v8295_v11  ;;  %7378 = vmatpush.bf16.msrb.mxu3 %v8299_v12  ;;  %7683 = vst [vmem:[%s12635_s11 + $0x2d8] sm:$0xff] %v7121_v55  ;;  %v11439_v10 = vld [vmem:[%s12222_s5 + $0xbc4] sm:$0xf0]  ;;  %v11375_v11 = vld [vmem:[%s12222_s5 + $0x9cc] sm:$0xf] }
 0x384   : > { %v9336_v12 = vld [vmem:[%s12222_s5 + $0xbc8] sm:$0xf0]  ;;  %v9335_v24 = vor.u32 %v11439_v10, %v9334_v9  ;;  %v11376_v45 = vld [vmem:[%s12222_s5 + $0x9d4] sm:$0xf] }
 0x385   : > { %11032 = vmatmul.msk.bf16.vlgmr.msrb.gmra.mxu0 %vm5539_vm1, %v14098_v30  ;;  %11033 = vmatmul.msk.bf16.vlgmr.msrb.gmra.mxu1 %vm5539_vm1, %v14098_v30  ;;  %v9339_v25 = vor.u32 %v11375_v11, %v9336_v12  ;;  %v10879_v11 = vor.u32 %v11824_v63, %v10878_v62  ;;  %v10883_v12 = vor.u32 %v11760_v49, %v10880_v60  ;;  %v11248_v62 = vld [vmem:[%s12222_s5 + $0x5d4] sm:$0xf] }
 0x386   : > { %7385 = vmatpush.bf16.msra.mxu0 %v5881_v13  ;;  %7398 = vmatpush.bf16.msra.mxu1 %v5884_v14  ;;  %v1085_v13 = vld [vmem:[%s12222_s5 + $0x19d0] sm:$0x33]  ;;  %v1086_v14 = vld [vmem:[%s12222_s5 + $0x19d8] sm:$0x33] }
 0x387   : > { %7411 = vmatpush.bf16.msra.mxu2 %v5887_v2  ;;  %7424 = vmatpush.bf16.msra.mxu3 %v5890_v18  ;;  %v7109_v15 = vpop.f32.mrf.mxu2  ;;  %v7122_v17 = vpop.f32.mrf.mxu3  ;;  %v9327_v2 = vor.u32 %v11438_v3, %v9326_v52  ;;  %v9331_v18 = vor.u32 %v11374_v4, %v9328_v7  ;;  %v3863_v29 = vunpack.c.l.b16 %v1085_v13  ;;  %v3864_v16 = vunpack.c.h.b16 %v1085_v13  ;;  %v11761_v52 = vld [vmem:[%s12222_s5 + $0x15dc] sm:$0xf]  ;;  %v11696_v7 = vld [vmem:[%s12222_s5 + $0x13cc] sm:$0xf0]  ;;  %v11632_v13 = vld [vmem:[%s12222_s5 + $0x11d4] sm:$0xf] }
 0x388   : > { %11034 = vmatmul.msk.bf16.vlgmr.msrb.gmra.mxu2 %vm5539_vm1, %v14098_v30  ;;  %11035 = vmatmul.msk.bf16.vlgmr.msrb.gmra.mxu3 %vm5539_vm1, %v14098_v30  ;;  %v3865_v31 = vunpack.c.l.b16 %v1086_v14  ;;  %v3866_v19 = vunpack.c.h.b16 %v1086_v14  ;;  %v10888_v3 = vld [vmem:[%s12222_s5 + $0x17d8] sm:$0xf0]  ;;  %v10368_v14 = vld [vmem:[%s12222_s5 + $0x13d0] sm:$0xf0]  ;;  %v1217_v15 = vperm.slane %v14216_v8, 6  ;;  %v1218_v17 = vperm.slane %v14216_v8, 7 }
 0x389   : > { %v4760_v32 = vpack.c.b16 %v3864_v16, %v3864_v16  ;;  %v10371_v28 = vor.u32 %v11632_v13, %v10368_v14  ;;  %v11504_v16 = vld [vmem:[%s12222_s5 + $0xdd4] sm:$0xf] }
 0x38a   : > { %7386 = vmatpush.bf16.msra.mxu0 %v10863_v33  ;;  %7399 = vmatpush.bf16.msra.mxu1 %v10867_v34  ;;  %v8302_v33 = vld [vmem:[%s12222_s5 + $0x1c0] sm:$0xf]  ;;  %v4761_v48 = vpack.c.b16 %v3865_v31, %v3865_v31  ;;  %v10375_v31 = vor.u32 %v11697_v5, %v10374_v20  ;;  %v8832_v60 = vld [vmem:[%s12222_s5 + $0x7d0] sm:$0xf0]  ;;  %v11121_v20 = vld [vmem:[%s12222_s5 + $0x1dc] sm:$0xf] }
 0x38b   : > { %7412 = vmatpush.bf16.msra.mxu2 %v10871_v40  ;;  %7425 = vmatpush.bf16.msra.mxu3 %v10875_v41  ;;  %v11182_v34 = vld [vmem:[%s12222_s5 + $0x3bc] sm:$0xf0]  ;;  %v8304_v40 = vld [vmem:[%s12222_s5 + $0x3c0] sm:$0xf0]  ;;  %v8310_v41 = vld [vmem:[%s12222_s5 + $0x1c8] sm:$0xf] }
 0x38c   : > { %v8303_v35 = vor.u32 %v11182_v34, %v8302_v33  ;;  %v8307_v51 = vor.u32 %v11118_v39, %v8304_v40  ;;  %v8311_v54 = vor.u32 %v11183_v43, %v8310_v41  ;;  %v5899_v61 = vsel %vm5543_vm0, %v4761_v48, 0  ;;  %v9862_v33 = vld [vmem:[%s12222_s5 + $0xdd8] sm:$0xf]  ;;  %v11440_v43 = vld [vmem:[%s12222_s5 + $0xbcc] sm:$0xf0] }
 0x38d   : > { %v11569_v34 = vld [vmem:[%s12222_s5 + $0xfd4] sm:$0xf0]  ;;  %v11120_v14 = vld [vmem:[%s12222_s5 + $0x1d4] sm:$0xf]  ;;  %v8328_v5 = vld [vmem:[%s12222_s5 + $0x3d8] sm:$0xf0] }
 0x38e   : > { %7387 = vmatpush.bf16.msra.mxu0 %v10351_v47  ;;  %7400 = vmatpush.bf16.msra.mxu1 %v10355_v50  ;;  %v4759_v47 = vpack.c.b16 %v3863_v29, %v3863_v29  ;;  %v4762_v50 = vpack.c.b16 %v3866_v19, %v3866_v19  ;;  %v11568_v29 = vld [vmem:[%s12222_s5 + $0xfcc] sm:$0xf0]  ;;  %v9863_v46 = vor.u32 %v11569_v34, %v9862_v33  ;;  %v9350_v48 = vld [vmem:[%s12222_s5 + $0x9d8] sm:$0xf]  ;;  %v10894_v34 = vld [vmem:[%s12222_s5 + $0x15e0] sm:$0xf] }
 0x38f   : > { %7413 = vmatpush.bf16.msra.mxu2 %v10359_v58  ;;  %7426 = vmatpush.bf16.msra.mxu3 %v10363_v53  ;;  %v5896_v58 = vsel %vm5543_vm0, %v4760_v32, 0  ;;  %v1215_v53 = vperm.slane %v14216_v8, 4  ;;  %v9855_v40 = vor.u32 %v11568_v29, %v9854_v23  ;;  %v9344_v32 = vld [vmem:[%s12222_s5 + $0xbd0] sm:$0xf0] }
 0x390   : > { %v5893_v55 = vsel %vm5543_vm0, %v4759_v47, 0  ;;  %v5902_v57 = vsel %vm5543_vm0, %v4762_v50, 0  ;;  %v11441_v50 = vld [vmem:[%s12222_s5 + $0xbd4] sm:$0xf0] }
 0x391   : > { %v9351_v63 = vor.u32 %v11441_v50, %v9350_v48 }
 0x392   : > { %7388 = vmatpush.bf16.msra.mxu0 %v9839_v0  ;;  %7401 = vmatpush.bf16.msra.mxu1 %v9843_v1  ;;  %v10886_v0 = vld [vmem:[%s12222_s5 + $0x15d8] sm:$0xf]  ;;  %v7133_v4 = vpop.f32.mrf.mxu0 }
 0x393   : > { %7414 = vmatpush.bf16.msra.mxu2 %v9847_v56  ;;  %7427 = vmatpush.bf16.msra.mxu3 %v9851_v6  ;;  %v11825_v1 = vld [vmem:[%s12222_s5 + $0x17d4] sm:$0xf0]  ;;  %v7146_v56 = vpop.f32.mrf.mxu1  ;;  %v10366_v6 = vld [vmem:[%s12222_s5 + $0x11d0] sm:$0xf]  ;;  %v7134_v9 = vadd.f32 %v7133_v4, %v1215_v53  ;;  %v11249_v4 = vld [vmem:[%s12222_s5 + $0x5dc] sm:$0xf] }
 0x394   : > { %v7147_v10 = vadd.f32 %v7146_v56, %v1216_v59  ;;  %v10367_v8 = vor.u32 %v11696_v7, %v10366_v6  ;;  %v9347_v59 = vor.u32 %v11376_v45, %v9344_v32  ;;  %v8840_v56 = vld [vmem:[%s12222_s5 + $0x7d8] sm:$0xf0] }
 0x395   : > { %7684 = vst [vmem:[%s12635_s11 + $0x2e0] sm:$0xff] %v7134_v9  ;;  %v8318_v9 = vld [vmem:[%s12222_s5 + $0x1d0] sm:$0xf] }
 0x396   : > { %7389 = vmatpush.bf16.msra.mxu0 %v9327_v2  ;;  %7402 = vmatpush.bf16.msra.mxu1 %v9331_v18  ;;  %v10887_v2 = vor.u32 %v11825_v1, %v10886_v0  ;;  %v10891_v18 = vor.u32 %v11761_v52, %v10888_v3  ;;  %7685 = vst [vmem:[%s12635_s11 + $0x2e8] sm:$0xff] %v7147_v10  ;;  %v8838_v0 = vld [vmem:[%s12222_s5 + $0x5d8] sm:$0xf]  ;;  %v11184_v10 = vld [vmem:[%s12222_s5 + $0x3cc] sm:$0xf0] }
 0x397   : > { %7415 = vmatpush.bf16.msra.mxu2 %v9335_v24  ;;  %7428 = vmatpush.bf16.msra.mxu3 %v9339_v25  ;;  %v10376_v24 = vld [vmem:[%s12222_s5 + $0x13d8] sm:$0xf0]  ;;  %v11313_v1 = vld [vmem:[%s12222_s5 + $0x7d4] sm:$0xf0] }
 0x398   : > { %v10379_v19 = vor.u32 %v11633_v21, %v10376_v24  ;;  %v8839_v13 = vor.u32 %v11313_v1, %v8838_v0 }
 0x39a   : > { %7390 = vmatpush.bf16.msra.mxu0 %v8815_v22  ;;  %7403 = vmatpush.bf16.msra.mxu1 %v8819_v36  ;;  %v11505_v22 = vld [vmem:[%s12222_s5 + $0xddc] sm:$0xf] }
 0x39b   : > { %7416 = vmatpush.bf16.msra.mxu2 %v8823_v37  ;;  %7429 = vmatpush.bf16.msra.mxu3 %v8827_v42  ;;  %v7159_v25 = vpop.f32.mrf.mxu2  ;;  %v7172_v26 = vpop.f32.mrf.mxu3  ;;  %v9864_v36 = vld [vmem:[%s12222_s5 + $0xfd8] sm:$0xf0]  ;;  %v9342_v42 = vld [vmem:[%s12222_s5 + $0x9d0] sm:$0xf] }
 0x39c   : > { %v7160_v27 = vadd.f32 %v7159_v25, %v1217_v15  ;;  %v7173_v44 = vadd.f32 %v7172_v26, %v1218_v17  ;;  %v7135_v37 = vpop.f32.mrf.mxu0  ;;  %v7148_v39 = vpop.f32.mrf.mxu1  ;;  %v9867_v47 = vor.u32 %v11505_v22, %v9864_v36  ;;  %v9343_v53 = vor.u32 %v11440_v43, %v9342_v42  ;;  %v8320_v15 = vld [vmem:[%s12222_s5 + $0x3d0] sm:$0xf0]  ;;  %v8326_v17 = vld [vmem:[%s12222_s5 + $0x1d8] sm:$0xf]  ;;  %v14359_v26 = vld [vmem:[%s12230_s26 + $0x60] sm:$0xff] }
 0x39d   : > { %v8323_v23 = vor.u32 %v11120_v14, %v8320_v15  ;;  %v11826_v22 = vld [vmem:[%s12222_s5 + $0x17dc] sm:$0xf0]  ;;  %v11762_v36 = vld [vmem:[%s12222_s5 + $0x15e4] sm:$0xf]  ;;  %v10902_v39 = vld [vmem:[%s12222_s5 + $0x15e8] sm:$0xf] }
 0x39e   : > { %7391 = vmatpush.bf16.msra.mxu0 %v8303_v35  ;;  %7404 = vmatpush.bf16.msra.mxu1 %v8307_v51  ;;  %7686 = vst [vmem:[%s12635_s11 + $0x2f0] sm:$0xff] %v7160_v27  ;;  %v11377_v35 = vld [vmem:[%s12222_s5 + $0x9dc] sm:$0xf]  ;;  %v10896_v37 = vld [vmem:[%s12222_s5 + $0x17e0] sm:$0xf0]  ;;  %v10895_v50 = vor.u32 %v11826_v22, %v10894_v34 }
 0x39f   : > { %7417 = vmatpush.bf16.msra.mxu2 %v8311_v54  ;;  %7430 = vmatpush.bf16.msra.mxu3 %v8315_v38  ;;  %7687 = vst [vmem:[%s12635_s11 + $0x2f8] sm:$0xff] %v7173_v44  ;;  %v9352_v51 = vld [vmem:[%s12222_s5 + $0xbd8] sm:$0xf0]  ;;  %v1087_v54 = vld [vmem:[%s12222_s5 + $0x19e0] sm:$0x33] }
 0x3a0   : > { %v1088_v38 = vld [vmem:[%s12222_s5 + $0x19e8] sm:$0x33]  ;;  %v9355_v49 = vor.u32 %v11377_v35, %v9352_v51  ;;  %v3867_v52 = vunpack.c.l.b16 %v1087_v54  ;;  %v3868_v3 = vunpack.c.h.b16 %v1087_v54  ;;  %v10899_v35 = vor.u32 %v11762_v36, %v10896_v37  ;;  %v11634_v51 = vld [vmem:[%s12222_s5 + $0x11e4] sm:$0xf]  ;;  %v8846_v34 = vld [vmem:[%s12222_s5 + $0x5e0] sm:$0xf] }
 0x3a1   : > { %11036 = vmatmul.msk.bf16.vlgmr.msra.gmra.mxu0 %vm5539_vm1, %v14098_v30  ;;  %11037 = vmatmul.msk.bf16.vlgmr.msra.gmra.mxu1 %vm5539_vm1, %v14098_v30  ;;  %v3869_v6 = vunpack.c.l.b16 %v1088_v38  ;;  %v3870_v7 = vunpack.c.h.b16 %v1088_v38  ;;  %v10904_v42 = vld [vmem:[%s12222_s5 + $0x17e8] sm:$0xf0]  ;;  %v10384_v54 = vld [vmem:[%s12222_s5 + $0x13e0] sm:$0xf0]  ;;  %v1221_v38 = vperm.slane %v14359_v26, 2 }
 0x3a2   : > { %7437 = vmatpush.bf16.msrb.mxu0 %v5893_v55  ;;  %7450 = vmatpush.bf16.msrb.mxu1 %v5896_v58  ;;  %v4763_v21 = vpack.c.b16 %v3867_v52, %v3867_v52  ;;  %v4764_v24 = vpack.c.b16 %v3868_v3, %v3868_v3  ;;  %v10387_v1 = vor.u32 %v11634_v51, %v10384_v54  ;;  %v9870_v52 = vld [vmem:[%s12222_s5 + $0xde0] sm:$0xf]  ;;  %v9880_v14 = vld [vmem:[%s12222_s5 + $0xfe8] sm:$0xf0]  ;;  %v11250_v36 = vld [vmem:[%s12222_s5 + $0x5e4] sm:$0xf] }
 0x3a3   : > { %7463 = vmatpush.bf16.msrb.mxu2 %v5899_v61  ;;  %7476 = vmatpush.bf16.msrb.mxu3 %v5902_v57  ;;  %v7161_v55 = vpop.f32.mrf.mxu2  ;;  %v7174_v58 = vpop.f32.mrf.mxu3  ;;  %v8830_v61 = vld [vmem:[%s12222_s5 + $0x5d0] sm:$0xf]  ;;  %v4766_v25 = vpack.c.b16 %v3870_v7, %v3870_v7  ;;  %v11570_v3 = vld [vmem:[%s12222_s5 + $0xfdc] sm:$0xf0] }
 0x3a4   : > { %11038 = vmatmul.msk.bf16.vlgmr.msra.gmra.mxu2 %vm5539_vm1, %v14098_v30  ;;  %11039 = vmatmul.msk.bf16.vlgmr.msra.gmra.mxu3 %vm5539_vm1, %v14098_v30  ;;  %v9856_v30 = vld [vmem:[%s12222_s5 + $0xfd0] sm:$0xf0]  ;;  %v11312_v57 = vld [vmem:[%s12222_s5 + $0x7cc] sm:$0xf0]  ;;  %v5905_v27 = vsel %vm5543_vm0, %v4763_v21, 0  ;;  %v5908_v44 = vsel %vm5543_vm0, %v4764_v24, 0 }
 0x3a5   : > { %v9859_v41 = vor.u32 %v11504_v16, %v9856_v30  ;;  %v8331_v16 = vor.u32 %v11121_v20, %v8328_v5  ;;  %v5914_v33 = vsel %vm5543_vm0, %v4766_v25, 0  ;;  %v1222_v55 = vperm.slane %v14359_v26, 3  ;;  %v9358_v20 = vld [vmem:[%s12222_s5 + $0x9e0] sm:$0xf]  ;;  %v11378_v21 = vld [vmem:[%s12222_s5 + $0x9e4] sm:$0xf] }
 0x3a6   : > { %7438 = vmatpush.bf16.msrb.mxu0 %v10879_v11  ;;  %7451 = vmatpush.bf16.msrb.mxu1 %v10883_v12  ;;  %v8831_v11 = vor.u32 %v11312_v57, %v8830_v61  ;;  %v8835_v12 = vor.u32 %v11248_v62, %v8832_v60  ;;  %v11699_v61 = vld [vmem:[%s12222_s5 + $0x13e4] sm:$0xf0]  ;;  %v11635_v57 = vld [vmem:[%s12222_s5 + $0x11ec] sm:$0xf]  ;;  %v11442_v5 = vld [vmem:[%s12222_s5 + $0xbdc] sm:$0xf0] }
 0x3a7   : > { %7464 = vmatpush.bf16.msrb.mxu2 %v10887_v2  ;;  %7477 = vmatpush.bf16.msrb.mxu3 %v10891_v18  ;;  %v8843_v2 = vor.u32 %v11249_v4, %v8840_v56  ;;  %v11185_v18 = vld [vmem:[%s12222_s5 + $0x3d4] sm:$0xf0]  ;;  %v10392_v62 = vld [vmem:[%s12222_s5 + $0x13e8] sm:$0xf0]  ;;  %v11506_v4 = vld [vmem:[%s12222_s5 + $0xde4] sm:$0xf] }
 0x3a8   : > { %v8327_v29 = vor.u32 %v11185_v18, %v8326_v17  ;;  %v9360_v25 = vld [vmem:[%s12222_s5 + $0xbe0] sm:$0xf0]  ;;  %v11314_v22 = vld [vmem:[%s12222_s5 + $0x7dc] sm:$0xf0] }
 0x3a9   : > { %v8847_v51 = vor.u32 %v11314_v22, %v8846_v34  ;;  %v10406_v34 = vld [vmem:[%s12222_s5 + $0x11f8] sm:$0xf] }
 0x3aa   : > { %7439 = vmatpush.bf16.msrb.mxu0 %v10367_v8  ;;  %7452 = vmatpush.bf16.msrb.mxu1 %v10371_v28  ;;  %v4765_v8 = vpack.c.b16 %v3869_v6, %v3869_v6  ;;  %v8319_v28 = vor.u32 %v11184_v10, %v8318_v9  ;;  %v10395_v9 = vor.u32 %v11635_v57, %v10392_v62  ;;  %v9872_v10 = vld [vmem:[%s12222_s5 + $0xfe0] sm:$0xf0]  ;;  %v11123_v57 = vld [vmem:[%s12222_s5 + $0x1ec] sm:$0xf]  ;;  %v11701_v22 = vld [vmem:[%s12222_s5 + $0x13f4] sm:$0xf0] }
 0x3ab   : > { %7465 = vmatpush.bf16.msrb.mxu2 %v10375_v31  ;;  %7478 = vmatpush.bf16.msrb.mxu3 %v10379_v19  ;;  %v1219_v31 = vperm.slane %v14359_v26, 0  ;;  %v1220_v19 = vperm.slane %v14359_v26, 1  ;;  %v9875_v18 = vor.u32 %v11506_v4, %v9872_v10  ;;  %v8344_v62 = vld [vmem:[%s12222_s5 + $0x3e8] sm:$0xf0]  ;;  %v1224_v10 = vperm.slane %v14359_v26, 5 }
 0x3ac   : > { %v5911_v30 = vsel %vm5543_vm0, %v4765_v8, 0 }
 0x3ae   : > { %7440 = vmatpush.bf16.msrb.mxu0 %v9855_v40  ;;  %7453 = vmatpush.bf16.msrb.mxu1 %v9859_v41  ;;  %v11827_v40 = vld [vmem:[%s12222_s5 + $0x17e4] sm:$0xf0]  ;;  %v11763_v41 = vld [vmem:[%s12222_s5 + $0x15ec] sm:$0xf]  ;;  %v7185_v43 = vpop.f32.mrf.mxu0  ;;  %v7198_v45 = vpop.f32.mrf.mxu1 }
 0x3af   : > { %7466 = vmatpush.bf16.msrb.mxu2 %v9863_v46  ;;  %7479 = vmatpush.bf16.msrb.mxu3 %v9867_v47  ;;  %v10382_v46 = vld [vmem:[%s12222_s5 + $0x11e0] sm:$0xf]  ;;  %v7186_v32 = vadd.f32 %v7185_v43, %v1219_v31  ;;  %v7199_v48 = vadd.f32 %v7198_v45, %v1220_v19  ;;  %v10903_v58 = vor.u32 %v11827_v40, %v10902_v39  ;;  %v8848_v40 = vld [vmem:[%s12222_s5 + $0x7e0] sm:$0xf0] }
 0x3b0   : > { %v11698_v47 = vld [vmem:[%s12222_s5 + $0x13dc] sm:$0xf0]  ;;  %v8851_v54 = vor.u32 %v11250_v36, %v8848_v40  ;;  %v11637_v36 = vld [vmem:[%s12222_s5 + $0x11fc] sm:$0xf] }
 0x3b1   : > { %7688 = vst [vmem:[%s12635_s11 + $0x300] sm:$0xff] %v7186_v32 }
 0x3b2   : > { %7441 = vmatpush.bf16.msrb.mxu0 %v9343_v53  ;;  %7454 = vmatpush.bf16.msrb.mxu1 %v9347_v59  ;;  %v10907_v53 = vor.u32 %v11763_v41, %v10904_v42  ;;  %v10390_v59 = vld [vmem:[%s12222_s5 + $0x11e8] sm:$0xf]  ;;  %7689 = vst [vmem:[%s12635_s11 + $0x308] sm:$0xff] %v7199_v48 }
 0x3b3   : > { %7467 = vmatpush.bf16.msrb.mxu2 %v9351_v63  ;;  %7480 = vmatpush.bf16.msrb.mxu3 %v9355_v49  ;;  %v14389_v63 = vld [vmem:[%s14593_s0] sm:$0xf]  ;;  %v10383_v49 = vor.u32 %v11698_v47, %v10382_v46  ;;  %v10391_v7 = vor.u32 %v11699_v61, %v10390_v59  ;;  %v8854_v41 = vld [vmem:[%s12222_s5 + $0x5e8] sm:$0xf]  ;;  %v11251_v46 = vld [vmem:[%s12222_s5 + $0x5ec] sm:$0xf] }
 0x3b4   : > { %v11315_v42 = vld [vmem:[%s12222_s5 + $0x7e4] sm:$0xf0]  ;;  %v8856_v47 = vld [vmem:[%s12222_s5 + $0x7e8] sm:$0xf0] }
 0x3b5   : > { %v8859_v59 = vor.u32 %v11251_v46, %v8856_v47  ;;  %v11187_v61 = vld [vmem:[%s12222_s5 + $0x3e4] sm:$0xf0] }
 0x3b6   : > { %7442 = vmatpush.bf16.msrb.mxu0 %v8831_v11  ;;  %7455 = vmatpush.bf16.msrb.mxu1 %v8835_v12  ;;  %v9878_v11 = vld [vmem:[%s12222_s5 + $0xde8] sm:$0xf]  ;;  %v7187_v15 = vpop.f32.mrf.mxu0  ;;  %v7200_v17 = vpop.f32.mrf.mxu1 }
 0x3b7   : > { %7468 = vmatpush.bf16.msrb.mxu2 %v8839_v13  ;;  %7481 = vmatpush.bf16.msrb.mxu3 %v8843_v2  ;;  %v7211_v60 = vpop.f32.mrf.mxu2  ;;  %v7224_v0 = vpop.f32.mrf.mxu3  ;;  %v11571_v12 = vld [vmem:[%s12222_s5 + $0xfe4] sm:$0xf0]  ;;  %v11507_v13 = vld [vmem:[%s12222_s5 + $0xdec] sm:$0xf]  ;;  %v9871_v2 = vor.u32 %v11570_v3, %v9870_v52  ;;  %v11764_v15 = vld [vmem:[%s12222_s5 + $0x15f4] sm:$0xf] }
 0x3b8   : > { %v7212_v56 = vadd.f32 %v7211_v60, %v1221_v38  ;;  %v7225_v6 = vadd.f32 %v7224_v0, %v1222_v55  ;;  %v9879_v24 = vor.u32 %v11571_v12, %v9878_v11  ;;  %v9883_v8 = vor.u32 %v11507_v13, %v9880_v14  ;;  %v11122_v55 = vld [vmem:[%s12222_s5 + $0x1e4] sm:$0xf]  ;;  %v10910_v13 = vld [vmem:[%s12222_s5 + $0x15f0] sm:$0xf]  ;;  %v10912_v17 = vld [vmem:[%s12222_s5 + $0x17f0] sm:$0xf0] }
 0x3b9   : > { %v8855_v38 = vor.u32 %v11315_v42, %v8854_v41  ;;  %v11828_v14 = vld [vmem:[%s12222_s5 + $0x17ec] sm:$0xf0] }
 0x3ba   : > { %7443 = vmatpush.bf16.msrb.mxu0 %v8319_v28  ;;  %7456 = vmatpush.bf16.msrb.mxu1 %v8323_v23  ;;  %7690 = vst [vmem:[%s12635_s11 + $0x310] sm:$0xff] %v7212_v56  ;;  %v9366_v28 = vld [vmem:[%s12222_s5 + $0x9e8] sm:$0xf]  ;;  %v8347_v56 = vor.u32 %v11123_v57, %v8344_v62  ;;  %v9886_v42 = vld [vmem:[%s12222_s5 + $0xdf0] sm:$0xf] }
 0x3bb   : > { %7469 = vmatpush.bf16.msrb.mxu2 %v8327_v29  ;;  %7482 = vmatpush.bf16.msrb.mxu3 %v8331_v16  ;;  %7691 = vst [vmem:[%s12635_s11 + $0x318] sm:$0xff] %v7225_v6  ;;  %v11443_v23 = vld [vmem:[%s12222_s5 + $0xbe4] sm:$0xf0]  ;;  %v11379_v29 = vld [vmem:[%s12222_s5 + $0x9ec] sm:$0xf] }
 0x3bc   : > { %v9368_v16 = vld [vmem:[%s12222_s5 + $0xbe8] sm:$0xf0]  ;;  %v9367_v37 = vor.u32 %v11443_v23, %v9366_v28  ;;  %v11444_v57 = vld [vmem:[%s12222_s5 + $0xbec] sm:$0xf0] }
 0x3bd   : > { %11040 = vmatmul.msk.bf16.vlgmr.msrb.gmra.mxu0 %vm5539_vm1, %v14389_v63  ;;  %11041 = vmatmul.msk.bf16.vlgmr.msrb.gmra.mxu1 %vm5539_vm1, %v14389_v63  ;;  %v9371_v39 = vor.u32 %v11379_v29, %v9368_v16  ;;  %v10911_v29 = vor.u32 %v11828_v14, %v10910_v13  ;;  %v10915_v16 = vor.u32 %v11764_v15, %v10912_v17  ;;  %v11252_v14 = vld [vmem:[%s12222_s5 + $0x5f4] sm:$0xf]  ;;  %v8870_v17 = vld [vmem:[%s12222_s5 + $0x5f8] sm:$0xf] }
 0x3be   : > { %7489 = vmatpush.bf16.msra.mxu0 %v5905_v27  ;;  %7502 = vmatpush.bf16.msra.mxu1 %v5908_v44  ;;  %v1089_v27 = vld [vmem:[%s12222_s5 + $0x19f0] sm:$0x33]  ;;  %v1090_v44 = vld [vmem:[%s12222_s5 + $0x19f8] sm:$0x33] }
 0x3bf   : > { %7515 = vmatpush.bf16.msra.mxu2 %v5911_v30  ;;  %7528 = vmatpush.bf16.msra.mxu3 %v5914_v33  ;;  %v7213_v31 = vpop.f32.mrf.mxu2  ;;  %v7226_v19 = vpop.f32.mrf.mxu3  ;;  %v9359_v30 = vor.u32 %v11442_v5, %v9358_v20  ;;  %v9363_v33 = vor.u32 %v11378_v21, %v9360_v25  ;;  %v3871_v43 = vunpack.c.l.b16 %v1089_v27  ;;  %v3872_v45 = vunpack.c.h.b16 %v1089_v27  ;;  %v11765_v20 = vld [vmem:[%s12222_s5 + $0x15fc] sm:$0xf]  ;;  %v11700_v25 = vld [vmem:[%s12222_s5 + $0x13ec] sm:$0xf0]  ;;  %v11636_v27 = vld [vmem:[%s12222_s5 + $0x11f4] sm:$0xf] }
 0x3c0   : > { %11042 = vmatmul.msk.bf16.vlgmr.msrb.gmra.mxu2 %vm5539_vm1, %v14389_v63  ;;  %11043 = vmatmul.msk.bf16.vlgmr.msrb.gmra.mxu3 %vm5539_vm1, %v14389_v63  ;;  %v3873_v32 = vunpack.c.l.b16 %v1090_v44  ;;  %v3874_v48 = vunpack.c.h.b16 %v1090_v44  ;;  %v10920_v5 = vld [vmem:[%s12222_s5 + $0x17f8] sm:$0xf0]  ;;  %v10400_v44 = vld [vmem:[%s12222_s5 + $0x13f0] sm:$0xf0]  ;;  %v1225_v31 = vperm.slane %v14359_v26, 6  ;;  %v1226_v19 = vperm.slane %v14359_v26, 7 }
 0x3c1   : > { %v4768_v60 = vpack.c.b16 %v3872_v45, %v3872_v45  ;;  %v10403_v41 = vor.u32 %v11636_v27, %v10400_v44  ;;  %v11508_v45 = vld [vmem:[%s12222_s5 + $0xdf4] sm:$0xf]  ;;  %v11189_v27 = vld [vmem:[%s12222_s5 + $0x3f4] sm:$0xf0]  ;;  %v11125_v44 = vld [vmem:[%s12222_s5 + $0x1fc] sm:$0xf] }
 0x3c2   : > { %7490 = vmatpush.bf16.msra.mxu0 %v10895_v50  ;;  %7503 = vmatpush.bf16.msra.mxu1 %v10899_v35  ;;  %v8334_v50 = vld [vmem:[%s12222_s5 + $0x1e0] sm:$0xf]  ;;  %v4769_v0 = vpack.c.b16 %v3873_v32, %v3873_v32  ;;  %v10407_v32 = vor.u32 %v11701_v22, %v10406_v34  ;;  %v8864_v15 = vld [vmem:[%s12222_s5 + $0x7f0] sm:$0xf0] }
 0x3c3   : > { %7516 = vmatpush.bf16.msra.mxu2 %v10903_v58  ;;  %7529 = vmatpush.bf16.msra.mxu3 %v10907_v53  ;;  %v11186_v35 = vld [vmem:[%s12222_s5 + $0x3dc] sm:$0xf0]  ;;  %v8336_v58 = vld [vmem:[%s12222_s5 + $0x3e0] sm:$0xf0]  ;;  %v8342_v53 = vld [vmem:[%s12222_s5 + $0x1e8] sm:$0xf] }
 0x3c4   : > { %v8335_v52 = vor.u32 %v11186_v35, %v8334_v50  ;;  %v8339_v3 = vor.u32 %v11122_v55, %v8336_v58  ;;  %v8343_v4 = vor.u32 %v11187_v61, %v8342_v53  ;;  %v5923_v11 = vsel %vm5543_vm0, %v4769_v0, 0  ;;  %v9888_v50 = vld [vmem:[%s12222_s5 + $0xff0] sm:$0xf0]  ;;  %v9894_v35 = vld [vmem:[%s12222_s5 + $0xdf8] sm:$0xf] }
 0x3c5   : > { %v9374_v61 = vld [vmem:[%s12222_s5 + $0x9f0] sm:$0xf]  ;;  %v9376_v0 = vld [vmem:[%s12222_s5 + $0xbf0] sm:$0xf0] }
 0x3c6   : > { %7491 = vmatpush.bf16.msra.mxu0 %v10383_v49  ;;  %7504 = vmatpush.bf16.msra.mxu1 %v10387_v1  ;;  %v4767_v49 = vpack.c.b16 %v3871_v43, %v3871_v43  ;;  %v4770_v1 = vpack.c.b16 %v3874_v48, %v3874_v48  ;;  %v11572_v43 = vld [vmem:[%s12222_s5 + $0xfec] sm:$0xf0] }
 0x3c7   : > { %7517 = vmatpush.bf16.msra.mxu2 %v10391_v7  ;;  %7530 = vmatpush.bf16.msra.mxu3 %v10395_v9  ;;  %v5920_v7 = vsel %vm5543_vm0, %v4768_v60, 0  ;;  %v1223_v9 = vperm.slane %v14359_v26, 4  ;;  %v9887_v53 = vor.u32 %v11572_v43, %v9886_v42  ;;  %v11380_v60 = vld [vmem:[%s12222_s5 + $0x9f4] sm:$0xf] }
 0x3c8   : > { %v5917_v6 = vsel %vm5543_vm0, %v4767_v49, 0  ;;  %v5926_v12 = vsel %vm5543_vm0, %v4770_v1, 0  ;;  %v9382_v1 = vld [vmem:[%s12222_s5 + $0x9f8] sm:$0xf] }
 0x3ca   : > { %7492 = vmatpush.bf16.msra.mxu0 %v9871_v2  ;;  %7505 = vmatpush.bf16.msra.mxu1 %v9875_v18  ;;  %v10918_v2 = vld [vmem:[%s12222_s5 + $0x15f8] sm:$0xf]  ;;  %v7237_v21 = vpop.f32.mrf.mxu0 }
 0x3cb   : > { %7518 = vmatpush.bf16.msra.mxu2 %v9879_v24  ;;  %7531 = vmatpush.bf16.msra.mxu3 %v9883_v8  ;;  %v11829_v18 = vld [vmem:[%s12222_s5 + $0x17f4] sm:$0xf0]  ;;  %v7250_v24 = vpop.f32.mrf.mxu1  ;;  %v10398_v8 = vld [vmem:[%s12222_s5 + $0x11f0] sm:$0xf]  ;;  %v7238_v28 = vadd.f32 %v7237_v21, %v1223_v9  ;;  %v9379_v9 = vor.u32 %v11380_v60, %v9376_v0  ;;  %v8867_v21 = vor.u32 %v11252_v14, %v8864_v15 }
 0x3cc   : > { %v7251_v23 = vadd.f32 %v7250_v24, %v1224_v10  ;;  %v10399_v26 = vor.u32 %v11700_v25, %v10398_v8  ;;  %v8862_v10 = vld [vmem:[%s12222_s5 + $0x5f0] sm:$0xf]  ;;  %v11124_v25 = vld [vmem:[%s12222_s5 + $0x1f4] sm:$0xf] }
 0x3cd   : > { %7692 = vst [vmem:[%s12635_s11 + $0x320] sm:$0xff] %v7238_v28  ;;  %v8350_v24 = vld [vmem:[%s12222_s5 + $0x1f0] sm:$0xf] }
 0x3ce   : > { %7493 = vmatpush.bf16.msra.mxu0 %v9359_v30  ;;  %7506 = vmatpush.bf16.msra.mxu1 %v9363_v33  ;;  %v10919_v30 = vor.u32 %v11829_v18, %v10918_v2  ;;  %v10923_v33 = vor.u32 %v11765_v20, %v10920_v5  ;;  %7693 = vst [vmem:[%s12635_s11 + $0x328] sm:$0xff] %v7251_v23  ;;  %v11317_v2 = vld [vmem:[%s12222_s5 + $0x7f4] sm:$0xf0]  ;;  %v11253_v18 = vld [vmem:[%s12222_s5 + $0x5fc] sm:$0xf] }
 0x3cf   : > { %7519 = vmatpush.bf16.msra.mxu2 %v9367_v37  ;;  %7532 = vmatpush.bf16.msra.mxu3 %v9371_v39  ;;  %v10408_v37 = vld [vmem:[%s12222_s5 + $0x13f8] sm:$0xf0]  ;;  %v11188_v8 = vld [vmem:[%s12222_s5 + $0x3ec] sm:$0xf0]  ;;  %v8871_v28 = vor.u32 %v11317_v2, %v8870_v17 }
 0x3d0   : > { %v10411_v48 = vor.u32 %v11637_v36, %v10408_v37  ;;  %v8872_v20 = vld [vmem:[%s12222_s5 + $0x7f8] sm:$0xf0] }
 0x3d1   : > { %v8875_v23 = vor.u32 %v11253_v18, %v8872_v20 }
 0x3d2   : > { %7494 = vmatpush.bf16.msra.mxu0 %v8847_v51  ;;  %7507 = vmatpush.bf16.msra.mxu1 %v8851_v54  ;;  %v11573_v51 = vld [vmem:[%s12222_s5 + $0xff4] sm:$0xf0]  ;;  %v11509_v54 = vld [vmem:[%s12222_s5 + $0xdfc] sm:$0xf]  ;;  %v7239_v55 = vpop.f32.mrf.mxu0 }
 0x3d3   : > { %7520 = vmatpush.bf16.msra.mxu2 %v8855_v38  ;;  %7533 = vmatpush.bf16.msra.mxu3 %v8859_v59  ;;  %v7263_v39 = vpop.f32.mrf.mxu2  ;;  %v7276_v40 = vpop.f32.mrf.mxu3  ;;  %v9896_v38 = vld [vmem:[%s12222_s5 + $0xff8] sm:$0xf0]  ;;  %v9891_v59 = vor.u32 %v11508_v45, %v9888_v50  ;;  %v9895_v62 = vor.u32 %v11573_v51, %v9894_v35 }
 0x3d4   : > { %v7264_v46 = vadd.f32 %v7263_v39, %v1225_v31  ;;  %v7277_v47 = vadd.f32 %v7276_v40, %v1226_v19  ;;  %v7252_v58 = vpop.f32.mrf.mxu1  ;;  %v9899_v49 = vor.u32 %v11509_v54, %v9896_v38  ;;  %v8360_v31 = vld [vmem:[%s12222_s5 + $0x3f8] sm:$0xf0]  ;;  %v1104_v19 = vld [vmem:[%s12230_s26 + $0x68] sm:$0xff] }
 0x3d5   : > { %v8363_v22 = vor.u32 %v11125_v44, %v8360_v31  ;;  %v1227_v36 = vperm.slane %v1104_v19, 0  ;;  %v1228_v37 = vperm.slane %v1104_v19, 1  ;;  %v1229_v42 = vperm.slane %v1104_v19, 2 }
 0x3d6   : > { %7495 = vmatpush.bf16.msra.mxu0 %v8335_v52  ;;  %7508 = vmatpush.bf16.msra.mxu1 %v8339_v3  ;;  %7694 = vst [vmem:[%s12635_s11 + $0x330] sm:$0xff] %v7264_v46  ;;  %v11445_v52 = vld [vmem:[%s12222_s5 + $0xbf4] sm:$0xf0]  ;;  %v11381_v3 = vld [vmem:[%s12222_s5 + $0x9fc] sm:$0xf]  ;;  %v1230_v43 = vperm.slane %v1104_v19, 3 }
 0x3d7   : > { %7521 = vmatpush.bf16.msra.mxu2 %v8343_v4  ;;  %7534 = vmatpush.bf16.msra.mxu3 %v8347_v56  ;;  %7695 = vst [vmem:[%s12635_s11 + $0x338] sm:$0xff] %v7277_v47  ;;  %v9384_v4 = vld [vmem:[%s12222_s5 + $0xbf8] sm:$0xf0]  ;;  %v1231_v54 = vperm.slane %v1104_v19, 4  ;;  %v1232_v38 = vperm.slane %v1104_v19, 5 }
 0x3d8   : > { %v9387_v13 = vor.u32 %v11381_v3, %v9384_v4  ;;  %v1105_v4 = vld [vmem:[%s12230_s26 + $0x70] sm:$0xff] }
 0x3d9   : > { %11044 = vmatmul.msk.bf16.vlgmr.msra.gmra.mxu0 %vm5539_vm1, %v14389_v63  ;;  %11045 = vmatmul.msk.bf16.vlgmr.msra.gmra.mxu1 %vm5539_vm1, %v14389_v63 }
 0x3da   : > { %7541 = vmatpush.bf16.msrb.mxu0 %v5917_v6  ;;  %7554 = vmatpush.bf16.msrb.mxu1 %v5920_v7  ;;  %v9375_v7 = vor.u32 %v11444_v57, %v9374_v61  ;;  %v1234_v61 = vperm.slane %v1104_v19, 7 }
 0x3db   : > { %7567 = vmatpush.bf16.msrb.mxu2 %v5923_v11  ;;  %7580 = vmatpush.bf16.msrb.mxu3 %v5926_v12  ;;  %v7265_v56 = vpop.f32.mrf.mxu2  ;;  %v7278_v6 = vpop.f32.mrf.mxu3  ;;  %v11316_v11 = vld [vmem:[%s12222_s5 + $0x7ec] sm:$0xf0]  ;;  %v9383_v12 = vor.u32 %v11445_v52, %v9382_v1 }
 0x3dc   : > { %11046 = vmatmul.msk.bf16.vlgmr.msra.gmra.mxu2 %vm5539_vm1, %v14389_v63  ;;  %11047 = vmatmul.msk.bf16.vlgmr.msra.gmra.mxu3 %vm5539_vm1, %v14389_v63  ;;  %v8863_v5 = vor.u32 %v11316_v11, %v8862_v10  ;;  %v1235_v56 = vperm.slane %v1105_v4, 0  ;;  %v1236_v6 = vperm.slane %v1105_v4, 1 }
 0x3de   : > { %7542 = vmatpush.bf16.msrb.mxu0 %v10911_v29  ;;  %7555 = vmatpush.bf16.msrb.mxu1 %v10915_v16  ;;  %v8352_v29 = vld [vmem:[%s12222_s5 + $0x3f0] sm:$0xf0]  ;;  %v8358_v16 = vld [vmem:[%s12222_s5 + $0x1f8] sm:$0xf]  ;;  %s7721_s5 = scalar_lea.sflag [#allocation4], %s12218_s19 }
 0x3df   : > { %7568 = vmatpush.bf16.msrb.mxu2 %v10919_v30  ;;  %7581 = vmatpush.bf16.msrb.mxu3 %v10923_v33  ;;  %v8351_v30 = vor.u32 %v11188_v8, %v8350_v24  ;;  %v8355_v33 = vor.u32 %v11124_v25, %v8352_v29  ;;  %v8359_v34 = vor.u32 %v11189_v27, %v8358_v16  ;;  %v1239_v24 = vperm.slane %v1105_v4, 4 }
 0x3e0   : > { %v1240_v8 = vperm.slane %v1105_v4, 5  ;;  %v1241_v16 = vperm.slane %v1105_v4, 6  ;;  %v1242_v27 = vperm.slane %v1105_v4, 7 }
 0x3e2   : > { %7543 = vmatpush.bf16.msrb.mxu0 %v10399_v26  ;;  %7556 = vmatpush.bf16.msrb.mxu1 %v10403_v41 }
 0x3e3   : > { %7569 = vmatpush.bf16.msrb.mxu2 %v10407_v32  ;;  %7582 = vmatpush.bf16.msrb.mxu3 %v10411_v48 }
 0x3e6   : > { %7544 = vmatpush.bf16.msrb.mxu0 %v9887_v53  ;;  %7557 = vmatpush.bf16.msrb.mxu1 %v9891_v59  ;;  %v7289_v26 = vpop.f32.mrf.mxu0  ;;  %v7302_v39 = vpop.f32.mrf.mxu1  ;;  %v1233_v59 = vperm.slane %v1104_v19, 6 }
 0x3e7   : > { %7570 = vmatpush.bf16.msrb.mxu2 %v9895_v62  ;;  %7583 = vmatpush.bf16.msrb.mxu3 %v9899_v49  ;;  %v7290_v40 = vadd.f32 %v7289_v26, %v1227_v36  ;;  %v7303_v41 = vadd.f32 %v7302_v39, %v1228_v37  ;;  %v1106_v37 = vld [vmem:[%s12230_s26 + $0x78] sm:$0xff]  ;;  %s11053_s26 = sshll.u32 (%p12116_p9), %s12089_s16, 7 }
 0x3e8   : > { %v1243_v26 = vperm.slane %v1106_v37, 0  ;;  %v1244_v39 = vperm.slane %v1106_v37, 1  ;;  %s7729_s17 = ssub.s32 (%p12116_p9), 981, %s11053_s26 }
 0x3e9   : > { %7696 = vst [vmem:[%s12635_s11 + $0x340] sm:$0xff] %v7290_v40  ;;  %p7730_p6 = scmp.lt.s32.totalorder (%p12116_p9), %s7729_s17, 128 }
 0x3ea   : > { %7545 = vmatpush.bf16.msrb.mxu0 %v9375_v7  ;;  %7558 = vmatpush.bf16.msrb.mxu1 %v9379_v9  ;;  %7697 = vst [vmem:[%s12635_s11 + $0x348] sm:$0xff] %v7303_v41 }
 0x3eb   : > { %7571 = vmatpush.bf16.msrb.mxu2 %v9383_v12  ;;  %7584 = vmatpush.bf16.msrb.mxu3 %v9387_v13  ;;  %v1237_v12 = vperm.slane %v1105_v4, 2  ;;  %v1238_v13 = vperm.slane %v1105_v4, 3 }
 0x3ee   : > { %7546 = vmatpush.bf16.msrb.mxu0 %v8863_v5  ;;  %7559 = vmatpush.bf16.msrb.mxu1 %v8867_v21  ;;  %v7291_v48 = vpop.f32.mrf.mxu0  ;;  %v7304_v50 = vpop.f32.mrf.mxu1 }
 0x3ef   : > { %7572 = vmatpush.bf16.msrb.mxu2 %v8871_v28  ;;  %7585 = vmatpush.bf16.msrb.mxu3 %v8875_v23  ;;  %v7315_v45 = vpop.f32.mrf.mxu2  ;;  %v7328_v46 = vpop.f32.mrf.mxu3 }
 0x3f0   : > { %v7316_v47 = vadd.f32 %v7315_v45, %v1229_v42  ;;  %v7329_v32 = vadd.f32 %v7328_v46, %v1230_v43  ;;  %v1245_v45 = vperm.slane %v1106_v37, 2  ;;  %v1246_v46 = vperm.slane %v1106_v37, 3 }
 0x3f2   : > { %7547 = vmatpush.bf16.msrb.mxu0 %v8351_v30  ;;  %7560 = vmatpush.bf16.msrb.mxu1 %v8355_v33  ;;  %7698 = vst [vmem:[%s12635_s11 + $0x350] sm:$0xff] %v7316_v47 }
 0x3f3   : > { %7573 = vmatpush.bf16.msrb.mxu2 %v8359_v34  ;;  %7586 = vmatpush.bf16.msrb.mxu3 %v8363_v22  ;;  %7699 = vst [vmem:[%s12635_s11 + $0x358] sm:$0xff] %v7329_v32 }
 0x3f5   : > { %11048 = vmatmul.msk.bf16.vlgmr.msrb.gmra.mxu0 %vm5539_vm1, %v14389_v63  ;;  %11049 = vmatmul.msk.bf16.vlgmr.msrb.gmra.mxu1 %vm5539_vm1, %v14389_v63 }
 0x3f6   : > { %11050 = vmatmul.msk.bf16.vlgmr.msrb.gmra.mxu2 %vm5539_vm1, %v14389_v63  ;;  %11051 = vmatmul.msk.bf16.vlgmr.msrb.gmra.mxu3 %vm5539_vm1, %v14389_v63 }
 0x3f7   : > { %v7317_v35 = vpop.f32.mrf.mxu2  ;;  %v7330_v51 = vpop.f32.mrf.mxu3 }
 0x402   : > { %v7341_v55 = vpop.f32.mrf.mxu0  ;;  %v7354_v58 = vpop.f32.mrf.mxu1 }
 0x403   : > { %v7342_v63 = vadd.f32 %v7341_v55, %v1231_v54  ;;  %v7355_v53 = vadd.f32 %v7354_v58, %v1232_v38  ;;  %v1247_v55 = vperm.slane %v1106_v37, 4  ;;  %v1248_v58 = vperm.slane %v1106_v37, 5 }
 0x405   : > { %7700 = vst [vmem:[%s12635_s11 + $0x360] sm:$0xff] %v7342_v63 }
 0x406   : > { %7701 = vst [vmem:[%s12635_s11 + $0x368] sm:$0xff] %v7355_v53 }
 0x40a   : > { %v7343_v0 = vpop.f32.mrf.mxu0  ;;  %v7356_v1 = vpop.f32.mrf.mxu1 }
 0x40b   : > { %v7367_v57 = vpop.f32.mrf.mxu2  ;;  %v7380_v62 = vpop.f32.mrf.mxu3 }
 0x40c   : > { %v7368_v49 = vadd.f32 %v7367_v57, %v1233_v59  ;;  %v7381_v60 = vadd.f32 %v7380_v62, %v1234_v61  ;;  %v1249_v57 = vperm.slane %v1106_v37, 6  ;;  %v1250_v62 = vperm.slane %v1106_v37, 7 }
 0x40e   : > { %7702 = vst [vmem:[%s12635_s11 + $0x370] sm:$0xff] %v7368_v49 }
 0x40f   : > { %7703 = vst [vmem:[%s12635_s11 + $0x378] sm:$0xff] %v7381_v60 }
 0x413   : > { %v7369_v52 = vpop.f32.mrf.mxu2  ;;  %v7382_v3 = vpop.f32.mrf.mxu3 }
 0x41e   : > { %v7393_v7 = vpop.f32.mrf.mxu0  ;;  %v7406_v9 = vpop.f32.mrf.mxu1 }
 0x41f   : > { %v7394_v10 = vadd.f32 %v7393_v7, %v1235_v56  ;;  %v7407_v11 = vadd.f32 %v7406_v9, %v1236_v6 }
 0x421   : > { %7704 = vst [vmem:[%s12635_s11 + $0x380] sm:$0xff] %v7394_v10 }
 0x422   : > { %7705 = vst [vmem:[%s12635_s11 + $0x388] sm:$0xff] %v7407_v11 }
 0x426   : > { %v7395_v18 = vpop.f32.mrf.mxu0  ;;  %v7408_v20 = vpop.f32.mrf.mxu1 }
 0x427   : > { %v7419_v14 = vpop.f32.mrf.mxu2  ;;  %v7432_v15 = vpop.f32.mrf.mxu3 }
 0x428   : > { %v7420_v17 = vadd.f32 %v7419_v14, %v1237_v12  ;;  %v7433_v2 = vadd.f32 %v7432_v15, %v1238_v13 }
 0x42a   : > { %7706 = vst [vmem:[%s12635_s11 + $0x390] sm:$0xff] %v7420_v17 }
 0x42b   : > { %7707 = vst [vmem:[%s12635_s11 + $0x398] sm:$0xff] %v7433_v2 }
 0x42f   : > { %v7421_v5 = vpop.f32.mrf.mxu2  ;;  %v7434_v21 = vpop.f32.mrf.mxu3 }
 0x43a   : > { %v7445_v25 = vpop.f32.mrf.mxu0  ;;  %v7458_v28 = vpop.f32.mrf.mxu1 }
 0x43b   : > { %v7446_v23 = vadd.f32 %v7445_v25, %v1239_v24  ;;  %v7459_v29 = vadd.f32 %v7458_v28, %v1240_v8 }
 0x43d   : > { %7708 = vst [vmem:[%s12635_s11 + $0x3a0] sm:$0xff] %v7446_v23 }
 0x43e   : > { %7709 = vst [vmem:[%s12635_s11 + $0x3a8] sm:$0xff] %v7459_v29 }
 0x442   : > { %v7447_v33 = vpop.f32.mrf.mxu0  ;;  %v7460_v34 = vpop.f32.mrf.mxu1 }
 0x443   : > { %v7471_v44 = vpop.f32.mrf.mxu2  ;;  %v7484_v31 = vpop.f32.mrf.mxu3 }
 0x444   : > { %v7472_v19 = vadd.f32 %v7471_v44, %v1241_v16  ;;  %v7485_v30 = vadd.f32 %v7484_v31, %v1242_v27 }
 0x446   : > { %7710 = vst [vmem:[%s12635_s11 + $0x3b0] sm:$0xff] %v7472_v19 }
 0x447   : > { %7711 = vst [vmem:[%s12635_s11 + $0x3b8] sm:$0xff] %v7485_v30 }
 0x44b   : > { %v7473_v22 = vpop.f32.mrf.mxu2  ;;  %v7486_v36 = vpop.f32.mrf.mxu3 }
 0x456   : > { %v7497_v40 = vpop.f32.mrf.mxu0  ;;  %v7510_v41 = vpop.f32.mrf.mxu1 }
 0x457   : > { %v7498_v42 = vadd.f32 %v7497_v40, %v1243_v26  ;;  %v7511_v43 = vadd.f32 %v7510_v41, %v1244_v39 }
 0x459   : > { %7712 = vst [vmem:[%s12635_s11 + $0x3c0] sm:$0xff] %v7498_v42 }
 0x45a   : > { %7713 = vst [vmem:[%s12635_s11 + $0x3c8] sm:$0xff] %v7511_v43 }
 0x45e   : > { %v7499_v35 = vpop.f32.mrf.mxu0  ;;  %v7512_v51 = vpop.f32.mrf.mxu1 }
 0x45f   : > { %v7523_v47 = vpop.f32.mrf.mxu2  ;;  %v7536_v32 = vpop.f32.mrf.mxu3 }
 0x460   : > { %v7524_v48 = vadd.f32 %v7523_v47, %v1245_v45  ;;  %v7537_v50 = vadd.f32 %v7536_v32, %v1246_v46 }
 0x462   : > { %7714 = vst [vmem:[%s12635_s11 + $0x3d0] sm:$0xff] %v7524_v48 }
 0x463   : > { %7715 = vst [vmem:[%s12635_s11 + $0x3d8] sm:$0xff] %v7537_v50 }
 0x467   : > { %v7525_v54 = vpop.f32.mrf.mxu2  ;;  %v7538_v38 = vpop.f32.mrf.mxu3 }
 0x472   : > { %v7549_v63 = vpop.f32.mrf.mxu0  ;;  %v7562_v53 = vpop.f32.mrf.mxu1 }
 0x473   : > { %v7550_v59 = vadd.f32 %v7549_v63, %v1247_v55  ;;  %v7563_v61 = vadd.f32 %v7562_v53, %v1248_v58 }
 0x475   : > { %7716 = vst [vmem:[%s12635_s11 + $0x3e0] sm:$0xff] %v7550_v59 }
 0x476   : > { %7717 = vst [vmem:[%s12635_s11 + $0x3e8] sm:$0xff] %v7563_v61 }
 0x479   : > { %v7575_v49 = vpop.f32.mrf.mxu2  ;;  %v7588_v60 = vpop.f32.mrf.mxu3 }
 0x47a   : > { %v7576_v0 = vadd.f32 %v7575_v49, %v1249_v57  ;;  %v7589_v1 = vadd.f32 %v7588_v60, %v1250_v62  ;;  %v7551_v52 = vpop.f32.mrf.mxu0  ;;  %v7564_v3 = vpop.f32.mrf.mxu1 }
 0x47c   : > { %7718 = vst [vmem:[%s12635_s11 + $0x3f0] sm:$0xff] %v7576_v0 }
 0x47d   : > { %7719 = vst [vmem:[%s12635_s11 + $0x3f8] sm:$0xff] %v7589_v1  ;;  %7727 = sbr.rel (!%p12116_p9) target bundleno = 1184 (0x4a0), region = 44 }
 0x481   : > { %v7577_v4 = vpop.f32.mrf.mxu2  ;;  %v7590_v56 = vpop.f32.mrf.mxu3 }
 0x482   : > { %s14616_s17 = smov (!%p7730_p6, %s7729_s17), 128 }
 0x483   : > { %s11054_s4 = sshll.u32 %s14616_s17, 3 }
 0x484   : > { %s7733_s7 = ssub.s32 1024, %s11054_s4 }
 0x485   : > { %s7734_s29 = sshll.u32 %s7733_s7, 4 }
 0x486   : > { %7735 = vsyncadd %s7721_s5, %s7734_s29  ;;  %p14548_p5 = scmp.ne.s32.totalorder %s11054_s4, 0  ;;  %s11830_s22 = sshll.u32 %s12089_s16, 10 }
 0x487   : > { %s7738_s28 = scalar_lea.hbm %s14596_s3, %s11830_s22  ;;  %s11058_s9 = sshll.u32 %s14616_s17, 7 }
 0x488   : > { %s7741_s30 = sshll.u32 %s12635_s11, 4  ;;  %s7743_s8 = sshll.u32 %s7738_s28, 4  ;;  %s7742_s30 = int_to_ptr.vmem [resolvable:$true] %s7741_s30  ;;  %s7744_s8 = int_to_ptr.hbm [resolvable:$true] %s7743_s8 }
 0x489   : > { %s11960_s23 = sshra.s32 %s7742_s30, 4  ;;  %s11962_s27 = sshrl.u32 %s11058_s9, 4  ;;  %s11961_s23 = int_to_ptr.vmem [resolvable:$true] %s11960_s23 }
 0x48a   : > { %s11967_s10 = scalar_lea.vmem %s11961_s23, %s11962_s27  ;;  %s12047_s26 = smov [#allocation7]  }
 0x48b   : > { %p11968_p9 = scmp.ne.s32.totalorder %s11961_s23, %s11967_s10  ;;  %s11971_s16 = scalar_lea.vmem %s12047_s26, 2048 }
 0x48c   : > { %p11973_p12 = scmp.lt.s32.totalorder %s11971_s16, %s11967_s10 }
 0x48d   : > { %p11969_p8 = pnand %p11968_p9, %p14548_p5 }
 0x48f   : > { %p11970_p11 = pneg %p11969_p8 }
 0x491   : > { %p11975_p0 = pnand %p11973_p12, %p11970_p11 }
 0x493   : > { %11978 = shalt.err (!%p11975_p0)
}
 0x494   : > { %s11979_s4 = sshra.s32 %s7744_s8, 4  ;;  %s11990_s22 = scalar_lea.hbm %s14596_s3, 7848  ;;  %s11980_s4 = int_to_ptr.hbm [resolvable:$true] %s11979_s4 }
 0x495   : > { %s11986_s11 = scalar_lea.hbm %s11980_s4, %s11962_s27  ;;  %p11991_p13 = scmp.lt.s32.totalorder %s11980_s4, %s14596_s3 }
 0x496   : > { %p11987_p1 = scmp.ne.s32.totalorder %s11980_s4, %s11986_s11  ;;  %p11992_p3 = scmp.lt.s32.totalorder %s11990_s22, %s11986_s11 }
 0x498   : > { %p11988_p2 = pnand %p11987_p1, %p14548_p5  ;;  %p11993_p4 = por %p11992_p3, %p11991_p13 }
 0x49a   : > { %p11989_p10 = pneg %p11988_p2 }
 0x49c   : > { %p11994_p7 = pnand %p11993_p4, %p11989_p10 }
 0x49e   : > { %11997 = shalt.err (!%p11994_p7)
}
 0x49f   : > { %7746 = dma.vmem_to_hbm [thread:$0]  (%p14548_p5), %s7742_s30, %s11058_s9, %s7744_s8, %s7721_s5  }
 0x4a0 PF: > { %p11840_p6 = scmp.ge.s32.totalorder %s12041_s15, 2  ;;  %s7755_s28 = sand.u32 1, %s12029_s12  }
 0x4a1   : > { %p14604_p9 = scmp.ne.s32.totalorder %s14600_s25, 0  ;;  %s7756_s23 = scalar_lea.sflag [#allocation4], %s7755_s28 }
 0x4a3   : > { %p11837_p8 = pnand %p11840_p6, %p14604_p9 }
 0x4a5   : > { %p11838_p11 = pneg %p11837_p8 }
 0x4a7   : > { %12024 = dma.done.wait (%p11838_p11), %s7756_s23, 16384  }
 0x4a8   : > { %12026 = vsyncadd (%p11838_p11), %s7756_s23, 4294950912  ;;  %p19_p12 = scmp.ge.s32.totalorder %s12093_s18, 10   ;;  %s14605_s12 = smov %s12033_s13 }
 0x4a9   : > { %s14606_s13 = smov %s12037_s14  ;;  %s14607_s14 = smov %s12105_s21 }
 0x4aa   : > { %s14608_s15 = smov %s12093_s18  ;;  %21 = sbr.rel (!%p19_p12) target bundleno = 7 (0x7), region = 90 }
 0x4af   :  { %7762 = vsyncpa [#allocation3], 1 }
 0x4b0   :  { %7764 = vsyncpa [#allocation3 + $0x1], 1 }
 0x4b1   :  { %7765 = vsyncpa [#allocation6], 1 }
 0x4b2   :  { %7767 = vsyncpa [#allocation6 + $0x1], 1 }
 0x4b3   :  { %7768 = vsyncpa [#allocation4], 1 }
 0x4b4   :  { %7770 = vsyncpa [#allocation4 + $0x1], 1 }

</bundles_post_ra>
